<compile_context>
chip_gen: v5e
topology: v5e:2x2
jax: 0.10.0
libtpu: 0.0.40
codegen_flags: <defaults>
</compile_context>

<pallas_src>
from functools import partial

import jax
import jax.numpy as jnp
import numpy as np
from jax.experimental import pallas as pl
from jax.experimental.pallas import tpu as pltpu

BN_EPS = 1e-5
C_LANE = 128   # MXU contraction / output lane width
PADW = 8       # W halo: keeps the big interior (x/h1) stores sublane-aligned


def _round_up(v, m):
    return (v + m - 1) // m * m


def fused_convblock_kernel(x_ref, w1_ref, bn1_ref, w2_ref, bn2_ref,
                           o_ref, pad_ref, p_ref, *, cout):
    """Fused (conv3x3 -> BN(train) -> ReLU) x 2 with im2col tap packing.

    x_ref   : (N, H, W, Cin)            NHWC input, f32 (Cin = 4 real lanes)
    w*_ref  : (128, 128)                packed weights: rows (kh*3+kw)*cin+ci, cols cout (zero-padded)
    bn*_ref : (2, 128)                  row 0 = gamma, row 1 = beta (zero-padded lanes)
    o_ref   : (N, C8, H*W)              lane-dense compact output (C8 = cout rounded up to 8)
    pad_ref : (N, H+2, W+2*PADW, C8)    small halo'd activation scratch (both stages)
    p_ref   : (N, H, W, 128)            im2col patch matrix scratch (both stages)
    """
    n, h, w, cin1 = x_ref.shape
    c8 = pad_ref.shape[-1]
    lanes = p_ref.shape[-1]
    rows = n * h * w

    # ---- one-time scratch init --------------------------------------------
    # p_ref: lanes >= 9*cin must be zero so the zero weight rows multiply real
    # zeros, not stale VMEM (0 * NaN = NaN).  One dense unmasked store is
    # simpler/cheaper than lane-masked zeroing of just the 92 padding lanes;
    # the active lanes are overwritten by the per-tap stores below.
    p_ref[...] = jnp.zeros_like(p_ref)
    # pad_ref: zero ONLY the 1-pixel halo the tap reads actually touch; the
    # interior is fully overwritten by x / h1 each stage (review item).
    zrow = jnp.zeros((n, 1, w + 2, c8), jnp.float32)
    zcol = jnp.zeros((n, h, 1, c8), jnp.float32)
    pad_ref[:, 0:1, PADW - 1:PADW + w + 1, :] = zrow
    pad_ref[:, h + 1:h + 2, PADW - 1:PADW + w + 1, :] = zrow
    pad_ref[:, 1:h + 1, PADW - 1:PADW, :] = zcol
    pad_ref[:, 1:h + 1, PADW + w:PADW + w + 1, :] = zcol

    def stage(cin, w_ref, bn_ref):
        # im2col: P[(n,y,x), (kh*3+kw)*cin + ci] = pad[n, y+kh, x+kw, ci].
        # 9 small masked (cin-lane) staging stores replace the previous 9 full
        # 128-lane matmuls.  kw=0/2 slabs are sublane-misaligned reads of a
        # tiny buffer; accepted (roll would compete with MXU for the XLU slot).
        for kh in range(3):
            for kw in range(3):
                tap = kh * 3 + kw
                c0 = PADW - 1 + kw
                p_ref[:, :, :, tap * cin:(tap + 1) * cin] = \
                    pad_ref[:, kh:kh + h, c0:c0 + w, :cin]

        # ONE (rows,128)x(128,128) f32 MXU matmul for the whole 3x3 conv.
        acc = jnp.dot(p_ref[...].reshape(rows, lanes), w_ref[...],
                      preferred_element_type=jnp.float32)      # (rows, 128)

        # BatchNorm2d (training mode: biased batch stats) + ReLU.
        # Per-channel sum / sum-of-squares in ONE chunked traversal of acc;
        # no full acc*acc temp slab is materialized.
        gamma = bn_ref[0:1, :]
        beta = bn_ref[1:2, :]
        csum = jnp.zeros((1, lanes), jnp.float32)
        csq = jnp.zeros((1, lanes), jnp.float32)
        for r0 in range(0, rows, 64):
            blk = acc[r0:r0 + 64]                              # (64, 128)
            csum = csum + jnp.sum(blk, axis=0, keepdims=True)
            csq = csq + jnp.sum(blk * blk, axis=0, keepdims=True)
        mean = csum * (1.0 / rows)                             # E[conv]
        var = jnp.maximum(csq * (1.0 / rows) - mean * mean, 0.0)
        scale = gamma * jax.lax.rsqrt(var + BN_EPS)            # rsqrt -> EUP slot
        # Conv2d bias cancels exactly against the BN mean subtraction.
        shift = beta - mean * scale
        # Padded output lanes stay exactly 0 (zero weight cols + gamma/beta 0).
        return jnp.maximum(acc * scale + shift, 0.0)           # (rows, 128)

    # ---- stage 1: activation never leaves VMEM -----------------------------
    pad_ref[:, 1:h + 1, PADW:PADW + w, :cin1] = x_ref[...]     # aligned interior write
    h1 = stage(cin1, w1_ref, bn1_ref).reshape(n, h, w, lanes)

    # ---- stage 2 ------------------------------------------------------------
    pad_ref[:, 1:h + 1, PADW:PADW + w, :] = h1[..., :c8]
    y = stage(cout, w2_ref, bn2_ref)                           # (rows, 128)

    # Compact output: (N, C8, H*W).  XLU transpose of each batch's (H*W,128)
    # slab + 8-sublane slice -> 16x less HBM writeback than the padded
    # 128-lane slab, and no wrapper-side transpose.
    for i in range(n):
        o_ref[i] = y[i * h * w:(i + 1) * h * w, :].T[:c8, :]


def pack_params(params):
    """One-time compact packing (outside the jit hot path).

    Per stage: (128,128) im2col weight matrix with rows (kh*3+kw)*cin+ci and
    cols cout (zero-padded), plus a (2,128) [gamma; beta] array.  Zero padding
    of weights/gamma/beta keeps padded lanes exactly zero through conv+BN+ReLU.
    The Conv2d bias is omitted: training-mode BatchNorm subtracts the batch
    mean, so the bias cancels exactly.
    """
    packed = []
    for (w_oihw, _b, gamma, beta) in params:
        cout, cin = int(w_oihw.shape[0]), int(w_oihw.shape[1])
        assert 9 * cin <= C_LANE and cout <= C_LANE, \
            "compact tap packing is sized for small decoder channel counts"
        wt = jnp.transpose(w_oihw, (2, 3, 1, 0)).reshape(9 * cin, cout)
        wt = jnp.pad(wt, ((0, C_LANE - 9 * cin), (0, C_LANE - cout)))
        bn = jnp.stack([jnp.pad(gamma, (0, C_LANE - cout)),
                        jnp.pad(beta, (0, C_LANE - cout))])
        packed.append((wt.astype(jnp.float32), bn.astype(jnp.float32)))
    return tuple(packed)


@partial(jax.jit, static_argnames=("cout",))
def conv_block_forward(x_nchw, packed, *, cout):
    """ConvBlock forward.  x_nchw: (N, Cin, H, W) -> (N, cout, H, W)."""
    n, cin, h, w = x_nchw.shape
    (w1, bn1), (w2, bn2) = packed
    c8 = _round_up(max(cin, cout), 8)

    x = jnp.transpose(x_nchw, (0, 2, 3, 1))                    # NCHW -> NHWC (tiny)

    vmem = pl.BlockSpec(memory_space=pltpu.MemorySpace.VMEM)
    out = pl.pallas_call(
        partial(fused_convblock_kernel, cout=cout),
        out_shape=jax.ShapeDtypeStruct((n, c8, h * w), jnp.float32),
        in_specs=[vmem] * 5,
        out_specs=vmem,
        scratch_shapes=[
            pltpu.VMEM((n, h + 2, w + 2 * PADW, c8), jnp.float32),  # halo'd activation
            pltpu.VMEM((n, h, w, C_LANE), jnp.float32),             # im2col patch matrix
        ],
        # Default scoped VMEM limit is ample here (<2 MiB resident); raise
        # vmem_limit_bytes only when scaling to larger fused spatial tiles.
    )(x, w1, bn1, w2, bn2)

    # (N, C8, H*W) -> (N, cout, H, W): pure reshape + channel slice, no transpose.
    return out.reshape(n, c8, h, w)[:, :cout]


def make_params(key, in_ch, out_ch):
    """Deterministic synthetic parameters matching ConvBlock(in_ch, out_ch)."""
    ks = jax.random.split(key, 8)
    params = []
    cin = in_ch
    for i in range(2):
        w = 0.1 * jax.random.normal(ks[4 * i + 0], (out_ch, cin, 3, 3), jnp.float32)
        b = 0.05 * jax.random.normal(ks[4 * i + 1], (out_ch,), jnp.float32)
        gamma = 1.0 + 0.1 * jax.random.normal(ks[4 * i + 2], (out_ch,), jnp.float32)
        beta = 0.1 * jax.random.normal(ks[4 * i + 3], (out_ch,), jnp.float32)
        params.append((w, b, gamma, beta))
        cin = out_ch
    return params


def reference_forward(x_nchw, params):
    """Pure-JAX (XLA) reference for correctness checking (keeps the conv bias)."""
    x = x_nchw
    for (w_oihw, b, gamma, beta) in params:
        y = jax.lax.conv_general_dilated(
            x, w_oihw, window_strides=(1, 1), padding=((1, 1), (1, 1)),
            dimension_numbers=('NCHW', 'OIHW', 'NCHW'))
        y = y + b[None, :, None, None]
        mean = jnp.mean(y, axis=(0, 2, 3), keepdims=True)
        var = jnp.mean((y - mean) ** 2, axis=(0, 2, 3), keepdims=True)
        y = (y - mean) / jnp.sqrt(var + BN_EPS)
        y = y * gamma[None, :, None, None] + beta[None, :, None, None]
        x = jnp.maximum(y, 0.0)
    return x


if __name__ == "__main__":
    in_ch, out_ch = 4, 8
    N, H, W = 2, 16, 16

    key = jax.random.PRNGKey(0)
    k_x, k_p = jax.random.split(key)
    x = jax.random.normal(k_x, (N, in_ch, H, W), jnp.float32)
    params = make_params(k_p, in_ch, out_ch)
    packed = pack_params(params)          # one-time packing, outside the jit hot path

    out = conv_block_forward(x, packed, cout=out_ch)
    out = jax.block_until_ready(out)

    ref = jax.block_until_ready(reference_forward(x, params))
    assert out.shape == (N, out_ch, H, W), out.shape
    np.testing.assert_allclose(np.asarray(out), np.asarray(ref), rtol=1e-4, atol=1e-4)

    print("KERNEL_OK")
</pallas_src>

<mosaic_0001>
module attributes {stable_mosaic.version = 11 : i64} {
  func.func @fused_convblock_kernel(%arg0: memref<2x16x16x4xf32, #tpu.memory_space<vmem>>, %arg1: memref<128x128xf32, #tpu.memory_space<vmem>>, %arg2: memref<2x128xf32, #tpu.memory_space<vmem>>, %arg3: memref<128x128xf32, #tpu.memory_space<vmem>>, %arg4: memref<2x128xf32, #tpu.memory_space<vmem>>, %arg5: memref<2x8x256xf32, #tpu.memory_space<vmem>>, %arg6: memref<2x18x32x8xf32, #tpu.memory_space<vmem>>, %arg7: memref<2x16x16x128xf32, #tpu.memory_space<vmem>>) attributes {dimension_semantics = [], scalar_prefetch = 0 : i64, scratch_operands = 2 : i64, tpu.core_type = #tpu.core_type<tc>} {
    %cst = arith.constant 0.000000e+00 : f32
    %0 = vector.broadcast %cst : f32 to vector<2x16x16x128xf32>
    %c0 = arith.constant 0 : index
    %c0_0 = arith.constant 0 : index
    %c0_1 = arith.constant 0 : index
    %c0_2 = arith.constant 0 : index
    %1 = vector.load %arg7[%c0, %c0_0, %c0_1, %c0_2] : memref<2x16x16x128xf32, #tpu.memory_space<vmem>>, vector<2x16x16x128xf32>
    tpu.vector_store %arg7[%c0, %c0_0, %c0_1, %c0_2], %0 {strides = array<i32>} : memref<2x16x16x128xf32, #tpu.memory_space<vmem>>, vector<2x16x16x128xf32>,
    %cst_3 = arith.constant 0.000000e+00 : f32
    %2 = vector.broadcast %cst_3 : f32 to vector<2x1x18x8xf32>
    %cst_4 = arith.constant 0.000000e+00 : f32
    %3 = vector.broadcast %cst_4 : f32 to vector<2x16x1x8xf32>
    %c0_5 = arith.constant 0 : index
    %c0_6 = arith.constant 0 : index
    %c7 = arith.constant 7 : index
    %c0_7 = arith.constant 0 : index
    %4 = vector.load %arg6[%c0_5, %c0_6, %c7, %c0_7] : memref<2x18x32x8xf32, #tpu.memory_space<vmem>>, vector<2x1x18x8xf32>
    tpu.vector_store %arg6[%c0_5, %c0_6, %c7, %c0_7], %2 {strides = array<i32>} : memref<2x18x32x8xf32, #tpu.memory_space<vmem>>, vector<2x1x18x8xf32>,
    %c0_8 = arith.constant 0 : index
    %c17 = arith.constant 17 : index
    %c7_9 = arith.constant 7 : index
    %c0_10 = arith.constant 0 : index
    %5 = vector.load %arg6[%c0_8, %c17, %c7_9, %c0_10] : memref<2x18x32x8xf32, #tpu.memory_space<vmem>>, vector<2x1x18x8xf32>
    tpu.vector_store %arg6[%c0_8, %c17, %c7_9, %c0_10], %2 {strides = array<i32>} : memref<2x18x32x8xf32, #tpu.memory_space<vmem>>, vector<2x1x18x8xf32>,
    %c0_11 = arith.constant 0 : index
    %c1 = arith.constant 1 : index
    %c7_12 = arith.constant 7 : index
    %c0_13 = arith.constant 0 : index
    %6 = vector.load %arg6[%c0_11, %c1, %c7_12, %c0_13] : memref<2x18x32x8xf32, #tpu.memory_space<vmem>>, vector<2x16x1x8xf32>
    tpu.vector_store %arg6[%c0_11, %c1, %c7_12, %c0_13], %3 {strides = array<i32>} : memref<2x18x32x8xf32, #tpu.memory_space<vmem>>, vector<2x16x1x8xf32>,
    %c0_14 = arith.constant 0 : index
    %c1_15 = arith.constant 1 : index
    %c24 = arith.constant 24 : index
    %c0_16 = arith.constant 0 : index
    %7 = vector.load %arg6[%c0_14, %c1_15, %c24, %c0_16] : memref<2x18x32x8xf32, #tpu.memory_space<vmem>>, vector<2x16x1x8xf32>
    tpu.vector_store %arg6[%c0_14, %c1_15, %c24, %c0_16], %3 {strides = array<i32>} : memref<2x18x32x8xf32, #tpu.memory_space<vmem>>, vector<2x16x1x8xf32>,
    %c0_17 = arith.constant 0 : index
    %c0_18 = arith.constant 0 : index
    %c0_19 = arith.constant 0 : index
    %c0_20 = arith.constant 0 : index
    %8 = vector.load %arg0[%c0_17, %c0_18, %c0_19, %c0_20] : memref<2x16x16x4xf32, #tpu.memory_space<vmem>>, vector<2x16x16x4xf32>
    %c0_21 = arith.constant 0 : index
    %c1_22 = arith.constant 1 : index
    %c8 = arith.constant 8 : index
    %c0_23 = arith.constant 0 : index
    %9 = vector.load %arg6[%c0_21, %c1_22, %c8, %c0_23] : memref<2x18x32x8xf32, #tpu.memory_space<vmem>>, vector<2x16x16x4xf32>
    tpu.vector_store %arg6[%c0_21, %c1_22, %c8, %c0_23], %8 {strides = array<i32>} : memref<2x18x32x8xf32, #tpu.memory_space<vmem>>, vector<2x16x16x4xf32>,
    %c0_24 = arith.constant 0 : index
    %c0_25 = arith.constant 0 : index
    %c7_26 = arith.constant 7 : index
    %c0_27 = arith.constant 0 : index
    %10 = vector.load %arg6[%c0_24, %c0_25, %c7_26, %c0_27] : memref<2x18x32x8xf32, #tpu.memory_space<vmem>>, vector<2x16x16x4xf32>
    %c0_28 = arith.constant 0 : index
    %c0_29 = arith.constant 0 : index
    %c0_30 = arith.constant 0 : index
    %c0_31 = arith.constant 0 : index
    %11 = vector.load %arg7[%c0_28, %c0_29, %c0_30, %c0_31] : memref<2x16x16x128xf32, #tpu.memory_space<vmem>>, vector<2x16x16x4xf32>
    tpu.vector_store %arg7[%c0_28, %c0_29, %c0_30, %c0_31], %10 {strides = array<i32>} : memref<2x16x16x128xf32, #tpu.memory_space<vmem>>, vector<2x16x16x4xf32>,
    %c0_32 = arith.constant 0 : index
    %c0_33 = arith.constant 0 : index
    %c8_34 = arith.constant 8 : index
    %c0_35 = arith.constant 0 : index
    %12 = vector.load %arg6[%c0_32, %c0_33, %c8_34, %c0_35] : memref<2x18x32x8xf32, #tpu.memory_space<vmem>>, vector<2x16x16x4xf32>
    %c0_36 = arith.constant 0 : index
    %c0_37 = arith.constant 0 : index
    %c0_38 = arith.constant 0 : index
    %c4 = arith.constant 4 : index
    %13 = vector.load %arg7[%c0_36, %c0_37, %c0_38, %c4] : memref<2x16x16x128xf32, #tpu.memory_space<vmem>>, vector<2x16x16x4xf32>
    tpu.vector_store %arg7[%c0_36, %c0_37, %c0_38, %c4], %12 {strides = array<i32>} : memref<2x16x16x128xf32, #tpu.memory_space<vmem>>, vector<2x16x16x4xf32>,
    %c0_39 = arith.constant 0 : index
    %c0_40 = arith.constant 0 : index
    %c9 = arith.constant 9 : index
    %c0_41 = arith.constant 0 : index
    %14 = vector.load %arg6[%c0_39, %c0_40, %c9, %c0_41] : memref<2x18x32x8xf32, #tpu.memory_space<vmem>>, vector<2x16x16x4xf32>
    %c0_42 = arith.constant 0 : index
    %c0_43 = arith.constant 0 : index
    %c0_44 = arith.constant 0 : index
    %c8_45 = arith.constant 8 : index
    %15 = vector.load %arg7[%c0_42, %c0_43, %c0_44, %c8_45] : memref<2x16x16x128xf32, #tpu.memory_space<vmem>>, vector<2x16x16x4xf32>
    tpu.vector_store %arg7[%c0_42, %c0_43, %c0_44, %c8_45], %14 {strides = array<i32>} : memref<2x16x16x128xf32, #tpu.memory_space<vmem>>, vector<2x16x16x4xf32>,
    %c0_46 = arith.constant 0 : index
    %c1_47 = arith.constant 1 : index
    %c7_48 = arith.constant 7 : index
    %c0_49 = arith.constant 0 : index
    %16 = vector.load %arg6[%c0_46, %c1_47, %c7_48, %c0_49] : memref<2x18x32x8xf32, #tpu.memory_space<vmem>>, vector<2x16x16x4xf32>
    %c0_50 = arith.constant 0 : index
    %c0_51 = arith.constant 0 : index
    %c0_52 = arith.constant 0 : index
    %c12 = arith.constant 12 : index
    %17 = vector.load %arg7[%c0_50, %c0_51, %c0_52, %c12] : memref<2x16x16x128xf32, #tpu.memory_space<vmem>>, vector<2x16x16x4xf32>
    tpu.vector_store %arg7[%c0_50, %c0_51, %c0_52, %c12], %16 {strides = array<i32>} : memref<2x16x16x128xf32, #tpu.memory_space<vmem>>, vector<2x16x16x4xf32>,
    %c0_53 = arith.constant 0 : index
    %c1_54 = arith.constant 1 : index
    %c8_55 = arith.constant 8 : index
    %c0_56 = arith.constant 0 : index
    %18 = vector.load %arg6[%c0_53, %c1_54, %c8_55, %c0_56] : memref<2x18x32x8xf32, #tpu.memory_space<vmem>>, vector<2x16x16x4xf32>
    %c0_57 = arith.constant 0 : index
    %c0_58 = arith.constant 0 : index
    %c0_59 = arith.constant 0 : index
    %c16 = arith.constant 16 : index
    %19 = vector.load %arg7[%c0_57, %c0_58, %c0_59, %c16] : memref<2x16x16x128xf32, #tpu.memory_space<vmem>>, vector<2x16x16x4xf32>
    tpu.vector_store %arg7[%c0_57, %c0_58, %c0_59, %c16], %18 {strides = array<i32>} : memref<2x16x16x128xf32, #tpu.memory_space<vmem>>, vector<2x16x16x4xf32>,
    %c0_60 = arith.constant 0 : index
    %c1_61 = arith.constant 1 : index
    %c9_62 = arith.constant 9 : index
    %c0_63 = arith.constant 0 : index
    %20 = vector.load %arg6[%c0_60, %c1_61, %c9_62, %c0_63] : memref<2x18x32x8xf32, #tpu.memory_space<vmem>>, vector<2x16x16x4xf32>
    %c0_64 = arith.constant 0 : index
    %c0_65 = arith.constant 0 : index
    %c0_66 = arith.constant 0 : index
    %c20 = arith.constant 20 : index
    %21 = vector.load %arg7[%c0_64, %c0_65, %c0_66, %c20] : memref<2x16x16x128xf32, #tpu.memory_space<vmem>>, vector<2x16x16x4xf32>
    tpu.vector_store %arg7[%c0_64, %c0_65, %c0_66, %c20], %20 {strides = array<i32>} : memref<2x16x16x128xf32, #tpu.memory_space<vmem>>, vector<2x16x16x4xf32>,
    %c0_67 = arith.constant 0 : index
    %c2 = arith.constant 2 : index
    %c7_68 = arith.constant 7 : index
    %c0_69 = arith.constant 0 : index
    %22 = vector.load %arg6[%c0_67, %c2, %c7_68, %c0_69] : memref<2x18x32x8xf32, #tpu.memory_space<vmem>>, vector<2x16x16x4xf32>
    %c0_70 = arith.constant 0 : index
    %c0_71 = arith.constant 0 : index
    %c0_72 = arith.constant 0 : index
    %c24_73 = arith.constant 24 : index
    %23 = vector.load %arg7[%c0_70, %c0_71, %c0_72, %c24_73] : memref<2x16x16x128xf32, #tpu.memory_space<vmem>>, vector<2x16x16x4xf32>
    tpu.vector_store %arg7[%c0_70, %c0_71, %c0_72, %c24_73], %22 {strides = array<i32>} : memref<2x16x16x128xf32, #tpu.memory_space<vmem>>, vector<2x16x16x4xf32>,
    %c0_74 = arith.constant 0 : index
    %c2_75 = arith.constant 2 : index
    %c8_76 = arith.constant 8 : index
    %c0_77 = arith.constant 0 : index
    %24 = vector.load %arg6[%c0_74, %c2_75, %c8_76, %c0_77] : memref<2x18x32x8xf32, #tpu.memory_space<vmem>>, vector<2x16x16x4xf32>
    %c0_78 = arith.constant 0 : index
    %c0_79 = arith.constant 0 : index
    %c0_80 = arith.constant 0 : index
    %c28 = arith.constant 28 : index
    %25 = vector.load %arg7[%c0_78, %c0_79, %c0_80, %c28] : memref<2x16x16x128xf32, #tpu.memory_space<vmem>>, vector<2x16x16x4xf32>
    tpu.vector_store %arg7[%c0_78, %c0_79, %c0_80, %c28], %24 {strides = array<i32>} : memref<2x16x16x128xf32, #tpu.memory_space<vmem>>, vector<2x16x16x4xf32>,
    %c0_81 = arith.constant 0 : index
    %c2_82 = arith.constant 2 : index
    %c9_83 = arith.constant 9 : index
    %c0_84 = arith.constant 0 : index
    %26 = vector.load %arg6[%c0_81, %c2_82, %c9_83, %c0_84] : memref<2x18x32x8xf32, #tpu.memory_space<vmem>>, vector<2x16x16x4xf32>
    %c0_85 = arith.constant 0 : index
    %c0_86 = arith.constant 0 : index
    %c0_87 = arith.constant 0 : index
    %c32 = arith.constant 32 : index
    %27 = vector.load %arg7[%c0_85, %c0_86, %c0_87, %c32] : memref<2x16x16x128xf32, #tpu.memory_space<vmem>>, vector<2x16x16x4xf32>
    tpu.vector_store %arg7[%c0_85, %c0_86, %c0_87, %c32], %26 {strides = array<i32>} : memref<2x16x16x128xf32, #tpu.memory_space<vmem>>, vector<2x16x16x4xf32>,
    %c0_88 = arith.constant 0 : index
    %c0_89 = arith.constant 0 : index
    %c0_90 = arith.constant 0 : index
    %c0_91 = arith.constant 0 : index
    %28 = vector.load %arg7[%c0_88, %c0_89, %c0_90, %c0_91] : memref<2x16x16x128xf32, #tpu.memory_space<vmem>>, vector<2x16x16x128xf32>
    %29 = vector.shape_cast %28 : vector<2x16x16x128xf32> to vector<512x128xf32>
    %c0_92 = arith.constant 0 : index
    %c0_93 = arith.constant 0 : index
    %30 = vector.load %arg1[%c0_92, %c0_93] : memref<128x128xf32, #tpu.memory_space<vmem>>, vector<128x128xf32>
    %cst_94 = arith.constant dense<0.000000e+00> : vector<512x128xf32>
    %31 = tpu.matmul %29, %30, %cst_94 {dimension_numbers = #tpu.dot_dimension_numbers<[1], [0], [0], [1], [0, 0, 1, 1], [], []>} : vector<512x128xf32>, vector<128x128xf32>, vector<512x128xf32> -> vector<512x128xf32>
    %c0_95 = arith.constant 0 : index
    %c0_96 = arith.constant 0 : index
    %32 = vector.load %arg2[%c0_95, %c0_96] : memref<2x128xf32, #tpu.memory_space<vmem>>, vector<1x128xf32>
    %c1_97 = arith.constant 1 : index
    %c0_98 = arith.constant 0 : index
    %33 = vector.load %arg2[%c1_97, %c0_98] : memref<2x128xf32, #tpu.memory_space<vmem>>, vector<1x128xf32>
    %cst_99 = arith.constant 0.000000e+00 : f32
    %34 = vector.broadcast %cst_99 : f32 to vector<1x128xf32>
    %cst_100 = arith.constant 0.000000e+00 : f32
    %35 = vector.broadcast %cst_100 : f32 to vector<1x128xf32>
    %36 = vector.extract_strided_slice %31 {offsets = [0, 0], sizes = [64, 128], strides = [1, 1]} : vector<512x128xf32> to vector<64x128xf32>
    %cst_101 = arith.constant dense<0.000000e+00> : vector<128xf32>
    %37 = vector.multi_reduction <add>, %36, %cst_101 [0] : vector<64x128xf32> to vector<128xf32>
    %38 = vector.shape_cast %37 : vector<128xf32> to vector<1x128xf32>
    %39 = arith.addf %34, %38 : vector<1x128xf32>
    %40 = arith.mulf %36, %36 : vector<64x128xf32>
    %cst_102 = arith.constant dense<0.000000e+00> : vector<128xf32>
    %41 = vector.multi_reduction <add>, %40, %cst_102 [0] : vector<64x128xf32> to vector<128xf32>
    %42 = vector.shape_cast %41 : vector<128xf32> to vector<1x128xf32>
    %43 = arith.addf %35, %42 : vector<1x128xf32>
    %44 = vector.extract_strided_slice %31 {offsets = [64, 0], sizes = [64, 128], strides = [1, 1]} : vector<512x128xf32> to vector<64x128xf32>
    %cst_103 = arith.constant dense<0.000000e+00> : vector<128xf32>
    %45 = vector.multi_reduction <add>, %44, %cst_103 [0] : vector<64x128xf32> to vector<128xf32>
    %46 = vector.shape_cast %45 : vector<128xf32> to vector<1x128xf32>
    %47 = arith.addf %39, %46 : vector<1x128xf32>
    %48 = arith.mulf %44, %44 : vector<64x128xf32>
    %cst_104 = arith.constant dense<0.000000e+00> : vector<128xf32>
    %49 = vector.multi_reduction <add>, %48, %cst_104 [0] : vector<64x128xf32> to vector<128xf32>
    %50 = vector.shape_cast %49 : vector<128xf32> to vector<1x128xf32>
    %51 = arith.addf %43, %50 : vector<1x128xf32>
    %52 = vector.extract_strided_slice %31 {offsets = [128, 0], sizes = [64, 128], strides = [1, 1]} : vector<512x128xf32> to vector<64x128xf32>
    %cst_105 = arith.constant dense<0.000000e+00> : vector<128xf32>
    %53 = vector.multi_reduction <add>, %52, %cst_105 [0] : vector<64x128xf32> to vector<128xf32>
    %54 = vector.shape_cast %53 : vector<128xf32> to vector<1x128xf32>
    %55 = arith.addf %47, %54 : vector<1x128xf32>
    %56 = arith.mulf %52, %52 : vector<64x128xf32>
    %cst_106 = arith.constant dense<0.000000e+00> : vector<128xf32>
    %57 = vector.multi_reduction <add>, %56, %cst_106 [0] : vector<64x128xf32> to vector<128xf32>
    %58 = vector.shape_cast %57 : vector<128xf32> to vector<1x128xf32>
    %59 = arith.addf %51, %58 : vector<1x128xf32>
    %60 = vector.extract_strided_slice %31 {offsets = [192, 0], sizes = [64, 128], strides = [1, 1]} : vector<512x128xf32> to vector<64x128xf32>
    %cst_107 = arith.constant dense<0.000000e+00> : vector<128xf32>
    %61 = vector.multi_reduction <add>, %60, %cst_107 [0] : vector<64x128xf32> to vector<128xf32>
    %62 = vector.shape_cast %61 : vector<128xf32> to vector<1x128xf32>
    %63 = arith.addf %55, %62 : vector<1x128xf32>
    %64 = arith.mulf %60, %60 : vector<64x128xf32>
    %cst_108 = arith.constant dense<0.000000e+00> : vector<128xf32>
    %65 = vector.multi_reduction <add>, %64, %cst_108 [0] : vector<64x128xf32> to vector<128xf32>
    %66 = vector.shape_cast %65 : vector<128xf32> to vector<1x128xf32>
    %67 = arith.addf %59, %66 : vector<1x128xf32>
    %68 = vector.extract_strided_slice %31 {offsets = [256, 0], sizes = [64, 128], strides = [1, 1]} : vector<512x128xf32> to vector<64x128xf32>
    %cst_109 = arith.constant dense<0.000000e+00> : vector<128xf32>
    %69 = vector.multi_reduction <add>, %68, %cst_109 [0] : vector<64x128xf32> to vector<128xf32>
    %70 = vector.shape_cast %69 : vector<128xf32> to vector<1x128xf32>
    %71 = arith.addf %63, %70 : vector<1x128xf32>
    %72 = arith.mulf %68, %68 : vector<64x128xf32>
    %cst_110 = arith.constant dense<0.000000e+00> : vector<128xf32>
    %73 = vector.multi_reduction <add>, %72, %cst_110 [0] : vector<64x128xf32> to vector<128xf32>
    %74 = vector.shape_cast %73 : vector<128xf32> to vector<1x128xf32>
    %75 = arith.addf %67, %74 : vector<1x128xf32>
    %76 = vector.extract_strided_slice %31 {offsets = [320, 0], sizes = [64, 128], strides = [1, 1]} : vector<512x128xf32> to vector<64x128xf32>
    %cst_111 = arith.constant dense<0.000000e+00> : vector<128xf32>
    %77 = vector.multi_reduction <add>, %76, %cst_111 [0] : vector<64x128xf32> to vector<128xf32>
    %78 = vector.shape_cast %77 : vector<128xf32> to vector<1x128xf32>
    %79 = arith.addf %71, %78 : vector<1x128xf32>
    %80 = arith.mulf %76, %76 : vector<64x128xf32>
    %cst_112 = arith.constant dense<0.000000e+00> : vector<128xf32>
    %81 = vector.multi_reduction <add>, %80, %cst_112 [0] : vector<64x128xf32> to vector<128xf32>
    %82 = vector.shape_cast %81 : vector<128xf32> to vector<1x128xf32>
    %83 = arith.addf %75, %82 : vector<1x128xf32>
    %84 = vector.extract_strided_slice %31 {offsets = [384, 0], sizes = [64, 128], strides = [1, 1]} : vector<512x128xf32> to vector<64x128xf32>
    %cst_113 = arith.constant dense<0.000000e+00> : vector<128xf32>
    %85 = vector.multi_reduction <add>, %84, %cst_113 [0] : vector<64x128xf32> to vector<128xf32>
    %86 = vector.shape_cast %85 : vector<128xf32> to vector<1x128xf32>
    %87 = arith.addf %79, %86 : vector<1x128xf32>
    %88 = arith.mulf %84, %84 : vector<64x128xf32>
    %cst_114 = arith.constant dense<0.000000e+00> : vector<128xf32>
    %89 = vector.multi_reduction <add>, %88, %cst_114 [0] : vector<64x128xf32> to vector<128xf32>
    %90 = vector.shape_cast %89 : vector<128xf32> to vector<1x128xf32>
    %91 = arith.addf %83, %90 : vector<1x128xf32>
    %92 = vector.extract_strided_slice %31 {offsets = [448, 0], sizes = [64, 128], strides = [1, 1]} : vector<512x128xf32> to vector<64x128xf32>
    %cst_115 = arith.constant dense<0.000000e+00> : vector<128xf32>
    %93 = vector.multi_reduction <add>, %92, %cst_115 [0] : vector<64x128xf32> to vector<128xf32>
    %94 = vector.shape_cast %93 : vector<128xf32> to vector<1x128xf32>
    %95 = arith.addf %87, %94 : vector<1x128xf32>
    %96 = arith.mulf %92, %92 : vector<64x128xf32>
    %cst_116 = arith.constant dense<0.000000e+00> : vector<128xf32>
    %97 = vector.multi_reduction <add>, %96, %cst_116 [0] : vector<64x128xf32> to vector<128xf32>
    %98 = vector.shape_cast %97 : vector<128xf32> to vector<1x128xf32>
    %99 = arith.addf %91, %98 : vector<1x128xf32>
    %cst_117 = arith.constant 0.001953125 : f32
    %100 = vector.broadcast %cst_117 : f32 to vector<1x128xf32>
    %101 = arith.mulf %95, %100 : vector<1x128xf32>
    %cst_118 = arith.constant 0.001953125 : f32
    %102 = vector.broadcast %cst_118 : f32 to vector<1x128xf32>
    %103 = arith.mulf %99, %102 : vector<1x128xf32>
    %104 = arith.mulf %101, %101 : vector<1x128xf32>
    %105 = arith.subf %103, %104 : vector<1x128xf32>
    %cst_119 = arith.constant 0.000000e+00 : f32
    %106 = vector.broadcast %cst_119 : f32 to vector<1x128xf32>
    %107 = arith.maximumf %105, %106 : vector<1x128xf32>
    %cst_120 = arith.constant 9.99999974E-6 : f32
    %108 = vector.broadcast %cst_120 : f32 to vector<1x128xf32>
    %109 = arith.addf %107, %108 : vector<1x128xf32>
    %110 = math.rsqrt %109 : vector<1x128xf32>
    %111 = arith.mulf %32, %110 : vector<1x128xf32>
    %112 = arith.mulf %101, %111 : vector<1x128xf32>
    %113 = arith.subf %33, %112 : vector<1x128xf32>
    %114 = vector.broadcast %111 : vector<1x128xf32> to vector<512x128xf32>
    %115 = arith.mulf %31, %114 : vector<512x128xf32>
    %116 = vector.broadcast %113 : vector<1x128xf32> to vector<512x128xf32>
    %117 = arith.addf %115, %116 : vector<512x128xf32>
    %cst_121 = arith.constant 0.000000e+00 : f32
    %118 = vector.broadcast %cst_121 : f32 to vector<512x128xf32>
    %119 = arith.maximumf %117, %118 : vector<512x128xf32>
    %120 = vector.shape_cast %119 : vector<512x128xf32> to vector<2x16x16x128xf32>
    %121 = vector.extract_strided_slice %120 {offsets = [0, 0, 0, 0], sizes = [2, 16, 16, 8], strides = [1, 1, 1, 1]} : vector<2x16x16x128xf32> to vector<2x16x16x8xf32>
    %c0_122 = arith.constant 0 : index
    %c1_123 = arith.constant 1 : index
    %c8_124 = arith.constant 8 : index
    %c0_125 = arith.constant 0 : index
    %122 = vector.load %arg6[%c0_122, %c1_123, %c8_124, %c0_125] : memref<2x18x32x8xf32, #tpu.memory_space<vmem>>, vector<2x16x16x8xf32>
    tpu.vector_store %arg6[%c0_122, %c1_123, %c8_124, %c0_125], %121 {strides = array<i32>} : memref<2x18x32x8xf32, #tpu.memory_space<vmem>>, vector<2x16x16x8xf32>,
    %c0_126 = arith.constant 0 : index
    %c0_127 = arith.constant 0 : index
    %c7_128 = arith.constant 7 : index
    %c0_129 = arith.constant 0 : index
    %123 = vector.load %arg6[%c0_126, %c0_127, %c7_128, %c0_129] : memref<2x18x32x8xf32, #tpu.memory_space<vmem>>, vector<2x16x16x8xf32>
    %c0_130 = arith.constant 0 : index
    %c0_131 = arith.constant 0 : index
    %c0_132 = arith.constant 0 : index
    %c0_133 = arith.constant 0 : index
    %124 = vector.load %arg7[%c0_130, %c0_131, %c0_132, %c0_133] : memref<2x16x16x128xf32, #tpu.memory_space<vmem>>, vector<2x16x16x8xf32>
    tpu.vector_store %arg7[%c0_130, %c0_131, %c0_132, %c0_133], %123 {strides = array<i32>} : memref<2x16x16x128xf32, #tpu.memory_space<vmem>>, vector<2x16x16x8xf32>,
    %c0_134 = arith.constant 0 : index
    %c0_135 = arith.constant 0 : index
    %c8_136 = arith.constant 8 : index
    %c0_137 = arith.constant 0 : index
    %125 = vector.load %arg6[%c0_134, %c0_135, %c8_136, %c0_137] : memref<2x18x32x8xf32, #tpu.memory_space<vmem>>, vector<2x16x16x8xf32>
    %c0_138 = arith.constant 0 : index
    %c0_139 = arith.constant 0 : index
    %c0_140 = arith.constant 0 : index
    %c8_141 = arith.constant 8 : index
    %126 = vector.load %arg7[%c0_138, %c0_139, %c0_140, %c8_141] : memref<2x16x16x128xf32, #tpu.memory_space<vmem>>, vector<2x16x16x8xf32>
    tpu.vector_store %arg7[%c0_138, %c0_139, %c0_140, %c8_141], %125 {strides = array<i32>} : memref<2x16x16x128xf32, #tpu.memory_space<vmem>>, vector<2x16x16x8xf32>,
    %c0_142 = arith.constant 0 : index
    %c0_143 = arith.constant 0 : index
    %c9_144 = arith.constant 9 : index
    %c0_145 = arith.constant 0 : index
    %127 = vector.load %arg6[%c0_142, %c0_143, %c9_144, %c0_145] : memref<2x18x32x8xf32, #tpu.memory_space<vmem>>, vector<2x16x16x8xf32>
    %c0_146 = arith.constant 0 : index
    %c0_147 = arith.constant 0 : index
    %c0_148 = arith.constant 0 : index
    %c16_149 = arith.constant 16 : index
    %128 = vector.load %arg7[%c0_146, %c0_147, %c0_148, %c16_149] : memref<2x16x16x128xf32, #tpu.memory_space<vmem>>, vector<2x16x16x8xf32>
    tpu.vector_store %arg7[%c0_146, %c0_147, %c0_148, %c16_149], %127 {strides = array<i32>} : memref<2x16x16x128xf32, #tpu.memory_space<vmem>>, vector<2x16x16x8xf32>,
    %c0_150 = arith.constant 0 : index
    %c1_151 = arith.constant 1 : index
    %c7_152 = arith.constant 7 : index
    %c0_153 = arith.constant 0 : index
    %129 = vector.load %arg6[%c0_150, %c1_151, %c7_152, %c0_153] : memref<2x18x32x8xf32, #tpu.memory_space<vmem>>, vector<2x16x16x8xf32>
    %c0_154 = arith.constant 0 : index
    %c0_155 = arith.constant 0 : index
    %c0_156 = arith.constant 0 : index
    %c24_157 = arith.constant 24 : index
    %130 = vector.load %arg7[%c0_154, %c0_155, %c0_156, %c24_157] : memref<2x16x16x128xf32, #tpu.memory_space<vmem>>, vector<2x16x16x8xf32>
    tpu.vector_store %arg7[%c0_154, %c0_155, %c0_156, %c24_157], %129 {strides = array<i32>} : memref<2x16x16x128xf32, #tpu.memory_space<vmem>>, vector<2x16x16x8xf32>,
    %c0_158 = arith.constant 0 : index
    %c1_159 = arith.constant 1 : index
    %c8_160 = arith.constant 8 : index
    %c0_161 = arith.constant 0 : index
    %131 = vector.load %arg6[%c0_158, %c1_159, %c8_160, %c0_161] : memref<2x18x32x8xf32, #tpu.memory_space<vmem>>, vector<2x16x16x8xf32>
    %c0_162 = arith.constant 0 : index
    %c0_163 = arith.constant 0 : index
    %c0_164 = arith.constant 0 : index
    %c32_165 = arith.constant 32 : index
    %132 = vector.load %arg7[%c0_162, %c0_163, %c0_164, %c32_165] : memref<2x16x16x128xf32, #tpu.memory_space<vmem>>, vector<2x16x16x8xf32>
    tpu.vector_store %arg7[%c0_162, %c0_163, %c0_164, %c32_165], %131 {strides = array<i32>} : memref<2x16x16x128xf32, #tpu.memory_space<vmem>>, vector<2x16x16x8xf32>,
    %c0_166 = arith.constant 0 : index
    %c1_167 = arith.constant 1 : index
    %c9_168 = arith.constant 9 : index
    %c0_169 = arith.constant 0 : index
    %133 = vector.load %arg6[%c0_166, %c1_167, %c9_168, %c0_169] : memref<2x18x32x8xf32, #tpu.memory_space<vmem>>, vector<2x16x16x8xf32>
    %c0_170 = arith.constant 0 : index
    %c0_171 = arith.constant 0 : index
    %c0_172 = arith.constant 0 : index
    %c40 = arith.constant 40 : index
    %134 = vector.load %arg7[%c0_170, %c0_171, %c0_172, %c40] : memref<2x16x16x128xf32, #tpu.memory_space<vmem>>, vector<2x16x16x8xf32>
    tpu.vector_store %arg7[%c0_170, %c0_171, %c0_172, %c40], %133 {strides = array<i32>} : memref<2x16x16x128xf32, #tpu.memory_space<vmem>>, vector<2x16x16x8xf32>,
    %c0_173 = arith.constant 0 : index
    %c2_174 = arith.constant 2 : index
    %c7_175 = arith.constant 7 : index
    %c0_176 = arith.constant 0 : index
    %135 = vector.load %arg6[%c0_173, %c2_174, %c7_175, %c0_176] : memref<2x18x32x8xf32, #tpu.memory_space<vmem>>, vector<2x16x16x8xf32>
    %c0_177 = arith.constant 0 : index
    %c0_178 = arith.constant 0 : index
    %c0_179 = arith.constant 0 : index
    %c48 = arith.constant 48 : index
    %136 = vector.load %arg7[%c0_177, %c0_178, %c0_179, %c48] : memref<2x16x16x128xf32, #tpu.memory_space<vmem>>, vector<2x16x16x8xf32>
    tpu.vector_store %arg7[%c0_177, %c0_178, %c0_179, %c48], %135 {strides = array<i32>} : memref<2x16x16x128xf32, #tpu.memory_space<vmem>>, vector<2x16x16x8xf32>,
    %c0_180 = arith.constant 0 : index
    %c2_181 = arith.constant 2 : index
    %c8_182 = arith.constant 8 : index
    %c0_183 = arith.constant 0 : index
    %137 = vector.load %arg6[%c0_180, %c2_181, %c8_182, %c0_183] : memref<2x18x32x8xf32, #tpu.memory_space<vmem>>, vector<2x16x16x8xf32>
    %c0_184 = arith.constant 0 : index
    %c0_185 = arith.constant 0 : index
    %c0_186 = arith.constant 0 : index
    %c56 = arith.constant 56 : index
    %138 = vector.load %arg7[%c0_184, %c0_185, %c0_186, %c56] : memref<2x16x16x128xf32, #tpu.memory_space<vmem>>, vector<2x16x16x8xf32>
    tpu.vector_store %arg7[%c0_184, %c0_185, %c0_186, %c56], %137 {strides = array<i32>} : memref<2x16x16x128xf32, #tpu.memory_space<vmem>>, vector<2x16x16x8xf32>,
    %c0_187 = arith.constant 0 : index
    %c2_188 = arith.constant 2 : index
    %c9_189 = arith.constant 9 : index
    %c0_190 = arith.constant 0 : index
    %139 = vector.load %arg6[%c0_187, %c2_188, %c9_189, %c0_190] : memref<2x18x32x8xf32, #tpu.memory_space<vmem>>, vector<2x16x16x8xf32>
    %c0_191 = arith.constant 0 : index
    %c0_192 = arith.constant 0 : index
    %c0_193 = arith.constant 0 : index
    %c64 = arith.constant 64 : index
    %140 = vector.load %arg7[%c0_191, %c0_192, %c0_193, %c64] : memref<2x16x16x128xf32, #tpu.memory_space<vmem>>, vector<2x16x16x8xf32>
    tpu.vector_store %arg7[%c0_191, %c0_192, %c0_193, %c64], %139 {strides = array<i32>} : memref<2x16x16x128xf32, #tpu.memory_space<vmem>>, vector<2x16x16x8xf32>,
    %c0_194 = arith.constant 0 : index
    %c0_195 = arith.constant 0 : index
    %c0_196 = arith.constant 0 : index
    %c0_197 = arith.constant 0 : index
    %141 = vector.load %arg7[%c0_194, %c0_195, %c0_196, %c0_197] : memref<2x16x16x128xf32, #tpu.memory_space<vmem>>, vector<2x16x16x128xf32>
    %142 = vector.shape_cast %141 : vector<2x16x16x128xf32> to vector<512x128xf32>
    %c0_198 = arith.constant 0 : index
    %c0_199 = arith.constant 0 : index
    %143 = vector.load %arg3[%c0_198, %c0_199] : memref<128x128xf32, #tpu.memory_space<vmem>>, vector<128x128xf32>
    %cst_200 = arith.constant dense<0.000000e+00> : vector<512x128xf32>
    %144 = tpu.matmul %142, %143, %cst_200 {dimension_numbers = #tpu.dot_dimension_numbers<[1], [0], [0], [1], [0, 0, 1, 1], [], []>} : vector<512x128xf32>, vector<128x128xf32>, vector<512x128xf32> -> vector<512x128xf32>
    %c0_201 = arith.constant 0 : index
    %c0_202 = arith.constant 0 : index
    %145 = vector.load %arg4[%c0_201, %c0_202] : memref<2x128xf32, #tpu.memory_space<vmem>>, vector<1x128xf32>
    %c1_203 = arith.constant 1 : index
    %c0_204 = arith.constant 0 : index
    %146 = vector.load %arg4[%c1_203, %c0_204] : memref<2x128xf32, #tpu.memory_space<vmem>>, vector<1x128xf32>
    %cst_205 = arith.constant 0.000000e+00 : f32
    %147 = vector.broadcast %cst_205 : f32 to vector<1x128xf32>
    %cst_206 = arith.constant 0.000000e+00 : f32
    %148 = vector.broadcast %cst_206 : f32 to vector<1x128xf32>
    %149 = vector.extract_strided_slice %144 {offsets = [0, 0], sizes = [64, 128], strides = [1, 1]} : vector<512x128xf32> to vector<64x128xf32>
    %cst_207 = arith.constant dense<0.000000e+00> : vector<128xf32>
    %150 = vector.multi_reduction <add>, %149, %cst_207 [0] : vector<64x128xf32> to vector<128xf32>
    %151 = vector.shape_cast %150 : vector<128xf32> to vector<1x128xf32>
    %152 = arith.addf %147, %151 : vector<1x128xf32>
    %153 = arith.mulf %149, %149 : vector<64x128xf32>
    %cst_208 = arith.constant dense<0.000000e+00> : vector<128xf32>
    %154 = vector.multi_reduction <add>, %153, %cst_208 [0] : vector<64x128xf32> to vector<128xf32>
    %155 = vector.shape_cast %154 : vector<128xf32> to vector<1x128xf32>
    %156 = arith.addf %148, %155 : vector<1x128xf32>
    %157 = vector.extract_strided_slice %144 {offsets = [64, 0], sizes = [64, 128], strides = [1, 1]} : vector<512x128xf32> to vector<64x128xf32>
    %cst_209 = arith.constant dense<0.000000e+00> : vector<128xf32>
    %158 = vector.multi_reduction <add>, %157, %cst_209 [0] : vector<64x128xf32> to vector<128xf32>
    %159 = vector.shape_cast %158 : vector<128xf32> to vector<1x128xf32>
    %160 = arith.addf %152, %159 : vector<1x128xf32>
    %161 = arith.mulf %157, %157 : vector<64x128xf32>
    %cst_210 = arith.constant dense<0.000000e+00> : vector<128xf32>
    %162 = vector.multi_reduction <add>, %161, %cst_210 [0] : vector<64x128xf32> to vector<128xf32>
    %163 = vector.shape_cast %162 : vector<128xf32> to vector<1x128xf32>
    %164 = arith.addf %156, %163 : vector<1x128xf32>
    %165 = vector.extract_strided_slice %144 {offsets = [128, 0], sizes = [64, 128], strides = [1, 1]} : vector<512x128xf32> to vector<64x128xf32>
    %cst_211 = arith.constant dense<0.000000e+00> : vector<128xf32>
    %166 = vector.multi_reduction <add>, %165, %cst_211 [0] : vector<64x128xf32> to vector<128xf32>
    %167 = vector.shape_cast %166 : vector<128xf32> to vector<1x128xf32>
    %168 = arith.addf %160, %167 : vector<1x128xf32>
    %169 = arith.mulf %165, %165 : vector<64x128xf32>
    %cst_212 = arith.constant dense<0.000000e+00> : vector<128xf32>
    %170 = vector.multi_reduction <add>, %169, %cst_212 [0] : vector<64x128xf32> to vector<128xf32>
    %171 = vector.shape_cast %170 : vector<128xf32> to vector<1x128xf32>
    %172 = arith.addf %164, %171 : vector<1x128xf32>
    %173 = vector.extract_strided_slice %144 {offsets = [192, 0], sizes = [64, 128], strides = [1, 1]} : vector<512x128xf32> to vector<64x128xf32>
    %cst_213 = arith.constant dense<0.000000e+00> : vector<128xf32>
    %174 = vector.multi_reduction <add>, %173, %cst_213 [0] : vector<64x128xf32> to vector<128xf32>
    %175 = vector.shape_cast %174 : vector<128xf32> to vector<1x128xf32>
    %176 = arith.addf %168, %175 : vector<1x128xf32>
    %177 = arith.mulf %173, %173 : vector<64x128xf32>
    %cst_214 = arith.constant dense<0.000000e+00> : vector<128xf32>
    %178 = vector.multi_reduction <add>, %177, %cst_214 [0] : vector<64x128xf32> to vector<128xf32>
    %179 = vector.shape_cast %178 : vector<128xf32> to vector<1x128xf32>
    %180 = arith.addf %172, %179 : vector<1x128xf32>
    %181 = vector.extract_strided_slice %144 {offsets = [256, 0], sizes = [64, 128], strides = [1, 1]} : vector<512x128xf32> to vector<64x128xf32>
    %cst_215 = arith.constant dense<0.000000e+00> : vector<128xf32>
    %182 = vector.multi_reduction <add>, %181, %cst_215 [0] : vector<64x128xf32> to vector<128xf32>
    %183 = vector.shape_cast %182 : vector<128xf32> to vector<1x128xf32>
    %184 = arith.addf %176, %183 : vector<1x128xf32>
    %185 = arith.mulf %181, %181 : vector<64x128xf32>
    %cst_216 = arith.constant dense<0.000000e+00> : vector<128xf32>
    %186 = vector.multi_reduction <add>, %185, %cst_216 [0] : vector<64x128xf32> to vector<128xf32>
    %187 = vector.shape_cast %186 : vector<128xf32> to vector<1x128xf32>
    %188 = arith.addf %180, %187 : vector<1x128xf32>
    %189 = vector.extract_strided_slice %144 {offsets = [320, 0], sizes = [64, 128], strides = [1, 1]} : vector<512x128xf32> to vector<64x128xf32>
    %cst_217 = arith.constant dense<0.000000e+00> : vector<128xf32>
    %190 = vector.multi_reduction <add>, %189, %cst_217 [0] : vector<64x128xf32> to vector<128xf32>
    %191 = vector.shape_cast %190 : vector<128xf32> to vector<1x128xf32>
    %192 = arith.addf %184, %191 : vector<1x128xf32>
    %193 = arith.mulf %189, %189 : vector<64x128xf32>
    %cst_218 = arith.constant dense<0.000000e+00> : vector<128xf32>
    %194 = vector.multi_reduction <add>, %193, %cst_218 [0] : vector<64x128xf32> to vector<128xf32>
    %195 = vector.shape_cast %194 : vector<128xf32> to vector<1x128xf32>
    %196 = arith.addf %188, %195 : vector<1x128xf32>
    %197 = vector.extract_strided_slice %144 {offsets = [384, 0], sizes = [64, 128], strides = [1, 1]} : vector<512x128xf32> to vector<64x128xf32>
    %cst_219 = arith.constant dense<0.000000e+00> : vector<128xf32>
    %198 = vector.multi_reduction <add>, %197, %cst_219 [0] : vector<64x128xf32> to vector<128xf32>
    %199 = vector.shape_cast %198 : vector<128xf32> to vector<1x128xf32>
    %200 = arith.addf %192, %199 : vector<1x128xf32>
    %201 = arith.mulf %197, %197 : vector<64x128xf32>
    %cst_220 = arith.constant dense<0.000000e+00> : vector<128xf32>
    %202 = vector.multi_reduction <add>, %201, %cst_220 [0] : vector<64x128xf32> to vector<128xf32>
    %203 = vector.shape_cast %202 : vector<128xf32> to vector<1x128xf32>
    %204 = arith.addf %196, %203 : vector<1x128xf32>
    %205 = vector.extract_strided_slice %144 {offsets = [448, 0], sizes = [64, 128], strides = [1, 1]} : vector<512x128xf32> to vector<64x128xf32>
    %cst_221 = arith.constant dense<0.000000e+00> : vector<128xf32>
    %206 = vector.multi_reduction <add>, %205, %cst_221 [0] : vector<64x128xf32> to vector<128xf32>
    %207 = vector.shape_cast %206 : vector<128xf32> to vector<1x128xf32>
    %208 = arith.addf %200, %207 : vector<1x128xf32>
    %209 = arith.mulf %205, %205 : vector<64x128xf32>
    %cst_222 = arith.constant dense<0.000000e+00> : vector<128xf32>
    %210 = vector.multi_reduction <add>, %209, %cst_222 [0] : vector<64x128xf32> to vector<128xf32>
    %211 = vector.shape_cast %210 : vector<128xf32> to vector<1x128xf32>
    %212 = arith.addf %204, %211 : vector<1x128xf32>
    %cst_223 = arith.constant 0.001953125 : f32
    %213 = vector.broadcast %cst_223 : f32 to vector<1x128xf32>
    %214 = arith.mulf %208, %213 : vector<1x128xf32>
    %cst_224 = arith.constant 0.001953125 : f32
    %215 = vector.broadcast %cst_224 : f32 to vector<1x128xf32>
    %216 = arith.mulf %212, %215 : vector<1x128xf32>
    %217 = arith.mulf %214, %214 : vector<1x128xf32>
    %218 = arith.subf %216, %217 : vector<1x128xf32>
    %cst_225 = arith.constant 0.000000e+00 : f32
    %219 = vector.broadcast %cst_225 : f32 to vector<1x128xf32>
    %220 = arith.maximumf %218, %219 : vector<1x128xf32>
    %cst_226 = arith.constant 9.99999974E-6 : f32
    %221 = vector.broadcast %cst_226 : f32 to vector<1x128xf32>
    %222 = arith.addf %220, %221 : vector<1x128xf32>
    %223 = math.rsqrt %222 : vector<1x128xf32>
    %224 = arith.mulf %145, %223 : vector<1x128xf32>
    %225 = arith.mulf %214, %224 : vector<1x128xf32>
    %226 = arith.subf %146, %225 : vector<1x128xf32>
    %227 = vector.broadcast %224 : vector<1x128xf32> to vector<512x128xf32>
    %228 = arith.mulf %144, %227 : vector<512x128xf32>
    %229 = vector.broadcast %226 : vector<1x128xf32> to vector<512x128xf32>
    %230 = arith.addf %228, %229 : vector<512x128xf32>
    %cst_227 = arith.constant 0.000000e+00 : f32
    %231 = vector.broadcast %cst_227 : f32 to vector<512x128xf32>
    %232 = arith.maximumf %230, %231 : vector<512x128xf32>
    %233 = vector.extract_strided_slice %232 {offsets = [0, 0], sizes = [256, 128], strides = [1, 1]} : vector<512x128xf32> to vector<256x128xf32>
    %234 = tpu.transpose %233, [1, 0] : vector<256x128xf32> -> vector<128x256xf32>
    %235 = vector.extract_strided_slice %234 {offsets = [0, 0], sizes = [8, 256], strides = [1, 1]} : vector<128x256xf32> to vector<8x256xf32>
    %c0_228 = arith.constant 0 : index
    %c0_229 = arith.constant 0 : index
    %c0_230 = arith.constant 0 : index
    %236 = vector.load %arg5[%c0_228, %c0_229, %c0_230] : memref<2x8x256xf32, #tpu.memory_space<vmem>>, vector<1x8x256xf32>
    %237 = vector.shape_cast %236 : vector<1x8x256xf32> to vector<8x256xf32>
    %238 = vector.shape_cast %235 : vector<8x256xf32> to vector<1x8x256xf32>
    tpu.vector_store %arg5[%c0_228, %c0_229, %c0_230], %238 {strides = array<i32>} : memref<2x8x256xf32, #tpu.memory_space<vmem>>, vector<1x8x256xf32>,
    %239 = vector.extract_strided_slice %232 {offsets = [256, 0], sizes = [256, 128], strides = [1, 1]} : vector<512x128xf32> to vector<256x128xf32>
    %240 = tpu.transpose %239, [1, 0] : vector<256x128xf32> -> vector<128x256xf32>
    %241 = vector.extract_strided_slice %240 {offsets = [0, 0], sizes = [8, 256], strides = [1, 1]} : vector<128x256xf32> to vector<8x256xf32>
    %c1_231 = arith.constant 1 : index
    %c0_232 = arith.constant 0 : index
    %c0_233 = arith.constant 0 : index
    %242 = vector.load %arg5[%c1_231, %c0_232, %c0_233] : memref<2x8x256xf32, #tpu.memory_space<vmem>>, vector<1x8x256xf32>
    %243 = vector.shape_cast %242 : vector<1x8x256xf32> to vector<8x256xf32>
    %244 = vector.shape_cast %241 : vector<8x256xf32> to vector<1x8x256xf32>
    tpu.vector_store %arg5[%c1_231, %c0_232, %c0_233], %244 {strides = array<i32>} : memref<2x8x256xf32, #tpu.memory_space<vmem>>, vector<1x8x256xf32>,
    return
  }
}

</mosaic_0001>

<bundles_post_ra>
// kernel: conv_block_forward.1
= control target key start
LH: loop header
LB: loop body
LE: loop exit
PB: predicated region body
PF: predicated region fallthrough
CT: control target
= control target key end

     0   :  { %vm84_vm0 = vcmask 64512   ;;  %v8549_v0 = vmov 0.0   ;;  %s8550_s18 = smov 4   ;;  %vm229_vm1 = vcmask 31744   ;;  %vm87_vm2 = vcmask 58368   ;;  %s8551_s14 = smov 8   ;;  %s13138_s0 = inlined_call_operand.vmem [shape: f32[2,16,16,4], index: 0, kind: input, shape index: {}]   ;;  %s13139_s1 = inlined_call_operand.vmem [shape: f32[128,128], index: 1, kind: input, shape index: {}]   ;;  %s13140_s2 = inlined_call_operand.vmem [shape: f32[2,128], index: 2, kind: input, shape index: {}]   ;;  %s13141_s3 = inlined_call_operand.vmem [shape: f32[128,128], index: 3, kind: input, shape index: {}]   ;;  %s13142_s4 = inlined_call_operand.vmem [shape: f32[2,128], index: 4, kind: input, shape index: {}]   ;;  %s13143_s5 = inlined_call_operand.vmem [shape: f32[2,8,256], index: 5, kind: output, shape index: {}]  }
   0x1   :  { %85 = vst.msk [vmem:[#allocation2 + $0x7] sm:$0xff] %vm84_vm0, %v8549_v0  ;;  %v165_v2 = vld [vmem:[%s13138_s0] sm:$0xff]  ;;  %v166_v3 = vld [vmem:[%s13138_s0 + $0x8] sm:$0xff]  ;;  %v172_v6 = vld [vmem:[%s13138_s0 + $0x38] sm:$0xff]  ;;  %vm742_vm3 = vcmask 64544   ;;  %vm100_vm4 = vcmask 57344  }
   0x2   :  { %86 = vst.msk [vmem:[#allocation2 + $0xf] sm:$0xff] %vm84_vm0, %v8549_v0  ;;  %v169_v4 = vld [vmem:[%s13138_s0 + $0x20] sm:$0xff]  ;;  %v170_v5 = vld [vmem:[%s13138_s0 + $0x28] sm:$0xff]  ;;  %v175_v9 = vld [vmem:[%s13138_s0 + $0x50] sm:$0xff]  ;;  %vm1127_vm5 = vcmask 97344   ;;  %vm1512_vm6 = vcmask 130144  }
   0x3   :  { %20 = vst [vmem:[#allocation3] sm:$0xff] %v8549_v0  ;;  %v173_v7 = vld [vmem:[%s13138_s0 + $0x40] sm:$0xff]  ;;  %v167_v11 = vld [vmem:[%s13138_s0 + $0x10] sm:$0xff]  ;;  %v176_v12 = vld [vmem:[%s13138_s0 + $0x58] sm:$0xff]  ;;  %vm1897_vm7 = vcmask 162944   ;;  %s8554_s28 = smov 20  }
   0x4   :  { %21 = vst [vmem:[#allocation3 + $0x8] sm:$0xff] %v8549_v0  ;;  %v178_v13 = vld [vmem:[%s13138_s0 + $0x68] sm:$0xff]  ;;  %v168_v14 = vld [vmem:[%s13138_s0 + $0x18] sm:$0xff]  ;;  %v179_v15 = vld [vmem:[%s13138_s0 + $0x70] sm:$0xff]  ;;  %vm2282_vm8 = vcmask 195744   ;;  %s8555_s29 = smov 24  }
   0x5   :  { %22 = vst [vmem:[#allocation3 + $0x10] sm:$0xff] %v8549_v0  ;;  %v181_v18 = vld [vmem:[%s13138_s0 + $0x80] sm:$0xff]  ;;  %v171_v19 = vld [vmem:[%s13138_s0 + $0x30] sm:$0xff]  ;;  %v182_v20 = vld [vmem:[%s13138_s0 + $0x88] sm:$0xff]  ;;  %vm2668_vm9 = vcmask 228544   ;;  %s8556_s30 = smov 28  }
   0x6   :  { %23 = vst [vmem:[#allocation3 + $0x18] sm:$0xff] %v8549_v0  ;;  %v184_v24 = vld [vmem:[%s13138_s0 + $0x98] sm:$0xff]  ;;  %v174_v25 = vld [vmem:[%s13138_s0 + $0x48] sm:$0xff]  ;;  %v185_v26 = vld [vmem:[%s13138_s0 + $0xa0] sm:$0xff]  ;;  %vm3053_vm10 = vcmask 261344   ;;  %s8557_s6 = smov 32  }
   0x7   :  { %24 = vst [vmem:[#allocation3 + $0x20] sm:$0xff] %v8549_v0  ;;  %v187_v30 = vld [vmem:[%s13138_s0 + $0xb0] sm:$0xff]  ;;  %v177_v31 = vld [vmem:[%s13138_s0 + $0x60] sm:$0xff]  ;;  %v188_v32 = vld [vmem:[%s13138_s0 + $0xb8] sm:$0xff]  ;;  %vm3438_vm11 = vcmask 294144   ;;  %vm4807_vm15 = vcmask 130112  }
   0x8   :  { %25 = vst [vmem:[#allocation3 + $0x28] sm:$0xff] %v8549_v0  ;;  %v190_v36 = vld [vmem:[%s13138_s0 + $0xc8] sm:$0xff]  ;;  %v180_v37 = vld [vmem:[%s13138_s0 + $0x78] sm:$0xff]  ;;  %v191_v38 = vld [vmem:[%s13138_s0 + $0xd0] sm:$0xff] }
   0x9   :  { %v422_v1 = vld [vmem:[#allocation2 + $0x8] sm:$0xff]  ;;  %26 = vst [vmem:[#allocation3 + $0x30] sm:$0xff] %v8549_v0  ;;  %v193_v42 = vld [vmem:[%s13138_s0 + $0xe0] sm:$0xff]  ;;  %v183_v43 = vld [vmem:[%s13138_s0 + $0x90] sm:$0xff] }
   0xa   :  { %550 = vrot.lane.b32.xlu0 %v422_v1, %s8550_s18  ;;  %27 = vst [vmem:[#allocation3 + $0x38] sm:$0xff] %v8549_v0  ;;  %v194_v44 = vld [vmem:[%s13138_s0 + $0xe8] sm:$0xff]  ;;  %v197_v49 = vld [vmem:[%s13138_s0 + $0x100] sm:$0xff]  ;;  %v199_v53 = vld [vmem:[%s13138_s0 + $0x110] sm:$0xff] }
   0xb   :  { %28 = vst [vmem:[#allocation3 + $0x40] sm:$0xff] %v8549_v0  ;;  %v186_v48 = vld [vmem:[%s13138_s0 + $0xa8] sm:$0xff]  ;;  %v189_v54 = vld [vmem:[%s13138_s0 + $0xc0] sm:$0xff]  ;;  %v200_v55 = vld [vmem:[%s13138_s0 + $0x118] sm:$0xff] }
   0xc   :  { %29 = vst [vmem:[#allocation3 + $0x48] sm:$0xff] %v8549_v0  ;;  %v202_v59 = vld [vmem:[%s13138_s0 + $0x128] sm:$0xff]  ;;  %v192_v60 = vld [vmem:[%s13138_s0 + $0xd8] sm:$0xff]  ;;  %v203_v61 = vld [vmem:[%s13138_s0 + $0x130] sm:$0xff] }
   0xd   :  { %30 = vst [vmem:[#allocation3 + $0x50] sm:$0xff] %v8549_v0 }
   0xe   :  { %31 = vst [vmem:[#allocation3 + $0x58] sm:$0xff] %v8549_v0 }
   0xf   :  { %32 = vst [vmem:[#allocation3 + $0x60] sm:$0xff] %v8549_v0 }
  0x10   :  { %33 = vst [vmem:[#allocation3 + $0x68] sm:$0xff] %v8549_v0 }
  0x11   :  { %34 = vst [vmem:[#allocation3 + $0x70] sm:$0xff] %v8549_v0 }
  0x12   :  { %35 = vst [vmem:[#allocation3 + $0x78] sm:$0xff] %v8549_v0 }
  0x13   :  { %36 = vst [vmem:[#allocation3 + $0x80] sm:$0xff] %v8549_v0 }
  0x14   :  { %37 = vst [vmem:[#allocation3 + $0x88] sm:$0xff] %v8549_v0 }
  0x15   :  { %38 = vst [vmem:[#allocation3 + $0x90] sm:$0xff] %v8549_v0 }
  0x16   :  { %39 = vst [vmem:[#allocation3 + $0x98] sm:$0xff] %v8549_v0 }
  0x17   :  { %40 = vst [vmem:[#allocation3 + $0xa0] sm:$0xff] %v8549_v0 }
  0x18   :  { %41 = vst [vmem:[#allocation3 + $0xa8] sm:$0xff] %v8549_v0 }
  0x19   :  { %42 = vst [vmem:[#allocation3 + $0xb0] sm:$0xff] %v8549_v0 }
  0x1a   :  { %43 = vst [vmem:[#allocation3 + $0xb8] sm:$0xff] %v8549_v0 }
  0x1b   :  { %44 = vst [vmem:[#allocation3 + $0xc0] sm:$0xff] %v8549_v0 }
  0x1c   :  { %45 = vst [vmem:[#allocation3 + $0xc8] sm:$0xff] %v8549_v0 }
  0x1d   :  { %46 = vst [vmem:[#allocation3 + $0xd0] sm:$0xff] %v8549_v0 }
  0x1e   :  { %47 = vst [vmem:[#allocation3 + $0xd8] sm:$0xff] %v8549_v0 }
  0x1f   :  { %48 = vst [vmem:[#allocation3 + $0xe0] sm:$0xff] %v8549_v0 }
  0x20   :  { %49 = vst [vmem:[#allocation3 + $0xe8] sm:$0xff] %v8549_v0 }
  0x21   :  { %50 = vst [vmem:[#allocation3 + $0xf0] sm:$0xff] %v8549_v0 }
  0x22   :  { %51 = vst [vmem:[#allocation3 + $0xf8] sm:$0xff] %v8549_v0 }
  0x23   :  { %52 = vst [vmem:[#allocation3 + $0x100] sm:$0xff] %v8549_v0 }
  0x24   :  { %53 = vst [vmem:[#allocation3 + $0x108] sm:$0xff] %v8549_v0 }
  0x25   :  { %54 = vst [vmem:[#allocation3 + $0x110] sm:$0xff] %v8549_v0 }
  0x26   :  { %55 = vst [vmem:[#allocation3 + $0x118] sm:$0xff] %v8549_v0 }
  0x27   :  { %56 = vst [vmem:[#allocation3 + $0x120] sm:$0xff] %v8549_v0 }
  0x28   :  { %57 = vst [vmem:[#allocation3 + $0x128] sm:$0xff] %v8549_v0 }
  0x29   :  { %58 = vst [vmem:[#allocation3 + $0x130] sm:$0xff] %v8549_v0 }
  0x2a   :  { %59 = vst [vmem:[#allocation3 + $0x138] sm:$0xff] %v8549_v0 }
  0x2b   :  { %60 = vst [vmem:[#allocation3 + $0x140] sm:$0xff] %v8549_v0 }
  0x2c   :  { %61 = vst [vmem:[#allocation3 + $0x148] sm:$0xff] %v8549_v0 }
  0x2d   :  { %62 = vst [vmem:[#allocation3 + $0x150] sm:$0xff] %v8549_v0 }
  0x2e   :  { %63 = vst [vmem:[#allocation3 + $0x158] sm:$0xff] %v8549_v0 }
  0x2f   :  { %64 = vst [vmem:[#allocation3 + $0x160] sm:$0xff] %v8549_v0 }
  0x30   :  { %65 = vst [vmem:[#allocation3 + $0x168] sm:$0xff] %v8549_v0 }
  0x31   :  { %66 = vst [vmem:[#allocation3 + $0x170] sm:$0xff] %v8549_v0 }
  0x32   :  { %67 = vst [vmem:[#allocation3 + $0x178] sm:$0xff] %v8549_v0 }
  0x33   :  { %68 = vst [vmem:[#allocation3 + $0x180] sm:$0xff] %v8549_v0 }
  0x34   :  { %69 = vst [vmem:[#allocation3 + $0x188] sm:$0xff] %v8549_v0 }
  0x35   :  { %70 = vst [vmem:[#allocation3 + $0x190] sm:$0xff] %v8549_v0 }
  0x36   :  { %71 = vst [vmem:[#allocation3 + $0x198] sm:$0xff] %v8549_v0 }
  0x37   :  { %72 = vst [vmem:[#allocation3 + $0x1a0] sm:$0xff] %v8549_v0 }
  0x38   :  { %73 = vst [vmem:[#allocation3 + $0x1a8] sm:$0xff] %v8549_v0 }
  0x39   :  { %74 = vst [vmem:[#allocation3 + $0x1b0] sm:$0xff] %v8549_v0 }
  0x3a   :  { %75 = vst [vmem:[#allocation3 + $0x1b8] sm:$0xff] %v8549_v0 }
  0x3b   :  { %76 = vst [vmem:[#allocation3 + $0x1c0] sm:$0xff] %v8549_v0 }
  0x3c   :  { %77 = vst [vmem:[#allocation3 + $0x1c8] sm:$0xff] %v8549_v0 }
  0x3d   :  { %78 = vst [vmem:[#allocation3 + $0x1d0] sm:$0xff] %v8549_v0 }
  0x3e   :  { %79 = vst [vmem:[#allocation3 + $0x1d8] sm:$0xff] %v8549_v0 }
  0x3f   :  { %80 = vst [vmem:[#allocation3 + $0x1e0] sm:$0xff] %v8549_v0 }
  0x40   :  { %81 = vst [vmem:[#allocation3 + $0x1e8] sm:$0xff] %v8549_v0 }
  0x41   :  { %82 = vst [vmem:[#allocation3 + $0x1f0] sm:$0xff] %v8549_v0 }
  0x42   :  { %83 = vst [vmem:[#allocation3 + $0x1f8] sm:$0xff] %v8549_v0 }
  0x43   :  { %89 = vst.msk [vmem:[#allocation2 + $0x247] sm:$0xff] %vm84_vm0, %v8549_v0 }
  0x44   :  { %90 = vst.msk [vmem:[#allocation2 + $0x24f] sm:$0xff] %vm84_vm0, %v8549_v0 }
  0x45   :  { %93 = vst.msk [vmem:[#allocation2 + $0x227] sm:$0xff] %vm84_vm0, %v8549_v0 }
  0x46   :  { %94 = vst.msk [vmem:[#allocation2 + $0x22f] sm:$0xff] %vm84_vm0, %v8549_v0 }
  0x47   :  { %96 = vst.msk [vmem:[#allocation2 + $0x467] sm:$0xff] %vm84_vm0, %v8549_v0 }
  0x48   :  { %97 = vst.msk [vmem:[#allocation2 + $0x46f] sm:$0xff] %vm84_vm0, %v8549_v0 }
  0x49   :  { %230 = vst.msk [vmem:[#allocation2 + $0x28] sm:$0xff] %vm229_vm1, %v165_v2  ;;  %v205_v2 = vld [vmem:[%s13138_s0 + $0x140] sm:$0xff] }
  0x4a   :  { %88 = vst.msk [vmem:[#allocation2 + $0x17] sm:$0x3] %vm87_vm2, %v8549_v0 }
  0x4b   :  { %91 = vst.msk [vmem:[#allocation2 + $0x257] sm:$0x3] %vm87_vm2, %v8549_v0 }
  0x4c   :  { %95 = vst.msk [vmem:[#allocation2 + $0x237] sm:$0x3] %vm87_vm2, %v8549_v0 }
  0x4d   :  { %98 = vst.msk [vmem:[#allocation2 + $0x477] sm:$0x3] %vm87_vm2, %v8549_v0  ;;  %vm5962_vm2 = vcmask 326912  }
  0x4e   :  { %231 = vst.msk [vmem:[#allocation2 + $0x30] sm:$0xff] %vm229_vm1, %v166_v3  ;;  %v206_v3 = vld [vmem:[%s13138_s0 + $0x148] sm:$0xff] }
  0x4f   :  { %234 = vst.msk [vmem:[#allocation2 + $0x68] sm:$0xff] %vm229_vm1, %v169_v4 }
  0x50   :  { %v424_v8 = vld [vmem:[#allocation2 + $0x28] sm:$0xff]  ;;  %235 = vst.msk [vmem:[#allocation2 + $0x70] sm:$0xff] %vm229_vm1, %v170_v5 }
  0x51   :  { %554 = vrot.lane.b32.xlu1 %v424_v8, %s8550_s18  ;;  %v423_v10 = vld [vmem:[#allocation2 + $0x10] sm:$0xff]  ;;  %237 = vst.msk [vmem:[#allocation2 + $0x90] sm:$0xff] %vm229_vm1, %v172_v6  ;;  %v198_v8 = vld [vmem:[%s13138_s0 + $0x108] sm:$0xff] }
  0x52   :  { %552 = vrot.lane.b32.xlu0 %v423_v10, %s8550_s18  ;;  %238 = vst.msk [vmem:[#allocation2 + $0xa8] sm:$0xff] %vm229_vm1, %v173_v7  ;;  %v455_v6 = vld [vmem:[#allocation2 + $0x250] sm:$0xff]  ;;  %v208_v7 = vld [vmem:[%s13138_s0 + $0x158] sm:$0xff] }
  0x53   :  { %240 = vst.msk [vmem:[#allocation2 + $0xc8] sm:$0xff] %vm229_vm1, %v175_v9 }
  0x54   :  { %232 = vst.msk [vmem:[#allocation2 + $0x48] sm:$0xff] %vm229_vm1, %v167_v11  ;;  %v294_v11 = vld [vmem:[#allocation2 + $0x7] sm:$0xff] }
  0x55   :  { %241 = vst.msk [vmem:[#allocation2 + $0xd0] sm:$0xff] %vm229_vm1, %v176_v12  ;;  %v425_v16 = vld [vmem:[#allocation2 + $0x30] sm:$0xff] }
  0x56   :  { %243 = vst.msk [vmem:[#allocation2 + $0xf0] sm:$0xff] %vm229_vm1, %v178_v13  ;;  %v428_v17 = vld [vmem:[#allocation2 + $0x68] sm:$0xff] }
  0x57   :  { %233 = vst.msk [vmem:[#allocation2 + $0x50] sm:$0xff] %vm229_vm1, %v168_v14  ;;  %v429_v22 = vld [vmem:[#allocation2 + $0x70] sm:$0xff]  ;;  %v454_v14 = vld [vmem:[#allocation2 + $0x248] sm:$0xff] }
  0x58   :  { %244 = vst.msk [vmem:[#allocation2 + $0x108] sm:$0xff] %vm229_vm1, %v179_v15  ;;  %v431_v23 = vld [vmem:[#allocation2 + $0x90] sm:$0xff] }
  0x59   :  { %556 = vrot.lane.b32.xlu1 %v425_v16, %s8550_s18  ;;  %246 = vst.msk [vmem:[#allocation2 + $0x128] sm:$0xff] %vm229_vm1, %v181_v18  ;;  %v432_v28 = vld [vmem:[#allocation2 + $0xa8] sm:$0xff] }
  0x5a   :  { %562 = vrot.lane.b32.xlu0 %v428_v17, %s8550_s18  ;;  %236 = vst.msk [vmem:[#allocation2 + $0x88] sm:$0xff] %vm229_vm1, %v171_v19  ;;  %v434_v29 = vld [vmem:[#allocation2 + $0xc8] sm:$0xff] }
  0x5b   :  { %v426_v21 = vld [vmem:[#allocation2 + $0x48] sm:$0xff]  ;;  %247 = vst.msk [vmem:[#allocation2 + $0x130] sm:$0xff] %vm229_vm1, %v182_v20 }
  0x5c   :  { %558 = vrot.lane.b32.xlu2 %v426_v21, %s8550_s18  ;;  %249 = vst.msk [vmem:[#allocation2 + $0x150] sm:$0xff] %vm229_vm1, %v184_v24  ;;  %v435_v34 = vld [vmem:[#allocation2 + $0xd0] sm:$0xff] }
  0x5d   :  { %239 = vst.msk [vmem:[#allocation2 + $0xb0] sm:$0xff] %vm229_vm1, %v174_v25  ;;  %v437_v35 = vld [vmem:[#allocation2 + $0xf0] sm:$0xff] }
  0x5e   :  { %v427_v27 = vld [vmem:[#allocation2 + $0x50] sm:$0xff]  ;;  %250 = vst.msk [vmem:[#allocation2 + $0x168] sm:$0xff] %vm229_vm1, %v185_v26 }
  0x5f   :  { %252 = vst.msk [vmem:[#allocation2 + $0x188] sm:$0xff] %vm229_vm1, %v187_v30  ;;  %v438_v40 = vld [vmem:[#allocation2 + $0x108] sm:$0xff] }
  0x60   :  { %242 = vst.msk [vmem:[#allocation2 + $0xe8] sm:$0xff] %vm229_vm1, %v177_v31  ;;  %v440_v41 = vld [vmem:[#allocation2 + $0x128] sm:$0xff] }
  0x61   :  { %564 = vrot.lane.b32.xlu1 %v429_v22, %s8550_s18  ;;  %v430_v33 = vld [vmem:[#allocation2 + $0x88] sm:$0xff]  ;;  %253 = vst.msk [vmem:[#allocation2 + $0x190] sm:$0xff] %vm229_vm1, %v188_v32  ;;  %v209_v32 = vld [vmem:[%s13138_s0 + $0x160] sm:$0xff] }
  0x62   :  { %568 = vrot.lane.b32.xlu0 %v431_v23, %s8550_s18  ;;  %255 = vst.msk [vmem:[#allocation2 + $0x1b0] sm:$0xff] %vm229_vm1, %v190_v36  ;;  %v441_v46 = vld [vmem:[#allocation2 + $0x130] sm:$0xff] }
  0x63   :  { %245 = vst.msk [vmem:[#allocation2 + $0x110] sm:$0xff] %vm229_vm1, %v180_v37  ;;  %v443_v47 = vld [vmem:[#allocation2 + $0x150] sm:$0xff] }
  0x64   :  { %560 = vrot.lane.b32.xlu2 %v427_v27, %s8550_s18  ;;  %v433_v39 = vld [vmem:[#allocation2 + $0xb0] sm:$0xff]  ;;  %256 = vst.msk [vmem:[#allocation2 + $0x1c8] sm:$0xff] %vm229_vm1, %v191_v38 }
  0x65   :  { %258 = vst.msk [vmem:[#allocation2 + $0x1e8] sm:$0xff] %vm229_vm1, %v193_v42  ;;  %v444_v51 = vld [vmem:[#allocation2 + $0x168] sm:$0xff] }
  0x66   :  { %248 = vst.msk [vmem:[#allocation2 + $0x148] sm:$0xff] %vm229_vm1, %v183_v43  ;;  %v446_v52 = vld [vmem:[#allocation2 + $0x188] sm:$0xff] }
  0x67   :  { %v436_v45 = vld [vmem:[#allocation2 + $0xe8] sm:$0xff]  ;;  %259 = vst.msk [vmem:[#allocation2 + $0x1f0] sm:$0xff] %vm229_vm1, %v194_v44 }
  0x68   :  { %251 = vst.msk [vmem:[#allocation2 + $0x170] sm:$0xff] %vm229_vm1, %v186_v48  ;;  %v447_v57 = vld [vmem:[#allocation2 + $0x190] sm:$0xff] }
  0x69   :  { %570 = vrot.lane.b32.xlu1 %v432_v28, %s8550_s18  ;;  %262 = vst.msk [vmem:[#allocation2 + $0x268] sm:$0xff] %vm229_vm1, %v197_v49  ;;  %v449_v58 = vld [vmem:[#allocation2 + $0x1b0] sm:$0xff] }
  0x6a   :  { %574 = vrot.lane.b32.xlu0 %v434_v29, %s8550_s18  ;;  %v439_v50 = vld [vmem:[#allocation2 + $0x110] sm:$0xff]  ;;  %264 = vst.msk [vmem:[#allocation2 + $0x288] sm:$0xff] %vm229_vm1, %v199_v53 }
  0x6b   :  { %254 = vst.msk [vmem:[#allocation2 + $0x1a8] sm:$0xff] %vm229_vm1, %v189_v54  ;;  %v450_v63 = vld [vmem:[#allocation2 + $0x1c8] sm:$0xff] }
  0x6c   :  { %566 = vrot.lane.b32.xlu2 %v430_v33, %s8550_s18  ;;  %265 = vst.msk [vmem:[#allocation2 + $0x290] sm:$0xff] %vm229_vm1, %v200_v55  ;;  %v452_v1 = vld [vmem:[#allocation2 + $0x1e8] sm:$0xff] }
  0x6d   :  { %v442_v56 = vld [vmem:[#allocation2 + $0x148] sm:$0xff]  ;;  %267 = vst.msk [vmem:[#allocation2 + $0x2b0] sm:$0xff] %vm229_vm1, %v202_v59  ;;  %v217_v59 = vld [vmem:[%s13138_s0 + $0x1a0] sm:$0xff] }
  0x6e   :  { %257 = vst.msk [vmem:[#allocation2 + $0x1d0] sm:$0xff] %vm229_vm1, %v192_v60  ;;  %v453_v5 = vld [vmem:[#allocation2 + $0x1f0] sm:$0xff] }
  0x6f   :  { %v445_v62 = vld [vmem:[#allocation2 + $0x170] sm:$0xff]  ;;  %268 = vst.msk [vmem:[#allocation2 + $0x2c8] sm:$0xff] %vm229_vm1, %v203_v61 }
  0x70   :  { %270 = vst.msk [vmem:[#allocation2 + $0x2e8] sm:$0xff] %vm229_vm1, %v205_v2  ;;  %v456_v12 = vld [vmem:[#allocation2 + $0x268] sm:$0xff] }
  0x71   :  { %576 = vrot.lane.b32.xlu1 %v435_v34, %s8550_s18  ;;  %271 = vst.msk [vmem:[#allocation2 + $0x2f0] sm:$0xff] %vm229_vm1, %v206_v3  ;;  %v458_v13 = vld [vmem:[#allocation2 + $0x288] sm:$0xff] }
  0x72   :  { %580 = vrot.lane.b32.xlu0 %v437_v35, %s8550_s18  ;;  %v448_v4 = vld [vmem:[#allocation2 + $0x1a8] sm:$0xff]  ;;  %273 = vst.msk [vmem:[#allocation2 + $0x310] sm:$0xff] %vm229_vm1, %v208_v7 }
  0x73   :  { %263 = vst.msk [vmem:[#allocation2 + $0x270] sm:$0xff] %vm229_vm1, %v198_v8  ;;  %v459_v16 = vld [vmem:[#allocation2 + $0x290] sm:$0xff]  ;;  %v220_v8 = vld [vmem:[%s13138_s0 + $0x1b8] sm:$0xff] }
  0x74   :  { %572 = vrot.lane.b32.xlu2 %v433_v39, %s8550_s18  ;;  %358 = vst.msk [vmem:[#allocation3] sm:$0xff] %vm229_vm1, %v294_v11  ;;  %v461_v17 = vld [vmem:[#allocation2 + $0x2b0] sm:$0xff]  ;;  %v201_v39 = vld [vmem:[%s13138_s0 + $0x120] sm:$0xff]  ;;  %v210_v11 = vld [vmem:[%s13138_s0 + $0x168] sm:$0xff] }
  0x75   :  { %v451_v9 = vld [vmem:[#allocation2 + $0x1d0] sm:$0xff]  ;;  %101 = vst.msk [vmem:[#allocation2 + $0x27] sm:$0x1] %vm100_vm4, %v8549_v0 }
  0x76   :  { %102 = vst.msk [vmem:[#allocation2 + $0x47] sm:$0x1] %vm100_vm4, %v8549_v0  ;;  %v462_v19 = vld [vmem:[#allocation2 + $0x2c8] sm:$0xff] }
  0x77   :  { %103 = vst.msk [vmem:[#allocation2 + $0x67] sm:$0x1] %vm100_vm4, %v8549_v0  ;;  %v464_v20 = vld [vmem:[#allocation2 + $0x2e8] sm:$0xff] }
  0x78   :  { %104 = vst.msk [vmem:[#allocation2 + $0x87] sm:$0x1] %vm100_vm4, %v8549_v0  ;;  %v465_v21 = vld [vmem:[#allocation2 + $0x2f0] sm:$0xff] }
  0x79   :  { %582 = vrot.lane.b32.xlu1 %v438_v40, %s8550_s18  ;;  %105 = vst.msk [vmem:[#allocation2 + $0xa7] sm:$0x1] %vm100_vm4, %v8549_v0  ;;  %v467_v22 = vld [vmem:[#allocation2 + $0x310] sm:$0xff]  ;;  %v212_v40 = vld [vmem:[%s13138_s0 + $0x178] sm:$0xff] }
  0x7a   :  { %586 = vrot.lane.b32.xlu0 %v440_v41, %s8550_s18  ;;  %106 = vst.msk [vmem:[#allocation2 + $0xc7] sm:$0x1] %vm100_vm4, %v8549_v0  ;;  %v457_v18 = vld [vmem:[#allocation2 + $0x270] sm:$0xff] }
  0x7b   :  { %107 = vst.msk [vmem:[#allocation2 + $0xe7] sm:$0x1] %vm100_vm4, %v8549_v0  ;;  %v295_v33 = vld [vmem:[#allocation2 + $0xf] sm:$0xff] }
  0x7c   :  { %578 = vrot.lane.b32.xlu2 %v436_v45, %s8550_s18  ;;  %v551_v10 = vpop.permute.xlu0 %550  ;;  %v296_v15 = vld [vmem:[#allocation2 + $0x27] sm:$0xff]  ;;  %108 = vst.msk [vmem:[#allocation2 + $0x107] sm:$0x1] %vm100_vm4, %v8549_v0  ;;  %v9017_v36 = vld [vmem:[#allocation2 + $0x2f] sm:$0xff] }
  0x7d   :  { %743 = vst.msk [vmem:[#allocation3] sm:$0xff] %vm742_vm3, %v551_v10  ;;  %v9013_v35 = vld [vmem:[#allocation2 + $0x47] sm:$0xff]  ;;  %v299_v43 = vld [vmem:[#allocation2 + $0x4f] sm:$0xff] }
  0x7e   :  { %360 = vst.msk [vmem:[#allocation3 + $0x10] sm:$0xff] %vm229_vm1, %v296_v15  ;;  %v9039_v42 = vld [vmem:[#allocation2 + $0x67] sm:$0xff]  ;;  %v9047_v45 = vld [vmem:[#allocation2 + $0x6f] sm:$0xff] }
  0x7f   :  { %109 = vst.msk [vmem:[#allocation2 + $0x127] sm:$0x1] %vm100_vm4, %v8549_v0  ;;  %v9070_v54 = vld [vmem:[#allocation2 + $0x8f] sm:$0xff]  ;;  %v9075_v55 = vld [vmem:[#allocation2 + $0x87] sm:$0xff] }
  0x80   :  { %110 = vst.msk [vmem:[#allocation2 + $0x147] sm:$0x1] %vm100_vm4, %v8549_v0  ;;  %v9141_v15 = vld [vmem:[#allocation2 + $0xef] sm:$0xff] }
  0x81   :  { %588 = vrot.lane.b32.xlu1 %v441_v46, %s8550_s18  ;;  %111 = vst.msk [vmem:[#allocation2 + $0x167] sm:$0x1] %vm100_vm4, %v8549_v0  ;;  %v9105_v3 = vld [vmem:[#allocation2 + $0xc7] sm:$0xff] }
  0x82   :  { %592 = vrot.lane.b32.xlu0 %v443_v47, %s8550_s18  ;;  %112 = vst.msk [vmem:[#allocation2 + $0x187] sm:$0x1] %vm100_vm4, %v8549_v0  ;;  %v214_v47 = vld [vmem:[%s13138_s0 + $0x188] sm:$0xff] }
  0x83   :  { %113 = vst.msk [vmem:[#allocation2 + $0x1a7] sm:$0x1] %vm100_vm4, %v8549_v0 }
  0x84   :  { %584 = vrot.lane.b32.xlu2 %v439_v50, %s8550_s18  ;;  %114 = vst.msk [vmem:[#allocation2 + $0x1c7] sm:$0x1] %vm100_vm4, %v8549_v0  ;;  %v204_v50 = vld [vmem:[%s13138_s0 + $0x138] sm:$0xff] }
  0x85   :  { %115 = vst.msk [vmem:[#allocation2 + $0x1e7] sm:$0x1] %vm100_vm4, %v8549_v0 }
  0x86   :  { %116 = vst.msk [vmem:[#allocation2 + $0x207] sm:$0x1] %vm100_vm4, %v8549_v0 }
  0x87   :  { %117 = vst.msk [vmem:[#allocation2 + $0x267] sm:$0x1] %vm100_vm4, %v8549_v0 }
  0x88   :  { %118 = vst.msk [vmem:[#allocation2 + $0x287] sm:$0x1] %vm100_vm4, %v8549_v0 }
  0x89   :  { %594 = vrot.lane.b32.xlu1 %v444_v51, %s8550_s18  ;;  %119 = vst.msk [vmem:[#allocation2 + $0x2a7] sm:$0x1] %vm100_vm4, %v8549_v0 }
  0x8a   :  { %598 = vrot.lane.b32.xlu0 %v446_v52, %s8550_s18  ;;  %120 = vst.msk [vmem:[#allocation2 + $0x2c7] sm:$0x1] %vm100_vm4, %v8549_v0  ;;  %v215_v52 = vld [vmem:[%s13138_s0 + $0x190] sm:$0xff] }
  0x8b   :  { %121 = vst.msk [vmem:[#allocation2 + $0x2e7] sm:$0x1] %vm100_vm4, %v8549_v0 }
  0x8c   :  { %590 = vrot.lane.b32.xlu2 %v442_v56, %s8550_s18  ;;  %122 = vst.msk [vmem:[#allocation2 + $0x307] sm:$0x1] %vm100_vm4, %v8549_v0 }
  0x8d   :  { %123 = vst.msk [vmem:[#allocation2 + $0x327] sm:$0x1] %vm100_vm4, %v8549_v0 }
  0x8e   :  { %124 = vst.msk [vmem:[#allocation2 + $0x347] sm:$0x1] %vm100_vm4, %v8549_v0 }
  0x8f   :  { %125 = vst.msk [vmem:[#allocation2 + $0x367] sm:$0x1] %vm100_vm4, %v8549_v0 }
  0x90   :  { %126 = vst.msk [vmem:[#allocation2 + $0x387] sm:$0x1] %vm100_vm4, %v8549_v0 }
  0x91   :  { %600 = vrot.lane.b32.xlu1 %v447_v57, %s8550_s18  ;;  %127 = vst.msk [vmem:[#allocation2 + $0x3a7] sm:$0x1] %vm100_vm4, %v8549_v0  ;;  %v9080_v57 = vld [vmem:[#allocation2 + $0xa7] sm:$0xff] }
  0x92   :  { %604 = vrot.lane.b32.xlu0 %v449_v58, %s8550_s18  ;;  %128 = vst.msk [vmem:[#allocation2 + $0x3c7] sm:$0x1] %vm100_vm4, %v8549_v0 }
  0x93   :  { %129 = vst.msk [vmem:[#allocation2 + $0x3e7] sm:$0x1] %vm100_vm4, %v8549_v0 }
  0x94   :  { %596 = vrot.lane.b32.xlu2 %v445_v62, %s8550_s18  ;;  %130 = vst.msk [vmem:[#allocation2 + $0x407] sm:$0x1] %vm100_vm4, %v8549_v0  ;;  %v207_v62 = vld [vmem:[%s13138_s0 + $0x150] sm:$0xff] }
  0x95   :  { %131 = vst.msk [vmem:[#allocation2 + $0x427] sm:$0x1] %vm100_vm4, %v8549_v0 }
  0x96   :  { %132 = vst.msk [vmem:[#allocation2 + $0x447] sm:$0x1] %vm100_vm4, %v8549_v0 }
  0x97   :  { %133 = vst.msk [vmem:[#allocation2 + $0x38] sm:$0x1] %vm100_vm4, %v8549_v0 }
  0x98   :  { %134 = vst.msk [vmem:[#allocation2 + $0x58] sm:$0x1] %vm100_vm4, %v8549_v0 }
  0x99   :  { %606 = vrot.lane.b32.xlu1 %v450_v63, %s8550_s18  ;;  %135 = vst.msk [vmem:[#allocation2 + $0x78] sm:$0x1] %vm100_vm4, %v8549_v0 }
  0x9a   :  { %610 = vrot.lane.b32.xlu0 %v452_v1, %s8550_s18  ;;  %136 = vst.msk [vmem:[#allocation2 + $0x98] sm:$0x1] %vm100_vm4, %v8549_v0  ;;  %v218_v1 = vld [vmem:[%s13138_s0 + $0x1a8] sm:$0xff] }
  0x9b   :  { %137 = vst.msk [vmem:[#allocation2 + $0xb8] sm:$0x1] %vm100_vm4, %v8549_v0 }
  0x9c   :  { %602 = vrot.lane.b32.xlu2 %v448_v4, %s8550_s18  ;;  %138 = vst.msk [vmem:[#allocation2 + $0xd8] sm:$0x1] %vm100_vm4, %v8549_v0  ;;  %v9110_v4 = vld [vmem:[#allocation2 + $0xaf] sm:$0xff] }
  0x9d   :  { %139 = vst.msk [vmem:[#allocation2 + $0xf8] sm:$0x1] %vm100_vm4, %v8549_v0 }
  0x9e   :  { %140 = vst.msk [vmem:[#allocation2 + $0x118] sm:$0x1] %vm100_vm4, %v8549_v0 }
  0x9f   :  { %141 = vst.msk [vmem:[#allocation2 + $0x138] sm:$0x1] %vm100_vm4, %v8549_v0 }
  0xa0   :  { %142 = vst.msk [vmem:[#allocation2 + $0x158] sm:$0x1] %vm100_vm4, %v8549_v0 }
  0xa1   :  { %612 = vrot.lane.b32.xlu1 %v453_v5, %s8550_s18  ;;  %143 = vst.msk [vmem:[#allocation2 + $0x178] sm:$0x1] %vm100_vm4, %v8549_v0  ;;  %v9116_v5 = vld [vmem:[#allocation2 + $0xcf] sm:$0xff] }
  0xa2   :  { %616 = vrot.lane.b32.xlu0 %v455_v6, %s8550_s18  ;;  %144 = vst.msk [vmem:[#allocation2 + $0x198] sm:$0x1] %vm100_vm4, %v8549_v0 }
  0xa3   :  { %145 = vst.msk [vmem:[#allocation2 + $0x1b8] sm:$0x1] %vm100_vm4, %v8549_v0 }
  0xa4   :  { %608 = vrot.lane.b32.xlu2 %v451_v9, %s8550_s18  ;;  %146 = vst.msk [vmem:[#allocation2 + $0x1d8] sm:$0x1] %vm100_vm4, %v8549_v0 }
  0xa5   :  { %147 = vst.msk [vmem:[#allocation2 + $0x1f8] sm:$0x1] %vm100_vm4, %v8549_v0 }
  0xa6   :  { %148 = vst.msk [vmem:[#allocation2 + $0x218] sm:$0x1] %vm100_vm4, %v8549_v0 }
  0xa7   :  { %149 = vst.msk [vmem:[#allocation2 + $0x278] sm:$0x1] %vm100_vm4, %v8549_v0 }
  0xa8   :  { %150 = vst.msk [vmem:[#allocation2 + $0x298] sm:$0x1] %vm100_vm4, %v8549_v0 }
  0xa9   :  { %618 = vrot.lane.b32.xlu1 %v456_v12, %s8550_s18  ;;  %151 = vst.msk [vmem:[#allocation2 + $0x2b8] sm:$0x1] %vm100_vm4, %v8549_v0 }
  0xaa   :  { %622 = vrot.lane.b32.xlu0 %v458_v13, %s8550_s18  ;;  %152 = vst.msk [vmem:[#allocation2 + $0x2d8] sm:$0x1] %vm100_vm4, %v8549_v0  ;;  %v221_v13 = vld [vmem:[%s13138_s0 + $0x1c0] sm:$0xff] }
  0xab   :  { %153 = vst.msk [vmem:[#allocation2 + $0x2f8] sm:$0x1] %vm100_vm4, %v8549_v0 }
  0xac   :  { %614 = vrot.lane.b32.xlu2 %v454_v14, %s8550_s18  ;;  %154 = vst.msk [vmem:[#allocation2 + $0x318] sm:$0x1] %vm100_vm4, %v8549_v0 }
  0xad   :  { %155 = vst.msk [vmem:[#allocation2 + $0x338] sm:$0x1] %vm100_vm4, %v8549_v0 }
  0xae   :  { %156 = vst.msk [vmem:[#allocation2 + $0x358] sm:$0x1] %vm100_vm4, %v8549_v0 }
  0xaf   :  { %157 = vst.msk [vmem:[#allocation2 + $0x378] sm:$0x1] %vm100_vm4, %v8549_v0 }
  0xb0   :  { %158 = vst.msk [vmem:[#allocation2 + $0x398] sm:$0x1] %vm100_vm4, %v8549_v0 }
  0xb1   :  { %624 = vrot.lane.b32.xlu1 %v459_v16, %s8550_s18  ;;  %159 = vst.msk [vmem:[#allocation2 + $0x3b8] sm:$0x1] %vm100_vm4, %v8549_v0  ;;  %v9146_v16 = vld [vmem:[#allocation2 + $0xe7] sm:$0xff] }
  0xb2   :  { %628 = vrot.lane.b32.xlu0 %v461_v17, %s8550_s18  ;;  %160 = vst.msk [vmem:[#allocation2 + $0x3d8] sm:$0x1] %vm100_vm4, %v8549_v0 }
  0xb3   :  { %161 = vst.msk [vmem:[#allocation2 + $0x3f8] sm:$0x1] %vm100_vm4, %v8549_v0 }
  0xb4   :  { %620 = vrot.lane.b32.xlu2 %v457_v18, %s8550_s18  ;;  %162 = vst.msk [vmem:[#allocation2 + $0x418] sm:$0x1] %vm100_vm4, %v8549_v0  ;;  %v9154_v18 = vld [vmem:[#allocation2 + $0x107] sm:$0xff] }
  0xb5   :  { %163 = vst.msk [vmem:[#allocation2 + $0x438] sm:$0x1] %vm100_vm4, %v8549_v0 }
  0xb6   :  { %v559_v26 = vpop.permute.xlu2 %558  ;;  %164 = vst.msk [vmem:[#allocation2 + $0x458] sm:$0x1] %vm100_vm4, %v8549_v0  ;;  %v211_v0 = vld [vmem:[%s13138_s0 + $0x170] sm:$0xff]  ;;  %vm6732_vm4 = vcmask 458112  }
  0xb7   :  { %274 = vst.msk [vmem:[#allocation2 + $0x328] sm:$0xff] %vm229_vm1, %v209_v32 }
  0xb8   :  { %359 = vst.msk [vmem:[#allocation3 + $0x8] sm:$0xff] %vm229_vm1, %v295_v33 }
  0xb9   :  { %630 = vrot.lane.b32.xlu1 %v462_v19, %s8550_s18  ;;  %362 = vst.msk [vmem:[#allocation3 + $0x20] sm:$0xff] %vm229_vm1, %v9013_v35 }
  0xba   :  { %634 = vrot.lane.b32.xlu0 %v464_v20, %s8550_s18  ;;  %747 = vst.msk [vmem:[#allocation3 + $0x20] sm:$0xff] %vm742_vm3, %v559_v26  ;;  %v223_v20 = vld [vmem:[%s13138_s0 + $0x1d0] sm:$0xff] }
  0xbb   :  { %361 = vst.msk [vmem:[#allocation3 + $0x18] sm:$0xff] %vm229_vm1, %v9017_v36 }
  0xbc   :  { %276 = vst.msk [vmem:[#allocation2 + $0x348] sm:$0xff] %vm229_vm1, %v211_v0  ;;  %v9204_v0 = vld [vmem:[#allocation2 + $0x14f] sm:$0xff] }
  0xbd   :  { %266 = vst.msk [vmem:[#allocation2 + $0x2a8] sm:$0xff] %vm229_vm1, %v201_v39 }
  0xbe   :  { %v561_v29 = vpop.permute.xlu2 %560  ;;  %v468_v41 = vld [vmem:[#allocation2 + $0x328] sm:$0xff]  ;;  %277 = vst.msk [vmem:[#allocation2 + $0x350] sm:$0xff] %vm229_vm1, %v212_v40 }
  0xbf   :  { %364 = vst.msk [vmem:[#allocation3 + $0x30] sm:$0xff] %vm229_vm1, %v9039_v42  ;;  %v9210_v40 = vld [vmem:[#allocation2 + $0x147] sm:$0xff] }
  0xc0   :  { %363 = vst.msk [vmem:[#allocation3 + $0x28] sm:$0xff] %vm229_vm1, %v299_v43  ;;  %v9216_v43 = vld [vmem:[#allocation2 + $0x167] sm:$0xff] }
  0xc1   :  { %636 = vrot.lane.b32.xlu1 %v465_v21, %s8550_s18  ;;  %748 = vst.msk [vmem:[#allocation3 + $0x28] sm:$0xff] %vm742_vm3, %v561_v29 }
  0xc2   :  { %640 = vrot.lane.b32.xlu0 %v467_v22, %s8550_s18  ;;  %365 = vst.msk [vmem:[#allocation3 + $0x38] sm:$0xff] %vm229_vm1, %v9047_v45  ;;  %v213_v22 = vld [vmem:[%s13138_s0 + $0x180] sm:$0xff] }
  0xc3   :  { %v555_v23 = vpop.permute.xlu1 %554  ;;  %v470_v49 = vld [vmem:[#allocation2 + $0x348] sm:$0xff]  ;;  %279 = vst.msk [vmem:[#allocation2 + $0x370] sm:$0xff] %vm229_vm1, %v214_v47 }
  0xc4   :  { %745 = vst.msk [vmem:[#allocation3 + $0x10] sm:$0xff] %vm742_vm3, %v555_v23  ;;  %v553_v24 = vpop.permute.xlu0 %552  ;;  %v460_v51 = vld [vmem:[#allocation2 + $0x2a8] sm:$0xff] }
  0xc5   :  { %744 = vst.msk [vmem:[#allocation3 + $0x8] sm:$0xff] %vm742_vm3, %v553_v24  ;;  %626 = vrot.lane.b32.xlu2 %v460_v51, %s8550_s18  ;;  %v471_v53 = vld [vmem:[#allocation2 + $0x350] sm:$0xff]  ;;  %v9226_v47 = vld [vmem:[#allocation2 + $0x187] sm:$0xff] }
  0xc6   :  { %v567_v34 = vpop.permute.xlu2 %566  ;;  %269 = vst.msk [vmem:[#allocation2 + $0x2d0] sm:$0xff] %vm229_vm1, %v204_v50  ;;  %v9232_v51 = vld [vmem:[#allocation2 + $0x16f] sm:$0xff] }
  0xc7   :  { %280 = vst.msk [vmem:[#allocation2 + $0x388] sm:$0xff] %vm229_vm1, %v215_v52 }
  0xc8   :  { %367 = vst.msk [vmem:[#allocation3 + $0x48] sm:$0xff] %vm229_vm1, %v9070_v54 }
  0xc9   :  { %642 = vrot.lane.b32.xlu1 %v468_v41, %s8550_s18  ;;  %366 = vst.msk [vmem:[#allocation3 + $0x40] sm:$0xff] %vm229_vm1, %v9075_v55 }
  0xca   :  { %646 = vrot.lane.b32.xlu0 %v470_v49, %s8550_s18  ;;  %751 = vst.msk [vmem:[#allocation3 + $0x40] sm:$0xff] %vm742_vm3, %v567_v34  ;;  %v473_v61 = vld [vmem:[#allocation2 + $0x370] sm:$0xff]  ;;  %v216_v34 = vld [vmem:[%s13138_s0 + $0x198] sm:$0xff] }
  0xcb   :  { %v557_v25 = vpop.permute.xlu1 %556  ;;  %368 = vst.msk [vmem:[#allocation3 + $0x50] sm:$0xff] %vm229_vm1, %v9080_v57 }
  0xcc   :  { %v563_v27 = vpop.permute.xlu0 %562  ;;  %746 = vst.msk [vmem:[#allocation3 + $0x18] sm:$0xff] %vm742_vm3, %v557_v25  ;;  %v224_v25 = vld [vmem:[%s13138_s0 + $0x1d8] sm:$0xff] }
  0xcd   :  { %749 = vst.msk [vmem:[#allocation3 + $0x30] sm:$0xff] %vm742_vm3, %v563_v27  ;;  %v463_v63 = vld [vmem:[#allocation2 + $0x2d0] sm:$0xff]  ;;  %v9177_v27 = vld [vmem:[#allocation2 + $0x127] sm:$0xff] }
  0xce   :  { %v573_v44 = vpop.permute.xlu2 %572  ;;  %632 = vrot.lane.b32.xlu2 %v463_v63, %s8550_s18  ;;  %v474_v2 = vld [vmem:[#allocation2 + $0x388] sm:$0xff]  ;;  %282 = vst.msk [vmem:[#allocation2 + $0x3a8] sm:$0xff] %vm229_vm1, %v217_v59 }
  0xcf   :  { %272 = vst.msk [vmem:[#allocation2 + $0x308] sm:$0xff] %vm229_vm1, %v207_v62  ;;  %v809_v59 = vld [vmem:[#allocation2 + $0x29] sm:$0xff] }
  0xd0   :  { %283 = vst.msk [vmem:[#allocation2 + $0x3b0] sm:$0xff] %vm229_vm1, %v218_v1  ;;  %v9255_v63 = vld [vmem:[#allocation2 + $0x1a7] sm:$0xff] }
  0xd1   :  { %648 = vrot.lane.b32.xlu1 %v471_v53, %s8550_s18  ;;  %370 = vst.msk [vmem:[#allocation3 + $0x60] sm:$0xff] %vm229_vm1, %v9105_v3  ;;  %v9263_v1 = vld [vmem:[#allocation2 + $0x1c7] sm:$0xff] }
  0xd2   :  { %652 = vrot.lane.b32.xlu0 %v473_v61, %s8550_s18  ;;  %369 = vst.msk [vmem:[#allocation3 + $0x58] sm:$0xff] %vm229_vm1, %v9110_v4  ;;  %v810_v61 = vld [vmem:[#allocation2 + $0x31] sm:$0xff] }
  0xd3   :  { %v565_v28 = vpop.permute.xlu1 %564  ;;  %754 = vst.msk [vmem:[#allocation3 + $0x58] sm:$0xff] %vm742_vm3, %v573_v44  ;;  %v219_v44 = vld [vmem:[%s13138_s0 + $0x1b0] sm:$0xff] }
  0xd4   :  { %v569_v30 = vpop.permute.xlu0 %568  ;;  %750 = vst.msk [vmem:[#allocation3 + $0x38] sm:$0xff] %vm742_vm3, %v565_v28  ;;  %v9182_v28 = vld [vmem:[#allocation2 + $0x10f] sm:$0xff] }
  0xd5   :  { %752 = vst.msk [vmem:[#allocation3 + $0x48] sm:$0xff] %vm742_vm3, %v569_v30  ;;  %v476_v10 = vld [vmem:[#allocation2 + $0x3a8] sm:$0xff] }
  0xd6   :  { %v579_v56 = vpop.permute.xlu2 %578  ;;  %371 = vst.msk [vmem:[#allocation3 + $0x68] sm:$0xff] %vm229_vm1, %v9116_v5  ;;  %v466_v12 = vld [vmem:[#allocation2 + $0x308] sm:$0xff] }
  0xd7   :  { %638 = vrot.lane.b32.xlu2 %v466_v12, %s8550_s18  ;;  %v477_v14 = vld [vmem:[#allocation2 + $0x3b0] sm:$0xff]  ;;  %285 = vst.msk [vmem:[#allocation2 + $0x3d0] sm:$0xff] %vm229_vm1, %v220_v8 }
  0xd8   :  { %275 = vst.msk [vmem:[#allocation2 + $0x330] sm:$0xff] %vm229_vm1, %v210_v11  ;;  %v9188_v30 = vld [vmem:[#allocation2 + $0x12f] sm:$0xff] }
  0xd9   :  { %654 = vrot.lane.b32.xlu1 %v474_v2, %s8550_s18  ;;  %286 = vst.msk [vmem:[#allocation2 + $0x3e8] sm:$0xff] %vm229_vm1, %v221_v13  ;;  %v813_v12 = vld [vmem:[#allocation2 + $0x69] sm:$0xff] }
  0xda   :  { %658 = vrot.lane.b32.xlu0 %v476_v10, %s8550_s18  ;;  %373 = vst.msk [vmem:[#allocation3 + $0x78] sm:$0xff] %vm229_vm1, %v9141_v15  ;;  %v812_v10 = vld [vmem:[#allocation2 + $0x51] sm:$0xff] }
  0xdb   :  { %v8999_v31 = vpop.permute.xlu1 %570  ;;  %372 = vst.msk [vmem:[#allocation3 + $0x70] sm:$0xff] %vm229_vm1, %v9146_v16  ;;  %v9277_v13 = vld [vmem:[#allocation2 + $0x1cf] sm:$0xff] }
  0xdc   :  { %v9021_v37 = vpop.permute.xlu0 %574  ;;  %753 = vst.msk [vmem:[#allocation3 + $0x50] sm:$0xff] %vm742_vm3, %v8999_v31  ;;  %v226_v31 = vld [vmem:[%s13138_s0 + $0x1e8] sm:$0xff] }
  0xdd   :  { %755 = vst.msk [vmem:[#allocation3 + $0x60] sm:$0xff] %vm742_vm3, %v9021_v37 }
  0xde   :  { %v585_v6 = vpop.permute.xlu2 %584  ;;  %757 = vst.msk [vmem:[#allocation3 + $0x70] sm:$0xff] %vm742_vm3, %v579_v56  ;;  %v479_v21 = vld [vmem:[#allocation2 + $0x3d0] sm:$0xff] }
  0xdf   :  { %374 = vst.msk [vmem:[#allocation3 + $0x80] sm:$0xff] %vm229_vm1, %v9154_v18  ;;  %v469_v24 = vld [vmem:[#allocation2 + $0x330] sm:$0xff] }
  0xe0   :  { %644 = vrot.lane.b32.xlu2 %v469_v24, %s8550_s18  ;;  %v480_v26 = vld [vmem:[#allocation2 + $0x3e8] sm:$0xff]  ;;  %288 = vst.msk [vmem:[#allocation2 + $0x408] sm:$0xff] %vm229_vm1, %v223_v20 }
  0xe1   :  { %660 = vrot.lane.b32.xlu1 %v477_v14, %s8550_s18  ;;  %278 = vst.msk [vmem:[#allocation2 + $0x368] sm:$0xff] %vm229_vm1, %v213_v22  ;;  %v9240_v56 = vld [vmem:[#allocation2 + $0x18f] sm:$0xff]  ;;  %v326_v20 = vld [vmem:[#allocation2 + $0x247] sm:$0xff] }
  0xe2   :  { %664 = vrot.lane.b32.xlu0 %v479_v21, %s8550_s18  ;;  %289 = vst.msk [vmem:[#allocation2 + $0x410] sm:$0xff] %vm229_vm1, %v224_v25  ;;  %v9283_v14 = vld [vmem:[#allocation2 + $0x1ef] sm:$0xff] }
  0xe3   :  { %v9027_v38 = vpop.permute.xlu1 %576  ;;  %376 = vst.msk [vmem:[#allocation3 + $0x90] sm:$0xff] %vm229_vm1, %v9177_v27  ;;  %v815_v21 = vld [vmem:[#allocation2 + $0x89] sm:$0xff]  ;;  %v816_v25 = vld [vmem:[#allocation2 + $0x91] sm:$0xff] }
  0xe4   :  { %v9050_v46 = vpop.permute.xlu0 %580  ;;  %756 = vst.msk [vmem:[#allocation3 + $0x68] sm:$0xff] %vm742_vm3, %v9027_v38 }
  0xe5   :  { %758 = vst.msk [vmem:[#allocation3 + $0x78] sm:$0xff] %vm742_vm3, %v9050_v46  ;;  %v807_v46 = vld [vmem:[#allocation2 + $0x9] sm:$0xff] }
  0xe6   :  { %v591_v19 = vpop.permute.xlu2 %590  ;;  %375 = vst.msk [vmem:[#allocation3 + $0x88] sm:$0xff] %vm229_vm1, %v9182_v28 }
  0xe7   :  { %760 = vst.msk [vmem:[#allocation3 + $0x88] sm:$0xff] %vm742_vm3, %v585_v6  ;;  %v482_v33 = vld [vmem:[#allocation2 + $0x408] sm:$0xff]  ;;  %v225_v6 = vld [vmem:[%s13138_s0 + $0x1e0] sm:$0xff] }
  0xe8   :  { %377 = vst.msk [vmem:[#allocation3 + $0x98] sm:$0xff] %vm229_vm1, %v9188_v30  ;;  %v472_v37 = vld [vmem:[#allocation2 + $0x368] sm:$0xff] }
  0xe9   :  { %666 = vrot.lane.b32.xlu1 %v480_v26, %s8550_s18  ;;  %650 = vrot.lane.b32.xlu2 %v472_v37, %s8550_s18  ;;  %v483_v39 = vld [vmem:[#allocation2 + $0x410] sm:$0xff]  ;;  %291 = vst.msk [vmem:[#allocation2 + $0x430] sm:$0xff] %vm229_vm1, %v226_v31  ;;  %v9295_v26 = vld [vmem:[#allocation2 + $0x267] sm:$0xff] }
  0xea   :  { %670 = vrot.lane.b32.xlu0 %v482_v33, %s8550_s18  ;;  %281 = vst.msk [vmem:[#allocation2 + $0x390] sm:$0xff] %vm229_vm1, %v216_v34  ;;  %v9307_v31 = vld [vmem:[#allocation2 + $0x26f] sm:$0xff] }
  0xeb   :  { %v9056_v48 = vpop.permute.xlu1 %582  ;;  %379 = vst.msk [vmem:[#allocation3 + $0xa8] sm:$0xff] %vm229_vm1, %v9204_v0  ;;  %v818_v33 = vld [vmem:[#allocation2 + $0xb1] sm:$0xff] }
  0xec   :  { %v9084_v58 = vpop.permute.xlu0 %586  ;;  %759 = vst.msk [vmem:[#allocation3 + $0x80] sm:$0xff] %vm742_vm3, %v9056_v48  ;;  %v808_v37 = vld [vmem:[#allocation2 + $0x11] sm:$0xff] }
  0xed   :  { %761 = vst.msk [vmem:[#allocation3 + $0x90] sm:$0xff] %vm742_vm3, %v9084_v58  ;;  %v222_v58 = vld [vmem:[%s13138_s0 + $0x1c8] sm:$0xff] }
  0xee   :  { %v597_v32 = vpop.permute.xlu2 %596  ;;  %378 = vst.msk [vmem:[#allocation3 + $0xa0] sm:$0xff] %vm229_vm1, %v9210_v40 }
  0xef   :  { %763 = vst.msk [vmem:[#allocation3 + $0xa0] sm:$0xff] %vm742_vm3, %v591_v19 }
  0xf0   :  { %380 = vst.msk [vmem:[#allocation3 + $0xb0] sm:$0xff] %vm229_vm1, %v9216_v43  ;;  %v485_v48 = vld [vmem:[#allocation2 + $0x430] sm:$0xff] }
  0xf1   :  { %672 = vrot.lane.b32.xlu1 %v483_v39, %s8550_s18  ;;  %v475_v50 = vld [vmem:[#allocation2 + $0x390] sm:$0xff]  ;;  %284 = vst.msk [vmem:[#allocation2 + $0x3c8] sm:$0xff] %vm229_vm1, %v219_v44 }
  0xf2   :  { %676 = vrot.lane.b32.xlu0 %v485_v48, %s8550_s18  ;;  %656 = vrot.lane.b32.xlu2 %v475_v50, %s8550_s18  ;;  %382 = vst.msk [vmem:[#allocation3 + $0xc0] sm:$0xff] %vm229_vm1, %v9226_v47  ;;  %v9317_v39 = vld [vmem:[#allocation2 + $0x2af] sm:$0xff]  ;;  %v9329_v48 = vld [vmem:[#allocation2 + $0x2c7] sm:$0xff] }
  0xf3   :  { %v9090_v60 = vpop.permute.xlu1 %588  ;;  %381 = vst.msk [vmem:[#allocation3 + $0xb8] sm:$0xff] %vm229_vm1, %v9232_v51  ;;  %v821_v50 = vld [vmem:[#allocation2 + $0xe9] sm:$0xff] }
  0xf4   :  { %v9118_v7 = vpop.permute.xlu0 %592  ;;  %762 = vst.msk [vmem:[#allocation3 + $0x98] sm:$0xff] %vm742_vm3, %v9090_v60  ;;  %v9250_v60 = vld [vmem:[#allocation2 + $0x1af] sm:$0xff] }
  0xf5   :  { %764 = vst.msk [vmem:[#allocation3 + $0xa8] sm:$0xff] %vm742_vm3, %v9118_v7 }
  0xf6   :  { %v603_v49 = vpop.permute.xlu2 %602  ;;  %766 = vst.msk [vmem:[#allocation3 + $0xb8] sm:$0xff] %vm742_vm3, %v597_v32  ;;  %v9312_v32 = vld [vmem:[#allocation2 + $0x28f] sm:$0xff] }
  0xf7   :  { %383 = vst.msk [vmem:[#allocation3 + $0xc8] sm:$0xff] %vm229_vm1, %v9240_v56 }
  0xf8   :  { %v478_v62 = vld [vmem:[#allocation2 + $0x3c8] sm:$0xff]  ;;  %287 = vst.msk [vmem:[#allocation2 + $0x3f0] sm:$0xff] %vm229_vm1, %v222_v58  ;;  %v822_v58 = vld [vmem:[#allocation2 + $0xf1] sm:$0xff] }
  0xf9   :  { %935 = vrot.lane.b32.xlu1 %v807_v46, %s8551_s14  ;;  %385 = vst.msk [vmem:[#allocation3 + $0xd8] sm:$0xff] %vm229_vm1, %v9250_v60  ;;  %v9323_v46 = vld [vmem:[#allocation2 + $0x2a7] sm:$0xff] }
  0xfa   :  { %939 = vrot.lane.b32.xlu0 %v809_v59, %s8551_s14  ;;  %662 = vrot.lane.b32.xlu2 %v478_v62, %s8550_s18  ;;  %384 = vst.msk [vmem:[#allocation3 + $0xd0] sm:$0xff] %vm229_vm1, %v9255_v63  ;;  %v9343_v59 = vld [vmem:[#allocation2 + $0x2ef] sm:$0xff] }
  0xfb   :  { %v9126_v9 = vpop.permute.xlu1 %594  ;;  %769 = vst.msk [vmem:[#allocation3 + $0xd0] sm:$0xff] %vm742_vm3, %v603_v49  ;;  %v9334_v49 = vld [vmem:[#allocation2 + $0x2e7] sm:$0xff] }
  0xfc   :  { %v9150_v17 = vpop.permute.xlu0 %598  ;;  %765 = vst.msk [vmem:[#allocation3 + $0xb0] sm:$0xff] %vm742_vm3, %v9126_v9  ;;  %v9273_v9 = vld [vmem:[#allocation2 + $0x1e7] sm:$0xff] }
  0xfd   :  { %767 = vst.msk [vmem:[#allocation3 + $0xc0] sm:$0xff] %vm742_vm3, %v9150_v17  ;;  %v327_v17 = vld [vmem:[#allocation2 + $0x24f] sm:$0xff] }
  0xfe   :  { %v609_v2 = vpop.permute.xlu2 %608  ;;  %386 = vst.msk [vmem:[#allocation3 + $0xe0] sm:$0xff] %vm229_vm1, %v9263_v1 }
  0xff   :  { %v481_v11 = vld [vmem:[#allocation2 + $0x3f0] sm:$0xff]  ;;  %290 = vst.msk [vmem:[#allocation2 + $0x428] sm:$0xff] %vm229_vm1, %v225_v6  ;;  %v9356_v6 = vld [vmem:[#allocation2 + $0x307] sm:$0xff] }
 0x100   :  { %388 = vst.msk [vmem:[#allocation3 + $0xf0] sm:$0xff] %vm229_vm1, %v9273_v9 }
 0x101   :  { %941 = vrot.lane.b32.xlu1 %v810_v61, %s8551_s14  ;;  %387 = vst.msk [vmem:[#allocation3 + $0xe8] sm:$0xff] %vm229_vm1, %v9277_v13  ;;  %v9349_v61 = vld [vmem:[#allocation2 + $0x30f] sm:$0xff] }
 0x102   :  { %945 = vrot.lane.b32.xlu0 %v812_v10, %s8551_s14  ;;  %668 = vrot.lane.b32.xlu2 %v481_v11, %s8550_s18  ;;  %772 = vst.msk [vmem:[#allocation3 + $0xe8] sm:$0xff] %vm742_vm3, %v609_v2  ;;  %v9365_v10 = vld [vmem:[#allocation2 + $0x347] sm:$0xff]  ;;  %v814_v11 = vld [vmem:[#allocation2 + $0x71] sm:$0xff] }
 0x103   :  { %v9167_v23 = vpop.permute.xlu1 %600  ;;  %389 = vst.msk [vmem:[#allocation3 + $0xf8] sm:$0xff] %vm229_vm1, %v9283_v14 }
 0x104   :  { %v605_v29 = vpop.permute.xlu0 %604  ;;  %768 = vst.msk [vmem:[#allocation3 + $0xc8] sm:$0xff] %vm742_vm3, %v9167_v23 }
 0x105   :  { %770 = vst.msk [vmem:[#allocation3 + $0xd8] sm:$0xff] %vm742_vm3, %v605_v29  ;;  %v9300_v29 = vld [vmem:[#allocation2 + $0x287] sm:$0xff] }
 0x106   :  { %v615_v19 = vpop.permute.xlu2 %614  ;;  %391 = vst.msk [vmem:[#allocation3 + $0x108] sm:$0xff] %vm229_vm1, %v327_v17  ;;  %v484_v24 = vld [vmem:[#allocation2 + $0x428] sm:$0xff] }
 0x107   :  { %390 = vst.msk [vmem:[#allocation3 + $0x100] sm:$0xff] %vm229_vm1, %v326_v20  ;;  %v9372_v20 = vld [vmem:[#allocation2 + $0x34f] sm:$0xff] }
 0x108   :  { %775 = vst.msk [vmem:[#allocation3 + $0x100] sm:$0xff] %vm742_vm3, %v615_v19  ;;  %v9369_v19 = vld [vmem:[#allocation2 + $0x32f] sm:$0xff] }
 0x109   :  { %947 = vrot.lane.b32.xlu1 %v813_v12, %s8551_s14  ;;  %392 = vst.msk [vmem:[#allocation3 + $0x110] sm:$0xff] %vm229_vm1, %v9295_v26  ;;  %v825_v12 = vld [vmem:[#allocation2 + $0x129] sm:$0xff] }
 0x10a   :  { %951 = vrot.lane.b32.xlu0 %v815_v21, %s8551_s14  ;;  %674 = vrot.lane.b32.xlu2 %v484_v24, %s8550_s18  ;;  %394 = vst.msk [vmem:[#allocation3 + $0x120] sm:$0xff] %vm229_vm1, %v9300_v29  ;;  %v9381_v21 = vld [vmem:[#allocation2 + $0x36f] sm:$0xff]  ;;  %s8552_s18 = smov 12  }
 0x10b   :  { %v607_v38 = vpop.permute.xlu1 %606  ;;  %393 = vst.msk [vmem:[#allocation3 + $0x118] sm:$0xff] %vm229_vm1, %v9307_v31  ;;  %v827_v24 = vld [vmem:[#allocation2 + $0x149] sm:$0xff] }
 0x10c   :  { %v611_v41 = vpop.permute.xlu0 %610  ;;  %771 = vst.msk [vmem:[#allocation3 + $0xe0] sm:$0xff] %vm742_vm3, %v607_v38  ;;  %v819_v38 = vld [vmem:[#allocation2 + $0xc9] sm:$0xff] }
 0x10d   :  { %773 = vst.msk [vmem:[#allocation3 + $0xf0] sm:$0xff] %vm742_vm3, %v611_v41 }
 0x10e   :  { %v621_v34 = vpop.permute.xlu2 %620  ;;  %395 = vst.msk [vmem:[#allocation3 + $0x128] sm:$0xff] %vm229_vm1, %v9312_v32 }
 0x10f   :  { %778 = vst.msk [vmem:[#allocation3 + $0x118] sm:$0xff] %vm742_vm3, %v621_v34 }
 0x110   :  { %397 = vst.msk [vmem:[#allocation3 + $0x138] sm:$0xff] %vm229_vm1, %v9317_v39 }
 0x111   :  { %953 = vrot.lane.b32.xlu1 %v816_v25, %s8551_s14  ;;  %396 = vst.msk [vmem:[#allocation3 + $0x130] sm:$0xff] %vm229_vm1, %v9323_v46  ;;  %v817_v25 = vld [vmem:[#allocation2 + $0xa9] sm:$0xff] }
 0x112   :  { %957 = vrot.lane.b32.xlu0 %v818_v33, %s8551_s14  ;;  %937 = vrot.lane.b32.xlu2 %v808_v37, %s8551_s14  ;;  %398 = vst.msk [vmem:[#allocation3 + $0x140] sm:$0xff] %vm229_vm1, %v9329_v48  ;;  %v828_v33 = vld [vmem:[#allocation2 + $0x151] sm:$0xff]  ;;  %v9399_v37 = vld [vmem:[#allocation2 + $0x3a7] sm:$0xff] }
 0x113   :  { %v613_v52 = vpop.permute.xlu1 %612  ;;  %400 = vst.msk [vmem:[#allocation3 + $0x150] sm:$0xff] %vm229_vm1, %v9334_v49 }
 0x114   :  { %v617_v53 = vpop.permute.xlu0 %616  ;;  %774 = vst.msk [vmem:[#allocation3 + $0xf8] sm:$0xff] %vm742_vm3, %v613_v52  ;;  %v9339_v52 = vld [vmem:[#allocation2 + $0x2cf] sm:$0xff] }
 0x115   :  { %776 = vst.msk [vmem:[#allocation3 + $0x108] sm:$0xff] %vm742_vm3, %v617_v53  ;;  %v811_v53 = vld [vmem:[#allocation2 + $0x49] sm:$0xff] }
 0x116   :  { %399 = vst.msk [vmem:[#allocation3 + $0x148] sm:$0xff] %vm229_vm1, %v9339_v52 }
 0x117   :  { %401 = vst.msk [vmem:[#allocation3 + $0x158] sm:$0xff] %vm229_vm1, %v9343_v59 }
 0x118   :  { %403 = vst.msk [vmem:[#allocation3 + $0x168] sm:$0xff] %vm229_vm1, %v9349_v61 }
 0x119   :  { %959 = vrot.lane.b32.xlu1 %v819_v38, %s8551_s14  ;;  %402 = vst.msk [vmem:[#allocation3 + $0x160] sm:$0xff] %vm229_vm1, %v9356_v6  ;;  %v9401_v38 = vld [vmem:[#allocation2 + $0x38f] sm:$0xff] }
 0x11a   :  { %963 = vrot.lane.b32.xlu0 %v821_v50, %s8551_s14  ;;  %943 = vrot.lane.b32.xlu2 %v811_v53, %s8551_s14  ;;  %406 = vst.msk [vmem:[#allocation3 + $0x180] sm:$0xff] %vm229_vm1, %v9365_v10  ;;  %v820_v50 = vld [vmem:[#allocation2 + $0xd1] sm:$0xff]  ;;  %v831_v53 = vld [vmem:[#allocation2 + $0x189] sm:$0xff] }
 0x11b   :  { %v619_v7 = vpop.permute.xlu1 %618  ;;  %405 = vst.msk [vmem:[#allocation3 + $0x178] sm:$0xff] %vm229_vm1, %v9369_v19 }
 0x11c   :  { %v623_v8 = vpop.permute.xlu0 %622  ;;  %777 = vst.msk [vmem:[#allocation3 + $0x110] sm:$0xff] %vm742_vm3, %v619_v7  ;;  %v9360_v7 = vld [vmem:[#allocation2 + $0x327] sm:$0xff] }
 0x11d   :  { %779 = vst.msk [vmem:[#allocation3 + $0x120] sm:$0xff] %vm742_vm3, %v623_v8  ;;  %v824_v8 = vld [vmem:[#allocation2 + $0x111] sm:$0xff] }
 0x11e   :  { %404 = vst.msk [vmem:[#allocation3 + $0x170] sm:$0xff] %vm229_vm1, %v9360_v7 }
 0x11f   :  { %v627_v17 = vpop.permute.xlu2 %626  ;;  %407 = vst.msk [vmem:[#allocation3 + $0x188] sm:$0xff] %vm229_vm1, %v9372_v20 }
 0x120   :  { %781 = vst.msk [vmem:[#allocation3 + $0x130] sm:$0xff] %vm742_vm3, %v627_v17 }
 0x121   :  { %965 = vrot.lane.b32.xlu1 %v822_v58, %s8551_s14  ;;  %409 = vst.msk [vmem:[#allocation3 + $0x198] sm:$0xff] %vm229_vm1, %v9381_v21 }
 0x122   :  { %969 = vrot.lane.b32.xlu0 %v824_v8, %s8551_s14  ;;  %949 = vrot.lane.b32.xlu2 %v814_v11, %s8551_s14  ;;  %13230 = vst [vmem:[#allocation4_spill] sm:$0xff] %v9401_v38  ;;  %v9418_v8 = vld [vmem:[#allocation2 + $0x3c7] sm:$0xff] }
 0x123   :  { %v625_v22 = vpop.permute.xlu1 %624  ;;  %412 = vst.msk [vmem:[#allocation3 + $0x1b0] sm:$0xff] %vm229_vm1, %v9399_v37  ;;  %v9424_v11 = vld [vmem:[#allocation2 + $0x3e7] sm:$0xff] }
 0x124   :  { %v629_v23 = vpop.permute.xlu0 %628  ;;  %780 = vst.msk [vmem:[#allocation3 + $0x128] sm:$0xff] %vm742_vm3, %v625_v22  ;;  %v9383_v22 = vld [vmem:[#allocation2 + $0x367] sm:$0xff] }
 0x125   :  { %782 = vst.msk [vmem:[#allocation3 + $0x138] sm:$0xff] %vm742_vm3, %v629_v23  ;;  %v9389_v23 = vld [vmem:[#allocation2 + $0x387] sm:$0xff] }
 0x126   :  { %408 = vst.msk [vmem:[#allocation3 + $0x190] sm:$0xff] %vm229_vm1, %v9383_v22 }
 0x127   :  { %410 = vst.msk [vmem:[#allocation3 + $0x1a0] sm:$0xff] %vm229_vm1, %v9389_v23 }
 0x128   :  { %v633_v34 = vpop.permute.xlu2 %632  ;;  %411 = vst.msk [vmem:[#allocation3 + $0x1a8] sm:$0xff] %vm229_vm1, %v9401_v38 }
 0x129   :  { %971 = vrot.lane.b32.xlu1 %v825_v12, %s8551_s14  ;;  %784 = vst.msk [vmem:[#allocation3 + $0x148] sm:$0xff] %vm742_vm3, %v633_v34  ;;  %v833_v12 = vld [vmem:[#allocation2 + $0x1a9] sm:$0xff] }
 0x12a   :  { %975 = vrot.lane.b32.xlu0 %v827_v24, %s8551_s14  ;;  %955 = vrot.lane.b32.xlu2 %v817_v25, %s8551_s14  ;;  %13231 = vst [vmem:[#allocation5_spill] sm:$0xff] %v9418_v8  ;;  %v823_v24 = vld [vmem:[#allocation2 + $0x109] sm:$0xff]  ;;  %v834_v25 = vld [vmem:[#allocation2 + $0x1b1] sm:$0xff] }
 0x12b   :  { %v631_v41 = vpop.permute.xlu1 %630  ;;  %414 = vst.msk [vmem:[#allocation3 + $0x1c0] sm:$0xff] %vm229_vm1, %v9418_v8  ;;  %v843_v8 = vld [vmem:[#allocation2 + $0x289] sm:$0xff] }
 0x12c   :  { %v635_v44 = vpop.permute.xlu0 %634  ;;  %783 = vst.msk [vmem:[#allocation3 + $0x140] sm:$0xff] %vm742_vm3, %v631_v41  ;;  %v9407_v41 = vld [vmem:[#allocation2 + $0x3af] sm:$0xff] }
 0x12d   :  { %785 = vst.msk [vmem:[#allocation3 + $0x150] sm:$0xff] %vm742_vm3, %v635_v44  ;;  %v830_v44 = vld [vmem:[#allocation2 + $0x171] sm:$0xff] }
 0x12e   :  { %413 = vst.msk [vmem:[#allocation3 + $0x1b8] sm:$0xff] %vm229_vm1, %v9407_v41 }
 0x12f   :  { %416 = vst.msk [vmem:[#allocation3 + $0x1d0] sm:$0xff] %vm229_vm1, %v9424_v11 }
 0x131   :  { %977 = vrot.lane.b32.xlu1 %v828_v33, %s8551_s14 }
 0x132   :  { %981 = vrot.lane.b32.xlu0 %v830_v44, %s8551_s14  ;;  %961 = vrot.lane.b32.xlu2 %v820_v50, %s8551_s14  ;;  %v9433_v44 = vld [vmem:[#allocation2 + $0x407] sm:$0xff]  ;;  %v9436_v50 = vld [vmem:[#allocation2 + $0x3ef] sm:$0xff] }
 0x133   :  { %v637_v62 = vpop.permute.xlu1 %636  ;;  %13232 = vst [vmem:[#allocation6_spill] sm:$0xff] %v9436_v50 }
 0x134   :  { %v641_v2 = vpop.permute.xlu0 %640  ;;  %786 = vst.msk [vmem:[#allocation3 + $0x158] sm:$0xff] %vm742_vm3, %v637_v62  ;;  %v639_v62 = vpop.permute.xlu2 %638 }
 0x135   :  { %788 = vst.msk [vmem:[#allocation3 + $0x168] sm:$0xff] %vm742_vm3, %v641_v2  ;;  %v9416_v2 = vld [vmem:[#allocation2 + $0x3cf] sm:$0xff] }
 0x136   :  { %787 = vst.msk [vmem:[#allocation3 + $0x160] sm:$0xff] %vm742_vm3, %v639_v62  ;;  %v826_v62 = vld [vmem:[#allocation2 + $0x131] sm:$0xff] }
 0x137   :  { %415 = vst.msk [vmem:[#allocation3 + $0x1c8] sm:$0xff] %vm229_vm1, %v9416_v2 }
 0x138   :  { %418 = vst.msk [vmem:[#allocation3 + $0x1e0] sm:$0xff] %vm229_vm1, %v9433_v44 }
 0x139   :  { %983 = vrot.lane.b32.xlu1 %v831_v53, %s8551_s14  ;;  %417 = vst.msk [vmem:[#allocation3 + $0x1d8] sm:$0xff] %vm229_vm1, %v9436_v50  ;;  %v9442_v53 = vld [vmem:[#allocation2 + $0x40f] sm:$0xff] }
 0x13a   :  { %987 = vrot.lane.b32.xlu0 %v833_v12, %s8551_s14  ;;  %967 = vrot.lane.b32.xlu2 %v823_v24, %s8551_s14  ;;  %419 = vst.msk [vmem:[#allocation3 + $0x1e8] sm:$0xff] %vm229_vm1, %v9442_v53  ;;  %v837_v12 = vld [vmem:[#allocation2 + $0x1e9] sm:$0xff] }
 0x13b   :  { %v643_v58 = vpop.permute.xlu1 %642 }
 0x13c   :  { %789 = vst.msk [vmem:[#allocation3 + $0x170] sm:$0xff] %vm742_vm3, %v643_v58  ;;  %v647_v17 = vpop.permute.xlu0 %646  ;;  %v645_v34 = vpop.permute.xlu2 %644  ;;  %v836_v58 = vld [vmem:[#allocation2 + $0x1d1] sm:$0xff] }
 0x13d   :  { %791 = vst.msk [vmem:[#allocation3 + $0x180] sm:$0xff] %vm742_vm3, %v647_v17 }
 0x13e   :  { %790 = vst.msk [vmem:[#allocation3 + $0x178] sm:$0xff] %vm742_vm3, %v645_v34  ;;  %v9456_v34 = vld [vmem:[#allocation2 + $0x427] sm:$0xff] }
 0x13f   :  { %13233 = vst [vmem:[#allocation7_spill] sm:$0xff] %v9456_v34 }
 0x140   :  { %420 = vst.msk [vmem:[#allocation3 + $0x1f0] sm:$0xff] %vm229_vm1, %v9456_v34  ;;  %v832_v34 = vld [vmem:[#allocation2 + $0x191] sm:$0xff] }
 0x141   :  { %989 = vrot.lane.b32.xlu1 %v834_v25, %s8551_s14  ;;  %v9451_v25 = vld [vmem:[#allocation2 + $0x42f] sm:$0xff] }
 0x142   :  { %993 = vrot.lane.b32.xlu0 %v836_v58, %s8551_s14  ;;  %973 = vrot.lane.b32.xlu2 %v826_v62, %s8551_s14  ;;  %421 = vst.msk [vmem:[#allocation3 + $0x1f8] sm:$0xff] %vm229_vm1, %v9451_v25  ;;  %v839_v58 = vld [vmem:[#allocation2 + $0x249] sm:$0xff]  ;;  %v840_v62 = vld [vmem:[#allocation2 + $0x251] sm:$0xff] }
 0x143   :  { %v649_v33 = vpop.permute.xlu1 %648 }
 0x144   :  { %792 = vst.msk [vmem:[#allocation3 + $0x188] sm:$0xff] %vm742_vm3, %v649_v33  ;;  %v653_v17 = vpop.permute.xlu0 %652  ;;  %v651_v33 = vpop.permute.xlu2 %650 }
 0x145   :  { %794 = vst.msk [vmem:[#allocation3 + $0x198] sm:$0xff] %vm742_vm3, %v653_v17  ;;  %v829_v17 = vld [vmem:[#allocation2 + $0x169] sm:$0xff] }
 0x146   :  { %793 = vst.msk [vmem:[#allocation3 + $0x190] sm:$0xff] %vm742_vm3, %v651_v33  ;;  %v842_v33 = vld [vmem:[#allocation2 + $0x271] sm:$0xff] }
 0x149   :  { %995 = vrot.lane.b32.xlu1 %v837_v12, %s8551_s14 }
 0x14a   :  { %999 = vrot.lane.b32.xlu0 %v839_v58, %s8551_s14  ;;  %979 = vrot.lane.b32.xlu2 %v829_v17, %s8551_s14  ;;  %v845_v17 = vld [vmem:[#allocation2 + $0x2a9] sm:$0xff] }
 0x14b   :  { %v655_v24 = vpop.permute.xlu1 %654 }
 0x14c   :  { %795 = vst.msk [vmem:[#allocation3 + $0x1a0] sm:$0xff] %vm742_vm3, %v655_v24  ;;  %v659_v50 = vpop.permute.xlu0 %658  ;;  %v657_v24 = vpop.permute.xlu2 %656 }
 0x14d   :  { %797 = vst.msk [vmem:[#allocation3 + $0x1b0] sm:$0xff] %vm742_vm3, %v659_v50 }
 0x14e   :  { %796 = vst.msk [vmem:[#allocation3 + $0x1a8] sm:$0xff] %vm742_vm3, %v657_v24  ;;  %v848_v24 = vld [vmem:[#allocation2 + $0x2d1] sm:$0xff] }
 0x151   :  { %1001 = vrot.lane.b32.xlu1 %v840_v62, %s8551_s14  ;;  %v835_v62 = vld [vmem:[#allocation2 + $0x1c9] sm:$0xff] }
 0x152   :  { %1005 = vrot.lane.b32.xlu0 %v842_v33, %s8551_s14  ;;  %985 = vrot.lane.b32.xlu2 %v832_v34, %s8551_s14  ;;  %v838_v33 = vld [vmem:[#allocation2 + $0x1f1] sm:$0xff] }
 0x153   :  { %v661_v12 = vpop.permute.xlu1 %660 }
 0x154   :  { %798 = vst.msk [vmem:[#allocation3 + $0x1b8] sm:$0xff] %vm742_vm3, %v661_v12  ;;  %v665_v38 = vpop.permute.xlu0 %664  ;;  %v663_v58 = vpop.permute.xlu2 %662  ;;  %v846_v12 = vld [vmem:[#allocation2 + $0x2b1] sm:$0xff] }
 0x155   :  { %800 = vst.msk [vmem:[#allocation3 + $0x1c8] sm:$0xff] %vm742_vm3, %v665_v38 }
 0x156   :  { %799 = vst.msk [vmem:[#allocation3 + $0x1c0] sm:$0xff] %vm742_vm3, %v663_v58 }
 0x159   :  { %1007 = vrot.lane.b32.xlu1 %v843_v8, %s8551_s14 }
 0x15a   :  { %1011 = vrot.lane.b32.xlu0 %v845_v17, %s8551_s14  ;;  %991 = vrot.lane.b32.xlu2 %v835_v62, %s8551_s14 }
 0x15b   :  { %v667_v50 = vpop.permute.xlu1 %666 }
 0x15c   :  { %801 = vst.msk [vmem:[#allocation3 + $0x1d0] sm:$0xff] %vm742_vm3, %v667_v50  ;;  %v671_v34 = vpop.permute.xlu0 %670  ;;  %v669_v8 = vpop.permute.xlu2 %668  ;;  %v849_v50 = vld [vmem:[#allocation2 + $0x2e9] sm:$0xff] }
 0x15d   :  { %803 = vst.msk [vmem:[#allocation3 + $0x1e0] sm:$0xff] %vm742_vm3, %v671_v34  ;;  %v841_v34 = vld [vmem:[#allocation2 + $0x269] sm:$0xff] }
 0x15e   :  { %802 = vst.msk [vmem:[#allocation3 + $0x1d8] sm:$0xff] %vm742_vm3, %v669_v8  ;;  %v852_v8 = vld [vmem:[#allocation2 + $0x311] sm:$0xff] }
 0x161   :  { %1013 = vrot.lane.b32.xlu1 %v846_v12, %s8551_s14  ;;  %v851_v12 = vld [vmem:[#allocation2 + $0x309] sm:$0xff] }
 0x162   :  { %1017 = vrot.lane.b32.xlu0 %v848_v24, %s8551_s14  ;;  %997 = vrot.lane.b32.xlu2 %v838_v33, %s8551_s14 }
 0x163   :  { %v673_v38 = vpop.permute.xlu1 %672 }
 0x164   :  { %804 = vst.msk [vmem:[#allocation3 + $0x1e8] sm:$0xff] %vm742_vm3, %v673_v38  ;;  %v677_v58 = vpop.permute.xlu0 %676  ;;  %v675_v17 = vpop.permute.xlu2 %674 }
 0x165   :  { %806 = vst.msk [vmem:[#allocation3 + $0x1f8] sm:$0xff] %vm742_vm3, %v677_v58  ;;  %v844_v58 = vld [vmem:[#allocation2 + $0x291] sm:$0xff] }
 0x166   :  { %805 = vst.msk [vmem:[#allocation3 + $0x1f0] sm:$0xff] %vm742_vm3, %v675_v17  ;;  %v855_v17 = vld [vmem:[#allocation2 + $0x349] sm:$0xff]  ;;  %vm6347_vm3 = vcmask 392512  }
 0x169   :  { %1019 = vrot.lane.b32.xlu1 %v849_v50, %s8551_s14  ;;  %v854_v50 = vld [vmem:[#allocation2 + $0x331] sm:$0xff] }
 0x16a   :  { %1023 = vrot.lane.b32.xlu0 %v851_v12, %s8551_s14  ;;  %1003 = vrot.lane.b32.xlu2 %v841_v34, %s8551_s14 }
 0x16b   :  { %v936_v62 = vpop.permute.xlu1 %935 }
 0x16c   :  { %1128 = vst.msk [vmem:[#allocation3] sm:$0xff] %vm1127_vm5, %v936_v62  ;;  %v940_v38 = vpop.permute.xlu0 %939  ;;  %v938_v24 = vpop.permute.xlu2 %937 }
 0x16d   :  { %1130 = vst.msk [vmem:[#allocation3 + $0x10] sm:$0xff] %vm1127_vm5, %v940_v38  ;;  %v847_v38 = vld [vmem:[#allocation2 + $0x2c9] sm:$0xff] }
 0x16e   :  { %1129 = vst.msk [vmem:[#allocation3 + $0x8] sm:$0xff] %vm1127_vm5, %v938_v24  ;;  %v858_v24 = vld [vmem:[#allocation2 + $0x371] sm:$0xff] }
 0x171   :  { %1025 = vrot.lane.b32.xlu1 %v852_v8, %s8551_s14  ;;  %v857_v8 = vld [vmem:[#allocation2 + $0x369] sm:$0xff] }
 0x172   :  { %1029 = vrot.lane.b32.xlu0 %v854_v50, %s8551_s14  ;;  %1009 = vrot.lane.b32.xlu2 %v844_v58, %s8551_s14 }
 0x173   :  { %v942_v33 = vpop.permute.xlu1 %941 }
 0x174   :  { %1131 = vst.msk [vmem:[#allocation3 + $0x18] sm:$0xff] %vm1127_vm5, %v942_v33  ;;  %v946_v62 = vpop.permute.xlu0 %945  ;;  %v944_v12 = vpop.permute.xlu2 %943 }
 0x175   :  { %1133 = vst.msk [vmem:[#allocation3 + $0x28] sm:$0xff] %vm1127_vm5, %v946_v62  ;;  %v850_v62 = vld [vmem:[#allocation2 + $0x2f1] sm:$0xff] }
 0x176   :  { %1132 = vst.msk [vmem:[#allocation3 + $0x20] sm:$0xff] %vm1127_vm5, %v944_v12  ;;  %v861_v12 = vld [vmem:[#allocation2 + $0x3a9] sm:$0xff] }
 0x179   :  { %1031 = vrot.lane.b32.xlu1 %v855_v17, %s8551_s14  ;;  %v860_v17 = vld [vmem:[#allocation2 + $0x391] sm:$0xff] }
 0x17a   :  { %1035 = vrot.lane.b32.xlu0 %v857_v8, %s8551_s14  ;;  %1015 = vrot.lane.b32.xlu2 %v847_v38, %s8551_s14 }
 0x17b   :  { %v948_v34 = vpop.permute.xlu1 %947 }
 0x17c   :  { %1134 = vst.msk [vmem:[#allocation3 + $0x30] sm:$0xff] %vm1127_vm5, %v948_v34  ;;  %v952_v33 = vpop.permute.xlu0 %951  ;;  %v950_v50 = vpop.permute.xlu2 %949 }
 0x17d   :  { %1136 = vst.msk [vmem:[#allocation3 + $0x40] sm:$0xff] %vm1127_vm5, %v952_v33  ;;  %v853_v33 = vld [vmem:[#allocation2 + $0x329] sm:$0xff] }
 0x17e   :  { %1135 = vst.msk [vmem:[#allocation3 + $0x38] sm:$0xff] %vm1127_vm5, %v950_v50  ;;  %v864_v50 = vld [vmem:[#allocation2 + $0x3d1] sm:$0xff] }
 0x181   :  { %1037 = vrot.lane.b32.xlu1 %v858_v24, %s8551_s14  ;;  %v863_v24 = vld [vmem:[#allocation2 + $0x3c9] sm:$0xff] }
 0x182   :  { %1041 = vrot.lane.b32.xlu0 %v860_v17, %s8551_s14  ;;  %1021 = vrot.lane.b32.xlu2 %v850_v62, %s8551_s14 }
 0x183   :  { %v954_v58 = vpop.permute.xlu1 %953 }
 0x184   :  { %1137 = vst.msk [vmem:[#allocation3 + $0x48] sm:$0xff] %vm1127_vm5, %v954_v58  ;;  %v958_v34 = vpop.permute.xlu0 %957  ;;  %v956_v8 = vpop.permute.xlu2 %955 }
 0x185   :  { %1139 = vst.msk [vmem:[#allocation3 + $0x58] sm:$0xff] %vm1127_vm5, %v958_v34  ;;  %v856_v34 = vld [vmem:[#allocation2 + $0x351] sm:$0xff] }
 0x186   :  { %1138 = vst.msk [vmem:[#allocation3 + $0x50] sm:$0xff] %vm1127_vm5, %v956_v8  ;;  %v867_v8 = vld [vmem:[#allocation2 + $0x409] sm:$0xff] }
 0x189   :  { %1043 = vrot.lane.b32.xlu1 %v861_v12, %s8551_s14  ;;  %v866_v12 = vld [vmem:[#allocation2 + $0x3f1] sm:$0xff] }
 0x18a   :  { %1047 = vrot.lane.b32.xlu0 %v863_v24, %s8551_s14  ;;  %1027 = vrot.lane.b32.xlu2 %v853_v33, %s8551_s14 }
 0x18b   :  { %v960_v38 = vpop.permute.xlu1 %959 }
 0x18c   :  { %1140 = vst.msk [vmem:[#allocation3 + $0x60] sm:$0xff] %vm1127_vm5, %v960_v38  ;;  %v964_v58 = vpop.permute.xlu0 %963  ;;  %v962_v17 = vpop.permute.xlu2 %961 }
 0x18d   :  { %1142 = vst.msk [vmem:[#allocation3 + $0x70] sm:$0xff] %vm1127_vm5, %v964_v58  ;;  %v859_v58 = vld [vmem:[#allocation2 + $0x389] sm:$0xff] }
 0x18e   :  { %1141 = vst.msk [vmem:[#allocation3 + $0x68] sm:$0xff] %vm1127_vm5, %v962_v17  ;;  %v870_v17 = vld [vmem:[#allocation2 + $0x431] sm:$0xff] }
 0x191   :  { %1049 = vrot.lane.b32.xlu1 %v864_v50, %s8551_s14  ;;  %v869_v50 = vld [vmem:[#allocation2 + $0x429] sm:$0xff] }
 0x192   :  { %1053 = vrot.lane.b32.xlu0 %v866_v12, %s8551_s14  ;;  %1033 = vrot.lane.b32.xlu2 %v856_v34, %s8551_s14 }
 0x193   :  { %v966_v62 = vpop.permute.xlu1 %965 }
 0x194   :  { %1143 = vst.msk [vmem:[#allocation3 + $0x78] sm:$0xff] %vm1127_vm5, %v966_v62  ;;  %v970_v38 = vpop.permute.xlu0 %969  ;;  %v968_v24 = vpop.permute.xlu2 %967 }
 0x195   :  { %1145 = vst.msk [vmem:[#allocation3 + $0x88] sm:$0xff] %vm1127_vm5, %v970_v38 }
 0x196   :  { %1144 = vst.msk [vmem:[#allocation3 + $0x80] sm:$0xff] %vm1127_vm5, %v968_v24 }
 0x199   :  { %1055 = vrot.lane.b32.xlu1 %v867_v8, %s8551_s14  ;;  %v862_v8 = vld [vmem:[#allocation2 + $0x3b1] sm:$0xff] }
 0x19a   :  { %1059 = vrot.lane.b32.xlu0 %v869_v50, %s8551_s14  ;;  %1039 = vrot.lane.b32.xlu2 %v859_v58, %s8551_s14  ;;  %v865_v50 = vld [vmem:[#allocation2 + $0x3e9] sm:$0xff] }
 0x19b   :  { %v972_v33 = vpop.permute.xlu1 %971 }
 0x19c   :  { %1146 = vst.msk [vmem:[#allocation3 + $0x90] sm:$0xff] %vm1127_vm5, %v972_v33  ;;  %v976_v62 = vpop.permute.xlu0 %975  ;;  %v974_v12 = vpop.permute.xlu2 %973 }
 0x19d   :  { %1148 = vst.msk [vmem:[#allocation3 + $0xa0] sm:$0xff] %vm1127_vm5, %v976_v62 }
 0x19e   :  { %1147 = vst.msk [vmem:[#allocation3 + $0x98] sm:$0xff] %vm1127_vm5, %v974_v12  ;;  %v1192_v12 = vld [vmem:[#allocation2 + $0x27] sm:$0xff] }
 0x1a1   :  { %1061 = vrot.lane.b32.xlu1 %v870_v17, %s8551_s14  ;;  %v868_v17 = vld [vmem:[#allocation2 + $0x411] sm:$0xff] }
 0x1a2   :  { %1322 = vrot.lane.b32.xlu0 %v9017_v36, %s8552_s18  ;;  %1045 = vrot.lane.b32.xlu2 %v862_v8, %s8551_s14  ;;  %v1195_v8 = vld [vmem:[#allocation2 + $0x4f] sm:$0xff] }
 0x1a3   :  { %v978_v34 = vpop.permute.xlu1 %977 }
 0x1a4   :  { %1149 = vst.msk [vmem:[#allocation3 + $0xa8] sm:$0xff] %vm1127_vm5, %v978_v34  ;;  %v982_v38 = vpop.permute.xlu0 %981  ;;  %v980_v24 = vpop.permute.xlu2 %979 }
 0x1a5   :  { %1151 = vst.msk [vmem:[#allocation3 + $0xb8] sm:$0xff] %vm1127_vm5, %v982_v38 }
 0x1a6   :  { %1150 = vst.msk [vmem:[#allocation3 + $0xb0] sm:$0xff] %vm1127_vm5, %v980_v24  ;;  %v195_v24 = vld [vmem:[%s13138_s0 + $0xf0] sm:$0xff] }
 0x1a7   :  { %260 = vst.msk [vmem:[#allocation2 + $0x208] sm:$0xff] %vm229_vm1, %v195_v24  ;;  %v13236_v24 = vld [vmem:[#allocation6_spill] sm:$0xff] }
 0x1a9   :  { %1324 = vrot.lane.b32.xlu1 %v9013_v35, %s8552_s18 }
 0x1aa   :  { %1328 = vrot.lane.b32.xlu0 %v9039_v42, %s8552_s18  ;;  %1051 = vrot.lane.b32.xlu2 %v865_v50, %s8551_s14 }
 0x1ab   :  { %v984_v33 = vpop.permute.xlu1 %983 }
 0x1ac   :  { %1152 = vst.msk [vmem:[#allocation3 + $0xc0] sm:$0xff] %vm1127_vm5, %v984_v33  ;;  %v988_v36 = vpop.permute.xlu0 %987  ;;  %v986_v35 = vpop.permute.xlu2 %985 }
 0x1ad   :  { %1154 = vst.msk [vmem:[#allocation3 + $0xd0] sm:$0xff] %vm1127_vm5, %v988_v36 }
 0x1ae   :  { %1153 = vst.msk [vmem:[#allocation3 + $0xc8] sm:$0xff] %vm1127_vm5, %v986_v35 }
 0x1b1   :  { %1330 = vrot.lane.b32.xlu1 %v9047_v45, %s8552_s18 }
 0x1b2   :  { %1334 = vrot.lane.b32.xlu0 %v9070_v54, %s8552_s18  ;;  %1057 = vrot.lane.b32.xlu2 %v868_v17, %s8551_s14 }
 0x1b3   :  { %v990_v58 = vpop.permute.xlu1 %989 }
 0x1b4   :  { %1155 = vst.msk [vmem:[#allocation3 + $0xd8] sm:$0xff] %vm1127_vm5, %v990_v58  ;;  %v994_v42 = vpop.permute.xlu0 %993  ;;  %v992_v45 = vpop.permute.xlu2 %991  ;;  %v1222_v58 = vld [vmem:[#allocation2 + $0x207] sm:$0xff] }
 0x1b5   :  { %1157 = vst.msk [vmem:[#allocation3 + $0xe8] sm:$0xff] %vm1127_vm5, %v994_v42 }
 0x1b6   :  { %1156 = vst.msk [vmem:[#allocation3 + $0xe0] sm:$0xff] %vm1127_vm5, %v992_v45 }
 0x1b9   :  { %1336 = vrot.lane.b32.xlu1 %v9080_v57, %s8552_s18 }
 0x1ba   :  { %1340 = vrot.lane.b32.xlu0 %v9105_v3, %s8552_s18  ;;  %1320 = vrot.lane.b32.xlu2 %v1192_v12, %s8552_s18 }
 0x1bb   :  { %v996_v62 = vpop.permute.xlu1 %995 }
 0x1bc   :  { %1158 = vst.msk [vmem:[#allocation3 + $0xf0] sm:$0xff] %vm1127_vm5, %v996_v62  ;;  %v1000_v54 = vpop.permute.xlu0 %999  ;;  %v998_v57 = vpop.permute.xlu2 %997 }
 0x1bd   :  { %1160 = vst.msk [vmem:[#allocation3 + $0x100] sm:$0xff] %vm1127_vm5, %v1000_v54  ;;  %v1577_v54 = vld [vmem:[#allocation2 + $0x28] sm:$0xff] }
 0x1be   :  { %1159 = vst.msk [vmem:[#allocation3 + $0xf8] sm:$0xff] %vm1127_vm5, %v998_v57  ;;  %v1578_v57 = vld [vmem:[#allocation2 + $0x30] sm:$0xff] }
 0x1c1   :  { %1342 = vrot.lane.b32.xlu1 %v9116_v5, %s8552_s18 }
 0x1c2   :  { %1346 = vrot.lane.b32.xlu0 %v9141_v15, %s8552_s18  ;;  %1326 = vrot.lane.b32.xlu2 %v1195_v8, %s8552_s18  ;;  %v196_v15 = vld [vmem:[%s13138_s0 + $0xf8] sm:$0xff] }
 0x1c3   :  { %v1002_v34 = vpop.permute.xlu1 %1001  ;;  %261 = vst.msk [vmem:[#allocation2 + $0x210] sm:$0xff] %vm229_vm1, %v196_v15 }
 0x1c4   :  { %1161 = vst.msk [vmem:[#allocation3 + $0x108] sm:$0xff] %vm1127_vm5, %v1002_v34  ;;  %v1006_v3 = vpop.permute.xlu0 %1005  ;;  %v1004_v5 = vpop.permute.xlu2 %1003 }
 0x1c5   :  { %1163 = vst.msk [vmem:[#allocation3 + $0x118] sm:$0xff] %vm1127_vm5, %v1006_v3 }
 0x1c6   :  { %1162 = vst.msk [vmem:[#allocation3 + $0x110] sm:$0xff] %vm1127_vm5, %v1004_v5  ;;  %v1580_v5 = vld [vmem:[#allocation2 + $0x50] sm:$0xff] }
 0x1c9   :  { %1348 = vrot.lane.b32.xlu1 %v9154_v18, %s8552_s18 }
 0x1ca   :  { %1352 = vrot.lane.b32.xlu0 %v9177_v27, %s8552_s18  ;;  %1332 = vrot.lane.b32.xlu2 %v9075_v55, %s8552_s18  ;;  %v1223_v36 = vld [vmem:[#allocation2 + $0x20f] sm:$0xff] }
 0x1cb   :  { %v1008_v38 = vpop.permute.xlu1 %1007 }
 0x1cc   :  { %1164 = vst.msk [vmem:[#allocation3 + $0x120] sm:$0xff] %vm1127_vm5, %v1008_v38  ;;  %v1012_v18 = vpop.permute.xlu0 %1011  ;;  %v1010_v33 = vpop.permute.xlu2 %1009  ;;  %v1581_v38 = vld [vmem:[#allocation2 + $0x68] sm:$0xff] }
 0x1cd   :  { %1166 = vst.msk [vmem:[#allocation3 + $0x130] sm:$0xff] %vm1127_vm5, %v1012_v18 }
 0x1ce   :  { %1165 = vst.msk [vmem:[#allocation3 + $0x128] sm:$0xff] %vm1127_vm5, %v1010_v33 }
 0x1d1   :  { %1354 = vrot.lane.b32.xlu1 %v9188_v30, %s8552_s18 }
 0x1d2   :  { %1358 = vrot.lane.b32.xlu0 %v9204_v0, %s8552_s18  ;;  %1338 = vrot.lane.b32.xlu2 %v9110_v4, %s8552_s18 }
 0x1d3   :  { %v1014_v50 = vpop.permute.xlu1 %1013 }
 0x1d4   :  { %1167 = vst.msk [vmem:[#allocation3 + $0x138] sm:$0xff] %vm1127_vm5, %v1014_v50  ;;  %v1018_v55 = vpop.permute.xlu0 %1017  ;;  %v1016_v27 = vpop.permute.xlu2 %1015  ;;  %v1583_v50 = vld [vmem:[#allocation2 + $0x88] sm:$0xff] }
 0x1d5   :  { %1169 = vst.msk [vmem:[#allocation3 + $0x148] sm:$0xff] %vm1127_vm5, %v1018_v55  ;;  %v1584_v55 = vld [vmem:[#allocation2 + $0x90] sm:$0xff] }
 0x1d6   :  { %1168 = vst.msk [vmem:[#allocation3 + $0x140] sm:$0xff] %vm1127_vm5, %v1016_v27  ;;  %v13237_v27 = vld [vmem:[#allocation7_spill] sm:$0xff] }
 0x1d9   :  { %1360 = vrot.lane.b32.xlu1 %v9216_v43, %s8552_s18 }
 0x1da   :  { %1364 = vrot.lane.b32.xlu0 %v9226_v47, %s8552_s18  ;;  %1344 = vrot.lane.b32.xlu2 %v9146_v16, %s8552_s18 }
 0x1db   :  { %v1020_v30 = vpop.permute.xlu1 %1019 }
 0x1dc   :  { %1170 = vst.msk [vmem:[#allocation3 + $0x150] sm:$0xff] %vm1127_vm5, %v1020_v30  ;;  %v1024_v4 = vpop.permute.xlu0 %1023  ;;  %v1022_v0 = vpop.permute.xlu2 %1021 }
 0x1dd   :  { %1172 = vst.msk [vmem:[#allocation3 + $0x160] sm:$0xff] %vm1127_vm5, %v1024_v4 }
 0x1de   :  { %1171 = vst.msk [vmem:[#allocation3 + $0x158] sm:$0xff] %vm1127_vm5, %v1022_v0 }
 0x1e1   :  { %1366 = vrot.lane.b32.xlu1 %v9240_v56, %s8552_s18 }
 0x1e2   :  { %1370 = vrot.lane.b32.xlu0 %v9250_v60, %s8552_s18  ;;  %1350 = vrot.lane.b32.xlu2 %v9182_v28, %s8552_s18 }
 0x1e3   :  { %v1026_v43 = vpop.permute.xlu1 %1025 }
 0x1e4   :  { %1173 = vst.msk [vmem:[#allocation3 + $0x168] sm:$0xff] %vm1127_vm5, %v1026_v43  ;;  %v1030_v16 = vpop.permute.xlu0 %1029  ;;  %v1028_v47 = vpop.permute.xlu2 %1027  ;;  %v1586_v43 = vld [vmem:[#allocation2 + $0xb0] sm:$0xff] }
 0x1e5   :  { %1175 = vst.msk [vmem:[#allocation3 + $0x178] sm:$0xff] %vm1127_vm5, %v1030_v16 }
 0x1e6   :  { %1174 = vst.msk [vmem:[#allocation3 + $0x170] sm:$0xff] %vm1127_vm5, %v1028_v47  ;;  %v1587_v47 = vld [vmem:[#allocation2 + $0xc8] sm:$0xff] }
 0x1e9   :  { %1372 = vrot.lane.b32.xlu1 %v9263_v1, %s8552_s18 }
 0x1ea   :  { %1376 = vrot.lane.b32.xlu0 %v9273_v9, %s8552_s18  ;;  %1356 = vrot.lane.b32.xlu2 %v9210_v40, %s8552_s18 }
 0x1eb   :  { %v1032_v56 = vpop.permute.xlu1 %1031 }
 0x1ec   :  { %1176 = vst.msk [vmem:[#allocation3 + $0x180] sm:$0xff] %vm1127_vm5, %v1032_v56  ;;  %v1036_v28 = vpop.permute.xlu0 %1035  ;;  %v1034_v60 = vpop.permute.xlu2 %1033 }
 0x1ed   :  { %1178 = vst.msk [vmem:[#allocation3 + $0x190] sm:$0xff] %vm1127_vm5, %v1036_v28 }
 0x1ee   :  { %1177 = vst.msk [vmem:[#allocation3 + $0x188] sm:$0xff] %vm1127_vm5, %v1034_v60 }
 0x1f1   :  { %1378 = vrot.lane.b32.xlu1 %v9283_v14, %s8552_s18 }
 0x1f2   :  { %1382 = vrot.lane.b32.xlu0 %v1223_v36, %s8552_s18  ;;  %1362 = vrot.lane.b32.xlu2 %v9232_v51, %s8552_s18  ;;  %v1579_v36 = vld [vmem:[#allocation2 + $0x48] sm:$0xff] }
 0x1f3   :  { %v1038_v1 = vpop.permute.xlu1 %1037 }
 0x1f4   :  { %1179 = vst.msk [vmem:[#allocation3 + $0x198] sm:$0xff] %vm1127_vm5, %v1038_v1  ;;  %v1042_v40 = vpop.permute.xlu0 %1041  ;;  %v1040_v9 = vpop.permute.xlu2 %1039  ;;  %v1589_v1 = vld [vmem:[#allocation2 + $0xe8] sm:$0xff] }
 0x1f5   :  { %1181 = vst.msk [vmem:[#allocation3 + $0x1a8] sm:$0xff] %vm1127_vm5, %v1042_v40  ;;  %v1590_v40 = vld [vmem:[#allocation2 + $0xf0] sm:$0xff] }
 0x1f6   :  { %1180 = vst.msk [vmem:[#allocation3 + $0x1a0] sm:$0xff] %vm1127_vm5, %v1040_v9 }
 0x1f9   :  { %1384 = vrot.lane.b32.xlu1 %v9295_v26, %s8552_s18 }
 0x1fa   :  { %1388 = vrot.lane.b32.xlu0 %v9300_v29, %s8552_s18  ;;  %1368 = vrot.lane.b32.xlu2 %v9255_v63, %s8552_s18 }
 0x1fb   :  { %v1044_v14 = vpop.permute.xlu1 %1043 }
 0x1fc   :  { %1182 = vst.msk [vmem:[#allocation3 + $0x1b0] sm:$0xff] %vm1127_vm5, %v1044_v14  ;;  %v1048_v51 = vpop.permute.xlu0 %1047  ;;  %v1046_v26 = vpop.permute.xlu2 %1045 }
 0x1fd   :  { %1184 = vst.msk [vmem:[#allocation3 + $0x1c0] sm:$0xff] %vm1127_vm5, %v1048_v51 }
 0x1fe   :  { %1183 = vst.msk [vmem:[#allocation3 + $0x1b8] sm:$0xff] %vm1127_vm5, %v1046_v26  ;;  %v1592_v26 = vld [vmem:[#allocation2 + $0x110] sm:$0xff] }
 0x201   :  { %1390 = vrot.lane.b32.xlu1 %v9312_v32, %s8552_s18 }
 0x202   :  { %1394 = vrot.lane.b32.xlu0 %v9317_v39, %s8552_s18  ;;  %1374 = vrot.lane.b32.xlu2 %v9277_v13, %s8552_s18 }
 0x203   :  { %v1050_v35 = vpop.permute.xlu1 %1049 }
 0x204   :  { %1185 = vst.msk [vmem:[#allocation3 + $0x1c8] sm:$0xff] %vm1127_vm5, %v1050_v35  ;;  %v1054_v63 = vpop.permute.xlu0 %1053  ;;  %v1052_v29 = vpop.permute.xlu2 %1051  ;;  %v1582_v35 = vld [vmem:[#allocation2 + $0x70] sm:$0xff] }
 0x205   :  { %1187 = vst.msk [vmem:[#allocation3 + $0x1d8] sm:$0xff] %vm1127_vm5, %v1054_v63  ;;  %v1593_v63 = vld [vmem:[#allocation2 + $0x128] sm:$0xff] }
 0x206   :  { %1186 = vst.msk [vmem:[#allocation3 + $0x1d0] sm:$0xff] %vm1127_vm5, %v1052_v29 }
 0x209   :  { %1396 = vrot.lane.b32.xlu1 %v9329_v48, %s8552_s18 }
 0x20a   :  { %1400 = vrot.lane.b32.xlu0 %v9334_v49, %s8552_s18  ;;  %1380 = vrot.lane.b32.xlu2 %v1222_v58, %s8552_s18 }
 0x20b   :  { %v1056_v32 = vpop.permute.xlu1 %1055 }
 0x20c   :  { %1188 = vst.msk [vmem:[#allocation3 + $0x1e0] sm:$0xff] %vm1127_vm5, %v1056_v32  ;;  %v1060_v13 = vpop.permute.xlu0 %1059  ;;  %v1058_v39 = vpop.permute.xlu2 %1057 }
 0x20d   :  { %1190 = vst.msk [vmem:[#allocation3 + $0x1f0] sm:$0xff] %vm1127_vm5, %v1060_v13  ;;  %v1595_v13 = vld [vmem:[#allocation2 + $0x148] sm:$0xff] }
 0x20e   :  { %1189 = vst.msk [vmem:[#allocation3 + $0x1e8] sm:$0xff] %vm1127_vm5, %v1058_v39  ;;  %v1585_v39 = vld [vmem:[#allocation2 + $0xa8] sm:$0xff] }
 0x211   :  { %1402 = vrot.lane.b32.xlu1 %v9343_v59, %s8552_s18 }
 0x212   :  { %1406 = vrot.lane.b32.xlu0 %v9349_v61, %s8552_s18  ;;  %1386 = vrot.lane.b32.xlu2 %v9307_v31, %s8552_s18  ;;  %v227_v61 = vld [vmem:[%s13138_s0 + $0x1f0] sm:$0xff] }
 0x213   :  { %v1062_v48 = vpop.permute.xlu1 %1061  ;;  %292 = vst.msk [vmem:[#allocation2 + $0x448] sm:$0xff] %vm229_vm1, %v227_v61  ;;  %v1598_v61 = vld [vmem:[#allocation2 + $0x170] sm:$0xff] }
 0x214   :  { %1191 = vst.msk [vmem:[#allocation3 + $0x1f8] sm:$0xff] %vm1127_vm5, %v1062_v48  ;;  %v1323_v49 = vpop.permute.xlu0 %1322  ;;  %v1321_v59 = vpop.permute.xlu2 %1320  ;;  %v1596_v48 = vld [vmem:[#allocation2 + $0x150] sm:$0xff]  ;;  %vm7117_vm5 = vcmask 523712  }
 0x215   :  { %1514 = vst.msk [vmem:[#allocation3 + $0x8] sm:$0xff] %vm1512_vm6, %v1323_v49 }
 0x216   :  { %1513 = vst.msk [vmem:[#allocation3] sm:$0xff] %vm1512_vm6, %v1321_v59 }
 0x219   :  { %1408 = vrot.lane.b32.xlu1 %v9360_v7, %s8552_s18 }
 0x21a   :  { %1412 = vrot.lane.b32.xlu0 %v9365_v10, %s8552_s18  ;;  %1392 = vrot.lane.b32.xlu2 %v9323_v46, %s8552_s18 }
 0x21b   :  { %v1325_v17 = vpop.permute.xlu1 %1324 }
 0x21c   :  { %1515 = vst.msk [vmem:[#allocation3 + $0x10] sm:$0xff] %vm1512_vm6, %v1325_v17  ;;  %v1329_v31 = vpop.permute.xlu0 %1328  ;;  %v1327_v7 = vpop.permute.xlu2 %1326 }
 0x21d   :  { %1517 = vst.msk [vmem:[#allocation3 + $0x20] sm:$0xff] %vm1512_vm6, %v1329_v31  ;;  %v1588_v31 = vld [vmem:[#allocation2 + $0xd0] sm:$0xff] }
 0x21e   :  { %1516 = vst.msk [vmem:[#allocation3 + $0x18] sm:$0xff] %vm1512_vm6, %v1327_v7  ;;  %v1599_v7 = vld [vmem:[#allocation2 + $0x188] sm:$0xff] }
 0x221   :  { %1414 = vrot.lane.b32.xlu1 %v9372_v20, %s8552_s18 }
 0x222   :  { %1418 = vrot.lane.b32.xlu0 %v9381_v21, %s8552_s18  ;;  %1398 = vrot.lane.b32.xlu2 %v9339_v52, %s8552_s18 }
 0x223   :  { %v1331_v42 = vpop.permute.xlu1 %1330 }
 0x224   :  { %1518 = vst.msk [vmem:[#allocation3 + $0x28] sm:$0xff] %vm1512_vm6, %v1331_v42  ;;  %v1335_v46 = vpop.permute.xlu0 %1334  ;;  %v1333_v10 = vpop.permute.xlu2 %1332 }
 0x225   :  { %1520 = vst.msk [vmem:[#allocation3 + $0x38] sm:$0xff] %vm1512_vm6, %v1335_v46 }
 0x226   :  { %1519 = vst.msk [vmem:[#allocation3 + $0x30] sm:$0xff] %vm1512_vm6, %v1333_v10 }
 0x229   :  { %1420 = vrot.lane.b32.xlu1 %v9389_v23, %s8552_s18 }
 0x22a   :  { %1424 = vrot.lane.b32.xlu0 %v9399_v37, %s8552_s18  ;;  %1404 = vrot.lane.b32.xlu2 %v9356_v6, %s8552_s18 }
 0x22b   :  { %v1337_v20 = vpop.permute.xlu1 %1336 }
 0x22c   :  { %1521 = vst.msk [vmem:[#allocation3 + $0x40] sm:$0xff] %vm1512_vm6, %v1337_v20  ;;  %v1341_v52 = vpop.permute.xlu0 %1340  ;;  %v1339_v21 = vpop.permute.xlu2 %1338  ;;  %v1601_v20 = vld [vmem:[#allocation2 + $0x1a8] sm:$0xff] }
 0x22d   :  { %1523 = vst.msk [vmem:[#allocation3 + $0x50] sm:$0xff] %vm1512_vm6, %v1341_v52  ;;  %v1591_v52 = vld [vmem:[#allocation2 + $0x108] sm:$0xff] }
 0x22e   :  { %1522 = vst.msk [vmem:[#allocation3 + $0x48] sm:$0xff] %vm1512_vm6, %v1339_v21  ;;  %v1602_v21 = vld [vmem:[#allocation2 + $0x1b0] sm:$0xff] }
 0x231   :  { %1426 = vrot.lane.b32.xlu1 %v9407_v41, %s8552_s18 }
 0x232   :  { %1430 = vrot.lane.b32.xlu0 %v9416_v2, %s8552_s18  ;;  %1410 = vrot.lane.b32.xlu2 %v9369_v19, %s8552_s18  ;;  %v228_v2 = vld [vmem:[%s13138_s0 + $0x1f8] sm:$0xff]  ;;  %s8553_s0 = smov 16  }
 0x233   :  { %v1343_v23 = vpop.permute.xlu1 %1342  ;;  %293 = vst.msk [vmem:[#allocation2 + $0x450] sm:$0xff] %vm229_vm1, %v228_v2  ;;  %v1594_v2 = vld [vmem:[#allocation2 + $0x130] sm:$0xff]  ;;  %vm5577_vm1 = vcmask 261312  }
 0x234   :  { %1524 = vst.msk [vmem:[#allocation3 + $0x58] sm:$0xff] %vm1512_vm6, %v1343_v23  ;;  %v1347_v6 = vpop.permute.xlu0 %1346  ;;  %v1345_v37 = vpop.permute.xlu2 %1344 }
 0x235   :  { %1526 = vst.msk [vmem:[#allocation3 + $0x68] sm:$0xff] %vm1512_vm6, %v1347_v6 }
 0x236   :  { %1525 = vst.msk [vmem:[#allocation3 + $0x60] sm:$0xff] %vm1512_vm6, %v1345_v37 }
 0x239   :  { %1432 = vrot.lane.b32.xlu1 %v9424_v11, %s8552_s18 }
 0x23a   :  { %1436 = vrot.lane.b32.xlu0 %v9433_v44, %s8552_s18  ;;  %1416 = vrot.lane.b32.xlu2 %v9383_v22, %s8552_s18  ;;  %v1254_v44 = vld [vmem:[#allocation2 + $0x447] sm:$0xff]  ;;  %v1255_v16 = vld [vmem:[#allocation2 + $0x44f] sm:$0xff] }
 0x23b   :  { %v1349_v41 = vpop.permute.xlu1 %1348  ;;  %v13234_v22 = vld [vmem:[#allocation4_spill] sm:$0xff] }
 0x23c   :  { %1527 = vst.msk [vmem:[#allocation3 + $0x70] sm:$0xff] %vm1512_vm6, %v1349_v41  ;;  %v1353_v19 = vpop.permute.xlu0 %1352  ;;  %v1351_v11 = vpop.permute.xlu2 %1350  ;;  %v1604_v41 = vld [vmem:[#allocation2 + $0x1d0] sm:$0xff] }
 0x23d   :  { %1529 = vst.msk [vmem:[#allocation3 + $0x80] sm:$0xff] %vm1512_vm6, %v1353_v19  ;;  %v1605_v19 = vld [vmem:[#allocation2 + $0x1e8] sm:$0xff] }
 0x23e   :  { %1528 = vst.msk [vmem:[#allocation3 + $0x78] sm:$0xff] %vm1512_vm6, %v1351_v11 }
 0x241   :  { %1438 = vrot.lane.b32.xlu1 %v9442_v53, %s8552_s18 }
 0x242   :  { %1442 = vrot.lane.b32.xlu0 %v9451_v25, %s8552_s18  ;;  %1422 = vrot.lane.b32.xlu2 %v13234_v22, %s8552_s18  ;;  %v13235_v25 = vld [vmem:[#allocation5_spill] sm:$0xff] }
 0x243   :  { %v1355_v45 = vpop.permute.xlu1 %1354  ;;  %v1607_v22 = vld [vmem:[#allocation2 + $0x208] sm:$0xff] }
 0x244   :  { %1530 = vst.msk [vmem:[#allocation3 + $0x88] sm:$0xff] %vm1512_vm6, %v1355_v45  ;;  %v1359_v53 = vpop.permute.xlu0 %1358  ;;  %v1357_v62 = vpop.permute.xlu2 %1356 }
 0x245   :  { %1532 = vst.msk [vmem:[#allocation3 + $0x98] sm:$0xff] %vm1512_vm6, %v1359_v53  ;;  %v1597_v53 = vld [vmem:[#allocation2 + $0x168] sm:$0xff] }
 0x246   :  { %1531 = vst.msk [vmem:[#allocation3 + $0x90] sm:$0xff] %vm1512_vm6, %v1357_v62  ;;  %v1608_v62 = vld [vmem:[#allocation2 + $0x210] sm:$0xff] }
 0x249   :  { %1444 = vrot.lane.b32.xlu1 %v1254_v44, %s8552_s18 }
 0x24a   :  { %1705 = vrot.lane.b32.xlu0 %v1577_v54, %s8553_s0  ;;  %1428 = vrot.lane.b32.xlu2 %v13235_v25, %s8552_s18  ;;  %v1610_v25 = vld [vmem:[#allocation2 + $0x270] sm:$0xff] }
 0x24b   :  { %v1361_v12 = vpop.permute.xlu1 %1360 }
 0x24c   :  { %1533 = vst.msk [vmem:[#allocation3 + $0xa0] sm:$0xff] %vm1512_vm6, %v1361_v12  ;;  %v1365_v34 = vpop.permute.xlu0 %1364  ;;  %v1363_v8 = vpop.permute.xlu2 %1362 }
 0x24d   :  { %1535 = vst.msk [vmem:[#allocation3 + $0xb0] sm:$0xff] %vm1512_vm6, %v1365_v34  ;;  %v1600_v34 = vld [vmem:[#allocation2 + $0x190] sm:$0xff] }
 0x24e   :  { %1534 = vst.msk [vmem:[#allocation3 + $0xa8] sm:$0xff] %vm1512_vm6, %v1363_v8  ;;  %v1611_v8 = vld [vmem:[#allocation2 + $0x288] sm:$0xff] }
 0x251   :  { %1707 = vrot.lane.b32.xlu1 %v1578_v57, %s8553_s0 }
 0x252   :  { %1711 = vrot.lane.b32.xlu0 %v1580_v5, %s8553_s0  ;;  %1434 = vrot.lane.b32.xlu2 %v13236_v24, %s8552_s18  ;;  %v1613_v24 = vld [vmem:[#allocation2 + $0x2a8] sm:$0xff] }
 0x253   :  { %v1367_v3 = vpop.permute.xlu1 %1366 }
 0x254   :  { %1536 = vst.msk [vmem:[#allocation3 + $0xb8] sm:$0xff] %vm1512_vm6, %v1367_v3  ;;  %v1371_v15 = vpop.permute.xlu0 %1370  ;;  %v1369_v18 = vpop.permute.xlu2 %1368 }
 0x255   :  { %1538 = vst.msk [vmem:[#allocation3 + $0xc8] sm:$0xff] %vm1512_vm6, %v1371_v15  ;;  %v1603_v15 = vld [vmem:[#allocation2 + $0x1c8] sm:$0xff] }
 0x256   :  { %1537 = vst.msk [vmem:[#allocation3 + $0xc0] sm:$0xff] %vm1512_vm6, %v1369_v18  ;;  %v1614_v18 = vld [vmem:[#allocation2 + $0x2b0] sm:$0xff] }
 0x259   :  { %1713 = vrot.lane.b32.xlu1 %v1581_v38, %s8553_s0 }
 0x25a   :  { %1717 = vrot.lane.b32.xlu0 %v1583_v50, %s8553_s0  ;;  %1440 = vrot.lane.b32.xlu2 %v13237_v27, %s8552_s18  ;;  %v1616_v27 = vld [vmem:[#allocation2 + $0x2d0] sm:$0xff] }
 0x25b   :  { %v1373_v33 = vpop.permute.xlu1 %1372 }
 0x25c   :  { %1539 = vst.msk [vmem:[#allocation3 + $0xd0] sm:$0xff] %vm1512_vm6, %v1373_v33  ;;  %v1377_v30 = vpop.permute.xlu0 %1376  ;;  %v1375_v4 = vpop.permute.xlu2 %1374 }
 0x25d   :  { %1541 = vst.msk [vmem:[#allocation3 + $0xe0] sm:$0xff] %vm1512_vm6, %v1377_v30  ;;  %v1606_v30 = vld [vmem:[#allocation2 + $0x1f0] sm:$0xff] }
 0x25e   :  { %1540 = vst.msk [vmem:[#allocation3 + $0xd8] sm:$0xff] %vm1512_vm6, %v1375_v4  ;;  %v1617_v4 = vld [vmem:[#allocation2 + $0x2e8] sm:$0xff] }
 0x261   :  { %1719 = vrot.lane.b32.xlu1 %v1584_v55, %s8553_s0 }
 0x262   :  { %1723 = vrot.lane.b32.xlu0 %v1586_v43, %s8553_s0  ;;  %1446 = vrot.lane.b32.xlu2 %v1255_v16, %s8552_s18 }
 0x263   :  { %v1379_v0 = vpop.permute.xlu1 %1378 }
 0x264   :  { %1542 = vst.msk [vmem:[#allocation3 + $0xe8] sm:$0xff] %vm1512_vm6, %v1379_v0  ;;  %v1383_v56 = vpop.permute.xlu0 %1382  ;;  %v1381_v28 = vpop.permute.xlu2 %1380 }
 0x265   :  { %1544 = vst.msk [vmem:[#allocation3 + $0xf8] sm:$0xff] %vm1512_vm6, %v1383_v56  ;;  %v1609_v56 = vld [vmem:[#allocation2 + $0x268] sm:$0xff] }
 0x266   :  { %1543 = vst.msk [vmem:[#allocation3 + $0xf0] sm:$0xff] %vm1512_vm6, %v1381_v28  ;;  %v1620_v28 = vld [vmem:[#allocation2 + $0x310] sm:$0xff] }
 0x269   :  { %1725 = vrot.lane.b32.xlu1 %v1587_v47, %s8553_s0  ;;  %v1619_v47 = vld [vmem:[#allocation2 + $0x308] sm:$0xff] }
 0x26a   :  { %1729 = vrot.lane.b32.xlu0 %v1589_v1, %s8553_s0  ;;  %1709 = vrot.lane.b32.xlu2 %v1579_v36, %s8553_s0 }
 0x26b   :  { %v1385_v60 = vpop.permute.xlu1 %1384 }
 0x26c   :  { %1545 = vst.msk [vmem:[#allocation3 + $0x100] sm:$0xff] %vm1512_vm6, %v1385_v60  ;;  %v1389_v9 = vpop.permute.xlu0 %1388  ;;  %v1387_v14 = vpop.permute.xlu2 %1386 }
 0x26d   :  { %1547 = vst.msk [vmem:[#allocation3 + $0x110] sm:$0xff] %vm1512_vm6, %v1389_v9  ;;  %v1612_v9 = vld [vmem:[#allocation2 + $0x290] sm:$0xff] }
 0x26e   :  { %1546 = vst.msk [vmem:[#allocation3 + $0x108] sm:$0xff] %vm1512_vm6, %v1387_v14  ;;  %v1623_v14 = vld [vmem:[#allocation2 + $0x348] sm:$0xff] }
 0x271   :  { %1731 = vrot.lane.b32.xlu1 %v1590_v40, %s8553_s0  ;;  %v1622_v40 = vld [vmem:[#allocation2 + $0x330] sm:$0xff] }
 0x272   :  { %1735 = vrot.lane.b32.xlu0 %v1592_v26, %s8553_s0  ;;  %1715 = vrot.lane.b32.xlu2 %v1582_v35, %s8553_s0 }
 0x273   :  { %v1391_v51 = vpop.permute.xlu1 %1390 }
 0x274   :  { %1548 = vst.msk [vmem:[#allocation3 + $0x118] sm:$0xff] %vm1512_vm6, %v1391_v51  ;;  %v1395_v29 = vpop.permute.xlu0 %1394  ;;  %v1393_v32 = vpop.permute.xlu2 %1392 }
 0x275   :  { %1550 = vst.msk [vmem:[#allocation3 + $0x128] sm:$0xff] %vm1512_vm6, %v1395_v29  ;;  %v1615_v29 = vld [vmem:[#allocation2 + $0x2c8] sm:$0xff] }
 0x276   :  { %1549 = vst.msk [vmem:[#allocation3 + $0x120] sm:$0xff] %vm1512_vm6, %v1393_v32  ;;  %v1626_v32 = vld [vmem:[#allocation2 + $0x370] sm:$0xff] }
 0x279   :  { %1737 = vrot.lane.b32.xlu1 %v1593_v63, %s8553_s0  ;;  %v1625_v63 = vld [vmem:[#allocation2 + $0x368] sm:$0xff] }
 0x27a   :  { %1741 = vrot.lane.b32.xlu0 %v1595_v13, %s8553_s0  ;;  %1721 = vrot.lane.b32.xlu2 %v1585_v39, %s8553_s0 }
 0x27b   :  { %v1397_v58 = vpop.permute.xlu1 %1396 }
 0x27c   :  { %1551 = vst.msk [vmem:[#allocation3 + $0x130] sm:$0xff] %vm1512_vm6, %v1397_v58  ;;  %v1401_v49 = vpop.permute.xlu0 %1400  ;;  %v1399_v59 = vpop.permute.xlu2 %1398 }
 0x27d   :  { %1553 = vst.msk [vmem:[#allocation3 + $0x140] sm:$0xff] %vm1512_vm6, %v1401_v49  ;;  %v1618_v49 = vld [vmem:[#allocation2 + $0x2f0] sm:$0xff] }
 0x27e   :  { %1552 = vst.msk [vmem:[#allocation3 + $0x138] sm:$0xff] %vm1512_vm6, %v1399_v59  ;;  %v1629_v59 = vld [vmem:[#allocation2 + $0x3a8] sm:$0xff] }
 0x281   :  { %1743 = vrot.lane.b32.xlu1 %v1596_v48, %s8553_s0  ;;  %v1628_v48 = vld [vmem:[#allocation2 + $0x390] sm:$0xff] }
 0x282   :  { %1747 = vrot.lane.b32.xlu0 %v1598_v61, %s8553_s0  ;;  %1727 = vrot.lane.b32.xlu2 %v1588_v31, %s8553_s0 }
 0x283   :  { %v1403_v17 = vpop.permute.xlu1 %1402 }
 0x284   :  { %1554 = vst.msk [vmem:[#allocation3 + $0x148] sm:$0xff] %vm1512_vm6, %v1403_v17  ;;  %v1407_v42 = vpop.permute.xlu0 %1406  ;;  %v1405_v46 = vpop.permute.xlu2 %1404 }
 0x285   :  { %1556 = vst.msk [vmem:[#allocation3 + $0x158] sm:$0xff] %vm1512_vm6, %v1407_v42  ;;  %v1621_v42 = vld [vmem:[#allocation2 + $0x328] sm:$0xff] }
 0x286   :  { %1555 = vst.msk [vmem:[#allocation3 + $0x150] sm:$0xff] %vm1512_vm6, %v1405_v46  ;;  %v1632_v46 = vld [vmem:[#allocation2 + $0x3d0] sm:$0xff] }
 0x289   :  { %1749 = vrot.lane.b32.xlu1 %v1599_v7, %s8553_s0  ;;  %v1631_v7 = vld [vmem:[#allocation2 + $0x3c8] sm:$0xff] }
 0x28a   :  { %1753 = vrot.lane.b32.xlu0 %v1601_v20, %s8553_s0  ;;  %1733 = vrot.lane.b32.xlu2 %v1591_v52, %s8553_s0 }
 0x28b   :  { %v1409_v10 = vpop.permute.xlu1 %1408 }
 0x28c   :  { %1557 = vst.msk [vmem:[#allocation3 + $0x160] sm:$0xff] %vm1512_vm6, %v1409_v10  ;;  %v1413_v23 = vpop.permute.xlu0 %1412  ;;  %v1411_v6 = vpop.permute.xlu2 %1410 }
 0x28d   :  { %1559 = vst.msk [vmem:[#allocation3 + $0x170] sm:$0xff] %vm1512_vm6, %v1413_v23  ;;  %v1624_v23 = vld [vmem:[#allocation2 + $0x350] sm:$0xff] }
 0x28e   :  { %1558 = vst.msk [vmem:[#allocation3 + $0x168] sm:$0xff] %vm1512_vm6, %v1411_v6  ;;  %v1635_v6 = vld [vmem:[#allocation2 + $0x408] sm:$0xff] }
 0x291   :  { %1755 = vrot.lane.b32.xlu1 %v1602_v21, %s8553_s0  ;;  %v1634_v21 = vld [vmem:[#allocation2 + $0x3f0] sm:$0xff] }
 0x292   :  { %1759 = vrot.lane.b32.xlu0 %v1604_v41, %s8553_s0  ;;  %1739 = vrot.lane.b32.xlu2 %v1594_v2, %s8553_s0 }
 0x293   :  { %v1415_v37 = vpop.permute.xlu1 %1414 }
 0x294   :  { %1560 = vst.msk [vmem:[#allocation3 + $0x178] sm:$0xff] %vm1512_vm6, %v1415_v37  ;;  %v1419_v11 = vpop.permute.xlu0 %1418  ;;  %v1417_v45 = vpop.permute.xlu2 %1416 }
 0x295   :  { %1562 = vst.msk [vmem:[#allocation3 + $0x188] sm:$0xff] %vm1512_vm6, %v1419_v11  ;;  %v1627_v11 = vld [vmem:[#allocation2 + $0x388] sm:$0xff] }
 0x296   :  { %1561 = vst.msk [vmem:[#allocation3 + $0x180] sm:$0xff] %vm1512_vm6, %v1417_v45  ;;  %v1638_v45 = vld [vmem:[#allocation2 + $0x430] sm:$0xff] }
 0x299   :  { %1761 = vrot.lane.b32.xlu1 %v1605_v19, %s8553_s0  ;;  %v1637_v19 = vld [vmem:[#allocation2 + $0x428] sm:$0xff] }
 0x29a   :  { %1765 = vrot.lane.b32.xlu0 %v1607_v22, %s8553_s0  ;;  %1745 = vrot.lane.b32.xlu2 %v1597_v53, %s8553_s0 }
 0x29b   :  { %v1421_v44 = vpop.permute.xlu1 %1420 }
 0x29c   :  { %1563 = vst.msk [vmem:[#allocation3 + $0x190] sm:$0xff] %vm1512_vm6, %v1421_v44  ;;  %v1425_v12 = vpop.permute.xlu0 %1424  ;;  %v1423_v54 = vpop.permute.xlu2 %1422 }
 0x29d   :  { %1565 = vst.msk [vmem:[#allocation3 + $0x1a0] sm:$0xff] %vm1512_vm6, %v1425_v12  ;;  %v1630_v12 = vld [vmem:[#allocation2 + $0x3b0] sm:$0xff] }
 0x29e   :  { %1564 = vst.msk [vmem:[#allocation3 + $0x198] sm:$0xff] %vm1512_vm6, %v1423_v54  ;;  %v1962_v54 = vld [vmem:[#allocation2 + $0x29] sm:$0xff] }
 0x2a1   :  { %1767 = vrot.lane.b32.xlu1 %v1608_v62, %s8553_s0  ;;  %v1640_v62 = vld [vmem:[#allocation2 + $0x450] sm:$0xff] }
 0x2a2   :  { %1771 = vrot.lane.b32.xlu0 %v1610_v25, %s8553_s0  ;;  %1751 = vrot.lane.b32.xlu2 %v1600_v34, %s8553_s0 }
 0x2a3   :  { %v1427_v57 = vpop.permute.xlu1 %1426 }
 0x2a4   :  { %1566 = vst.msk [vmem:[#allocation3 + $0x1a8] sm:$0xff] %vm1512_vm6, %v1427_v57  ;;  %v1431_v3 = vpop.permute.xlu0 %1430  ;;  %v1429_v5 = vpop.permute.xlu2 %1428 }
 0x2a5   :  { %1568 = vst.msk [vmem:[#allocation3 + $0x1b8] sm:$0xff] %vm1512_vm6, %v1431_v3  ;;  %v1633_v3 = vld [vmem:[#allocation2 + $0x3e8] sm:$0xff] }
 0x2a6   :  { %1567 = vst.msk [vmem:[#allocation3 + $0x1b0] sm:$0xff] %vm1512_vm6, %v1429_v5  ;;  %v1965_v5 = vld [vmem:[#allocation2 + $0x51] sm:$0xff] }
 0x2a9   :  { %1773 = vrot.lane.b32.xlu1 %v1611_v8, %s8553_s0  ;;  %v1964_v8 = vld [vmem:[#allocation2 + $0x49] sm:$0xff] }
 0x2aa   :  { %1777 = vrot.lane.b32.xlu0 %v1613_v24, %s8553_s0  ;;  %1757 = vrot.lane.b32.xlu2 %v1603_v15, %s8553_s0 }
 0x2ab   :  { %v1433_v38 = vpop.permute.xlu1 %1432 }
 0x2ac   :  { %1569 = vst.msk [vmem:[#allocation3 + $0x1c0] sm:$0xff] %vm1512_vm6, %v1433_v38  ;;  %v1437_v33 = vpop.permute.xlu0 %1436  ;;  %v1435_v50 = vpop.permute.xlu2 %1434 }
 0x2ad   :  { %1571 = vst.msk [vmem:[#allocation3 + $0x1d0] sm:$0xff] %vm1512_vm6, %v1437_v33  ;;  %v1636_v33 = vld [vmem:[#allocation2 + $0x410] sm:$0xff] }
 0x2ae   :  { %1570 = vst.msk [vmem:[#allocation3 + $0x1c8] sm:$0xff] %vm1512_vm6, %v1435_v50  ;;  %v1968_v50 = vld [vmem:[#allocation2 + $0x89] sm:$0xff] }
 0x2b1   :  { %1779 = vrot.lane.b32.xlu1 %v1614_v18, %s8553_s0  ;;  %v1967_v18 = vld [vmem:[#allocation2 + $0x71] sm:$0xff] }
 0x2b2   :  { %1783 = vrot.lane.b32.xlu0 %v1616_v27, %s8553_s0  ;;  %1763 = vrot.lane.b32.xlu2 %v1606_v30, %s8553_s0 }
 0x2b3   :  { %v1439_v55 = vpop.permute.xlu1 %1438 }
 0x2b4   :  { %1572 = vst.msk [vmem:[#allocation3 + $0x1d8] sm:$0xff] %vm1512_vm6, %v1439_v55  ;;  %v1443_v0 = vpop.permute.xlu0 %1442  ;;  %v1441_v43 = vpop.permute.xlu2 %1440 }
 0x2b5   :  { %1574 = vst.msk [vmem:[#allocation3 + $0x1e8] sm:$0xff] %vm1512_vm6, %v1443_v0  ;;  %v1639_v0 = vld [vmem:[#allocation2 + $0x448] sm:$0xff] }
 0x2b6   :  { %1573 = vst.msk [vmem:[#allocation3 + $0x1e0] sm:$0xff] %vm1512_vm6, %v1441_v43  ;;  %v1971_v43 = vld [vmem:[#allocation2 + $0xb1] sm:$0xff] }
 0x2b9   :  { %1785 = vrot.lane.b32.xlu1 %v1617_v4, %s8553_s0  ;;  %v1970_v4 = vld [vmem:[#allocation2 + $0xa9] sm:$0xff] }
 0x2ba   :  { %1789 = vrot.lane.b32.xlu0 %v1619_v47, %s8553_s0  ;;  %1769 = vrot.lane.b32.xlu2 %v1609_v56, %s8553_s0 }
 0x2bb   :  { %v1445_v16 = vpop.permute.xlu1 %1444 }
 0x2bc   :  { %1575 = vst.msk [vmem:[#allocation3 + $0x1f0] sm:$0xff] %vm1512_vm6, %v1445_v16  ;;  %v1706_v60 = vpop.permute.xlu0 %1705  ;;  %v1447_v1 = vpop.permute.xlu2 %1446 }
 0x2bd   :  { %1898 = vst.msk [vmem:[#allocation3] sm:$0xff] %vm1897_vm7, %v1706_v60  ;;  %v1963_v60 = vld [vmem:[#allocation2 + $0x31] sm:$0xff] }
 0x2be   :  { %1576 = vst.msk [vmem:[#allocation3 + $0x1f8] sm:$0xff] %vm1512_vm6, %v1447_v1  ;;  %v1974_v1 = vld [vmem:[#allocation2 + $0xe9] sm:$0xff]  ;;  %vm7502_vm6 = vcmask 589312  }
 0x2c1   :  { %1791 = vrot.lane.b32.xlu1 %v1620_v28, %s8553_s0  ;;  %v1973_v28 = vld [vmem:[#allocation2 + $0xd1] sm:$0xff] }
 0x2c2   :  { %1795 = vrot.lane.b32.xlu0 %v1622_v40, %s8553_s0  ;;  %1775 = vrot.lane.b32.xlu2 %v1612_v9, %s8553_s0 }
 0x2c3   :  { %v1708_v36 = vpop.permute.xlu1 %1707 }
 0x2c4   :  { %1899 = vst.msk [vmem:[#allocation3 + $0x8] sm:$0xff] %vm1897_vm7, %v1708_v36  ;;  %v1712_v51 = vpop.permute.xlu0 %1711  ;;  %v1710_v26 = vpop.permute.xlu2 %1709 }
 0x2c5   :  { %1901 = vst.msk [vmem:[#allocation3 + $0x18] sm:$0xff] %vm1897_vm7, %v1712_v51  ;;  %v1966_v51 = vld [vmem:[#allocation2 + $0x69] sm:$0xff] }
 0x2c6   :  { %1900 = vst.msk [vmem:[#allocation3 + $0x10] sm:$0xff] %vm1897_vm7, %v1710_v26  ;;  %v1977_v26 = vld [vmem:[#allocation2 + $0x111] sm:$0xff] }
 0x2c9   :  { %1797 = vrot.lane.b32.xlu1 %v1623_v14, %s8553_s0  ;;  %v1976_v14 = vld [vmem:[#allocation2 + $0x109] sm:$0xff] }
 0x2ca   :  { %1801 = vrot.lane.b32.xlu0 %v1625_v63, %s8553_s0  ;;  %1781 = vrot.lane.b32.xlu2 %v1615_v29, %s8553_s0 }
 0x2cb   :  { %v1714_v35 = vpop.permute.xlu1 %1713 }
 0x2cc   :  { %1902 = vst.msk [vmem:[#allocation3 + $0x20] sm:$0xff] %vm1897_vm7, %v1714_v35  ;;  %v1718_v58 = vpop.permute.xlu0 %1717  ;;  %v1716_v13 = vpop.permute.xlu2 %1715 }
 0x2cd   :  { %1904 = vst.msk [vmem:[#allocation3 + $0x30] sm:$0xff] %vm1897_vm7, %v1718_v58  ;;  %v1969_v58 = vld [vmem:[#allocation2 + $0x91] sm:$0xff] }
 0x2ce   :  { %1903 = vst.msk [vmem:[#allocation3 + $0x28] sm:$0xff] %vm1897_vm7, %v1716_v13  ;;  %v1980_v13 = vld [vmem:[#allocation2 + $0x149] sm:$0xff] }
 0x2d1   :  { %1803 = vrot.lane.b32.xlu1 %v1626_v32, %s8553_s0  ;;  %v1979_v32 = vld [vmem:[#allocation2 + $0x131] sm:$0xff] }
 0x2d2   :  { %1807 = vrot.lane.b32.xlu0 %v1628_v48, %s8553_s0  ;;  %1787 = vrot.lane.b32.xlu2 %v1618_v49, %s8553_s0 }
 0x2d3   :  { %v1720_v39 = vpop.permute.xlu1 %1719 }
 0x2d4   :  { %1905 = vst.msk [vmem:[#allocation3 + $0x38] sm:$0xff] %vm1897_vm7, %v1720_v39  ;;  %v1724_v17 = vpop.permute.xlu0 %1723  ;;  %v1722_v61 = vpop.permute.xlu2 %1721 }
 0x2d5   :  { %1907 = vst.msk [vmem:[#allocation3 + $0x48] sm:$0xff] %vm1897_vm7, %v1724_v17  ;;  %v1972_v17 = vld [vmem:[#allocation2 + $0xc9] sm:$0xff] }
 0x2d6   :  { %1906 = vst.msk [vmem:[#allocation3 + $0x40] sm:$0xff] %vm1897_vm7, %v1722_v61  ;;  %v1983_v61 = vld [vmem:[#allocation2 + $0x171] sm:$0xff] }
 0x2d9   :  { %1809 = vrot.lane.b32.xlu1 %v1629_v59, %s8553_s0  ;;  %v1982_v59 = vld [vmem:[#allocation2 + $0x169] sm:$0xff] }
 0x2da   :  { %1813 = vrot.lane.b32.xlu0 %v1631_v7, %s8553_s0  ;;  %1793 = vrot.lane.b32.xlu2 %v1621_v42, %s8553_s0 }
 0x2db   :  { %v1726_v31 = vpop.permute.xlu1 %1725 }
 0x2dc   :  { %1908 = vst.msk [vmem:[#allocation3 + $0x50] sm:$0xff] %vm1897_vm7, %v1726_v31  ;;  %v1730_v10 = vpop.permute.xlu0 %1729  ;;  %v1728_v20 = vpop.permute.xlu2 %1727 }
 0x2dd   :  { %1910 = vst.msk [vmem:[#allocation3 + $0x60] sm:$0xff] %vm1897_vm7, %v1730_v10  ;;  %v1975_v10 = vld [vmem:[#allocation2 + $0xf1] sm:$0xff] }
 0x2de   :  { %1909 = vst.msk [vmem:[#allocation3 + $0x58] sm:$0xff] %vm1897_vm7, %v1728_v20  ;;  %v1986_v20 = vld [vmem:[#allocation2 + $0x1a9] sm:$0xff] }
 0x2e1   :  { %1815 = vrot.lane.b32.xlu1 %v1632_v46, %s8553_s0  ;;  %v1985_v46 = vld [vmem:[#allocation2 + $0x191] sm:$0xff] }
 0x2e2   :  { %1819 = vrot.lane.b32.xlu0 %v1634_v21, %s8553_s0  ;;  %1799 = vrot.lane.b32.xlu2 %v1624_v23, %s8553_s0 }
 0x2e3   :  { %v1732_v52 = vpop.permute.xlu1 %1731 }
 0x2e4   :  { %1911 = vst.msk [vmem:[#allocation3 + $0x68] sm:$0xff] %vm1897_vm7, %v1732_v52  ;;  %v1736_v37 = vpop.permute.xlu0 %1735  ;;  %v1734_v41 = vpop.permute.xlu2 %1733 }
 0x2e5   :  { %1913 = vst.msk [vmem:[#allocation3 + $0x78] sm:$0xff] %vm1897_vm7, %v1736_v37  ;;  %v1978_v37 = vld [vmem:[#allocation2 + $0x129] sm:$0xff] }
 0x2e6   :  { %1912 = vst.msk [vmem:[#allocation3 + $0x70] sm:$0xff] %vm1897_vm7, %v1734_v41  ;;  %v1989_v41 = vld [vmem:[#allocation2 + $0x1d1] sm:$0xff] }
 0x2e9   :  { %1821 = vrot.lane.b32.xlu1 %v1635_v6, %s8553_s0  ;;  %v1988_v6 = vld [vmem:[#allocation2 + $0x1c9] sm:$0xff] }
 0x2ea   :  { %1825 = vrot.lane.b32.xlu0 %v1637_v19, %s8553_s0  ;;  %1805 = vrot.lane.b32.xlu2 %v1627_v11, %s8553_s0 }
 0x2eb   :  { %v1738_v2 = vpop.permute.xlu1 %1737 }
 0x2ec   :  { %1914 = vst.msk [vmem:[#allocation3 + $0x80] sm:$0xff] %vm1897_vm7, %v1738_v2  ;;  %v1742_v44 = vpop.permute.xlu0 %1741  ;;  %v1740_v22 = vpop.permute.xlu2 %1739 }
 0x2ed   :  { %1916 = vst.msk [vmem:[#allocation3 + $0x90] sm:$0xff] %vm1897_vm7, %v1742_v44  ;;  %v1981_v44 = vld [vmem:[#allocation2 + $0x151] sm:$0xff] }
 0x2ee   :  { %1915 = vst.msk [vmem:[#allocation3 + $0x88] sm:$0xff] %vm1897_vm7, %v1740_v22  ;;  %v1992_v22 = vld [vmem:[#allocation2 + $0x209] sm:$0xff] }
 0x2f1   :  { %1827 = vrot.lane.b32.xlu1 %v1638_v45, %s8553_s0  ;;  %v1991_v45 = vld [vmem:[#allocation2 + $0x1f1] sm:$0xff] }
 0x2f2   :  { %1831 = vrot.lane.b32.xlu0 %v1640_v62, %s8553_s0  ;;  %1811 = vrot.lane.b32.xlu2 %v1630_v12, %s8553_s0 }
 0x2f3   :  { %v1744_v53 = vpop.permute.xlu1 %1743 }
 0x2f4   :  { %1917 = vst.msk [vmem:[#allocation3 + $0x98] sm:$0xff] %vm1897_vm7, %v1744_v53  ;;  %v1748_v57 = vpop.permute.xlu0 %1747  ;;  %v1746_v25 = vpop.permute.xlu2 %1745 }
 0x2f5   :  { %1919 = vst.msk [vmem:[#allocation3 + $0xa8] sm:$0xff] %vm1897_vm7, %v1748_v57  ;;  %v1984_v57 = vld [vmem:[#allocation2 + $0x189] sm:$0xff] }
 0x2f6   :  { %1918 = vst.msk [vmem:[#allocation3 + $0xa0] sm:$0xff] %vm1897_vm7, %v1746_v25  ;;  %v1995_v25 = vld [vmem:[#allocation2 + $0x271] sm:$0xff] }
 0x2f9   :  { %2090 = vrot.lane.b32.xlu1 %v1962_v54, %s8554_s28  ;;  %v1994_v54 = vld [vmem:[#allocation2 + $0x269] sm:$0xff] }
 0x2fa   :  { %2094 = vrot.lane.b32.xlu0 %v1964_v8, %s8554_s28  ;;  %1817 = vrot.lane.b32.xlu2 %v1633_v3, %s8553_s0 }
 0x2fb   :  { %v1750_v34 = vpop.permute.xlu1 %1749 }
 0x2fc   :  { %1920 = vst.msk [vmem:[#allocation3 + $0xb0] sm:$0xff] %vm1897_vm7, %v1750_v34  ;;  %v1754_v38 = vpop.permute.xlu0 %1753  ;;  %v1752_v24 = vpop.permute.xlu2 %1751 }
 0x2fd   :  { %1922 = vst.msk [vmem:[#allocation3 + $0xc0] sm:$0xff] %vm1897_vm7, %v1754_v38  ;;  %v1987_v38 = vld [vmem:[#allocation2 + $0x1b1] sm:$0xff] }
 0x2fe   :  { %1921 = vst.msk [vmem:[#allocation3 + $0xb8] sm:$0xff] %vm1897_vm7, %v1752_v24  ;;  %v1998_v24 = vld [vmem:[#allocation2 + $0x2a9] sm:$0xff] }
 0x301   :  { %2096 = vrot.lane.b32.xlu1 %v1965_v5, %s8554_s28  ;;  %v1997_v5 = vld [vmem:[#allocation2 + $0x291] sm:$0xff] }
 0x302   :  { %2100 = vrot.lane.b32.xlu0 %v1967_v18, %s8554_s28  ;;  %1823 = vrot.lane.b32.xlu2 %v1636_v33, %s8553_s0 }
 0x303   :  { %v1756_v15 = vpop.permute.xlu1 %1755 }
 0x304   :  { %1923 = vst.msk [vmem:[#allocation3 + $0xc8] sm:$0xff] %vm1897_vm7, %v1756_v15  ;;  %v1760_v55 = vpop.permute.xlu0 %1759  ;;  %v1758_v27 = vpop.permute.xlu2 %1757 }
 0x305   :  { %1925 = vst.msk [vmem:[#allocation3 + $0xd8] sm:$0xff] %vm1897_vm7, %v1760_v55  ;;  %v1990_v55 = vld [vmem:[#allocation2 + $0x1e9] sm:$0xff] }
 0x306   :  { %1924 = vst.msk [vmem:[#allocation3 + $0xd0] sm:$0xff] %vm1897_vm7, %v1758_v27  ;;  %v2001_v27 = vld [vmem:[#allocation2 + $0x2d1] sm:$0xff] }
 0x309   :  { %2102 = vrot.lane.b32.xlu1 %v1968_v50, %s8554_s28  ;;  %v2000_v50 = vld [vmem:[#allocation2 + $0x2c9] sm:$0xff] }
 0x30a   :  { %2106 = vrot.lane.b32.xlu0 %v1970_v4, %s8554_s28  ;;  %1829 = vrot.lane.b32.xlu2 %v1639_v0, %s8553_s0 }
 0x30b   :  { %v1762_v30 = vpop.permute.xlu1 %1761 }
 0x30c   :  { %1926 = vst.msk [vmem:[#allocation3 + $0xe0] sm:$0xff] %vm1897_vm7, %v1762_v30  ;;  %v1766_v16 = vpop.permute.xlu0 %1765  ;;  %v1764_v47 = vpop.permute.xlu2 %1763 }
 0x30d   :  { %1928 = vst.msk [vmem:[#allocation3 + $0xf0] sm:$0xff] %vm1897_vm7, %v1766_v16  ;;  %v1993_v16 = vld [vmem:[#allocation2 + $0x211] sm:$0xff] }
 0x30e   :  { %1927 = vst.msk [vmem:[#allocation3 + $0xe8] sm:$0xff] %vm1897_vm7, %v1764_v47  ;;  %v2004_v47 = vld [vmem:[#allocation2 + $0x309] sm:$0xff] }
 0x311   :  { %2108 = vrot.lane.b32.xlu1 %v1971_v43, %s8554_s28  ;;  %v2003_v43 = vld [vmem:[#allocation2 + $0x2f1] sm:$0xff] }
 0x312   :  { %2112 = vrot.lane.b32.xlu0 %v1973_v28, %s8554_s28  ;;  %2092 = vrot.lane.b32.xlu2 %v1963_v60, %s8554_s28 }
 0x313   :  { %v1768_v56 = vpop.permute.xlu1 %1767 }
 0x314   :  { %1929 = vst.msk [vmem:[#allocation3 + $0xf8] sm:$0xff] %vm1897_vm7, %v1768_v56  ;;  %v1772_v36 = vpop.permute.xlu0 %1771  ;;  %v1770_v40 = vpop.permute.xlu2 %1769 }
 0x315   :  { %1931 = vst.msk [vmem:[#allocation3 + $0x108] sm:$0xff] %vm1897_vm7, %v1772_v36  ;;  %v1996_v36 = vld [vmem:[#allocation2 + $0x289] sm:$0xff] }
 0x316   :  { %1930 = vst.msk [vmem:[#allocation3 + $0x100] sm:$0xff] %vm1897_vm7, %v1770_v40  ;;  %v2007_v40 = vld [vmem:[#allocation2 + $0x331] sm:$0xff] }
 0x319   :  { %2114 = vrot.lane.b32.xlu1 %v1974_v1, %s8554_s28  ;;  %v2006_v1 = vld [vmem:[#allocation2 + $0x329] sm:$0xff] }
 0x31a   :  { %2118 = vrot.lane.b32.xlu0 %v1976_v14, %s8554_s28  ;;  %2098 = vrot.lane.b32.xlu2 %v1966_v51, %s8554_s28 }
 0x31b   :  { %v1774_v9 = vpop.permute.xlu1 %1773 }
 0x31c   :  { %1932 = vst.msk [vmem:[#allocation3 + $0x110] sm:$0xff] %vm1897_vm7, %v1774_v9  ;;  %v1778_v35 = vpop.permute.xlu0 %1777  ;;  %v1776_v63 = vpop.permute.xlu2 %1775 }
 0x31d   :  { %1934 = vst.msk [vmem:[#allocation3 + $0x120] sm:$0xff] %vm1897_vm7, %v1778_v35  ;;  %v1999_v35 = vld [vmem:[#allocation2 + $0x2b1] sm:$0xff] }
 0x31e   :  { %1933 = vst.msk [vmem:[#allocation3 + $0x118] sm:$0xff] %vm1897_vm7, %v1776_v63  ;;  %v2010_v63 = vld [vmem:[#allocation2 + $0x369] sm:$0xff] }
 0x321   :  { %2120 = vrot.lane.b32.xlu1 %v1977_v26, %s8554_s28  ;;  %v2009_v26 = vld [vmem:[#allocation2 + $0x351] sm:$0xff] }
 0x322   :  { %2124 = vrot.lane.b32.xlu0 %v1979_v32, %s8554_s28  ;;  %2104 = vrot.lane.b32.xlu2 %v1969_v58, %s8554_s28 }
 0x323   :  { %v1780_v29 = vpop.permute.xlu1 %1779 }
 0x324   :  { %1935 = vst.msk [vmem:[#allocation3 + $0x128] sm:$0xff] %vm1897_vm7, %v1780_v29  ;;  %v1784_v39 = vpop.permute.xlu0 %1783  ;;  %v1782_v48 = vpop.permute.xlu2 %1781 }
 0x325   :  { %1937 = vst.msk [vmem:[#allocation3 + $0x138] sm:$0xff] %vm1897_vm7, %v1784_v39  ;;  %v2002_v39 = vld [vmem:[#allocation2 + $0x2e9] sm:$0xff] }
 0x326   :  { %1936 = vst.msk [vmem:[#allocation3 + $0x130] sm:$0xff] %vm1897_vm7, %v1782_v48  ;;  %v2013_v48 = vld [vmem:[#allocation2 + $0x391] sm:$0xff] }
 0x329   :  { %2126 = vrot.lane.b32.xlu1 %v1980_v13, %s8554_s28  ;;  %v2012_v13 = vld [vmem:[#allocation2 + $0x389] sm:$0xff] }
 0x32a   :  { %2130 = vrot.lane.b32.xlu0 %v1982_v59, %s8554_s28  ;;  %2110 = vrot.lane.b32.xlu2 %v1972_v17, %s8554_s28 }
 0x32b   :  { %v1786_v49 = vpop.permute.xlu1 %1785 }
 0x32c   :  { %1938 = vst.msk [vmem:[#allocation3 + $0x140] sm:$0xff] %vm1897_vm7, %v1786_v49  ;;  %v1790_v31 = vpop.permute.xlu0 %1789  ;;  %v1788_v7 = vpop.permute.xlu2 %1787 }
 0x32d   :  { %1940 = vst.msk [vmem:[#allocation3 + $0x150] sm:$0xff] %vm1897_vm7, %v1790_v31  ;;  %v2005_v31 = vld [vmem:[#allocation2 + $0x311] sm:$0xff] }
 0x32e   :  { %1939 = vst.msk [vmem:[#allocation3 + $0x148] sm:$0xff] %vm1897_vm7, %v1788_v7  ;;  %v2016_v7 = vld [vmem:[#allocation2 + $0x3c9] sm:$0xff] }
 0x331   :  { %2132 = vrot.lane.b32.xlu1 %v1983_v61, %s8554_s28  ;;  %v2015_v61 = vld [vmem:[#allocation2 + $0x3b1] sm:$0xff] }
 0x332   :  { %2136 = vrot.lane.b32.xlu0 %v1985_v46, %s8554_s28  ;;  %2116 = vrot.lane.b32.xlu2 %v1975_v10, %s8554_s28 }
 0x333   :  { %v1792_v42 = vpop.permute.xlu1 %1791 }
 0x334   :  { %1941 = vst.msk [vmem:[#allocation3 + $0x158] sm:$0xff] %vm1897_vm7, %v1792_v42  ;;  %v1796_v52 = vpop.permute.xlu0 %1795  ;;  %v1794_v21 = vpop.permute.xlu2 %1793 }
 0x335   :  { %1943 = vst.msk [vmem:[#allocation3 + $0x168] sm:$0xff] %vm1897_vm7, %v1796_v52  ;;  %v2008_v52 = vld [vmem:[#allocation2 + $0x349] sm:$0xff] }
 0x336   :  { %1942 = vst.msk [vmem:[#allocation3 + $0x160] sm:$0xff] %vm1897_vm7, %v1794_v21  ;;  %v2019_v21 = vld [vmem:[#allocation2 + $0x3f1] sm:$0xff] }
 0x339   :  { %2138 = vrot.lane.b32.xlu1 %v1986_v20, %s8554_s28  ;;  %v2018_v20 = vld [vmem:[#allocation2 + $0x3e9] sm:$0xff] }
 0x33a   :  { %2142 = vrot.lane.b32.xlu0 %v1988_v6, %s8554_s28  ;;  %2122 = vrot.lane.b32.xlu2 %v1978_v37, %s8554_s28 }
 0x33b   :  { %v1798_v23 = vpop.permute.xlu1 %1797 }
 0x33c   :  { %1944 = vst.msk [vmem:[#allocation3 + $0x170] sm:$0xff] %vm1897_vm7, %v1798_v23  ;;  %v1802_v2 = vpop.permute.xlu0 %1801  ;;  %v1800_v19 = vpop.permute.xlu2 %1799 }
 0x33d   :  { %1946 = vst.msk [vmem:[#allocation3 + $0x180] sm:$0xff] %vm1897_vm7, %v1802_v2  ;;  %v2011_v2 = vld [vmem:[#allocation2 + $0x371] sm:$0xff] }
 0x33e   :  { %1945 = vst.msk [vmem:[#allocation3 + $0x178] sm:$0xff] %vm1897_vm7, %v1800_v19  ;;  %v2022_v19 = vld [vmem:[#allocation2 + $0x429] sm:$0xff] }
 0x341   :  { %2144 = vrot.lane.b32.xlu1 %v1989_v41, %s8554_s28  ;;  %v2021_v41 = vld [vmem:[#allocation2 + $0x411] sm:$0xff] }
 0x342   :  { %2148 = vrot.lane.b32.xlu0 %v1991_v45, %s8554_s28  ;;  %2128 = vrot.lane.b32.xlu2 %v1981_v44, %s8554_s28 }
 0x343   :  { %v1804_v11 = vpop.permute.xlu1 %1803 }
 0x344   :  { %1947 = vst.msk [vmem:[#allocation3 + $0x188] sm:$0xff] %vm1897_vm7, %v1804_v11  ;;  %v1808_v53 = vpop.permute.xlu0 %1807  ;;  %v1806_v62 = vpop.permute.xlu2 %1805 }
 0x345   :  { %1949 = vst.msk [vmem:[#allocation3 + $0x198] sm:$0xff] %vm1897_vm7, %v1808_v53  ;;  %v2014_v53 = vld [vmem:[#allocation2 + $0x3a9] sm:$0xff] }
 0x346   :  { %1948 = vst.msk [vmem:[#allocation3 + $0x190] sm:$0xff] %vm1897_vm7, %v1806_v62  ;;  %v2025_v62 = vld [vmem:[#allocation2 + $0x451] sm:$0xff] }
 0x349   :  { %2150 = vrot.lane.b32.xlu1 %v1992_v22, %s8554_s28  ;;  %v2024_v22 = vld [vmem:[#allocation2 + $0x449] sm:$0xff] }
 0x34a   :  { %2154 = vrot.lane.b32.xlu0 %v1994_v54, %s8554_s28  ;;  %2134 = vrot.lane.b32.xlu2 %v1984_v57, %s8554_s28 }
 0x34b   :  { %v1810_v12 = vpop.permute.xlu1 %1809 }
 0x34c   :  { %1950 = vst.msk [vmem:[#allocation3 + $0x1a0] sm:$0xff] %vm1897_vm7, %v1810_v12  ;;  %v1814_v34 = vpop.permute.xlu0 %1813  ;;  %v1812_v8 = vpop.permute.xlu2 %1811 }
 0x34d   :  { %1952 = vst.msk [vmem:[#allocation3 + $0x1b0] sm:$0xff] %vm1897_vm7, %v1814_v34  ;;  %v2017_v34 = vld [vmem:[#allocation2 + $0x3d1] sm:$0xff] }
 0x34e   :  { %1951 = vst.msk [vmem:[#allocation3 + $0x1a8] sm:$0xff] %vm1897_vm7, %v1812_v8  ;;  %v2350_v8 = vld [vmem:[#allocation2 + $0x67] sm:$0xff] }
 0x351   :  { %2156 = vrot.lane.b32.xlu1 %v1995_v25, %s8554_s28  ;;  %v2349_v25 = vld [vmem:[#allocation2 + $0x4f] sm:$0xff] }
 0x352   :  { %2160 = vrot.lane.b32.xlu0 %v1997_v5, %s8554_s28  ;;  %2140 = vrot.lane.b32.xlu2 %v1987_v38, %s8554_s28 }
 0x353   :  { %v1816_v3 = vpop.permute.xlu1 %1815 }
 0x354   :  { %1953 = vst.msk [vmem:[#allocation3 + $0x1b8] sm:$0xff] %vm1897_vm7, %v1816_v3  ;;  %v1820_v15 = vpop.permute.xlu0 %1819  ;;  %v1818_v18 = vpop.permute.xlu2 %1817 }
 0x355   :  { %1955 = vst.msk [vmem:[#allocation3 + $0x1c8] sm:$0xff] %vm1897_vm7, %v1820_v15  ;;  %v2020_v15 = vld [vmem:[#allocation2 + $0x409] sm:$0xff] }
 0x356   :  { %1954 = vst.msk [vmem:[#allocation3 + $0x1c0] sm:$0xff] %vm1897_vm7, %v1818_v18  ;;  %v2353_v18 = vld [vmem:[#allocation2 + $0x8f] sm:$0xff] }
 0x359   :  { %2162 = vrot.lane.b32.xlu1 %v1998_v24, %s8554_s28  ;;  %v2352_v24 = vld [vmem:[#allocation2 + $0x87] sm:$0xff] }
 0x35a   :  { %2166 = vrot.lane.b32.xlu0 %v2000_v50, %s8554_s28  ;;  %2146 = vrot.lane.b32.xlu2 %v1990_v55, %s8554_s28 }
 0x35b   :  { %v1822_v33 = vpop.permute.xlu1 %1821 }
 0x35c   :  { %1956 = vst.msk [vmem:[#allocation3 + $0x1d0] sm:$0xff] %vm1897_vm7, %v1822_v33  ;;  %v1826_v30 = vpop.permute.xlu0 %1825  ;;  %v1824_v4 = vpop.permute.xlu2 %1823 }
 0x35d   :  { %1958 = vst.msk [vmem:[#allocation3 + $0x1e0] sm:$0xff] %vm1897_vm7, %v1826_v30  ;;  %v2023_v30 = vld [vmem:[#allocation2 + $0x431] sm:$0xff] }
 0x35e   :  { %1957 = vst.msk [vmem:[#allocation3 + $0x1d8] sm:$0xff] %vm1897_vm7, %v1824_v4  ;;  %v2356_v4 = vld [vmem:[#allocation2 + $0xc7] sm:$0xff] }
 0x361   :  { %2168 = vrot.lane.b32.xlu1 %v2001_v27, %s8554_s28  ;;  %v2355_v27 = vld [vmem:[#allocation2 + $0xaf] sm:$0xff] }
 0x362   :  { %2172 = vrot.lane.b32.xlu0 %v2003_v43, %s8554_s28  ;;  %2152 = vrot.lane.b32.xlu2 %v1993_v16, %s8554_s28 }
 0x363   :  { %v1828_v0 = vpop.permute.xlu1 %1827 }
 0x364   :  { %1959 = vst.msk [vmem:[#allocation3 + $0x1e8] sm:$0xff] %vm1897_vm7, %v1828_v0  ;;  %v1832_v56 = vpop.permute.xlu0 %1831  ;;  %v1830_v28 = vpop.permute.xlu2 %1829 }
 0x365   :  { %1961 = vst.msk [vmem:[#allocation3 + $0x1f8] sm:$0xff] %vm1897_vm7, %v1832_v56  ;;  %v2348_v56 = vld [vmem:[#allocation2 + $0x47] sm:$0xff] }
 0x366   :  { %1960 = vst.msk [vmem:[#allocation3 + $0x1f0] sm:$0xff] %vm1897_vm7, %v1830_v28  ;;  %v2359_v28 = vld [vmem:[#allocation2 + $0xef] sm:$0xff] }
 0x369   :  { %2174 = vrot.lane.b32.xlu1 %v2004_v47, %s8554_s28  ;;  %v2358_v47 = vld [vmem:[#allocation2 + $0xe7] sm:$0xff] }
 0x36a   :  { %2178 = vrot.lane.b32.xlu0 %v2006_v1, %s8554_s28  ;;  %2158 = vrot.lane.b32.xlu2 %v1996_v36, %s8554_s28 }
 0x36b   :  { %v2091_v60 = vpop.permute.xlu1 %2090 }
 0x36c   :  { %2283 = vst.msk [vmem:[#allocation3] sm:$0xff] %vm2282_vm8, %v2091_v60  ;;  %v2095_v9 = vpop.permute.xlu0 %2094  ;;  %v2093_v14 = vpop.permute.xlu2 %2092 }
 0x36d   :  { %2285 = vst.msk [vmem:[#allocation3 + $0x10] sm:$0xff] %vm2282_vm8, %v2095_v9  ;;  %v2351_v9 = vld [vmem:[#allocation2 + $0x6f] sm:$0xff] }
 0x36e   :  { %2284 = vst.msk [vmem:[#allocation3 + $0x8] sm:$0xff] %vm2282_vm8, %v2093_v14  ;;  %v2362_v14 = vld [vmem:[#allocation2 + $0x127] sm:$0xff] }
 0x371   :  { %2180 = vrot.lane.b32.xlu1 %v2007_v40, %s8554_s28  ;;  %v2361_v40 = vld [vmem:[#allocation2 + $0x10f] sm:$0xff] }
 0x372   :  { %2184 = vrot.lane.b32.xlu0 %v2009_v26, %s8554_s28  ;;  %2164 = vrot.lane.b32.xlu2 %v1999_v35, %s8554_s28 }
 0x373   :  { %v2097_v51 = vpop.permute.xlu1 %2096 }
 0x374   :  { %2286 = vst.msk [vmem:[#allocation3 + $0x18] sm:$0xff] %vm2282_vm8, %v2097_v51  ;;  %v2101_v29 = vpop.permute.xlu0 %2100  ;;  %v2099_v32 = vpop.permute.xlu2 %2098 }
 0x375   :  { %2288 = vst.msk [vmem:[#allocation3 + $0x28] sm:$0xff] %vm2282_vm8, %v2101_v29  ;;  %v2354_v29 = vld [vmem:[#allocation2 + $0xa7] sm:$0xff] }
 0x376   :  { %2287 = vst.msk [vmem:[#allocation3 + $0x20] sm:$0xff] %vm2282_vm8, %v2099_v32  ;;  %v2365_v32 = vld [vmem:[#allocation2 + $0x14f] sm:$0xff] }
 0x379   :  { %2186 = vrot.lane.b32.xlu1 %v2010_v63, %s8554_s28  ;;  %v2364_v63 = vld [vmem:[#allocation2 + $0x147] sm:$0xff] }
 0x37a   :  { %2190 = vrot.lane.b32.xlu0 %v2012_v13, %s8554_s28  ;;  %2170 = vrot.lane.b32.xlu2 %v2002_v39, %s8554_s28 }
 0x37b   :  { %v2103_v58 = vpop.permute.xlu1 %2102 }
 0x37c   :  { %2289 = vst.msk [vmem:[#allocation3 + $0x30] sm:$0xff] %vm2282_vm8, %v2103_v58  ;;  %v2107_v49 = vpop.permute.xlu0 %2106  ;;  %v2105_v59 = vpop.permute.xlu2 %2104 }
 0x37d   :  { %2291 = vst.msk [vmem:[#allocation3 + $0x40] sm:$0xff] %vm2282_vm8, %v2107_v49  ;;  %v2357_v49 = vld [vmem:[#allocation2 + $0xcf] sm:$0xff] }
 0x37e   :  { %2290 = vst.msk [vmem:[#allocation3 + $0x38] sm:$0xff] %vm2282_vm8, %v2105_v59  ;;  %v2368_v59 = vld [vmem:[#allocation2 + $0x187] sm:$0xff] }
 0x381   :  { %2192 = vrot.lane.b32.xlu1 %v2013_v48, %s8554_s28  ;;  %v2367_v48 = vld [vmem:[#allocation2 + $0x16f] sm:$0xff] }
 0x382   :  { %2196 = vrot.lane.b32.xlu0 %v2015_v61, %s8554_s28  ;;  %2176 = vrot.lane.b32.xlu2 %v2005_v31, %s8554_s28 }
 0x383   :  { %v2109_v17 = vpop.permute.xlu1 %2108 }
 0x384   :  { %2292 = vst.msk [vmem:[#allocation3 + $0x48] sm:$0xff] %vm2282_vm8, %v2109_v17  ;;  %v2113_v42 = vpop.permute.xlu0 %2112  ;;  %v2111_v46 = vpop.permute.xlu2 %2110 }
 0x385   :  { %2294 = vst.msk [vmem:[#allocation3 + $0x58] sm:$0xff] %vm2282_vm8, %v2113_v42  ;;  %v2360_v42 = vld [vmem:[#allocation2 + $0x107] sm:$0xff] }
 0x386   :  { %2293 = vst.msk [vmem:[#allocation3 + $0x50] sm:$0xff] %vm2282_vm8, %v2111_v46  ;;  %v2371_v46 = vld [vmem:[#allocation2 + $0x1af] sm:$0xff] }
 0x389   :  { %2198 = vrot.lane.b32.xlu1 %v2016_v7, %s8554_s28  ;;  %v2370_v7 = vld [vmem:[#allocation2 + $0x1a7] sm:$0xff] }
 0x38a   :  { %2202 = vrot.lane.b32.xlu0 %v2018_v20, %s8554_s28  ;;  %2182 = vrot.lane.b32.xlu2 %v2008_v52, %s8554_s28 }
 0x38b   :  { %v2115_v10 = vpop.permute.xlu1 %2114 }
 0x38c   :  { %2295 = vst.msk [vmem:[#allocation3 + $0x60] sm:$0xff] %vm2282_vm8, %v2115_v10  ;;  %v2119_v23 = vpop.permute.xlu0 %2118  ;;  %v2117_v6 = vpop.permute.xlu2 %2116 }
 0x38d   :  { %2297 = vst.msk [vmem:[#allocation3 + $0x70] sm:$0xff] %vm2282_vm8, %v2119_v23  ;;  %v2363_v23 = vld [vmem:[#allocation2 + $0x12f] sm:$0xff] }
 0x38e   :  { %2296 = vst.msk [vmem:[#allocation3 + $0x68] sm:$0xff] %vm2282_vm8, %v2117_v6  ;;  %v2374_v6 = vld [vmem:[#allocation2 + $0x1e7] sm:$0xff] }
 0x391   :  { %2204 = vrot.lane.b32.xlu1 %v2019_v21, %s8554_s28  ;;  %v2373_v21 = vld [vmem:[#allocation2 + $0x1cf] sm:$0xff] }
 0x392   :  { %2208 = vrot.lane.b32.xlu0 %v2021_v41, %s8554_s28  ;;  %2188 = vrot.lane.b32.xlu2 %v2011_v2, %s8554_s28 }
 0x393   :  { %v2121_v37 = vpop.permute.xlu1 %2120 }
 0x394   :  { %2298 = vst.msk [vmem:[#allocation3 + $0x78] sm:$0xff] %vm2282_vm8, %v2121_v37  ;;  %v2125_v11 = vpop.permute.xlu0 %2124  ;;  %v2123_v45 = vpop.permute.xlu2 %2122 }
 0x395   :  { %2300 = vst.msk [vmem:[#allocation3 + $0x88] sm:$0xff] %vm2282_vm8, %v2125_v11  ;;  %v2366_v11 = vld [vmem:[#allocation2 + $0x167] sm:$0xff] }
 0x396   :  { %2299 = vst.msk [vmem:[#allocation3 + $0x80] sm:$0xff] %vm2282_vm8, %v2123_v45  ;;  %v2377_v45 = vld [vmem:[#allocation2 + $0x20f] sm:$0xff] }
 0x399   :  { %2210 = vrot.lane.b32.xlu1 %v2022_v19, %s8554_s28  ;;  %v2376_v19 = vld [vmem:[#allocation2 + $0x207] sm:$0xff] }
 0x39a   :  { %2214 = vrot.lane.b32.xlu0 %v2024_v22, %s8554_s28  ;;  %2194 = vrot.lane.b32.xlu2 %v2014_v53, %s8554_s28 }
 0x39b   :  { %v2127_v44 = vpop.permute.xlu1 %2126 }
 0x39c   :  { %2301 = vst.msk [vmem:[#allocation3 + $0x90] sm:$0xff] %vm2282_vm8, %v2127_v44  ;;  %v2131_v12 = vpop.permute.xlu0 %2130  ;;  %v2129_v54 = vpop.permute.xlu2 %2128 }
 0x39d   :  { %2303 = vst.msk [vmem:[#allocation3 + $0xa0] sm:$0xff] %vm2282_vm8, %v2131_v12  ;;  %v2369_v12 = vld [vmem:[#allocation2 + $0x18f] sm:$0xff] }
 0x39e   :  { %2302 = vst.msk [vmem:[#allocation3 + $0x98] sm:$0xff] %vm2282_vm8, %v2129_v54  ;;  %v2380_v54 = vld [vmem:[#allocation2 + $0x287] sm:$0xff] }
 0x3a1   :  { %2216 = vrot.lane.b32.xlu1 %v2025_v62, %s8554_s28  ;;  %v2379_v62 = vld [vmem:[#allocation2 + $0x22f] sm:$0xff] }
 0x3a2   :  { %2478 = vrot.lane.b32.xlu0 %v2349_v25, %s8555_s29  ;;  %2200 = vrot.lane.b32.xlu2 %v2017_v34, %s8554_s28 }
 0x3a3   :  { %v2133_v57 = vpop.permute.xlu1 %2132 }
 0x3a4   :  { %2304 = vst.msk [vmem:[#allocation3 + $0xa8] sm:$0xff] %vm2282_vm8, %v2133_v57  ;;  %v2137_v3 = vpop.permute.xlu0 %2136  ;;  %v2135_v5 = vpop.permute.xlu2 %2134 }
 0x3a5   :  { %2306 = vst.msk [vmem:[#allocation3 + $0xb8] sm:$0xff] %vm2282_vm8, %v2137_v3  ;;  %v2372_v3 = vld [vmem:[#allocation2 + $0x1c7] sm:$0xff] }
 0x3a6   :  { %2305 = vst.msk [vmem:[#allocation3 + $0xb0] sm:$0xff] %vm2282_vm8, %v2135_v5  ;;  %v2383_v5 = vld [vmem:[#allocation2 + $0x2af] sm:$0xff] }
 0x3a9   :  { %2480 = vrot.lane.b32.xlu1 %v2350_v8, %s8555_s29  ;;  %v2382_v8 = vld [vmem:[#allocation2 + $0x2a7] sm:$0xff] }
 0x3aa   :  { %2484 = vrot.lane.b32.xlu0 %v2352_v24, %s8555_s29  ;;  %2206 = vrot.lane.b32.xlu2 %v2020_v15, %s8554_s28 }
 0x3ab   :  { %v2139_v38 = vpop.permute.xlu1 %2138 }
 0x3ac   :  { %2307 = vst.msk [vmem:[#allocation3 + $0xc0] sm:$0xff] %vm2282_vm8, %v2139_v38  ;;  %v2143_v33 = vpop.permute.xlu0 %2142  ;;  %v2141_v50 = vpop.permute.xlu2 %2140 }
 0x3ad   :  { %2309 = vst.msk [vmem:[#allocation3 + $0xd0] sm:$0xff] %vm2282_vm8, %v2143_v33  ;;  %v2375_v33 = vld [vmem:[#allocation2 + $0x1ef] sm:$0xff] }
 0x3ae   :  { %2308 = vst.msk [vmem:[#allocation3 + $0xc8] sm:$0xff] %vm2282_vm8, %v2141_v50  ;;  %v2386_v50 = vld [vmem:[#allocation2 + $0x2e7] sm:$0xff] }
 0x3b1   :  { %2486 = vrot.lane.b32.xlu1 %v2353_v18, %s8555_s29  ;;  %v2385_v18 = vld [vmem:[#allocation2 + $0x2cf] sm:$0xff] }
 0x3b2   :  { %2490 = vrot.lane.b32.xlu0 %v2355_v27, %s8555_s29  ;;  %2212 = vrot.lane.b32.xlu2 %v2023_v30, %s8554_s28 }
 0x3b3   :  { %v2145_v55 = vpop.permute.xlu1 %2144 }
 0x3b4   :  { %2310 = vst.msk [vmem:[#allocation3 + $0xd8] sm:$0xff] %vm2282_vm8, %v2145_v55  ;;  %v2149_v0 = vpop.permute.xlu0 %2148  ;;  %v2147_v43 = vpop.permute.xlu2 %2146 }
 0x3b5   :  { %2312 = vst.msk [vmem:[#allocation3 + $0xe8] sm:$0xff] %vm2282_vm8, %v2149_v0  ;;  %v2378_v0 = vld [vmem:[#allocation2 + $0x227] sm:$0xff] }
 0x3b6   :  { %2311 = vst.msk [vmem:[#allocation3 + $0xe0] sm:$0xff] %vm2282_vm8, %v2147_v43  ;;  %v2389_v43 = vld [vmem:[#allocation2 + $0x30f] sm:$0xff] }
 0x3b9   :  { %2492 = vrot.lane.b32.xlu1 %v2356_v4, %s8555_s29  ;;  %v2388_v4 = vld [vmem:[#allocation2 + $0x307] sm:$0xff] }
 0x3ba   :  { %2496 = vrot.lane.b32.xlu0 %v2358_v47, %s8555_s29  ;;  %2476 = vrot.lane.b32.xlu2 %v2348_v56, %s8555_s29 }
 0x3bb   :  { %v2151_v16 = vpop.permute.xlu1 %2150 }
 0x3bc   :  { %2313 = vst.msk [vmem:[#allocation3 + $0xf0] sm:$0xff] %vm2282_vm8, %v2151_v16  ;;  %v2155_v60 = vpop.permute.xlu0 %2154  ;;  %v2153_v1 = vpop.permute.xlu2 %2152 }
 0x3bd   :  { %2315 = vst.msk [vmem:[#allocation3 + $0x100] sm:$0xff] %vm2282_vm8, %v2155_v60  ;;  %v2381_v60 = vld [vmem:[#allocation2 + $0x28f] sm:$0xff] }
 0x3be   :  { %2314 = vst.msk [vmem:[#allocation3 + $0xf8] sm:$0xff] %vm2282_vm8, %v2153_v1  ;;  %v2392_v1 = vld [vmem:[#allocation2 + $0x347] sm:$0xff] }
 0x3c1   :  { %2498 = vrot.lane.b32.xlu1 %v2359_v28, %s8555_s29  ;;  %v2391_v28 = vld [vmem:[#allocation2 + $0x32f] sm:$0xff] }
 0x3c2   :  { %2502 = vrot.lane.b32.xlu0 %v2361_v40, %s8555_s29  ;;  %2482 = vrot.lane.b32.xlu2 %v2351_v9, %s8555_s29 }
 0x3c3   :  { %v2157_v36 = vpop.permute.xlu1 %2156 }
 0x3c4   :  { %2316 = vst.msk [vmem:[#allocation3 + $0x108] sm:$0xff] %vm2282_vm8, %v2157_v36  ;;  %v2161_v51 = vpop.permute.xlu0 %2160  ;;  %v2159_v26 = vpop.permute.xlu2 %2158 }
 0x3c5   :  { %2318 = vst.msk [vmem:[#allocation3 + $0x118] sm:$0xff] %vm2282_vm8, %v2161_v51  ;;  %v2384_v51 = vld [vmem:[#allocation2 + $0x2c7] sm:$0xff] }
 0x3c6   :  { %2317 = vst.msk [vmem:[#allocation3 + $0x110] sm:$0xff] %vm2282_vm8, %v2159_v26  ;;  %v2395_v26 = vld [vmem:[#allocation2 + $0x36f] sm:$0xff] }
 0x3c9   :  { %2504 = vrot.lane.b32.xlu1 %v2362_v14, %s8555_s29  ;;  %v2394_v14 = vld [vmem:[#allocation2 + $0x367] sm:$0xff] }
 0x3ca   :  { %2508 = vrot.lane.b32.xlu0 %v2364_v63, %s8555_s29  ;;  %2488 = vrot.lane.b32.xlu2 %v2354_v29, %s8555_s29 }
 0x3cb   :  { %v2163_v35 = vpop.permute.xlu1 %2162 }
 0x3cc   :  { %2319 = vst.msk [vmem:[#allocation3 + $0x120] sm:$0xff] %vm2282_vm8, %v2163_v35  ;;  %v2167_v58 = vpop.permute.xlu0 %2166  ;;  %v2165_v13 = vpop.permute.xlu2 %2164 }
 0x3cd   :  { %2321 = vst.msk [vmem:[#allocation3 + $0x130] sm:$0xff] %vm2282_vm8, %v2167_v58  ;;  %v2387_v58 = vld [vmem:[#allocation2 + $0x2ef] sm:$0xff] }
 0x3ce   :  { %2320 = vst.msk [vmem:[#allocation3 + $0x128] sm:$0xff] %vm2282_vm8, %v2165_v13  ;;  %v2398_v13 = vld [vmem:[#allocation2 + $0x3a7] sm:$0xff] }
 0x3d1   :  { %2510 = vrot.lane.b32.xlu1 %v2365_v32, %s8555_s29  ;;  %v2397_v32 = vld [vmem:[#allocation2 + $0x38f] sm:$0xff] }
 0x3d2   :  { %2514 = vrot.lane.b32.xlu0 %v2367_v48, %s8555_s29  ;;  %2494 = vrot.lane.b32.xlu2 %v2357_v49, %s8555_s29 }
 0x3d3   :  { %v2169_v39 = vpop.permute.xlu1 %2168 }
 0x3d4   :  { %2322 = vst.msk [vmem:[#allocation3 + $0x138] sm:$0xff] %vm2282_vm8, %v2169_v39  ;;  %v2173_v17 = vpop.permute.xlu0 %2172  ;;  %v2171_v61 = vpop.permute.xlu2 %2170 }
 0x3d5   :  { %2324 = vst.msk [vmem:[#allocation3 + $0x148] sm:$0xff] %vm2282_vm8, %v2173_v17  ;;  %v2390_v17 = vld [vmem:[#allocation2 + $0x327] sm:$0xff] }
 0x3d6   :  { %2323 = vst.msk [vmem:[#allocation3 + $0x140] sm:$0xff] %vm2282_vm8, %v2171_v61  ;;  %v2401_v61 = vld [vmem:[#allocation2 + $0x3cf] sm:$0xff] }
 0x3d9   :  { %2516 = vrot.lane.b32.xlu1 %v2368_v59, %s8555_s29  ;;  %v2400_v59 = vld [vmem:[#allocation2 + $0x3c7] sm:$0xff] }
 0x3da   :  { %2520 = vrot.lane.b32.xlu0 %v2370_v7, %s8555_s29  ;;  %2500 = vrot.lane.b32.xlu2 %v2360_v42, %s8555_s29 }
 0x3db   :  { %v2175_v31 = vpop.permute.xlu1 %2174 }
 0x3dc   :  { %2325 = vst.msk [vmem:[#allocation3 + $0x150] sm:$0xff] %vm2282_vm8, %v2175_v31  ;;  %v2179_v10 = vpop.permute.xlu0 %2178  ;;  %v2177_v20 = vpop.permute.xlu2 %2176 }
 0x3dd   :  { %2327 = vst.msk [vmem:[#allocation3 + $0x160] sm:$0xff] %vm2282_vm8, %v2179_v10  ;;  %v2393_v10 = vld [vmem:[#allocation2 + $0x34f] sm:$0xff] }
 0x3de   :  { %2326 = vst.msk [vmem:[#allocation3 + $0x158] sm:$0xff] %vm2282_vm8, %v2177_v20  ;;  %v2404_v20 = vld [vmem:[#allocation2 + $0x407] sm:$0xff] }
 0x3e1   :  { %2522 = vrot.lane.b32.xlu1 %v2371_v46, %s8555_s29  ;;  %v2403_v46 = vld [vmem:[#allocation2 + $0x3ef] sm:$0xff] }
 0x3e2   :  { %2526 = vrot.lane.b32.xlu0 %v2373_v21, %s8555_s29  ;;  %2506 = vrot.lane.b32.xlu2 %v2363_v23, %s8555_s29 }
 0x3e3   :  { %v2181_v52 = vpop.permute.xlu1 %2180 }
 0x3e4   :  { %2328 = vst.msk [vmem:[#allocation3 + $0x168] sm:$0xff] %vm2282_vm8, %v2181_v52  ;;  %v2185_v37 = vpop.permute.xlu0 %2184  ;;  %v2183_v41 = vpop.permute.xlu2 %2182 }
 0x3e5   :  { %2330 = vst.msk [vmem:[#allocation3 + $0x178] sm:$0xff] %vm2282_vm8, %v2185_v37  ;;  %v2396_v37 = vld [vmem:[#allocation2 + $0x387] sm:$0xff] }
 0x3e6   :  { %2329 = vst.msk [vmem:[#allocation3 + $0x170] sm:$0xff] %vm2282_vm8, %v2183_v41  ;;  %v2407_v41 = vld [vmem:[#allocation2 + $0x42f] sm:$0xff] }
 0x3e9   :  { %2528 = vrot.lane.b32.xlu1 %v2374_v6, %s8555_s29  ;;  %v2406_v6 = vld [vmem:[#allocation2 + $0x427] sm:$0xff] }
 0x3ea   :  { %2532 = vrot.lane.b32.xlu0 %v2376_v19, %s8555_s29  ;;  %2512 = vrot.lane.b32.xlu2 %v2366_v11, %s8555_s29 }
 0x3eb   :  { %v2187_v2 = vpop.permute.xlu1 %2186 }
 0x3ec   :  { %2331 = vst.msk [vmem:[#allocation3 + $0x180] sm:$0xff] %vm2282_vm8, %v2187_v2  ;;  %v2191_v44 = vpop.permute.xlu0 %2190  ;;  %v2189_v22 = vpop.permute.xlu2 %2188 }
 0x3ed   :  { %2333 = vst.msk [vmem:[#allocation3 + $0x190] sm:$0xff] %vm2282_vm8, %v2191_v44  ;;  %v2399_v44 = vld [vmem:[#allocation2 + $0x3af] sm:$0xff] }
 0x3ee   :  { %2332 = vst.msk [vmem:[#allocation3 + $0x188] sm:$0xff] %vm2282_vm8, %v2189_v22  ;;  %v2410_v22 = vld [vmem:[#allocation2 + $0x467] sm:$0xff] }
 0x3f1   :  { %2534 = vrot.lane.b32.xlu1 %v2377_v45, %s8555_s29  ;;  %v2409_v45 = vld [vmem:[#allocation2 + $0x44f] sm:$0xff] }
 0x3f2   :  { %2538 = vrot.lane.b32.xlu0 %v2379_v62, %s8555_s29  ;;  %2518 = vrot.lane.b32.xlu2 %v2369_v12, %s8555_s29 }
 0x3f3   :  { %v2193_v53 = vpop.permute.xlu1 %2192 }
 0x3f4   :  { %2334 = vst.msk [vmem:[#allocation3 + $0x198] sm:$0xff] %vm2282_vm8, %v2193_v53  ;;  %v2197_v57 = vpop.permute.xlu0 %2196  ;;  %v2195_v25 = vpop.permute.xlu2 %2194 }
 0x3f5   :  { %2336 = vst.msk [vmem:[#allocation3 + $0x1a8] sm:$0xff] %vm2282_vm8, %v2197_v57  ;;  %v2402_v57 = vld [vmem:[#allocation2 + $0x3e7] sm:$0xff] }
 0x3f6   :  { %2335 = vst.msk [vmem:[#allocation3 + $0x1a0] sm:$0xff] %vm2282_vm8, %v2195_v25  ;;  %v2734_v25 = vld [vmem:[#allocation2 + $0x50] sm:$0xff] }
 0x3f9   :  { %2540 = vrot.lane.b32.xlu1 %v2380_v54, %s8555_s29  ;;  %v2733_v54 = vld [vmem:[#allocation2 + $0x48] sm:$0xff] }
 0x3fa   :  { %2544 = vrot.lane.b32.xlu0 %v2382_v8, %s8555_s29  ;;  %2524 = vrot.lane.b32.xlu2 %v2372_v3, %s8555_s29 }
 0x3fb   :  { %v2199_v34 = vpop.permute.xlu1 %2198 }
 0x3fc   :  { %2337 = vst.msk [vmem:[#allocation3 + $0x1b0] sm:$0xff] %vm2282_vm8, %v2199_v34  ;;  %v2203_v38 = vpop.permute.xlu0 %2202  ;;  %v2201_v24 = vpop.permute.xlu2 %2200 }
 0x3fd   :  { %2339 = vst.msk [vmem:[#allocation3 + $0x1c0] sm:$0xff] %vm2282_vm8, %v2203_v38  ;;  %v2405_v38 = vld [vmem:[#allocation2 + $0x40f] sm:$0xff] }
 0x3fe   :  { %2338 = vst.msk [vmem:[#allocation3 + $0x1b8] sm:$0xff] %vm2282_vm8, %v2201_v24  ;;  %v2737_v24 = vld [vmem:[#allocation2 + $0x88] sm:$0xff] }
 0x401   :  { %2546 = vrot.lane.b32.xlu1 %v2383_v5, %s8555_s29  ;;  %v2736_v5 = vld [vmem:[#allocation2 + $0x70] sm:$0xff] }
 0x402   :  { %2550 = vrot.lane.b32.xlu0 %v2385_v18, %s8555_s29  ;;  %2530 = vrot.lane.b32.xlu2 %v2375_v33, %s8555_s29 }
 0x403   :  { %v2205_v15 = vpop.permute.xlu1 %2204 }
 0x404   :  { %2340 = vst.msk [vmem:[#allocation3 + $0x1c8] sm:$0xff] %vm2282_vm8, %v2205_v15  ;;  %v2209_v55 = vpop.permute.xlu0 %2208  ;;  %v2207_v27 = vpop.permute.xlu2 %2206 }
 0x405   :  { %2342 = vst.msk [vmem:[#allocation3 + $0x1d8] sm:$0xff] %vm2282_vm8, %v2209_v55  ;;  %v2408_v55 = vld [vmem:[#allocation2 + $0x447] sm:$0xff] }
 0x406   :  { %2341 = vst.msk [vmem:[#allocation3 + $0x1d0] sm:$0xff] %vm2282_vm8, %v2207_v27  ;;  %v2740_v27 = vld [vmem:[#allocation2 + $0xb0] sm:$0xff] }
 0x409   :  { %2552 = vrot.lane.b32.xlu1 %v2386_v50, %s8555_s29  ;;  %v2739_v50 = vld [vmem:[#allocation2 + $0xa8] sm:$0xff] }
 0x40a   :  { %2556 = vrot.lane.b32.xlu0 %v2388_v4, %s8555_s29  ;;  %2536 = vrot.lane.b32.xlu2 %v2378_v0, %s8555_s29 }
 0x40b   :  { %v2211_v30 = vpop.permute.xlu1 %2210 }
 0x40c   :  { %2343 = vst.msk [vmem:[#allocation3 + $0x1e0] sm:$0xff] %vm2282_vm8, %v2211_v30  ;;  %v2215_v16 = vpop.permute.xlu0 %2214  ;;  %v2213_v47 = vpop.permute.xlu2 %2212 }
 0x40d   :  { %2345 = vst.msk [vmem:[#allocation3 + $0x1f0] sm:$0xff] %vm2282_vm8, %v2215_v16  ;;  %v2411_v16 = vld [vmem:[#allocation2 + $0x46f] sm:$0xff] }
 0x40e   :  { %2344 = vst.msk [vmem:[#allocation3 + $0x1e8] sm:$0xff] %vm2282_vm8, %v2213_v47  ;;  %v2743_v47 = vld [vmem:[#allocation2 + $0xe8] sm:$0xff] }
 0x411   :  { %2558 = vrot.lane.b32.xlu1 %v2389_v43, %s8555_s29  ;;  %v2742_v43 = vld [vmem:[#allocation2 + $0xd0] sm:$0xff] }
 0x412   :  { %2562 = vrot.lane.b32.xlu0 %v2391_v28, %s8555_s29  ;;  %2542 = vrot.lane.b32.xlu2 %v2381_v60, %s8555_s29 }
 0x413   :  { %v2217_v56 = vpop.permute.xlu1 %2216 }
 0x414   :  { %2346 = vst.msk [vmem:[#allocation3 + $0x1f8] sm:$0xff] %vm2282_vm8, %v2217_v56  ;;  %v2479_v36 = vpop.permute.xlu0 %2478  ;;  %v2477_v40 = vpop.permute.xlu2 %2476 }
 0x415   :  { %2670 = vst.msk [vmem:[#allocation3 + $0x8] sm:$0xff] %vm2668_vm9, %v2479_v36  ;;  %v2735_v36 = vld [vmem:[#allocation2 + $0x68] sm:$0xff] }
 0x416   :  { %2669 = vst.msk [vmem:[#allocation3] sm:$0xff] %vm2668_vm9, %v2477_v40  ;;  %v2746_v40 = vld [vmem:[#allocation2 + $0x110] sm:$0xff] }
 0x419   :  { %2564 = vrot.lane.b32.xlu1 %v2392_v1, %s8555_s29  ;;  %v2745_v1 = vld [vmem:[#allocation2 + $0x108] sm:$0xff] }
 0x41a   :  { %2568 = vrot.lane.b32.xlu0 %v2394_v14, %s8555_s29  ;;  %2548 = vrot.lane.b32.xlu2 %v2384_v51, %s8555_s29 }
 0x41b   :  { %v2481_v9 = vpop.permute.xlu1 %2480 }
 0x41c   :  { %2671 = vst.msk [vmem:[#allocation3 + $0x10] sm:$0xff] %vm2668_vm9, %v2481_v9  ;;  %v2485_v35 = vpop.permute.xlu0 %2484  ;;  %v2483_v63 = vpop.permute.xlu2 %2482 }
 0x41d   :  { %2673 = vst.msk [vmem:[#allocation3 + $0x20] sm:$0xff] %vm2668_vm9, %v2485_v35  ;;  %v2738_v35 = vld [vmem:[#allocation2 + $0x90] sm:$0xff] }
 0x41e   :  { %2672 = vst.msk [vmem:[#allocation3 + $0x18] sm:$0xff] %vm2668_vm9, %v2483_v63  ;;  %v2749_v63 = vld [vmem:[#allocation2 + $0x148] sm:$0xff] }
 0x421   :  { %2570 = vrot.lane.b32.xlu1 %v2395_v26, %s8555_s29  ;;  %v2748_v26 = vld [vmem:[#allocation2 + $0x130] sm:$0xff] }
 0x422   :  { %2574 = vrot.lane.b32.xlu0 %v2397_v32, %s8555_s29  ;;  %2554 = vrot.lane.b32.xlu2 %v2387_v58, %s8555_s29 }
 0x423   :  { %v2487_v29 = vpop.permute.xlu1 %2486 }
 0x424   :  { %2674 = vst.msk [vmem:[#allocation3 + $0x28] sm:$0xff] %vm2668_vm9, %v2487_v29  ;;  %v2491_v39 = vpop.permute.xlu0 %2490  ;;  %v2489_v48 = vpop.permute.xlu2 %2488 }
 0x425   :  { %2676 = vst.msk [vmem:[#allocation3 + $0x38] sm:$0xff] %vm2668_vm9, %v2491_v39  ;;  %v2741_v39 = vld [vmem:[#allocation2 + $0xc8] sm:$0xff] }
 0x426   :  { %2675 = vst.msk [vmem:[#allocation3 + $0x30] sm:$0xff] %vm2668_vm9, %v2489_v48  ;;  %v2752_v48 = vld [vmem:[#allocation2 + $0x170] sm:$0xff] }
 0x429   :  { %2576 = vrot.lane.b32.xlu1 %v2398_v13, %s8555_s29  ;;  %v2751_v13 = vld [vmem:[#allocation2 + $0x168] sm:$0xff] }
 0x42a   :  { %2580 = vrot.lane.b32.xlu0 %v2400_v59, %s8555_s29  ;;  %2560 = vrot.lane.b32.xlu2 %v2390_v17, %s8555_s29 }
 0x42b   :  { %v2493_v49 = vpop.permute.xlu1 %2492 }
 0x42c   :  { %2677 = vst.msk [vmem:[#allocation3 + $0x40] sm:$0xff] %vm2668_vm9, %v2493_v49  ;;  %v2497_v31 = vpop.permute.xlu0 %2496  ;;  %v2495_v7 = vpop.permute.xlu2 %2494 }
 0x42d   :  { %2679 = vst.msk [vmem:[#allocation3 + $0x50] sm:$0xff] %vm2668_vm9, %v2497_v31  ;;  %v2744_v31 = vld [vmem:[#allocation2 + $0xf0] sm:$0xff] }
 0x42e   :  { %2678 = vst.msk [vmem:[#allocation3 + $0x48] sm:$0xff] %vm2668_vm9, %v2495_v7  ;;  %v2755_v7 = vld [vmem:[#allocation2 + $0x1a8] sm:$0xff] }
 0x431   :  { %2582 = vrot.lane.b32.xlu1 %v2401_v61, %s8555_s29  ;;  %v2754_v61 = vld [vmem:[#allocation2 + $0x190] sm:$0xff] }
 0x432   :  { %2586 = vrot.lane.b32.xlu0 %v2403_v46, %s8555_s29  ;;  %2566 = vrot.lane.b32.xlu2 %v2393_v10, %s8555_s29 }
 0x433   :  { %v2499_v42 = vpop.permute.xlu1 %2498 }
 0x434   :  { %2680 = vst.msk [vmem:[#allocation3 + $0x58] sm:$0xff] %vm2668_vm9, %v2499_v42  ;;  %v2503_v52 = vpop.permute.xlu0 %2502  ;;  %v2501_v21 = vpop.permute.xlu2 %2500 }
 0x435   :  { %2682 = vst.msk [vmem:[#allocation3 + $0x68] sm:$0xff] %vm2668_vm9, %v2503_v52  ;;  %v2747_v52 = vld [vmem:[#allocation2 + $0x128] sm:$0xff] }
 0x436   :  { %2681 = vst.msk [vmem:[#allocation3 + $0x60] sm:$0xff] %vm2668_vm9, %v2501_v21  ;;  %v2758_v21 = vld [vmem:[#allocation2 + $0x1d0] sm:$0xff] }
 0x439   :  { %2588 = vrot.lane.b32.xlu1 %v2404_v20, %s8555_s29  ;;  %v2757_v20 = vld [vmem:[#allocation2 + $0x1c8] sm:$0xff] }
 0x43a   :  { %2592 = vrot.lane.b32.xlu0 %v2406_v6, %s8555_s29  ;;  %2572 = vrot.lane.b32.xlu2 %v2396_v37, %s8555_s29 }
 0x43b   :  { %v2505_v23 = vpop.permute.xlu1 %2504 }
 0x43c   :  { %2683 = vst.msk [vmem:[#allocation3 + $0x70] sm:$0xff] %vm2668_vm9, %v2505_v23  ;;  %v2509_v2 = vpop.permute.xlu0 %2508  ;;  %v2507_v19 = vpop.permute.xlu2 %2506 }
 0x43d   :  { %2685 = vst.msk [vmem:[#allocation3 + $0x80] sm:$0xff] %vm2668_vm9, %v2509_v2  ;;  %v2750_v2 = vld [vmem:[#allocation2 + $0x150] sm:$0xff] }
 0x43e   :  { %2684 = vst.msk [vmem:[#allocation3 + $0x78] sm:$0xff] %vm2668_vm9, %v2507_v19  ;;  %v2761_v19 = vld [vmem:[#allocation2 + $0x208] sm:$0xff] }
 0x441   :  { %2594 = vrot.lane.b32.xlu1 %v2407_v41, %s8555_s29  ;;  %v2760_v41 = vld [vmem:[#allocation2 + $0x1f0] sm:$0xff] }
 0x442   :  { %2598 = vrot.lane.b32.xlu0 %v2409_v45, %s8555_s29  ;;  %2578 = vrot.lane.b32.xlu2 %v2399_v44, %s8555_s29 }
 0x443   :  { %v2511_v11 = vpop.permute.xlu1 %2510 }
 0x444   :  { %2686 = vst.msk [vmem:[#allocation3 + $0x88] sm:$0xff] %vm2668_vm9, %v2511_v11  ;;  %v2515_v53 = vpop.permute.xlu0 %2514  ;;  %v2513_v62 = vpop.permute.xlu2 %2512 }
 0x445   :  { %2688 = vst.msk [vmem:[#allocation3 + $0x98] sm:$0xff] %vm2668_vm9, %v2515_v53  ;;  %v2753_v53 = vld [vmem:[#allocation2 + $0x188] sm:$0xff] }
 0x446   :  { %2687 = vst.msk [vmem:[#allocation3 + $0x90] sm:$0xff] %vm2668_vm9, %v2513_v62  ;;  %v2764_v62 = vld [vmem:[#allocation2 + $0x230] sm:$0xff] }
 0x449   :  { %2600 = vrot.lane.b32.xlu1 %v2410_v22, %s8555_s29  ;;  %v2763_v22 = vld [vmem:[#allocation2 + $0x228] sm:$0xff] }
 0x44a   :  { %2861 = vrot.lane.b32.xlu0 %v2733_v54, %s8556_s30  ;;  %2584 = vrot.lane.b32.xlu2 %v2402_v57, %s8555_s29 }
 0x44b   :  { %v2517_v12 = vpop.permute.xlu1 %2516 }
 0x44c   :  { %2689 = vst.msk [vmem:[#allocation3 + $0xa0] sm:$0xff] %vm2668_vm9, %v2517_v12  ;;  %v2521_v34 = vpop.permute.xlu0 %2520  ;;  %v2519_v8 = vpop.permute.xlu2 %2518 }
 0x44d   :  { %2691 = vst.msk [vmem:[#allocation3 + $0xb0] sm:$0xff] %vm2668_vm9, %v2521_v34  ;;  %v2756_v34 = vld [vmem:[#allocation2 + $0x1b0] sm:$0xff] }
 0x44e   :  { %2690 = vst.msk [vmem:[#allocation3 + $0xa8] sm:$0xff] %vm2668_vm9, %v2519_v8  ;;  %v2767_v8 = vld [vmem:[#allocation2 + $0x2a8] sm:$0xff] }
 0x451   :  { %2863 = vrot.lane.b32.xlu1 %v2734_v25, %s8556_s30  ;;  %v2766_v25 = vld [vmem:[#allocation2 + $0x290] sm:$0xff] }
 0x452   :  { %2867 = vrot.lane.b32.xlu0 %v2736_v5, %s8556_s30  ;;  %2590 = vrot.lane.b32.xlu2 %v2405_v38, %s8555_s29 }
 0x453   :  { %v2523_v3 = vpop.permute.xlu1 %2522 }
 0x454   :  { %2692 = vst.msk [vmem:[#allocation3 + $0xb8] sm:$0xff] %vm2668_vm9, %v2523_v3  ;;  %v2527_v15 = vpop.permute.xlu0 %2526  ;;  %v2525_v18 = vpop.permute.xlu2 %2524 }
 0x455   :  { %2694 = vst.msk [vmem:[#allocation3 + $0xc8] sm:$0xff] %vm2668_vm9, %v2527_v15  ;;  %v2759_v15 = vld [vmem:[#allocation2 + $0x1e8] sm:$0xff] }
 0x456   :  { %2693 = vst.msk [vmem:[#allocation3 + $0xc0] sm:$0xff] %vm2668_vm9, %v2525_v18  ;;  %v2770_v18 = vld [vmem:[#allocation2 + $0x2d0] sm:$0xff] }
 0x459   :  { %2869 = vrot.lane.b32.xlu1 %v2737_v24, %s8556_s30  ;;  %v2769_v24 = vld [vmem:[#allocation2 + $0x2c8] sm:$0xff] }
 0x45a   :  { %2873 = vrot.lane.b32.xlu0 %v2739_v50, %s8556_s30  ;;  %2596 = vrot.lane.b32.xlu2 %v2408_v55, %s8555_s29 }
 0x45b   :  { %v2529_v33 = vpop.permute.xlu1 %2528 }
 0x45c   :  { %2695 = vst.msk [vmem:[#allocation3 + $0xd0] sm:$0xff] %vm2668_vm9, %v2529_v33  ;;  %v2533_v30 = vpop.permute.xlu0 %2532  ;;  %v2531_v4 = vpop.permute.xlu2 %2530 }
 0x45d   :  { %2697 = vst.msk [vmem:[#allocation3 + $0xe0] sm:$0xff] %vm2668_vm9, %v2533_v30  ;;  %v2762_v30 = vld [vmem:[#allocation2 + $0x210] sm:$0xff] }
 0x45e   :  { %2696 = vst.msk [vmem:[#allocation3 + $0xd8] sm:$0xff] %vm2668_vm9, %v2531_v4  ;;  %v2773_v4 = vld [vmem:[#allocation2 + $0x308] sm:$0xff] }
 0x461   :  { %2875 = vrot.lane.b32.xlu1 %v2740_v27, %s8556_s30  ;;  %v2772_v27 = vld [vmem:[#allocation2 + $0x2f0] sm:$0xff] }
 0x462   :  { %2879 = vrot.lane.b32.xlu0 %v2742_v43, %s8556_s30  ;;  %2602 = vrot.lane.b32.xlu2 %v2411_v16, %s8555_s29 }
 0x463   :  { %v2535_v0 = vpop.permute.xlu1 %2534 }
 0x464   :  { %2698 = vst.msk [vmem:[#allocation3 + $0xe8] sm:$0xff] %vm2668_vm9, %v2535_v0  ;;  %v2539_v56 = vpop.permute.xlu0 %2538  ;;  %v2537_v28 = vpop.permute.xlu2 %2536 }
 0x465   :  { %2700 = vst.msk [vmem:[#allocation3 + $0xf8] sm:$0xff] %vm2668_vm9, %v2539_v56  ;;  %v2765_v56 = vld [vmem:[#allocation2 + $0x288] sm:$0xff] }
 0x466   :  { %2699 = vst.msk [vmem:[#allocation3 + $0xf0] sm:$0xff] %vm2668_vm9, %v2537_v28  ;;  %v2776_v28 = vld [vmem:[#allocation2 + $0x330] sm:$0xff] }
 0x469   :  { %2881 = vrot.lane.b32.xlu1 %v2743_v47, %s8556_s30  ;;  %v2775_v47 = vld [vmem:[#allocation2 + $0x328] sm:$0xff] }
 0x46a   :  { %2885 = vrot.lane.b32.xlu0 %v2745_v1, %s8556_s30  ;;  %2865 = vrot.lane.b32.xlu2 %v2735_v36, %s8556_s30 }
 0x46b   :  { %v2541_v60 = vpop.permute.xlu1 %2540 }
 0x46c   :  { %2701 = vst.msk [vmem:[#allocation3 + $0x100] sm:$0xff] %vm2668_vm9, %v2541_v60  ;;  %v2545_v9 = vpop.permute.xlu0 %2544  ;;  %v2543_v14 = vpop.permute.xlu2 %2542 }
 0x46d   :  { %2703 = vst.msk [vmem:[#allocation3 + $0x110] sm:$0xff] %vm2668_vm9, %v2545_v9  ;;  %v2768_v9 = vld [vmem:[#allocation2 + $0x2b0] sm:$0xff] }
 0x46e   :  { %2702 = vst.msk [vmem:[#allocation3 + $0x108] sm:$0xff] %vm2668_vm9, %v2543_v14  ;;  %v2779_v14 = vld [vmem:[#allocation2 + $0x368] sm:$0xff] }
 0x471   :  { %2887 = vrot.lane.b32.xlu1 %v2746_v40, %s8556_s30  ;;  %v2778_v40 = vld [vmem:[#allocation2 + $0x350] sm:$0xff] }
 0x472   :  { %2891 = vrot.lane.b32.xlu0 %v2748_v26, %s8556_s30  ;;  %2871 = vrot.lane.b32.xlu2 %v2738_v35, %s8556_s30 }
 0x473   :  { %v2547_v51 = vpop.permute.xlu1 %2546 }
 0x474   :  { %2704 = vst.msk [vmem:[#allocation3 + $0x118] sm:$0xff] %vm2668_vm9, %v2547_v51  ;;  %v2551_v29 = vpop.permute.xlu0 %2550  ;;  %v2549_v32 = vpop.permute.xlu2 %2548 }
 0x475   :  { %2706 = vst.msk [vmem:[#allocation3 + $0x128] sm:$0xff] %vm2668_vm9, %v2551_v29  ;;  %v2771_v29 = vld [vmem:[#allocation2 + $0x2e8] sm:$0xff] }
 0x476   :  { %2705 = vst.msk [vmem:[#allocation3 + $0x120] sm:$0xff] %vm2668_vm9, %v2549_v32  ;;  %v2782_v32 = vld [vmem:[#allocation2 + $0x390] sm:$0xff] }
 0x479   :  { %2893 = vrot.lane.b32.xlu1 %v2749_v63, %s8556_s30  ;;  %v2781_v63 = vld [vmem:[#allocation2 + $0x388] sm:$0xff] }
 0x47a   :  { %2897 = vrot.lane.b32.xlu0 %v2751_v13, %s8556_s30  ;;  %2877 = vrot.lane.b32.xlu2 %v2741_v39, %s8556_s30 }
 0x47b   :  { %v2553_v58 = vpop.permute.xlu1 %2552 }
 0x47c   :  { %2707 = vst.msk [vmem:[#allocation3 + $0x130] sm:$0xff] %vm2668_vm9, %v2553_v58  ;;  %v2557_v49 = vpop.permute.xlu0 %2556  ;;  %v2555_v59 = vpop.permute.xlu2 %2554 }
 0x47d   :  { %2709 = vst.msk [vmem:[#allocation3 + $0x140] sm:$0xff] %vm2668_vm9, %v2557_v49  ;;  %v2774_v49 = vld [vmem:[#allocation2 + $0x310] sm:$0xff] }
 0x47e   :  { %2708 = vst.msk [vmem:[#allocation3 + $0x138] sm:$0xff] %vm2668_vm9, %v2555_v59  ;;  %v2785_v59 = vld [vmem:[#allocation2 + $0x3c8] sm:$0xff] }
 0x481   :  { %2899 = vrot.lane.b32.xlu1 %v2752_v48, %s8556_s30  ;;  %v2784_v48 = vld [vmem:[#allocation2 + $0x3b0] sm:$0xff] }
 0x482   :  { %2903 = vrot.lane.b32.xlu0 %v2754_v61, %s8556_s30  ;;  %2883 = vrot.lane.b32.xlu2 %v2744_v31, %s8556_s30 }
 0x483   :  { %v2559_v17 = vpop.permute.xlu1 %2558 }
 0x484   :  { %2710 = vst.msk [vmem:[#allocation3 + $0x148] sm:$0xff] %vm2668_vm9, %v2559_v17  ;;  %v2563_v42 = vpop.permute.xlu0 %2562  ;;  %v2561_v46 = vpop.permute.xlu2 %2560 }
 0x485   :  { %2712 = vst.msk [vmem:[#allocation3 + $0x158] sm:$0xff] %vm2668_vm9, %v2563_v42  ;;  %v2777_v42 = vld [vmem:[#allocation2 + $0x348] sm:$0xff] }
 0x486   :  { %2711 = vst.msk [vmem:[#allocation3 + $0x150] sm:$0xff] %vm2668_vm9, %v2561_v46  ;;  %v2788_v46 = vld [vmem:[#allocation2 + $0x3f0] sm:$0xff] }
 0x489   :  { %2905 = vrot.lane.b32.xlu1 %v2755_v7, %s8556_s30  ;;  %v2787_v7 = vld [vmem:[#allocation2 + $0x3e8] sm:$0xff] }
 0x48a   :  { %2909 = vrot.lane.b32.xlu0 %v2757_v20, %s8556_s30  ;;  %2889 = vrot.lane.b32.xlu2 %v2747_v52, %s8556_s30 }
 0x48b   :  { %v2565_v10 = vpop.permute.xlu1 %2564 }
 0x48c   :  { %2713 = vst.msk [vmem:[#allocation3 + $0x160] sm:$0xff] %vm2668_vm9, %v2565_v10  ;;  %v2569_v23 = vpop.permute.xlu0 %2568  ;;  %v2567_v6 = vpop.permute.xlu2 %2566 }
 0x48d   :  { %2715 = vst.msk [vmem:[#allocation3 + $0x170] sm:$0xff] %vm2668_vm9, %v2569_v23  ;;  %v2780_v23 = vld [vmem:[#allocation2 + $0x370] sm:$0xff] }
 0x48e   :  { %2714 = vst.msk [vmem:[#allocation3 + $0x168] sm:$0xff] %vm2668_vm9, %v2567_v6  ;;  %v2791_v6 = vld [vmem:[#allocation2 + $0x428] sm:$0xff] }
 0x491   :  { %2911 = vrot.lane.b32.xlu1 %v2758_v21, %s8556_s30  ;;  %v2790_v21 = vld [vmem:[#allocation2 + $0x410] sm:$0xff] }
 0x492   :  { %2915 = vrot.lane.b32.xlu0 %v2760_v41, %s8556_s30  ;;  %2895 = vrot.lane.b32.xlu2 %v2750_v2, %s8556_s30 }
 0x493   :  { %v2571_v37 = vpop.permute.xlu1 %2570 }
 0x494   :  { %2716 = vst.msk [vmem:[#allocation3 + $0x178] sm:$0xff] %vm2668_vm9, %v2571_v37  ;;  %v2575_v11 = vpop.permute.xlu0 %2574  ;;  %v2573_v45 = vpop.permute.xlu2 %2572 }
 0x495   :  { %2718 = vst.msk [vmem:[#allocation3 + $0x188] sm:$0xff] %vm2668_vm9, %v2575_v11  ;;  %v2783_v11 = vld [vmem:[#allocation2 + $0x3a8] sm:$0xff] }
 0x496   :  { %2717 = vst.msk [vmem:[#allocation3 + $0x180] sm:$0xff] %vm2668_vm9, %v2573_v45  ;;  %v2794_v45 = vld [vmem:[#allocation2 + $0x450] sm:$0xff] }
 0x499   :  { %2917 = vrot.lane.b32.xlu1 %v2761_v19, %s8556_s30  ;;  %v2793_v19 = vld [vmem:[#allocation2 + $0x448] sm:$0xff] }
 0x49a   :  { %2921 = vrot.lane.b32.xlu0 %v2763_v22, %s8556_s30  ;;  %2901 = vrot.lane.b32.xlu2 %v2753_v53, %s8556_s30 }
 0x49b   :  { %v2577_v44 = vpop.permute.xlu1 %2576 }
 0x49c   :  { %2719 = vst.msk [vmem:[#allocation3 + $0x190] sm:$0xff] %vm2668_vm9, %v2577_v44  ;;  %v2581_v12 = vpop.permute.xlu0 %2580  ;;  %v2579_v54 = vpop.permute.xlu2 %2578 }
 0x49d   :  { %2721 = vst.msk [vmem:[#allocation3 + $0x1a0] sm:$0xff] %vm2668_vm9, %v2581_v12  ;;  %v2786_v12 = vld [vmem:[#allocation2 + $0x3d0] sm:$0xff] }
 0x49e   :  { %2720 = vst.msk [vmem:[#allocation3 + $0x198] sm:$0xff] %vm2668_vm9, %v2579_v54  ;;  %v3118_v54 = vld [vmem:[#allocation2 + $0x49] sm:$0xff] }
 0x4a1   :  { %2923 = vrot.lane.b32.xlu1 %v2764_v62, %s8556_s30  ;;  %v2796_v62 = vld [vmem:[#allocation2 + $0x470] sm:$0xff] }
 0x4a2   :  { %2927 = vrot.lane.b32.xlu0 %v2766_v25, %s8556_s30  ;;  %2907 = vrot.lane.b32.xlu2 %v2756_v34, %s8556_s30 }
 0x4a3   :  { %v2583_v57 = vpop.permute.xlu1 %2582 }
 0x4a4   :  { %2722 = vst.msk [vmem:[#allocation3 + $0x1a8] sm:$0xff] %vm2668_vm9, %v2583_v57  ;;  %v2587_v3 = vpop.permute.xlu0 %2586  ;;  %v2585_v5 = vpop.permute.xlu2 %2584 }
 0x4a5   :  { %2724 = vst.msk [vmem:[#allocation3 + $0x1b8] sm:$0xff] %vm2668_vm9, %v2587_v3  ;;  %v2789_v3 = vld [vmem:[#allocation2 + $0x408] sm:$0xff] }
 0x4a6   :  { %2723 = vst.msk [vmem:[#allocation3 + $0x1b0] sm:$0xff] %vm2668_vm9, %v2585_v5  ;;  %v3121_v5 = vld [vmem:[#allocation2 + $0x71] sm:$0xff] }
 0x4a9   :  { %2929 = vrot.lane.b32.xlu1 %v2767_v8, %s8556_s30  ;;  %v3120_v8 = vld [vmem:[#allocation2 + $0x69] sm:$0xff] }
 0x4aa   :  { %2933 = vrot.lane.b32.xlu0 %v2769_v24, %s8556_s30  ;;  %2913 = vrot.lane.b32.xlu2 %v2759_v15, %s8556_s30 }
 0x4ab   :  { %v2589_v38 = vpop.permute.xlu1 %2588 }
 0x4ac   :  { %2725 = vst.msk [vmem:[#allocation3 + $0x1c0] sm:$0xff] %vm2668_vm9, %v2589_v38  ;;  %v2593_v33 = vpop.permute.xlu0 %2592  ;;  %v2591_v50 = vpop.permute.xlu2 %2590 }
 0x4ad   :  { %2727 = vst.msk [vmem:[#allocation3 + $0x1d0] sm:$0xff] %vm2668_vm9, %v2593_v33  ;;  %v2792_v33 = vld [vmem:[#allocation2 + $0x430] sm:$0xff] }
 0x4ae   :  { %2726 = vst.msk [vmem:[#allocation3 + $0x1c8] sm:$0xff] %vm2668_vm9, %v2591_v50  ;;  %v3124_v50 = vld [vmem:[#allocation2 + $0xa9] sm:$0xff] }
 0x4b1   :  { %2935 = vrot.lane.b32.xlu1 %v2770_v18, %s8556_s30  ;;  %v3123_v18 = vld [vmem:[#allocation2 + $0x91] sm:$0xff] }
 0x4b2   :  { %2939 = vrot.lane.b32.xlu0 %v2772_v27, %s8556_s30  ;;  %2919 = vrot.lane.b32.xlu2 %v2762_v30, %s8556_s30 }
 0x4b3   :  { %v2595_v55 = vpop.permute.xlu1 %2594 }
 0x4b4   :  { %2728 = vst.msk [vmem:[#allocation3 + $0x1d8] sm:$0xff] %vm2668_vm9, %v2595_v55  ;;  %v2599_v0 = vpop.permute.xlu0 %2598  ;;  %v2597_v43 = vpop.permute.xlu2 %2596 }
 0x4b5   :  { %2730 = vst.msk [vmem:[#allocation3 + $0x1e8] sm:$0xff] %vm2668_vm9, %v2599_v0  ;;  %v2795_v0 = vld [vmem:[#allocation2 + $0x468] sm:$0xff] }
 0x4b6   :  { %2729 = vst.msk [vmem:[#allocation3 + $0x1e0] sm:$0xff] %vm2668_vm9, %v2597_v43  ;;  %v3127_v43 = vld [vmem:[#allocation2 + $0xd1] sm:$0xff] }
 0x4b9   :  { %2941 = vrot.lane.b32.xlu1 %v2773_v4, %s8556_s30  ;;  %v3126_v4 = vld [vmem:[#allocation2 + $0xc9] sm:$0xff] }
 0x4ba   :  { %2945 = vrot.lane.b32.xlu0 %v2775_v47, %s8556_s30  ;;  %2925 = vrot.lane.b32.xlu2 %v2765_v56, %s8556_s30 }
 0x4bb   :  { %v2601_v16 = vpop.permute.xlu1 %2600 }
 0x4bc   :  { %2731 = vst.msk [vmem:[#allocation3 + $0x1f0] sm:$0xff] %vm2668_vm9, %v2601_v16  ;;  %v2862_v60 = vpop.permute.xlu0 %2861  ;;  %v2603_v1 = vpop.permute.xlu2 %2602 }
 0x4bd   :  { %3054 = vst.msk [vmem:[#allocation3] sm:$0xff] %vm3053_vm10, %v2862_v60  ;;  %v3119_v60 = vld [vmem:[#allocation2 + $0x51] sm:$0xff] }
 0x4be   :  { %2732 = vst.msk [vmem:[#allocation3 + $0x1f8] sm:$0xff] %vm2668_vm9, %v2603_v1  ;;  %v3130_v1 = vld [vmem:[#allocation2 + $0x109] sm:$0xff] }
 0x4c1   :  { %2947 = vrot.lane.b32.xlu1 %v2776_v28, %s8556_s30  ;;  %v3129_v28 = vld [vmem:[#allocation2 + $0xf1] sm:$0xff] }
 0x4c2   :  { %2951 = vrot.lane.b32.xlu0 %v2778_v40, %s8556_s30  ;;  %2931 = vrot.lane.b32.xlu2 %v2768_v9, %s8556_s30 }
 0x4c3   :  { %v2864_v36 = vpop.permute.xlu1 %2863 }
 0x4c4   :  { %3055 = vst.msk [vmem:[#allocation3 + $0x8] sm:$0xff] %vm3053_vm10, %v2864_v36  ;;  %v2868_v51 = vpop.permute.xlu0 %2867  ;;  %v2866_v26 = vpop.permute.xlu2 %2865 }
 0x4c5   :  { %3057 = vst.msk [vmem:[#allocation3 + $0x18] sm:$0xff] %vm3053_vm10, %v2868_v51  ;;  %v3122_v51 = vld [vmem:[#allocation2 + $0x89] sm:$0xff] }
 0x4c6   :  { %3056 = vst.msk [vmem:[#allocation3 + $0x10] sm:$0xff] %vm3053_vm10, %v2866_v26  ;;  %v3133_v26 = vld [vmem:[#allocation2 + $0x131] sm:$0xff] }
 0x4c9   :  { %2953 = vrot.lane.b32.xlu1 %v2779_v14, %s8556_s30  ;;  %v3132_v14 = vld [vmem:[#allocation2 + $0x129] sm:$0xff] }
 0x4ca   :  { %2957 = vrot.lane.b32.xlu0 %v2781_v63, %s8556_s30  ;;  %2937 = vrot.lane.b32.xlu2 %v2771_v29, %s8556_s30 }
 0x4cb   :  { %v2870_v35 = vpop.permute.xlu1 %2869 }
 0x4cc   :  { %3058 = vst.msk [vmem:[#allocation3 + $0x20] sm:$0xff] %vm3053_vm10, %v2870_v35  ;;  %v2874_v58 = vpop.permute.xlu0 %2873  ;;  %v2872_v13 = vpop.permute.xlu2 %2871 }
 0x4cd   :  { %3060 = vst.msk [vmem:[#allocation3 + $0x30] sm:$0xff] %vm3053_vm10, %v2874_v58  ;;  %v3125_v58 = vld [vmem:[#allocation2 + $0xb1] sm:$0xff] }
 0x4ce   :  { %3059 = vst.msk [vmem:[#allocation3 + $0x28] sm:$0xff] %vm3053_vm10, %v2872_v13  ;;  %v3136_v13 = vld [vmem:[#allocation2 + $0x169] sm:$0xff] }
 0x4d1   :  { %2959 = vrot.lane.b32.xlu1 %v2782_v32, %s8556_s30  ;;  %v3135_v32 = vld [vmem:[#allocation2 + $0x151] sm:$0xff] }
 0x4d2   :  { %2963 = vrot.lane.b32.xlu0 %v2784_v48, %s8556_s30  ;;  %2943 = vrot.lane.b32.xlu2 %v2774_v49, %s8556_s30 }
 0x4d3   :  { %v2876_v39 = vpop.permute.xlu1 %2875 }
 0x4d4   :  { %3061 = vst.msk [vmem:[#allocation3 + $0x38] sm:$0xff] %vm3053_vm10, %v2876_v39  ;;  %v2880_v17 = vpop.permute.xlu0 %2879  ;;  %v2878_v61 = vpop.permute.xlu2 %2877 }
 0x4d5   :  { %3063 = vst.msk [vmem:[#allocation3 + $0x48] sm:$0xff] %vm3053_vm10, %v2880_v17  ;;  %v3128_v17 = vld [vmem:[#allocation2 + $0xe9] sm:$0xff] }
 0x4d6   :  { %3062 = vst.msk [vmem:[#allocation3 + $0x40] sm:$0xff] %vm3053_vm10, %v2878_v61  ;;  %v3139_v61 = vld [vmem:[#allocation2 + $0x191] sm:$0xff] }
 0x4d9   :  { %2965 = vrot.lane.b32.xlu1 %v2785_v59, %s8556_s30  ;;  %v3138_v59 = vld [vmem:[#allocation2 + $0x189] sm:$0xff] }
 0x4da   :  { %2969 = vrot.lane.b32.xlu0 %v2787_v7, %s8556_s30  ;;  %2949 = vrot.lane.b32.xlu2 %v2777_v42, %s8556_s30 }
 0x4db   :  { %v2882_v31 = vpop.permute.xlu1 %2881 }
 0x4dc   :  { %3064 = vst.msk [vmem:[#allocation3 + $0x50] sm:$0xff] %vm3053_vm10, %v2882_v31  ;;  %v2886_v10 = vpop.permute.xlu0 %2885  ;;  %v2884_v20 = vpop.permute.xlu2 %2883 }
 0x4dd   :  { %3066 = vst.msk [vmem:[#allocation3 + $0x60] sm:$0xff] %vm3053_vm10, %v2886_v10  ;;  %v3141_v10 = vld [vmem:[#allocation2 + $0x1b1] sm:$0xff] }
 0x4de   :  { %3065 = vst.msk [vmem:[#allocation3 + $0x58] sm:$0xff] %vm3053_vm10, %v2884_v20  ;;  %v3581_v20 = vld [vmem:[%s13139_s1 + $0x70] sm:$0xff] }
 0x4e1   :  { %2971 = vrot.lane.b32.xlu1 %v2788_v46, %s8556_s30  ;;  %v3582_v46 = vld [vmem:[%s13139_s1 + $0x78] sm:$0xff] }
 0x4e2   :  { %2975 = vrot.lane.b32.xlu0 %v2790_v21, %s8556_s30  ;;  %2955 = vrot.lane.b32.xlu2 %v2780_v23, %s8556_s30  ;;  %v3142_v21 = vld [vmem:[#allocation2 + $0x1c9] sm:$0xff] }
 0x4e3   :  { %v2888_v52 = vpop.permute.xlu1 %2887  ;;  %3583 = vmatpush.msra.mxu0 %v3582_v46  ;;  %8498 = vmatpush.msra.mxu2 %v3582_v46  ;;  %v3580_v23 = vld [vmem:[%s13139_s1 + $0x68] sm:$0xff] }
 0x4e4   :  { %3067 = vst.msk [vmem:[#allocation3 + $0x68] sm:$0xff] %vm3053_vm10, %v2888_v52  ;;  %v2892_v37 = vpop.permute.xlu0 %2891  ;;  %v2890_v41 = vpop.permute.xlu2 %2889  ;;  %v3131_v52 = vld [vmem:[#allocation2 + $0x111] sm:$0xff] }
 0x4e5   :  { %3069 = vst.msk [vmem:[#allocation3 + $0x78] sm:$0xff] %vm3053_vm10, %v2892_v37  ;;  %3584 = vmatpush.msra.mxu0 %v3581_v20  ;;  %8499 = vmatpush.msra.mxu2 %v3581_v20  ;;  %v3579_v37 = vld [vmem:[%s13139_s1 + $0x60] sm:$0xff] }
 0x4e6   :  { %3068 = vst.msk [vmem:[#allocation3 + $0x70] sm:$0xff] %vm3053_vm10, %v2890_v41 }
 0x4e7   :  { %3585 = vmatpush.msra.mxu0 %v3580_v23  ;;  %8500 = vmatpush.msra.mxu2 %v3580_v23 }
 0x4e9   :  { %2977 = vrot.lane.b32.xlu1 %v2791_v6, %s8556_s30  ;;  %3586 = vmatpush.msra.mxu0 %v3579_v37 }
 0x4ea   :  { %2981 = vrot.lane.b32.xlu0 %v2793_v19, %s8556_s30  ;;  %2961 = vrot.lane.b32.xlu2 %v2783_v11, %s8556_s30  ;;  %v3578_v19 = vld [vmem:[%s13139_s1 + $0x58] sm:$0xff]  ;;  %v3144_v11 = vld [vmem:[#allocation2 + $0x1e9] sm:$0xff] }
 0x4eb   :  { %v2894_v2 = vpop.permute.xlu1 %2893  ;;  %8501 = vmatpush.msra.mxu2 %v3579_v37  ;;  %3587 = vmatpush.msra.mxu0 %v3578_v19 }
 0x4ec   :  { %3070 = vst.msk [vmem:[#allocation3 + $0x80] sm:$0xff] %vm3053_vm10, %v2894_v2  ;;  %v2898_v44 = vpop.permute.xlu0 %2897  ;;  %v2896_v22 = vpop.permute.xlu2 %2895 }
 0x4ed   :  { %3072 = vst.msk [vmem:[#allocation3 + $0x90] sm:$0xff] %vm3053_vm10, %v2898_v44  ;;  %v3134_v44 = vld [vmem:[#allocation2 + $0x149] sm:$0xff]  ;;  %8502 = vmatpush.msra.mxu2 %v3578_v19 }
 0x4ee   :  { %3071 = vst.msk [vmem:[#allocation3 + $0x88] sm:$0xff] %vm3053_vm10, %v2896_v22  ;;  %v3145_v22 = vld [vmem:[#allocation2 + $0x1f1] sm:$0xff] }
 0x4f1   :  { %2983 = vrot.lane.b32.xlu1 %v2794_v45, %s8556_s30  ;;  %v3577_v45 = vld [vmem:[%s13139_s1 + $0x50] sm:$0xff] }
 0x4f2   :  { %2987 = vrot.lane.b32.xlu0 %v2796_v62, %s8556_s30  ;;  %2967 = vrot.lane.b32.xlu2 %v2786_v12, %s8556_s30  ;;  %v3575_v12 = vld [vmem:[%s13139_s1 + $0x40] sm:$0xff] }
 0x4f3   :  { %v2900_v53 = vpop.permute.xlu1 %2899  ;;  %3588 = vmatpush.msra.mxu0 %v3577_v45  ;;  %8503 = vmatpush.msra.mxu2 %v3577_v45 }
 0x4f4   :  { %3073 = vst.msk [vmem:[#allocation3 + $0x98] sm:$0xff] %vm3053_vm10, %v2900_v53  ;;  %v2904_v57 = vpop.permute.xlu0 %2903  ;;  %v2902_v25 = vpop.permute.xlu2 %2901  ;;  %v3576_v53 = vld [vmem:[%s13139_s1 + $0x48] sm:$0xff] }
 0x4f5   :  { %3075 = vst.msk [vmem:[#allocation3 + $0xa8] sm:$0xff] %vm3053_vm10, %v2904_v57  ;;  %3589 = vmatpush.msra.mxu0 %v3576_v53  ;;  %8504 = vmatpush.msra.mxu2 %v3576_v53 }
 0x4f6   :  { %3074 = vst.msk [vmem:[#allocation3 + $0xa0] sm:$0xff] %vm3053_vm10, %v2902_v25  ;;  %v3574_v25 = vld [vmem:[%s13139_s1 + $0x38] sm:$0xff] }
 0x4f7   :  { %3590 = vmatpush.msra.mxu0 %v3575_v12  ;;  %8505 = vmatpush.msra.mxu2 %v3575_v12 }
 0x4f9   :  { %3246 = vrot.lane.b32.xlu1 %v3118_v54, %s8557_s6  ;;  %3591 = vmatpush.msra.mxu0 %v3574_v25 }
 0x4fa   :  { %3250 = vrot.lane.b32.xlu0 %v3120_v8, %s8557_s6  ;;  %2973 = vrot.lane.b32.xlu2 %v2789_v3, %s8556_s30  ;;  %v3573_v8 = vld [vmem:[%s13139_s1 + $0x30] sm:$0xff] }
 0x4fb   :  { %v2906_v34 = vpop.permute.xlu1 %2905  ;;  %v3137_v3 = vld [vmem:[#allocation2 + $0x171] sm:$0xff]  ;;  %3592 = vmatpush.msra.mxu0 %v3573_v8  ;;  %8506 = vmatpush.msra.mxu2 %v3574_v25 }
 0x4fc   :  { %3076 = vst.msk [vmem:[#allocation3 + $0xb0] sm:$0xff] %vm3053_vm10, %v2906_v34  ;;  %v2910_v38 = vpop.permute.xlu0 %2909  ;;  %v2908_v24 = vpop.permute.xlu2 %2907  ;;  %v3147_v34 = vld [vmem:[#allocation2 + $0x211] sm:$0xff] }
 0x4fd   :  { %3078 = vst.msk [vmem:[#allocation3 + $0xc0] sm:$0xff] %vm3053_vm10, %v2910_v38  ;;  %v3572_v38 = vld [vmem:[%s13139_s1 + $0x28] sm:$0xff]  ;;  %8507 = vmatpush.msra.mxu2 %v3573_v8 }
 0x4fe   :  { %3077 = vst.msk [vmem:[#allocation3 + $0xb8] sm:$0xff] %vm3053_vm10, %v2908_v24  ;;  %3593 = vmatpush.msra.mxu0 %v3572_v38 }
 0x4ff   :  { %8508 = vmatpush.msra.mxu2 %v3572_v38 }
 0x501   :  { %3252 = vrot.lane.b32.xlu1 %v3121_v5, %s8557_s6  ;;  %v3148_v5 = vld [vmem:[#allocation2 + $0x229] sm:$0xff] }
 0x502   :  { %3256 = vrot.lane.b32.xlu0 %v3123_v18, %s8557_s6  ;;  %2979 = vrot.lane.b32.xlu2 %v2792_v33, %s8556_s30 }
 0x503   :  { %v2912_v15 = vpop.permute.xlu1 %2911 }
 0x504   :  { %3079 = vst.msk [vmem:[#allocation3 + $0xc8] sm:$0xff] %vm3053_vm10, %v2912_v15  ;;  %v2916_v55 = vpop.permute.xlu0 %2915  ;;  %v2914_v27 = vpop.permute.xlu2 %2913  ;;  %v3571_v15 = vld [vmem:[%s13139_s1 + $0x20] sm:$0xff] }
 0x505   :  { %3081 = vst.msk [vmem:[#allocation3 + $0xd8] sm:$0xff] %vm3053_vm10, %v2916_v55  ;;  %3594 = vmatpush.msra.mxu0 %v3571_v15  ;;  %v3570_v55 = vld [vmem:[%s13139_s1 + $0x18] sm:$0xff]  ;;  %8509 = vmatpush.msra.mxu2 %v3571_v15 }
 0x506   :  { %3080 = vst.msk [vmem:[#allocation3 + $0xd0] sm:$0xff] %vm3053_vm10, %v2914_v27  ;;  %v3569_v27 = vld [vmem:[%s13139_s1 + $0x10] sm:$0xff] }
 0x507   :  { %3595 = vmatpush.msra.mxu0 %v3570_v55  ;;  %8510 = vmatpush.msra.mxu2 %v3570_v55 }
 0x509   :  { %3258 = vrot.lane.b32.xlu1 %v3124_v50, %s8557_s6  ;;  %v3150_v50 = vld [vmem:[#allocation2 + $0x289] sm:$0xff]  ;;  %3596 = vmatpush.msra.mxu0 %v3569_v27 }
 0x50a   :  { %3262 = vrot.lane.b32.xlu0 %v3126_v4, %s8557_s6  ;;  %2985 = vrot.lane.b32.xlu2 %v2795_v0, %s8556_s30  ;;  %v3151_v4 = vld [vmem:[#allocation2 + $0x291] sm:$0xff]  ;;  %v3568_v0 = vld [vmem:[%s13139_s1 + $0x8] sm:$0xff] }
 0x50b   :  { %v2918_v30 = vpop.permute.xlu1 %2917  ;;  %3597 = vmatpush.msra.mxu0 %v3568_v0  ;;  %8511 = vmatpush.msra.mxu2 %v3569_v27 }
 0x50c   :  { %3082 = vst.msk [vmem:[#allocation3 + $0xe0] sm:$0xff] %vm3053_vm10, %v2918_v30  ;;  %v2922_v16 = vpop.permute.xlu0 %2921  ;;  %v2920_v47 = vpop.permute.xlu2 %2919  ;;  %v3140_v30 = vld [vmem:[#allocation2 + $0x1a9] sm:$0xff] }
 0x50d   :  { %3084 = vst.msk [vmem:[#allocation3 + $0xf0] sm:$0xff] %vm3053_vm10, %v2922_v16  ;;  %8512 = vmatpush.msra.mxu2 %v3568_v0 }
 0x50e   :  { %3083 = vst.msk [vmem:[#allocation3 + $0xe8] sm:$0xff] %vm3053_vm10, %v2920_v47 }
 0x511   :  { %3264 = vrot.lane.b32.xlu1 %v3127_v43, %s8557_s6 }
 0x512   :  { %3268 = vrot.lane.b32.xlu0 %v3129_v28, %s8557_s6  ;;  %3248 = vrot.lane.b32.xlu2 %v3119_v60, %s8557_s6  ;;  %v3153_v28 = vld [vmem:[#allocation2 + $0x2b1] sm:$0xff] }
 0x513   :  { %v2924_v56 = vpop.permute.xlu1 %2923  ;;  %v3143_v60 = vld [vmem:[#allocation2 + $0x1d1] sm:$0xff] }
 0x514   :  { %3085 = vst.msk [vmem:[#allocation3 + $0xf8] sm:$0xff] %vm3053_vm10, %v2924_v56  ;;  %v2928_v36 = vpop.permute.xlu0 %2927  ;;  %v2926_v40 = vpop.permute.xlu2 %2925  ;;  %v3567_v56 = vld [vmem:[%s13139_s1] sm:$0xff] }
 0x515   :  { %3087 = vst.msk [vmem:[#allocation3 + $0x108] sm:$0xff] %vm3053_vm10, %v2928_v36  ;;  %3598 = vmatpush.msra.mxu0 %v3567_v56  ;;  %8513 = vmatpush.msra.mxu2 %v3567_v56 }
 0x516   :  { %3086 = vst.msk [vmem:[#allocation3 + $0x100] sm:$0xff] %vm3053_vm10, %v2926_v40 }
 0x519   :  { %3270 = vrot.lane.b32.xlu1 %v3130_v1, %s8557_s6  ;;  %v3154_v1 = vld [vmem:[#allocation2 + $0x2c9] sm:$0xff] }
 0x51a   :  { %3274 = vrot.lane.b32.xlu0 %v3132_v14, %s8557_s6  ;;  %3254 = vrot.lane.b32.xlu2 %v3122_v51, %s8557_s6  ;;  %v3156_v14 = vld [vmem:[#allocation2 + $0x2e9] sm:$0xff] }
 0x51b   :  { %v2930_v9 = vpop.permute.xlu1 %2929  ;;  %v3146_v51 = vld [vmem:[#allocation2 + $0x209] sm:$0xff] }
 0x51c   :  { %3088 = vst.msk [vmem:[#allocation3 + $0x110] sm:$0xff] %vm3053_vm10, %v2930_v9  ;;  %v2934_v35 = vpop.permute.xlu0 %2933  ;;  %v2932_v63 = vpop.permute.xlu2 %2931 }
 0x51d   :  { %3090 = vst.msk [vmem:[#allocation3 + $0x120] sm:$0xff] %vm3053_vm10, %v2934_v35 }
 0x51e   :  { %3089 = vst.msk [vmem:[#allocation3 + $0x118] sm:$0xff] %vm3053_vm10, %v2932_v63 }
 0x521   :  { %3276 = vrot.lane.b32.xlu1 %v3133_v26, %s8557_s6 }
 0x522   :  { %3280 = vrot.lane.b32.xlu0 %v3135_v32, %s8557_s6  ;;  %3260 = vrot.lane.b32.xlu2 %v3125_v58, %s8557_s6  ;;  %v3149_v32 = vld [vmem:[#allocation2 + $0x231] sm:$0xff] }
 0x523   :  { %v2936_v29 = vpop.permute.xlu1 %2935 }
 0x524   :  { %3091 = vst.msk [vmem:[#allocation3 + $0x128] sm:$0xff] %vm3053_vm10, %v2936_v29  ;;  %v2940_v39 = vpop.permute.xlu0 %2939  ;;  %v2938_v48 = vpop.permute.xlu2 %2937  ;;  %v3157_v29 = vld [vmem:[#allocation2 + $0x2f1] sm:$0xff] }
 0x525   :  { %3093 = vst.msk [vmem:[#allocation3 + $0x138] sm:$0xff] %vm3053_vm10, %v2940_v39 }
 0x526   :  { %3092 = vst.msk [vmem:[#allocation3 + $0x130] sm:$0xff] %vm3053_vm10, %v2938_v48  ;;  %v3152_v48 = vld [vmem:[#allocation2 + $0x2a9] sm:$0xff] }
 0x529   :  { %3282 = vrot.lane.b32.xlu1 %v3136_v13, %s8557_s6 }
 0x52a   :  { %3286 = vrot.lane.b32.xlu0 %v3138_v59, %s8557_s6  ;;  %3266 = vrot.lane.b32.xlu2 %v3128_v17, %s8557_s6 }
 0x52b   :  { %v2942_v49 = vpop.permute.xlu1 %2941 }
 0x52c   :  { %3094 = vst.msk [vmem:[#allocation3 + $0x140] sm:$0xff] %vm3053_vm10, %v2942_v49  ;;  %v2946_v31 = vpop.permute.xlu0 %2945  ;;  %v2944_v7 = vpop.permute.xlu2 %2943 }
 0x52d   :  { %3096 = vst.msk [vmem:[#allocation3 + $0x150] sm:$0xff] %vm3053_vm10, %v2946_v31  ;;  %v3159_v31 = vld [vmem:[#allocation2 + $0x311] sm:$0xff] }
 0x52e   :  { %3095 = vst.msk [vmem:[#allocation3 + $0x148] sm:$0xff] %vm3053_vm10, %v2944_v7  ;;  %v3155_v7 = vld [vmem:[#allocation2 + $0x2d1] sm:$0xff] }
 0x531   :  { %3288 = vrot.lane.b32.xlu1 %v3139_v61, %s8557_s6 }
 0x532   :  { %3292 = vrot.lane.b32.xlu0 %v3141_v10, %s8557_s6  ;;  %3272 = vrot.lane.b32.xlu2 %v3131_v52, %s8557_s6  ;;  %v3160_v52 = vld [vmem:[#allocation2 + $0x329] sm:$0xff] }
 0x533   :  { %v2948_v42 = vpop.permute.xlu1 %2947 }
 0x534   :  { %3097 = vst.msk [vmem:[#allocation3 + $0x158] sm:$0xff] %vm3053_vm10, %v2948_v42  ;;  %v2952_v6 = vpop.permute.xlu0 %2951  ;;  %v2950_v41 = vpop.permute.xlu2 %2949 }
 0x535   :  { %3099 = vst.msk [vmem:[#allocation3 + $0x168] sm:$0xff] %vm3053_vm10, %v2952_v6 }
 0x536   :  { %3098 = vst.msk [vmem:[#allocation3 + $0x160] sm:$0xff] %vm3053_vm10, %v2950_v41  ;;  %v3158_v41 = vld [vmem:[#allocation2 + $0x309] sm:$0xff] }
 0x539   :  { %3294 = vrot.lane.b32.xlu1 %v3142_v21, %s8557_s6 }
 0x53a   :  { %3298 = vrot.lane.b32.xlu0 %v3144_v11, %s8557_s6  ;;  %3278 = vrot.lane.b32.xlu2 %v3134_v44, %s8557_s6  ;;  %v3162_v44 = vld [vmem:[#allocation2 + $0x349] sm:$0xff] }
 0x53b   :  { %v2954_v2 = vpop.permute.xlu1 %2953 }
 0x53c   :  { %3100 = vst.msk [vmem:[#allocation3 + $0x170] sm:$0xff] %vm3053_vm10, %v2954_v2  ;;  %v2958_v62 = vpop.permute.xlu0 %2957  ;;  %v2956_v54 = vpop.permute.xlu2 %2955 }
 0x53d   :  { %3102 = vst.msk [vmem:[#allocation3 + $0x180] sm:$0xff] %vm3053_vm10, %v2958_v62 }
 0x53e   :  { %3101 = vst.msk [vmem:[#allocation3 + $0x178] sm:$0xff] %vm3053_vm10, %v2956_v54  ;;  %v3163_v54 = vld [vmem:[#allocation2 + $0x351] sm:$0xff] }
 0x541   :  { %3300 = vrot.lane.b32.xlu1 %v3145_v22, %s8557_s6 }
 0x542   :  { %3304 = vrot.lane.b32.xlu0 %v3147_v34, %s8557_s6  ;;  %3284 = vrot.lane.b32.xlu2 %v3137_v3, %s8557_s6  ;;  %v3161_v3 = vld [vmem:[#allocation2 + $0x331] sm:$0xff] }
 0x543   :  { %v2960_v57 = vpop.permute.xlu1 %2959 }
 0x544   :  { %3103 = vst.msk [vmem:[#allocation3 + $0x188] sm:$0xff] %vm3053_vm10, %v2960_v57  ;;  %v2964_v24 = vpop.permute.xlu0 %2963  ;;  %v2962_v18 = vpop.permute.xlu2 %2961 }
 0x545   :  { %3105 = vst.msk [vmem:[#allocation3 + $0x198] sm:$0xff] %vm3053_vm10, %v2964_v24 }
 0x546   :  { %3104 = vst.msk [vmem:[#allocation3 + $0x190] sm:$0xff] %vm3053_vm10, %v2962_v18  ;;  %v3165_v18 = vld [vmem:[#allocation2 + $0x371] sm:$0xff] }
 0x549   :  { %3306 = vrot.lane.b32.xlu1 %v3148_v5, %s8557_s6 }
 0x54a   :  { %3310 = vrot.lane.b32.xlu0 %v3150_v50, %s8557_s6  ;;  %3290 = vrot.lane.b32.xlu2 %v3140_v30, %s8557_s6  ;;  %v3166_v30 = vld [vmem:[#allocation2 + $0x389] sm:$0xff] }
 0x54b   :  { %v2966_v33 = vpop.permute.xlu1 %2965 }
 0x54c   :  { %3106 = vst.msk [vmem:[#allocation3 + $0x1a0] sm:$0xff] %vm3053_vm10, %v2966_v33  ;;  %v2970_v43 = vpop.permute.xlu0 %2969  ;;  %v2968_v16 = vpop.permute.xlu2 %2967 }
 0x54d   :  { %3108 = vst.msk [vmem:[#allocation3 + $0x1b0] sm:$0xff] %vm3053_vm10, %v2970_v43 }
 0x54e   :  { %3107 = vst.msk [vmem:[#allocation3 + $0x1a8] sm:$0xff] %vm3053_vm10, %v2968_v16 }
 0x551   :  { %3312 = vrot.lane.b32.xlu1 %v3151_v4, %s8557_s6 }
 0x552   :  { %3316 = vrot.lane.b32.xlu0 %v3153_v28, %s8557_s6  ;;  %3296 = vrot.lane.b32.xlu2 %v3143_v60, %s8557_s6 }
 0x553   :  { %v2972_v47 = vpop.permute.xlu1 %2971 }
 0x554   :  { %3109 = vst.msk [vmem:[#allocation3 + $0x1b8] sm:$0xff] %vm3053_vm10, %v2972_v47  ;;  %v2976_v36 = vpop.permute.xlu0 %2975  ;;  %v2974_v40 = vpop.permute.xlu2 %2973  ;;  %v3164_v47 = vld [vmem:[#allocation2 + $0x369] sm:$0xff] }
 0x555   :  { %3111 = vst.msk [vmem:[#allocation3 + $0x1c8] sm:$0xff] %vm3053_vm10, %v2976_v36  ;;  %v3168_v36 = vld [vmem:[#allocation2 + $0x3a9] sm:$0xff] }
 0x556   :  { %3110 = vst.msk [vmem:[#allocation3 + $0x1c0] sm:$0xff] %vm3053_vm10, %v2974_v40 }
 0x559   :  { %3318 = vrot.lane.b32.xlu1 %v3154_v1, %s8557_s6 }
 0x55a   :  { %3322 = vrot.lane.b32.xlu0 %v3156_v14, %s8557_s6  ;;  %3302 = vrot.lane.b32.xlu2 %v3146_v51, %s8557_s6 }
 0x55b   :  { %v2978_v9 = vpop.permute.xlu1 %2977 }
 0x55c   :  { %3112 = vst.msk [vmem:[#allocation3 + $0x1d0] sm:$0xff] %vm3053_vm10, %v2978_v9  ;;  %v2982_v26 = vpop.permute.xlu0 %2981  ;;  %v2980_v35 = vpop.permute.xlu2 %2979 }
 0x55d   :  { %3114 = vst.msk [vmem:[#allocation3 + $0x1e0] sm:$0xff] %vm3053_vm10, %v2982_v26  ;;  %v3169_v26 = vld [vmem:[#allocation2 + $0x3b1] sm:$0xff] }
 0x55e   :  { %3113 = vst.msk [vmem:[#allocation3 + $0x1d8] sm:$0xff] %vm3053_vm10, %v2980_v35 }
 0x561   :  { %3324 = vrot.lane.b32.xlu1 %v3157_v29, %s8557_s6 }
 0x562   :  { %3308 = vrot.lane.b32.xlu2 %v3149_v32, %s8557_s6  ;;  %3328 = vrot.lane.b32.xlu0 %v3159_v31, %s8557_s6 }
 0x563   :  { %v2984_v63 = vpop.permute.xlu1 %2983 }
 0x564   :  { %3115 = vst.msk [vmem:[#allocation3 + $0x1e8] sm:$0xff] %vm3053_vm10, %v2984_v63  ;;  %v2988_v58 = vpop.permute.xlu0 %2987  ;;  %v2986_v13 = vpop.permute.xlu2 %2985 }
 0x565   :  { %3117 = vst.msk [vmem:[#allocation3 + $0x1f8] sm:$0xff] %vm3053_vm10, %v2988_v58 }
 0x566   :  { %3116 = vst.msk [vmem:[#allocation3 + $0x1f0] sm:$0xff] %vm3053_vm10, %v2986_v13  ;;  %v3167_v13 = vld [vmem:[#allocation2 + $0x391] sm:$0xff] }
 0x569   :  { %3330 = vrot.lane.b32.xlu1 %v3160_v52, %s8557_s6  ;;  %v3170_v52 = vld [vmem:[#allocation2 + $0x3c9] sm:$0xff] }
 0x56a   :  { %3314 = vrot.lane.b32.xlu2 %v3152_v48, %s8557_s6  ;;  %3334 = vrot.lane.b32.xlu0 %v3162_v44, %s8557_s6 }
 0x56b   :  { %v3247_v39 = vpop.permute.xlu1 %3246 }
 0x56c   :  { %3439 = vst.msk [vmem:[#allocation3] sm:$0xff] %vm3438_vm11, %v3247_v39  ;;  %v3251_v49 = vpop.permute.xlu0 %3250  ;;  %v3249_v59 = vpop.permute.xlu2 %3248 }
 0x56d   :  { %3441 = vst.msk [vmem:[#allocation3 + $0x10] sm:$0xff] %vm3438_vm11, %v3251_v49 }
 0x56e   :  { %3440 = vst.msk [vmem:[#allocation3 + $0x8] sm:$0xff] %vm3438_vm11, %v3249_v59 }
 0x571   :  { %3336 = vrot.lane.b32.xlu1 %v3163_v54, %s8557_s6 }
 0x572   :  { %3320 = vrot.lane.b32.xlu2 %v3155_v7, %s8557_s6  ;;  %3340 = vrot.lane.b32.xlu0 %v3165_v18, %s8557_s6  ;;  %v3178_v18 = vld [vmem:[#allocation2 + $0x449] sm:$0xff] }
 0x573   :  { %v3253_v17 = vpop.permute.xlu1 %3252  ;;  %v3503_v61 = vld [vmem:[#allocation3] sm:$0xff] }
 0x574   :  { %3599 = vmatmul.f32.vlgmr.msra.gmra.mxu0 %v3503_v61  ;;  %3442 = vst.msk [vmem:[#allocation3 + $0x18] sm:$0xff] %vm3438_vm11, %v3253_v17  ;;  %v3257_v42 = vpop.permute.xlu0 %3256  ;;  %v3255_v10 = vpop.permute.xlu2 %3254  ;;  %v3505_v37 = vld [vmem:[#allocation3 + $0x10] sm:$0xff] }
 0x575   :  { %3444 = vst.msk [vmem:[#allocation3 + $0x28] sm:$0xff] %vm3438_vm11, %v3257_v42  ;;  %v3504_v46 = vld [vmem:[#allocation3 + $0x8] sm:$0xff]  ;;  %v3171_v17 = vld [vmem:[#allocation2 + $0x3d1] sm:$0xff] }
 0x576   :  { %3443 = vst.msk [vmem:[#allocation3 + $0x20] sm:$0xff] %vm3438_vm11, %v3255_v10  ;;  %v3172_v42 = vld [vmem:[#allocation2 + $0x3e9] sm:$0xff] }
 0x579   :  { %3342 = vrot.lane.b32.xlu1 %v3166_v30, %s8557_s6 }
 0x57a   :  { %3326 = vrot.lane.b32.xlu2 %v3158_v41, %s8557_s6  ;;  %3346 = vrot.lane.b32.xlu0 %v3168_v36, %s8557_s6 }
 0x57b   :  { %v3259_v20 = vpop.permute.xlu1 %3258  ;;  %v3506_v45 = vld [vmem:[#allocation3 + $0x18] sm:$0xff] }
 0x57c   :  { %3602 = vmatmul.f32.gmra.mxu0 %v3504_v46  ;;  %3445 = vst.msk [vmem:[#allocation3 + $0x30] sm:$0xff] %vm3438_vm11, %v3259_v20  ;;  %v3263_v21 = vpop.permute.xlu0 %3262  ;;  %v3261_v23 = vpop.permute.xlu2 %3260  ;;  %v3508_v8 = vld [vmem:[#allocation3 + $0x28] sm:$0xff] }
 0x57d   :  { %3447 = vst.msk [vmem:[#allocation3 + $0x40] sm:$0xff] %vm3438_vm11, %v3263_v21  ;;  %v3507_v12 = vld [vmem:[#allocation3 + $0x20] sm:$0xff] }
 0x57e   :  { %3446 = vst.msk [vmem:[#allocation3 + $0x38] sm:$0xff] %vm3438_vm11, %v3261_v23 }
 0x581   :  { %3348 = vrot.lane.b32.xlu1 %v3169_v26, %s8557_s6 }
 0x582   :  { %3332 = vrot.lane.b32.xlu2 %v3161_v3, %s8557_s6  ;;  %3352 = vrot.lane.b32.xlu0 %v3171_v17, %s8557_s6 }
 0x583   :  { %v3265_v6 = vpop.permute.xlu1 %3264  ;;  %v3509_v15 = vld [vmem:[#allocation3 + $0x30] sm:$0xff] }
 0x584   :  { %3605 = vmatmul.f32.gmra.mxu0 %v3505_v37  ;;  %3448 = vst.msk [vmem:[#allocation3 + $0x48] sm:$0xff] %vm3438_vm11, %v3265_v6  ;;  %v3269_v2 = vpop.permute.xlu0 %3268  ;;  %v3267_v19 = vpop.permute.xlu2 %3266  ;;  %v3511_v16 = vld [vmem:[#allocation3 + $0x40] sm:$0xff]  ;;  %v3174_v37 = vld [vmem:[#allocation2 + $0x409] sm:$0xff] }
 0x585   :  { %3450 = vst.msk [vmem:[#allocation3 + $0x58] sm:$0xff] %vm3438_vm11, %v3269_v2  ;;  %v3510_v27 = vld [vmem:[#allocation3 + $0x38] sm:$0xff] }
 0x586   :  { %3449 = vst.msk [vmem:[#allocation3 + $0x50] sm:$0xff] %vm3438_vm11, %v3267_v19 }
 0x589   :  { %3354 = vrot.lane.b32.xlu1 %v3172_v42, %s8557_s6 }
 0x58a   :  { %3338 = vrot.lane.b32.xlu2 %v3164_v47, %s8557_s6  ;;  %3358 = vrot.lane.b32.xlu0 %v3174_v37, %s8557_s6 }
 0x58b   :  { %v3271_v11 = vpop.permute.xlu1 %3270  ;;  %v3512_v1 = vld [vmem:[#allocation3 + $0x48] sm:$0xff] }
 0x58c   :  { %3608 = vmatmul.f32.gmra.mxu0 %v3506_v45  ;;  %3451 = vst.msk [vmem:[#allocation3 + $0x60] sm:$0xff] %vm3438_vm11, %v3271_v11  ;;  %v3275_v22 = vpop.permute.xlu0 %3274  ;;  %v3273_v53 = vpop.permute.xlu2 %3272  ;;  %v3514_v58 = vld [vmem:[#allocation3 + $0x58] sm:$0xff] }
 0x58d   :  { %3453 = vst.msk [vmem:[#allocation3 + $0x70] sm:$0xff] %vm3438_vm11, %v3275_v22  ;;  %v3513_v51 = vld [vmem:[#allocation3 + $0x50] sm:$0xff] }
 0x58e   :  { %3452 = vst.msk [vmem:[#allocation3 + $0x68] sm:$0xff] %vm3438_vm11, %v3273_v53  ;;  %v3175_v45 = vld [vmem:[#allocation2 + $0x411] sm:$0xff] }
 0x591   :  { %3360 = vrot.lane.b32.xlu1 %v3175_v45, %s8557_s6 }
 0x592   :  { %3344 = vrot.lane.b32.xlu2 %v3167_v13, %s8557_s6 }
 0x593   :  { %v3277_v62 = vpop.permute.xlu1 %3276  ;;  %v3515_v59 = vld [vmem:[#allocation3 + $0x60] sm:$0xff] }
 0x594   :  { %3611 = vmatmul.f32.gmra.mxu0 %v3507_v12  ;;  %3454 = vst.msk [vmem:[#allocation3 + $0x78] sm:$0xff] %vm3438_vm11, %v3277_v62  ;;  %v3281_v57 = vpop.permute.xlu0 %3280  ;;  %v3279_v25 = vpop.permute.xlu2 %3278  ;;  %v3517_v20 = vld [vmem:[#allocation3 + $0x70] sm:$0xff] }
 0x595   :  { %3456 = vst.msk [vmem:[#allocation3 + $0x88] sm:$0xff] %vm3438_vm11, %v3281_v57  ;;  %v3516_v7 = vld [vmem:[#allocation3 + $0x68] sm:$0xff]  ;;  %v3173_v12 = vld [vmem:[#allocation2 + $0x3f1] sm:$0xff] }
 0x596   :  { %3455 = vst.msk [vmem:[#allocation3 + $0x80] sm:$0xff] %vm3438_vm11, %v3279_v25 }
 0x599   :  { %3366 = vrot.lane.b32.xlu1 %v3178_v18, %s8557_s6 }
 0x59a   :  { %3350 = vrot.lane.b32.xlu2 %v3170_v52, %s8557_s6 }
 0x59b   :  { %v3283_v34 = vpop.permute.xlu1 %3282  ;;  %v3518_v6 = vld [vmem:[#allocation3 + $0x78] sm:$0xff] }
 0x59c   :  { %3614 = vmatmul.f32.gmra.mxu0 %v3508_v8  ;;  %3457 = vst.msk [vmem:[#allocation3 + $0x90] sm:$0xff] %vm3438_vm11, %v3283_v34  ;;  %v3287_v5 = vpop.permute.xlu0 %3286  ;;  %v3285_v38 = vpop.permute.xlu2 %3284  ;;  %v3520_v62 = vld [vmem:[#allocation3 + $0x88] sm:$0xff]  ;;  %v3177_v8 = vld [vmem:[#allocation2 + $0x431] sm:$0xff] }
 0x59d   :  { %3459 = vst.msk [vmem:[#allocation3 + $0xa0] sm:$0xff] %vm3438_vm11, %v3287_v5  ;;  %v3519_v11 = vld [vmem:[#allocation3 + $0x80] sm:$0xff]  ;;  %3364 = vrot.lane.b32.xlu0 %v3177_v8, %s8557_s6 }
 0x59e   :  { %3458 = vst.msk [vmem:[#allocation3 + $0x98] sm:$0xff] %vm3438_vm11, %v3285_v38 }
 0x5a2   :  { %3356 = vrot.lane.b32.xlu2 %v3173_v12, %s8557_s6 }
 0x5a3   :  { %v3289_v24 = vpop.permute.xlu1 %3288  ;;  %v3521_v25 = vld [vmem:[#allocation3 + $0x90] sm:$0xff] }
 0x5a4   :  { %3617 = vmatmul.f32.gmra.mxu0 %v3509_v15  ;;  %3460 = vst.msk [vmem:[#allocation3 + $0xa8] sm:$0xff] %vm3438_vm11, %v3289_v24  ;;  %v3293_v33 = vpop.permute.xlu0 %3292  ;;  %v3291_v50 = vpop.permute.xlu2 %3290 }
 0x5a5   :  { %3462 = vst.msk [vmem:[#allocation3 + $0xb8] sm:$0xff] %vm3438_vm11, %v3293_v33  ;;  %v3522_v38 = vld [vmem:[#allocation3 + $0x98] sm:$0xff] }
 0x5a6   :  { %3461 = vst.msk [vmem:[#allocation3 + $0xb0] sm:$0xff] %vm3438_vm11, %v3291_v50  ;;  %v3523_v50 = vld [vmem:[#allocation3 + $0xa0] sm:$0xff] }
 0x5ab   :  { %v3295_v55 = vpop.permute.xlu1 %3294 }
 0x5ac   :  { %3620 = vmatmul.f32.gmra.mxu0 %v3510_v27  ;;  %3463 = vst.msk [vmem:[#allocation3 + $0xc0] sm:$0xff] %vm3438_vm11, %v3295_v55  ;;  %v3299_v4 = vpop.permute.xlu0 %3298  ;;  %v3297_v0 = vpop.permute.xlu2 %3296  ;;  %v3176_v27 = vld [vmem:[#allocation2 + $0x429] sm:$0xff] }
 0x5ad   :  { %3465 = vst.msk [vmem:[#allocation3 + $0xd0] sm:$0xff] %vm3438_vm11, %v3299_v4  ;;  %3362 = vrot.lane.b32.xlu2 %v3176_v27, %s8557_s6 }
 0x5ae   :  { %3464 = vst.msk [vmem:[#allocation3 + $0xc8] sm:$0xff] %vm3438_vm11, %v3297_v0  ;;  %v3524_v0 = vld [vmem:[#allocation3 + $0xa8] sm:$0xff] }
 0x5b3   :  { %v3301_v43 = vpop.permute.xlu1 %3300 }
 0x5b4   :  { %3623 = vmatmul.f32.gmra.mxu0 %v3511_v16  ;;  %3466 = vst.msk [vmem:[#allocation3 + $0xd8] sm:$0xff] %vm3438_vm11, %v3301_v43  ;;  %v3305_v56 = vpop.permute.xlu0 %3304  ;;  %v3303_v28 = vpop.permute.xlu2 %3302  ;;  %v3180_v43 = vld [vmem:[#allocation2 + $0x469] sm:$0xff] }
 0x5b5   :  { %3468 = vst.msk [vmem:[#allocation3 + $0xe8] sm:$0xff] %vm3438_vm11, %v3305_v56  ;;  %3370 = vrot.lane.b32.xlu0 %v3180_v43, %s8557_s6 }
 0x5b6   :  { %3467 = vst.msk [vmem:[#allocation3 + $0xe0] sm:$0xff] %vm3438_vm11, %v3303_v28  ;;  %v3525_v28 = vld [vmem:[#allocation3 + $0xb0] sm:$0xff] }
 0x5bb   :  { %v3307_v60 = vpop.permute.xlu1 %3306 }
 0x5bc   :  { %3626 = vmatmul.f32.gmra.mxu0 %v3512_v1  ;;  %3469 = vst.msk [vmem:[#allocation3 + $0xf0] sm:$0xff] %vm3438_vm11, %v3307_v60  ;;  %v3311_v40 = vpop.permute.xlu0 %3310  ;;  %v3309_v9 = vpop.permute.xlu2 %3308  ;;  %v3181_v60 = vld [vmem:[#allocation2 + $0x471] sm:$0xff] }
 0x5bd   :  { %3471 = vst.msk [vmem:[#allocation3 + $0x100] sm:$0xff] %vm3438_vm11, %v3311_v40  ;;  %3372 = vrot.lane.b32.xlu1 %v3181_v60, %s8557_s6  ;;  %v3526_v40 = vld [vmem:[#allocation3 + $0xb8] sm:$0xff] }
 0x5be   :  { %3470 = vst.msk [vmem:[#allocation3 + $0xf8] sm:$0xff] %vm3438_vm11, %v3309_v9 }
 0x5c3   :  { %v3313_v14 = vpop.permute.xlu1 %3312  ;;  %v3533_v45 = vld [vmem:[#allocation3 + $0xf0] sm:$0xff] }
 0x5c4   :  { %3629 = vmatmul.f32.gmra.mxu0 %v3513_v51  ;;  %3472 = vst.msk [vmem:[#allocation3 + $0x108] sm:$0xff] %vm3438_vm11, %v3313_v14  ;;  %v3535_v35 = vld [vmem:[#allocation3 + $0x100] sm:$0xff]  ;;  %v3317_v63 = vpop.permute.xlu0 %3316  ;;  %v3315_v29 = vpop.permute.xlu2 %3314  ;;  %v3179_v14 = vld [vmem:[#allocation2 + $0x451] sm:$0xff] }
 0x5c5   :  { %3695 = vmatmul.f32.vlgmr.msra.gmra.mxu2 %v3535_v35  ;;  %3474 = vst.msk [vmem:[#allocation3 + $0x118] sm:$0xff] %vm3438_vm11, %v3317_v63  ;;  %3368 = vrot.lane.b32.xlu2 %v3179_v14, %s8557_s6  ;;  %v3527_v35 = vld [vmem:[#allocation3 + $0xc0] sm:$0xff] }
 0x5c6   :  { %3473 = vst.msk [vmem:[#allocation3 + $0x110] sm:$0xff] %vm3438_vm11, %v3315_v29 }
 0x5cb   :  { %v3319_v32 = vpop.permute.xlu1 %3318  ;;  %v3536_v39 = vld [vmem:[#allocation3 + $0x108] sm:$0xff] }
 0x5cc   :  { %3632 = vmatmul.f32.gmra.mxu0 %v3514_v58  ;;  %3475 = vst.msk [vmem:[#allocation3 + $0x120] sm:$0xff] %vm3438_vm11, %v3319_v32  ;;  %v3321_v48 = vpop.permute.xlu2 %3320  ;;  %v3323_v49 = vpop.permute.xlu0 %3322  ;;  %v3538_v46 = vld [vmem:[#allocation3 + $0x118] sm:$0xff]  ;;  %v3528_v58 = vld [vmem:[#allocation3 + $0xc8] sm:$0xff] }
 0x5cd   :  { %3698 = vmatmul.f32.gmra.mxu2 %v3536_v39  ;;  %3476 = vst.msk [vmem:[#allocation3 + $0x128] sm:$0xff] %vm3438_vm11, %v3321_v48  ;;  %v3537_v61 = vld [vmem:[#allocation3 + $0x110] sm:$0xff] }
 0x5ce   :  { %3477 = vst.msk [vmem:[#allocation3 + $0x130] sm:$0xff] %vm3438_vm11, %v3323_v49  ;;  %v3529_v49 = vld [vmem:[#allocation3 + $0xd0] sm:$0xff] }
 0x5d3   :  { %v3325_v31 = vpop.permute.xlu1 %3324  ;;  %v3539_v21 = vld [vmem:[#allocation3 + $0x120] sm:$0xff] }
 0x5d4   :  { %3635 = vmatmul.f32.gmra.mxu0 %v3515_v59  ;;  %3478 = vst.msk [vmem:[#allocation3 + $0x138] sm:$0xff] %vm3438_vm11, %v3325_v31  ;;  %v3327_v10 = vpop.permute.xlu2 %3326  ;;  %v3329_v23 = vpop.permute.xlu0 %3328  ;;  %v3540_v41 = vld [vmem:[#allocation3 + $0x128] sm:$0xff]  ;;  %v3530_v31 = vld [vmem:[#allocation3 + $0xd8] sm:$0xff] }
 0x5d5   :  { %3701 = vmatmul.f32.gmra.mxu2 %v3537_v61  ;;  %3479 = vst.msk [vmem:[#allocation3 + $0x140] sm:$0xff] %vm3438_vm11, %v3327_v10  ;;  %v3541_v44 = vld [vmem:[#allocation3 + $0x130] sm:$0xff]  ;;  %v3531_v10 = vld [vmem:[#allocation3 + $0xe0] sm:$0xff] }
 0x5d6   :  { %3480 = vst.msk [vmem:[#allocation3 + $0x148] sm:$0xff] %vm3438_vm11, %v3329_v23 }
 0x5db   :  { %v3331_v19 = vpop.permute.xlu1 %3330  ;;  %v3542_v54 = vld [vmem:[#allocation3 + $0x138] sm:$0xff] }
 0x5dc   :  { %3638 = vmatmul.f32.gmra.mxu0 %v3516_v7  ;;  %3481 = vst.msk [vmem:[#allocation3 + $0x150] sm:$0xff] %vm3438_vm11, %v3331_v19  ;;  %v3333_v53 = vpop.permute.xlu2 %3332  ;;  %v3335_v57 = vpop.permute.xlu0 %3334  ;;  %v3543_v3 = vld [vmem:[#allocation3 + $0x140] sm:$0xff] }
 0x5dd   :  { %3704 = vmatmul.f32.gmra.mxu2 %v3538_v46  ;;  %3482 = vst.msk [vmem:[#allocation3 + $0x158] sm:$0xff] %vm3438_vm11, %v3333_v53  ;;  %v3544_v15 = vld [vmem:[#allocation3 + $0x148] sm:$0xff] }
 0x5de   :  { %3483 = vst.msk [vmem:[#allocation3 + $0x160] sm:$0xff] %vm3438_vm11, %v3335_v57 }
 0x5e3   :  { %v3337_v5 = vpop.permute.xlu1 %3336  ;;  %v3545_v55 = vld [vmem:[#allocation3 + $0x150] sm:$0xff] }
 0x5e4   :  { %3641 = vmatmul.f32.gmra.mxu0 %v3517_v20  ;;  %3484 = vst.msk [vmem:[#allocation3 + $0x168] sm:$0xff] %vm3438_vm11, %v3337_v5  ;;  %v3339_v33 = vpop.permute.xlu2 %3338  ;;  %v3341_v4 = vpop.permute.xlu0 %3340  ;;  %v3546_v16 = vld [vmem:[#allocation3 + $0x158] sm:$0xff] }
 0x5e5   :  { %3707 = vmatmul.f32.gmra.mxu2 %v3539_v21  ;;  %3485 = vst.msk [vmem:[#allocation3 + $0x170] sm:$0xff] %vm3438_vm11, %v3339_v33  ;;  %v3547_v1 = vld [vmem:[#allocation3 + $0x160] sm:$0xff] }
 0x5e6   :  { %3486 = vst.msk [vmem:[#allocation3 + $0x178] sm:$0xff] %vm3438_vm11, %v3341_v4 }
 0x5eb   :  { %v3343_v56 = vpop.permute.xlu1 %3342  ;;  %v3548_v51 = vld [vmem:[#allocation3 + $0x168] sm:$0xff] }
 0x5ec   :  { %3644 = vmatmul.f32.gmra.mxu0 %v3518_v6  ;;  %3487 = vst.msk [vmem:[#allocation3 + $0x180] sm:$0xff] %vm3438_vm11, %v3343_v56  ;;  %v3345_v36 = vpop.permute.xlu2 %3344  ;;  %v3347_v26 = vpop.permute.xlu0 %3346  ;;  %v3549_v29 = vld [vmem:[#allocation3 + $0x170] sm:$0xff]  ;;  %v3532_v6 = vld [vmem:[#allocation3 + $0xe8] sm:$0xff] }
 0x5ed   :  { %3710 = vmatmul.f32.gmra.mxu2 %v3540_v41  ;;  %3488 = vst.msk [vmem:[#allocation3 + $0x188] sm:$0xff] %vm3438_vm11, %v3345_v36  ;;  %v3550_v13 = vld [vmem:[#allocation3 + $0x178] sm:$0xff] }
 0x5ee   :  { %3489 = vst.msk [vmem:[#allocation3 + $0x190] sm:$0xff] %vm3438_vm11, %v3347_v26 }
 0x5f1   :  { %v10431_v2 = vpop.f32.mrf.mxu0 }
 0x5f3   :  { %v3349_v32 = vpop.permute.xlu1 %3348  ;;  %v3551_v59 = vld [vmem:[#allocation3 + $0x180] sm:$0xff] }
 0x5f4   :  { %3647 = vmatmul.f32.gmra.mxu0 %v3519_v11  ;;  %3490 = vst.msk [vmem:[#allocation3 + $0x198] sm:$0xff] %vm3438_vm11, %v3349_v32  ;;  %v3351_v48 = vpop.permute.xlu2 %3350  ;;  %v3353_v61 = vpop.permute.xlu0 %3352  ;;  %v3552_v42 = vld [vmem:[#allocation3 + $0x188] sm:$0xff] }
 0x5f5   :  { %3713 = vmatmul.f32.gmra.mxu2 %v3541_v44  ;;  %3491 = vst.msk [vmem:[#allocation3 + $0x1a0] sm:$0xff] %vm3438_vm11, %v3351_v48  ;;  %v3553_v21 = vld [vmem:[#allocation3 + $0x190] sm:$0xff] }
 0x5f6   :  { %3492 = vst.msk [vmem:[#allocation3 + $0x1a8] sm:$0xff] %vm3438_vm11, %v3353_v61 }
 0x5f9   :  { %v10435_v22 = vpop.f32.mrf.mxu0 }
 0x5fa   :  { %13238 = vst [vmem:[#allocation4_spill] sm:$0xff] %v10435_v22 }
 0x5fb   :  { %v3355_v46 = vpop.permute.xlu1 %3354  ;;  %v3554_v19 = vld [vmem:[#allocation3 + $0x198] sm:$0xff] }
 0x5fc   :  { %3650 = vmatmul.f32.gmra.mxu0 %v3520_v62  ;;  %3493 = vst.msk [vmem:[#allocation3 + $0x1b0] sm:$0xff] %vm3438_vm11, %v3355_v46  ;;  %v3357_v23 = vpop.permute.xlu2 %3356  ;;  %v3359_v11 = vpop.permute.xlu0 %3358  ;;  %v3555_v53 = vld [vmem:[#allocation3 + $0x1a0] sm:$0xff] }
 0x5fd   :  { %3716 = vmatmul.f32.gmra.mxu2 %v3542_v54  ;;  %3494 = vst.msk [vmem:[#allocation3 + $0x1b8] sm:$0xff] %vm3438_vm11, %v3357_v23  ;;  %v3534_v54 = vld [vmem:[#allocation3 + $0xf8] sm:$0xff] }
 0x5fe   :  { %3495 = vst.msk [vmem:[#allocation3 + $0x1c0] sm:$0xff] %vm3438_vm11, %v3359_v11 }
 0x601   :  { %v10440_v34 = vpop.f32.mrf.mxu0 }
 0x603   :  { %v3361_v12 = vpop.permute.xlu1 %3360 }
 0x604   :  { %3653 = vmatmul.f32.gmra.mxu0 %v3521_v25  ;;  %3496 = vst.msk [vmem:[#allocation3 + $0x1c8] sm:$0xff] %vm3438_vm11, %v3361_v12  ;;  %v3556_v25 = vld [vmem:[#allocation3 + $0x1a8] sm:$0xff] }
 0x605   :  { %3719 = vmatmul.f32.gmra.mxu2 %v3543_v3 }
 0x607   :  { %v3363_v3 = vpop.permute.xlu2 %3362 }
 0x608   :  { %3497 = vst.msk [vmem:[#allocation3 + $0x1d0] sm:$0xff] %vm3438_vm11, %v3363_v3 }
 0x609   :  { %v10444_v24 = vpop.f32.mrf.mxu0 }
 0x60b   :  { %v3560_v56 = vld [vmem:[#allocation3 + $0x1c8] sm:$0xff] }
 0x60c   :  { %3656 = vmatmul.f32.gmra.mxu0 %v3522_v38  ;;  %v3557_v38 = vld [vmem:[#allocation3 + $0x1b0] sm:$0xff] }
 0x60d   :  { %3722 = vmatmul.f32.gmra.mxu2 %v3544_v15 }
 0x60f   :  { %v3365_v15 = vpop.permute.xlu0 %3364  ;;  %v3561_v36 = vld [vmem:[#allocation3 + $0x1d0] sm:$0xff] }
 0x610   :  { %3498 = vst.msk [vmem:[#allocation3 + $0x1d8] sm:$0xff] %vm3438_vm11, %v3365_v15  ;;  %v3809_v15 = vmul.f32 %v10435_v22, %v10435_v22 }
 0x611   :  { %v10448_v30 = vpop.f32.mrf.mxu0 }
 0x614   :  { %3659 = vmatmul.f32.gmra.mxu0 %v3523_v50  ;;  %v3558_v50 = vld [vmem:[#allocation3 + $0x1b8] sm:$0xff] }
 0x615   :  { %3725 = vmatmul.f32.gmra.mxu2 %v3545_v55  ;;  %v3367_v55 = vpop.permute.xlu1 %3366 }
 0x616   :  { %3499 = vst.msk [vmem:[#allocation3 + $0x1e0] sm:$0xff] %vm3438_vm11, %v3367_v55 }
 0x617   :  { %v3562_v26 = vld [vmem:[#allocation3 + $0x1d8] sm:$0xff] }
 0x619   :  { %v10453_v47 = vpop.f32.mrf.mxu0 }
 0x61a   :  { %13239 = vst [vmem:[#allocation5_spill] sm:$0xff] %v10453_v47 }
 0x61c   :  { %3662 = vmatmul.f32.gmra.mxu0 %v3524_v0  ;;  %v3559_v0 = vld [vmem:[#allocation3 + $0x1c0] sm:$0xff] }
 0x61d   :  { %3728 = vmatmul.f32.gmra.mxu2 %v3546_v16  ;;  %v3563_v32 = vld [vmem:[#allocation3 + $0x1e0] sm:$0xff] }
 0x61f   :  { %v3369_v43 = vpop.permute.xlu2 %3368 }
 0x620   :  { %3500 = vst.msk [vmem:[#allocation3 + $0x1e8] sm:$0xff] %vm3438_vm11, %v3369_v43  ;;  %v3794_v43 = vadd.f32 %v10435_v22, %v10431_v2 }
 0x621   :  { %v10458_v9 = vpop.f32.mrf.mxu0 }
 0x622   :  { %13240 = vst [vmem:[#allocation6_spill] sm:$0xff] %v10458_v9 }
 0x624   :  { %3665 = vmatmul.f32.gmra.mxu0 %v3525_v28 }
 0x625   :  { %3731 = vmatmul.f32.gmra.mxu2 %v3547_v1 }
 0x627   :  { %v3371_v60 = vpop.permute.xlu0 %3370  ;;  %v3564_v48 = vld [vmem:[#allocation3 + $0x1e8] sm:$0xff] }
 0x628   :  { %3501 = vst.msk [vmem:[#allocation3 + $0x1f0] sm:$0xff] %vm3438_vm11, %v3371_v60  ;;  %v3811_v60 = vmul.f32 %v10444_v24, %v10444_v24 }
 0x629   :  { %v10462_v63 = vpop.f32.mrf.mxu0 }
 0x62a   :  { %13241 = vst [vmem:[#allocation7_spill] sm:$0xff] %v10462_v63 }
 0x62c   :  { %3668 = vmatmul.f32.gmra.mxu0 %v3526_v40 }
 0x62d   :  { %3734 = vmatmul.f32.gmra.mxu2 %v3548_v51 }
 0x62f   :  { %v3373_v14 = vpop.permute.xlu1 %3372 }
 0x630   :  { %3502 = vst.msk [vmem:[#allocation3 + $0x1f8] sm:$0xff] %vm3438_vm11, %v3373_v14 }
 0x631   :  { %v10465_v39 = vpop.f32.mrf.mxu0 }
 0x632   :  { %13242 = vst [vmem:[#allocation8_spill] sm:$0xff] %v10465_v39 }
 0x634   :  { %3671 = vmatmul.f32.gmra.mxu0 %v3527_v35 }
 0x635   :  { %3737 = vmatmul.f32.gmra.mxu2 %v3549_v29 }
 0x639   :  { %v10468_v17 = vpop.f32.mrf.mxu0 }
 0x63a   :  { %13243 = vst [vmem:[#allocation9_spill] sm:$0xff] %v10468_v17  ;;  %v3830_v55 = vadd.f32 %v10468_v17, %v10465_v39 }
 0x63c   :  { %3674 = vmatmul.f32.gmra.mxu0 %v3528_v58 }
 0x63d   :  { %3740 = vmatmul.f32.gmra.mxu2 %v3550_v13 }
 0x641   :  { %v10474_v20 = vpop.f32.mrf.mxu0 }
 0x642   :  { %13245 = vst [vmem:[#allocation11_spill] sm:$0xff] %v10474_v20  ;;  %v3831_v14 = vadd.f32 %v3830_v55, %v10474_v20 }
 0x644   :  { %3677 = vmatmul.f32.gmra.mxu0 %v3529_v49 }
 0x645   :  { %3743 = vmatmul.f32.gmra.mxu2 %v3551_v59  ;;  %v3565_v59 = vld [vmem:[#allocation3 + $0x1f0] sm:$0xff] }
 0x648   :  { %v10471_v7 = vpop.f32.mrf.mxu2 }
 0x649   :  { %13244 = vst [vmem:[#allocation10_spill] sm:$0xff] %v10471_v7  ;;  %v10481_v41 = vpop.f32.mrf.mxu0 }
 0x64a   :  { %13248 = vst [vmem:[#allocation14_spill] sm:$0xff] %v10481_v41 }
 0x64c   :  { %3680 = vmatmul.f32.gmra.mxu0 %v3530_v31 }
 0x64d   :  { %3746 = vmatmul.f32.gmra.mxu2 %v3552_v42  ;;  %v3566_v42 = vld [vmem:[#allocation3 + $0x1f8] sm:$0xff] }
 0x650   :  { %v10476_v52 = vpop.f32.mrf.mxu2 }
 0x651   :  { %13246 = vst [vmem:[#allocation12_spill] sm:$0xff] %v10476_v52  ;;  %v10486_v62 = vpop.f32.mrf.mxu0 }
 0x652   :  { %13250 = vst [vmem:[#allocation16_spill] sm:$0xff] %v10486_v62 }
 0x654   :  { %3683 = vmatmul.f32.gmra.mxu0 %v3531_v10 }
 0x655   :  { %3749 = vmatmul.f32.gmra.mxu2 %v3553_v21 }
 0x658   :  { %v10479_v37 = vpop.f32.mrf.mxu2 }
 0x659   :  { %13247 = vst [vmem:[#allocation13_spill] sm:$0xff] %v10479_v37  ;;  %v10491_v8 = vpop.f32.mrf.mxu0 }
 0x65a   :  { %13252 = vst [vmem:[#allocation18_spill] sm:$0xff] %v10491_v8 }
 0x65c   :  { %3686 = vmatmul.f32.gmra.mxu0 %v3532_v6 }
 0x65d   :  { %3752 = vmatmul.f32.gmra.mxu2 %v3554_v19 }
 0x660   :  { %v10484_v44 = vpop.f32.mrf.mxu2 }
 0x661   :  { %13249 = vst [vmem:[#allocation15_spill] sm:$0xff] %v10484_v44  ;;  %v10497_v18 = vpop.f32.mrf.mxu0 }
 0x662   :  { %13253 = vst [vmem:[#allocation19_spill] sm:$0xff] %v10497_v18 }
 0x664   :  { %3689 = vmatmul.f32.gmra.mxu0 %v3533_v45 }
 0x665   :  { %3755 = vmatmul.f32.gmra.mxu2 %v3555_v53 }
 0x668   :  { %v10489_v57 = vpop.f32.mrf.mxu2 }
 0x669   :  { %13251 = vst [vmem:[#allocation17_spill] sm:$0xff] %v10489_v57  ;;  %v10504_v4 = vpop.f32.mrf.mxu0 }
 0x66a   :  { %13254 = vst [vmem:[#allocation20_spill] sm:$0xff] %v10504_v4 }
 0x66c   :  { %3692 = vmatmul.f32.gmra.mxu0 %v3534_v54 }
 0x66d   :  { %3758 = vmatmul.f32.gmra.mxu2 %v3556_v25 }
 0x670   :  { %v10494_v5 = vpop.f32.mrf.mxu2 }
 0x671   :  { %v10509_v28 = vpop.f32.mrf.mxu0 }
 0x672   :  { %13255 = vst [vmem:[#allocation21_spill] sm:$0xff] %v10509_v28 }
 0x675   :  { %3761 = vmatmul.f32.gmra.mxu2 %v3557_v38  ;;  %v3808_v38 = vmul.f32 %v10431_v2, %v10431_v2 }
 0x678   :  { %v10499_v33 = vpop.f32.mrf.mxu2 }
 0x679   :  { %v10514_v40 = vpop.f32.mrf.mxu0 }
 0x67a   :  { %13256 = vst [vmem:[#allocation22_spill] sm:$0xff] %v10514_v40 }
 0x67d   :  { %3764 = vmatmul.f32.gmra.mxu2 %v3558_v50  ;;  %v3810_v50 = vmul.f32 %v10440_v34, %v10440_v34 }
 0x680   :  { %v10502_v27 = vpop.f32.mrf.mxu2 }
 0x681   :  { %v10519_v35 = vpop.f32.mrf.mxu0 }
 0x682   :  { %13257 = vst [vmem:[#allocation23_spill] sm:$0xff] %v10519_v35 }
 0x685   :  { %3767 = vmatmul.f32.gmra.mxu2 %v3559_v0  ;;  %v3845_v0 = vmul.f32 %v10468_v17, %v10468_v17 }
 0x688   :  { %v10507_v16 = vpop.f32.mrf.mxu2 }
 0x689   :  { %v10525_v13 = vpop.f32.mrf.mxu0 }
 0x68a   :  { %13258 = vst [vmem:[#allocation24_spill] sm:$0xff] %v10525_v13 }
 0x68d   :  { %3770 = vmatmul.f32.gmra.mxu2 %v3560_v56  ;;  %v3816_v56 = vadd.f32 %v3809_v15, %v3808_v38  ;;  %v3832_v38 = vadd.f32 %v3831_v14, %v10481_v41  ;;  %v3847_v15 = vmul.f32 %v10481_v41, %v10481_v41  ;;  %v3814_v14 = vmul.f32 %v10458_v9, %v10458_v9 }
 0x690   :  { %v10512_v1 = vpop.f32.mrf.mxu2 }
 0x691   :  { %v10529_v61 = vpop.f32.mrf.mxu0 }
 0x692   :  { %13259 = vst [vmem:[#allocation25_spill] sm:$0xff] %v10529_v61 }
 0x695   :  { %3773 = vmatmul.f32.gmra.mxu2 %v3561_v36  ;;  %v3844_v36 = vmul.f32 %v10465_v39, %v10465_v39 }
 0x698   :  { %v10517_v51 = vpop.f32.mrf.mxu2 }
 0x699   :  { %v10533_v46 = vpop.f32.mrf.mxu0 }
 0x69a   :  { %13260 = vst [vmem:[#allocation26_spill] sm:$0xff] %v10533_v46 }
 0x69d   :  { %3776 = vmatmul.f32.gmra.mxu2 %v3562_v26  ;;  %v3846_v26 = vmul.f32 %v10474_v20, %v10474_v20  ;;  %v3813_v20 = vmul.f32 %v10453_v47, %v10453_v47 }
 0x6a0   :  { %v10521_v29 = vpop.f32.mrf.mxu2 }
 0x6a1   :  { %v10537_v21 = vpop.f32.mrf.mxu0 }
 0x6a2   :  { %13261 = vst [vmem:[#allocation27_spill] sm:$0xff] %v10537_v21 }
 0x6a5   :  { %3779 = vmatmul.f32.gmra.mxu2 %v3563_v32  ;;  %v3795_v32 = vadd.f32 %v3794_v43, %v10440_v34  ;;  %v3833_v43 = vadd.f32 %v3832_v38, %v10486_v62 }
 0x6a7   :  { %v3796_v39 = vadd.f32 %v3795_v32, %v10444_v24  ;;  %v3849_v32 = vmul.f32 %v10491_v8, %v10491_v8 }
 0x6a8   :  { %v10523_v58 = vpop.f32.mrf.mxu2 }
 0x6a9   :  { %v10543_v19 = vpop.f32.mrf.mxu0 }
 0x6aa   :  { %13262 = vst [vmem:[#allocation28_spill] sm:$0xff] %v10543_v19 }
 0x6ad   :  { %3782 = vmatmul.f32.gmra.mxu2 %v3564_v48  ;;  %v3817_v48 = vadd.f32 %v3816_v56, %v3810_v50  ;;  %v3797_v56 = vadd.f32 %v3796_v39, %v10448_v30  ;;  %v3850_v39 = vmul.f32 %v10497_v18, %v10497_v18 }
 0x6af   :  { %v3818_v55 = vadd.f32 %v3817_v48, %v3811_v60  ;;  %v3834_v60 = vadd.f32 %v3833_v43, %v10491_v8  ;;  %v3798_v48 = vadd.f32 %v3797_v56, %v10453_v47  ;;  %v3851_v43 = vmul.f32 %v10504_v4, %v10504_v4 }
 0x6b0   :  { %v10527_v49 = vpop.f32.mrf.mxu2 }
 0x6b1   :  { %v10547_v45 = vpop.f32.mrf.mxu0 }
 0x6b2   :  { %13263 = vst [vmem:[#allocation29_spill] sm:$0xff] %v10547_v45 }
 0x6b5   :  { %3785 = vmatmul.f32.gmra.mxu2 %v3565_v59  ;;  %v3812_v59 = vmul.f32 %v10448_v30, %v10448_v30 }
 0x6b8   :  { %v10531_v31 = vpop.f32.mrf.mxu2 }
 0x6b9   :  { %v10551_v12 = vpop.f32.mrf.mxu0 }
 0x6ba   :  { %13264 = vst [vmem:[#allocation30_spill] sm:$0xff] %v10551_v12 }
 0x6bd   :  { %3788 = vmatmul.f32.gmra.mxu2 %v3566_v42  ;;  %v3852_v42 = vadd.f32 %v3845_v0, %v3844_v36  ;;  %v3848_v0 = vmul.f32 %v10486_v62, %v10486_v62  ;;  %v3819_v36 = vadd.f32 %v3818_v55, %v3812_v59  ;;  %v3835_v62 = vadd.f32 %v3834_v60, %v10497_v18 }
 0x6be   :  { %v3799_v59 = vadd.f32 %v3798_v48, %v10458_v9  ;;  %v3953_v9 = vmul.f32 %v10476_v52, %v10476_v52 }
 0x6bf   :  { %v3853_v50 = vadd.f32 %v3852_v42, %v3846_v26  ;;  %v3820_v26 = vadd.f32 %v3819_v36, %v3813_v20  ;;  %v3815_v42 = vmul.f32 %v10462_v63, %v10462_v63 }
 0x6c0   :  { %v10535_v10 = vpop.f32.mrf.mxu2  ;;  %v3800_v20 = vadd.f32 %v3799_v59, %v10462_v63  ;;  %v3956_v63 = vmul.f32 %v10489_v57, %v10489_v57 }
 0x6c1   :  { %v10555_v25 = vpop.f32.mrf.mxu0  ;;  %v3854_v41 = vadd.f32 %v3853_v50, %v3847_v15  ;;  %v3821_v15 = vadd.f32 %v3820_v26, %v3814_v14  ;;  %v3836_v50 = vadd.f32 %v3835_v62, %v10504_v4 }
 0x6c2   :  { %13265 = vst [vmem:[#allocation31_spill] sm:$0xff] %v10555_v25  ;;  %v3801_v18 = vrot.slane %v3800_v20, 4 }
 0x6c3   :  { %v3855_v38 = vadd.f32 %v3854_v41, %v3848_v0  ;;  %v3822_v36 = vadd.f32 %v3821_v15, %v3815_v42  ;;  %v3837_v60 = vrot.slane %v3836_v50, 4  ;;  %v3952_v15 = vmul.f32 %v10471_v7, %v10471_v7 }
 0x6c4   :  { %v3802_v62 = vadd.f32 %v3801_v18, %v3800_v20  ;;  %v3955_v20 = vmul.f32 %v10484_v44, %v10484_v44 }
 0x6c5   :  { %v3856_v55 = vadd.f32 %v3855_v38, %v3849_v32  ;;  %v3823_v47 = vrot.slane %v3822_v36, 4  ;;  %v3838_v48 = vadd.f32 %v3837_v60, %v3836_v50  ;;  %v3938_v50 = vadd.f32 %v10476_v52, %v10471_v7 }
 0x6c6   :  { %v3803_v42 = vrot.slane %v3802_v62, 2 }
 0x6c7   :  { %v3857_v41 = vadd.f32 %v3856_v55, %v3850_v39  ;;  %v3824_v26 = vadd.f32 %v3823_v47, %v3822_v36  ;;  %v3839_v38 = vrot.slane %v3838_v48, 2  ;;  %v3954_v55 = vmul.f32 %v10479_v37, %v10479_v37 }
 0x6c8   :  { %v10539_v23 = vpop.f32.mrf.mxu2  ;;  %v10631_v36 = vadd.f32 %v3803_v42, %v3802_v62  ;;  %v3939_v60 = vadd.f32 %v3938_v50, %v10479_v37  ;;  %v3882_v50 = vmul.f32 %v10519_v35, %v10519_v35  ;;  %v3883_v62 = vmul.f32 %v10525_v13, %v10525_v13 }
 0x6c9   :  { %v10589_v22 = vpop.f32.mrf.mxu0  ;;  %v3858_v8 = vadd.f32 %v3857_v41, %v3851_v43  ;;  %v3825_v39 = vrot.slane %v3824_v26, 2  ;;  %v3840_v18 = vadd.f32 %v3839_v38, %v3838_v48 }
 0x6ca   :  { %13266 = vst [vmem:[#allocation32_spill] sm:$0xff] %v10589_v22  ;;  %v3940_v52 = vadd.f32 %v3939_v60, %v10484_v44  ;;  %v3919_v37 = vmul.f32 %v10589_v22, %v10589_v22 }
 0x6cb   :  { %v3859_v14 = vrot.slane %v3858_v8, 4  ;;  %v10633_v41 = vadd.f32 %v3825_v39, %v3824_v26  ;;  %v3841_v48 = vrot.slane %v3840_v18, 1  ;;  %v3957_v39 = vmul.f32 %v10494_v5, %v10494_v5 }
 0x6cc   :  { %v3941_v42 = vadd.f32 %v3940_v52, %v10489_v57 }
 0x6cd   :  { %v3860_v4 = vadd.f32 %v3859_v14, %v3858_v8  ;;  %v3960_v8 = vadd.f32 %v3953_v9, %v3952_v15  ;;  %v3881_v9 = vmul.f32 %v10514_v40, %v10514_v40 }
 0x6ce   :  { %v3942_v52 = vadd.f32 %v3941_v42, %v10494_v5  ;;  %v3902_v42 = vadd.f32 %v10551_v12, %v10547_v45 }
 0x6cf   :  { %v3861_v47 = vrot.slane %v3860_v4, 2  ;;  %v3961_v14 = vadd.f32 %v3960_v8, %v3954_v55  ;;  %v3880_v55 = vmul.f32 %v10509_v28, %v10509_v28  ;;  %v10656_v8 = vadd.f32 %v3841_v48, %v3840_v18 }
 0x6d0   :  { %v10541_v6 = vpop.f32.mrf.mxu2  ;;  %v3916_v48 = vmul.f32 %v10547_v45, %v10547_v45  ;;  %v3903_v44 = vadd.f32 %v3902_v42, %v10555_v25  ;;  %v3989_v42 = vmul.f32 %v10512_v1, %v10512_v1 }
 0x6d1   :  { %v10613_v0 = vpop.f32.mrf.mxu0  ;;  %v10639_v38 = vadd.f32 %v3861_v47, %v3860_v4  ;;  %v3962_v7 = vadd.f32 %v3961_v14, %v3955_v20  ;;  %v3866_v4 = vadd.f32 %v10514_v40, %v10509_v28  ;;  %v3888_v60 = vadd.f32 %v3881_v9, %v3880_v55 }
 0x6d2   :  { %13268 = vst [vmem:[#allocation34_spill] sm:$0xff] %v10613_v0  ;;  %v3958_v14 = vmul.f32 %v10499_v33, %v10499_v33  ;;  %v3918_v20 = vmul.f32 %v10555_v25, %v10555_v25  ;;  %v3943_v9 = vadd.f32 %v3942_v52, %v10499_v33 }
 0x6d3   :  { %v3963_v15 = vadd.f32 %v3962_v7, %v3956_v63  ;;  %v3917_v63 = vmul.f32 %v10551_v12, %v10551_v12  ;;  %v3867_v26 = vadd.f32 %v3866_v4, %v10519_v35  ;;  %v3889_v55 = vadd.f32 %v3888_v60, %v3882_v50 }
 0x6d4   :  { %v3884_v4 = vmul.f32 %v10529_v61, %v10529_v61  ;;  %v3885_v50 = vmul.f32 %v10533_v46, %v10533_v46  ;;  %v3904_v60 = vadd.f32 %v3903_v44, %v10589_v22 }
 0x6d5   :  { %v3964_v18 = vadd.f32 %v3963_v15, %v3957_v39  ;;  %v3868_v57 = vadd.f32 %v3867_v26, %v10525_v13  ;;  %v3959_v39 = vmul.f32 %v10502_v27, %v10502_v27  ;;  %v3924_v15 = vadd.f32 %v3917_v63, %v3916_v48 }
 0x6d6   :  { %v3890_v45 = vadd.f32 %v3889_v55, %v3883_v62  ;;  %v10688_v26 = vadd.f32 %v3943_v9, %v10502_v27  ;;  %v3920_v63 = vmul.f32 %v10613_v0, %v10613_v0  ;;  %v3905_v9 = vadd.f32 %v3904_v60, %v10613_v0 }
 0x6d7   :  { %v3965_v12 = vadd.f32 %v3964_v18, %v3958_v14  ;;  %v3869_v35 = vadd.f32 %v3868_v57, %v10529_v61  ;;  %v3925_v52 = vadd.f32 %v3924_v15, %v3918_v20  ;;  %v3886_v57 = vmul.f32 %v10537_v21, %v10537_v21 }
 0x6d8   :  { %v10545_v11 = vpop.f32.mrf.mxu2  ;;  %v3891_v48 = vadd.f32 %v3890_v45, %v3884_v4  ;;  %v3988_v45 = vmul.f32 %v10507_v16, %v10507_v16 }
 0x6d9   :  { %v10619_v59 = vpop.f32.mrf.mxu0  ;;  %v3870_v62 = vadd.f32 %v3869_v35, %v10533_v46  ;;  %v10698_v14 = vadd.f32 %v3965_v12, %v3959_v39  ;;  %v3926_v18 = vadd.f32 %v3925_v52, %v3919_v37  ;;  %v3887_v35 = vmul.f32 %v10543_v19, %v10543_v19 }
 0x6da   :  { %13270 = vst [vmem:[#allocation36_spill] sm:$0xff] %v10619_v59  ;;  %v3921_v44 = vmul.f32 %v10619_v59, %v10619_v59  ;;  %v3892_v55 = vadd.f32 %v3891_v48, %v3885_v50  ;;  %v3974_v37 = vadd.f32 %v10512_v1, %v10507_v16  ;;  %v3906_v39 = vadd.f32 %v3905_v9, %v10619_v59 }
 0x6db   :  { %v3871_v4 = vadd.f32 %v3870_v62, %v10537_v21  ;;  %v3927_v12 = vadd.f32 %v3926_v18, %v3920_v63  ;;  %v3996_v60 = vadd.f32 %v3989_v42, %v3988_v45  ;;  %v4025_v48 = vmul.f32 %v10541_v6, %v10541_v6 }
 0x6dc   :  { %v3893_v0 = vadd.f32 %v3892_v55, %v3886_v57  ;;  %v3990_v62 = vmul.f32 %v10517_v51, %v10517_v51  ;;  %v4024_v9 = vmul.f32 %v10539_v23, %v10539_v23  ;;  %v4010_v42 = vadd.f32 %v10541_v6, %v10539_v23 }
 0x6dd   :  { %v3872_v50 = vadd.f32 %v3871_v4, %v10543_v19  ;;  %v3928_v22 = vadd.f32 %v3927_v12, %v3921_v44  ;;  %v4026_v57 = vmul.f32 %v10545_v11, %v10545_v11  ;;  %v3975_v45 = vadd.f32 %v3974_v37, %v10517_v51 }
 0x6de   :  { %v3894_v18 = vadd.f32 %v3893_v0, %v3887_v35  ;;  %v3991_v44 = vmul.f32 %v10521_v29, %v10521_v29  ;;  %v4011_v0 = vadd.f32 %v4010_v42, %v10545_v11  ;;  %v3992_v19 = vmul.f32 %v10523_v58, %v10523_v58 }
 0x6df   :  { %v3873_v12 = vrot.slane %v3872_v50, 4  ;;  %v3976_v59 = vadd.f32 %v3975_v45, %v10521_v29 }
 0x6e0   :  { %v10549_v53 = vpop.f32.mrf.mxu2  ;;  %v3895_v46 = vrot.slane %v3894_v18, 4 }
 0x6e1   :  { %v10654_v47 = vpop.f32.mrf.mxu0  ;;  %v4027_v35 = vmul.f32 %v10549_v53, %v10549_v53  ;;  %v3874_v42 = vadd.f32 %v3873_v12, %v3872_v50 }
 0x6e2   :  { %13272 = vst [vmem:[#allocation38_spill] sm:$0xff] %v10654_v47  ;;  %v3922_v52 = vmul.f32 %v10654_v47, %v10654_v47  ;;  %v3907_v25 = vadd.f32 %v3906_v39, %v10654_v47  ;;  %v4032_v39 = vadd.f32 %v4025_v48, %v4024_v9  ;;  %v3997_v47 = vadd.f32 %v3996_v60, %v3990_v62 }
 0x6e3   :  { %v3977_v9 = vadd.f32 %v3976_v59, %v10523_v58  ;;  %v3993_v60 = vmul.f32 %v10527_v49, %v10527_v49 }
 0x6e4   :  { %v3929_v55 = vadd.f32 %v3928_v22, %v3922_v52  ;;  %v4033_v22 = vadd.f32 %v4032_v39, %v4026_v57  ;;  %v3998_v48 = vadd.f32 %v3997_v47, %v3991_v44  ;;  %v3896_v44 = vadd.f32 %v3895_v46, %v3894_v18 }
 0x6e5   :  { %v3978_v39 = vadd.f32 %v3977_v9, %v10527_v49  ;;  %v3875_v18 = vrot.slane %v3874_v42, 2 }
 0x6e6   :  { %v4034_v45 = vadd.f32 %v4033_v22, %v4027_v35  ;;  %v3999_v57 = vadd.f32 %v3998_v48, %v3992_v19  ;;  %v3995_v22 = vmul.f32 %v10535_v10, %v10535_v10  ;;  %v3897_v61 = vrot.slane %v3896_v44, 2 }
 0x6e7   :  { %v3979_v35 = vadd.f32 %v3978_v39, %v10531_v31 }
 0x6e8   :  { %v10553_v54 = vpop.f32.mrf.mxu2  ;;  %v4000_v12 = vadd.f32 %v3999_v57, %v3993_v60  ;;  %v13276_v57 = vrot.slane %v10631_v36, 1 }
 0x6e9   :  { %v10710_v15 = vpop.f32.mrf.mxu0  ;;  %v4028_v52 = vmul.f32 %v10553_v54, %v10553_v54 }
 0x6ea   :  { %13274 = vst [vmem:[#allocation40_spill] sm:$0xff] %v10710_v15  ;;  %v3923_v63 = vmul.f32 %v10710_v15, %v10710_v15  ;;  %v3908_v4 = vadd.f32 %v3907_v25, %v10710_v15  ;;  %v4012_v25 = vadd.f32 %v4011_v0, %v10549_v53  ;;  %v3994_v0 = vmul.f32 %v10531_v31, %v10531_v31 }
 0x6eb   :  { %v4035_v59 = vadd.f32 %v4034_v45, %v4028_v52  ;;  %v3980_v45 = vadd.f32 %v3979_v35, %v10535_v10  ;;  %v3806_v39 = vadd.f32 %v13276_v57, %v10631_v36 }
 0x6ec   :  { %v3930_v37 = vadd.f32 %v3929_v55, %v3923_v63  ;;  %v3909_v62 = vrot.slane %v3908_v4, 4  ;;  %v4013_v63 = vadd.f32 %v4012_v25, %v10553_v54  ;;  %v3945_v25 = vrot.slane %v10688_v26, 4 }
 0x6ed   :  { %v4001_v52 = vadd.f32 %v4000_v12, %v3994_v0 }
 0x6ee   :  { %v3931_v47 = vrot.slane %v3930_v37, 4  ;;  %v3910_v19 = vadd.f32 %v3909_v62, %v3908_v4  ;;  %v13277_v4 = vrot.slane %v10633_v41, 1 }
 0x6ef   :  { %v4002_v0 = vadd.f32 %v4001_v52, %v3995_v22 }
 0x6f0   :  { %v10557_v3 = vpop.f32.mrf.mxu2  ;;  %v3828_v62 = vadd.f32 %v13277_v4, %v10633_v41  ;;  %v3911_v12 = vrot.slane %v3910_v19, 2  ;;  %v3946_v41 = vadd.f32 %v3945_v25, %v10688_v26 }
 0x6f1   :  { %v4029_v55 = vmul.f32 %v10557_v3, %v10557_v3  ;;  %v4014_v15 = vadd.f32 %v4013_v63, %v10557_v3  ;;  %v3932_v63 = vadd.f32 %v3931_v47, %v3930_v37  ;;  %v3843_v37 = vadd.f32 %v10656_v8, %v3806_v39 }
 0x6f2   :  { %v13278_v47 = vrot.slane %v10639_v38, 1  ;;  %v4003_v39 = vrot.slane %v4002_v0, 4  ;;  %v3912_v4 = vadd.f32 %v3911_v12, %v3910_v19 }
 0x6f3   :  { %v4036_v48 = vadd.f32 %v4035_v59, %v4029_v55  ;;  %v3967_v59 = vrot.slane %v10698_v14, 4 }
 0x6f4   :  { %v3864_v35 = vadd.f32 %v13278_v47, %v10639_v38  ;;  %v3913_v12 = vrot.slane %v3912_v4, 1 }
 0x6f5   :  { %v3968_v38 = vadd.f32 %v3967_v59, %v10698_v14  ;;  %v4004_v59 = vadd.f32 %v4003_v39, %v4002_v0 }
 0x6f6   :  { %v3865_v0 = vadd.f32 %v3864_v35, %v3828_v62 }
 0x6f8   :  { %v10584_v17 = vpop.f32.mrf.mxu2 }
 0x6f9   :  { %v4030_v50 = vmul.f32 %v10584_v17, %v10584_v17  ;;  %v4015_v9 = vadd.f32 %v4014_v15, %v10584_v17 }
 0x6fb   :  { %v4037_v55 = vadd.f32 %v4036_v48, %v4030_v50  ;;  %v3876_v50 = vadd.f32 %v3875_v18, %v3874_v42  ;;  %v3981_v48 = vrot.slane %v3980_v45, 4  ;;  %v3947_v18 = vrot.slane %v3946_v41, 2 }
 0x6fd   :  { %v3877_v47 = vrot.slane %v3876_v50, 1  ;;  %v3982_v40 = vadd.f32 %v3981_v48, %v3980_v45 }
 0x6ff   :  { %v3878_v48 = vadd.f32 %v3877_v47, %v3876_v50 }
 0x700   :  { %v10610_v56 = vpop.f32.mrf.mxu2 }
 0x701   :  { %13267 = vst [vmem:[#allocation33_spill] sm:$0xff] %v10610_v56  ;;  %v4031_v46 = vmul.f32 %v10610_v56, %v10610_v56  ;;  %v4016_v15 = vadd.f32 %v4015_v9, %v10610_v56  ;;  %v3933_v9 = vrot.slane %v3932_v63, 2  ;;  %v3879_v50 = vadd.f32 %v3878_v48, %v3843_v37 }
 0x703   :  { %v4038_v13 = vadd.f32 %v4037_v55, %v4031_v46  ;;  %v4017_v57 = vrot.slane %v4016_v15, 4  ;;  %v3898_v46 = vadd.f32 %v3897_v61, %v3896_v44  ;;  %v3934_v28 = vadd.f32 %v3933_v9, %v3932_v63 }
 0x704   :  { %v3969_v44 = vrot.slane %v3968_v38, 2  ;;  %v3948_v63 = vadd.f32 %v3947_v18, %v3946_v41 }
 0x705   :  { %v4039_v55 = vrot.slane %v4038_v13, 4  ;;  %v3899_v19 = vrot.slane %v3898_v46, 1  ;;  %v3935_v9 = vrot.slane %v3934_v28, 1 }
 0x706   :  { %v3970_v39 = vadd.f32 %v3969_v44, %v3968_v38  ;;  %v3949_v41 = vrot.slane %v3948_v63, 1 }
 0x707   :  { %v3936_v47 = vadd.f32 %v3935_v9, %v3934_v28 }
 0x708   :  { %v10615_v32 = vpop.f32.mrf.mxu2  ;;  %v3971_v35 = vrot.slane %v3970_v39, 1 }
 0x709   :  { %13269 = vst [vmem:[#allocation35_spill] sm:$0xff] %v10615_v32  ;;  %v4060_v22 = vmul.f32 %v10615_v32, %v10615_v32 }
 0x710   :  { %v10627_v43 = vpop.f32.mrf.mxu2 }
 0x711   :  { %13271 = vst [vmem:[#allocation37_spill] sm:$0xff] %v10627_v43  ;;  %v4061_v36 = vmul.f32 %v10627_v43, %v10627_v43  ;;  %v4046_v8 = vadd.f32 %v10627_v43, %v10615_v32  ;;  %v4018_v32 = vadd.f32 %v4017_v57, %v4016_v15  ;;  %v3983_v15 = vrot.slane %v3982_v40, 2 }
 0x713   :  { %v4068_v26 = vadd.f32 %v4061_v36, %v4060_v22  ;;  %v4040_v36 = vadd.f32 %v4039_v55, %v4038_v13  ;;  %v4019_v57 = vrot.slane %v4018_v32, 2  ;;  %v3900_v13 = vadd.f32 %v3899_v19, %v3898_v46 }
 0x714   :  { %v3914_v55 = vadd.f32 %v3913_v12, %v3912_v4  ;;  %v3984_v18 = vadd.f32 %v3983_v15, %v3982_v40 }
 0x715   :  { %v3901_v38 = vadd.f32 %v3900_v13, %v3865_v0 }
 0x716   :  { %v3915_v4 = vadd.f32 %v3914_v55, %v3879_v50  ;;  %v3985_v37 = vrot.slane %v3984_v18, 1 }
 0x717   :  { %v3937_v40 = vadd.f32 %v3936_v47, %v3901_v38 }
 0x718   :  { %v10662_v7 = vpop.f32.mrf.mxu2 }
 0x719   :  { %v4062_v52 = vmul.f32 %v10662_v7, %v10662_v7  ;;  %v4047_v42 = vadd.f32 %v4046_v8, %v10662_v7 }
 0x71b   :  { %v4069_v56 = vadd.f32 %v4068_v26, %v4062_v52 }
 0x720   :  { %v10703_v20 = vpop.f32.mrf.mxu2 }
 0x721   :  { %13273 = vst [vmem:[#allocation39_spill] sm:$0xff] %v10703_v20  ;;  %v4063_v25 = vmul.f32 %v10703_v20, %v10703_v20  ;;  %v4048_v14 = vadd.f32 %v4047_v42, %v10703_v20 }
 0x723   :  { %v4070_v22 = vadd.f32 %v4069_v56, %v4063_v25  ;;  %v4005_v56 = vrot.slane %v4004_v59, 2  ;;  %v4041_v25 = vrot.slane %v4040_v36, 2 }
 0x725   :  { %v4006_v46 = vadd.f32 %v4005_v56, %v4004_v59  ;;  %v4042_v44 = vadd.f32 %v4041_v25, %v4040_v36 }
 0x727   :  { %v4007_v9 = vrot.slane %v4006_v46, 1 }
 0x728   :  { %v10741_v21 = vpop.f32.mrf.mxu2 }
 0x729   :  { %13275 = vst [vmem:[#allocation41_spill] sm:$0xff] %v10741_v21  ;;  %v4064_v61 = vmul.f32 %v10741_v21, %v10741_v21  ;;  %v4049_v8 = vadd.f32 %v4048_v14, %v10741_v21  ;;  %v4008_v36 = vadd.f32 %v4007_v9, %v4006_v46 }
 0x72b   :  { %v4071_v52 = vadd.f32 %v4070_v22, %v4064_v61  ;;  %v4020_v61 = vadd.f32 %v4019_v57, %v4018_v32  ;;  %v3972_v32 = vadd.f32 %v3971_v35, %v3970_v39 }
 0x72d   :  { %v4021_v28 = vrot.slane %v4020_v61, 1 }
 0x72f   :  { %v4022_v0 = vadd.f32 %v4021_v28, %v4020_v61 }
 0x730   :  { %v10766_v60 = vpop.f32.mrf.mxu2 }
 0x731   :  { %v4065_v45 = vmul.f32 %v10766_v60, %v10766_v60  ;;  %v4050_v26 = vadd.f32 %v4049_v8, %v10766_v60 }
 0x733   :  { %v4072_v14 = vadd.f32 %v4071_v52, %v4065_v45  ;;  %v3950_v45 = vadd.f32 %v3949_v41, %v3948_v63 }
 0x735   :  { %v3951_v57 = vadd.f32 %v3950_v45, %v3915_v4  ;;  %v4487_v45 = vld [vmem:[#allocation2 + $0x8] sm:$0xff] }
 0x736   :  { %4615 = vrot.lane.b32.xlu2 %v4487_v45, %s8551_s14  ;;  %v13287_v45 = vld [vmem:[#allocation37_spill] sm:$0xff] }
 0x738   :  { %v10793_v43 = vpop.f32.mrf.mxu2 }
 0x739   :  { %v4066_v42 = vmul.f32 %v10793_v43, %v10793_v43  ;;  %v4051_v21 = vadd.f32 %v4050_v26, %v10793_v43 }
 0x73b   :  { %v4073_v22 = vadd.f32 %v4072_v14, %v4066_v42  ;;  %v3986_v42 = vadd.f32 %v3985_v37, %v3984_v18  ;;  %v3973_v14 = vadd.f32 %v3972_v32, %v3937_v40 }
 0x73d   :  { %v3987_v56 = vadd.f32 %v3986_v42, %v3951_v57  ;;  %v4009_v41 = vadd.f32 %v4008_v36, %v3973_v14  ;;  %v3793_v57 = vld [vmem:[%s13140_s2 + $0x1] sm:$0x1]  ;;  %v4488_v42 = vld [vmem:[#allocation2 + $0x10] sm:$0xff] }
 0x73e   :  { %4617 = vrot.lane.b32.xlu0 %v4488_v42, %s8551_s14 }
 0x73f   :  { %v4023_v50 = vadd.f32 %v4022_v0, %v3987_v56  ;;  %v13279_v56 = vld [vmem:[#allocation4_spill] sm:$0xff] }
 0x740   :  { %v10805_v20 = vpop.f32.mrf.mxu2 }
 0x741   :  { %v4052_v8 = vadd.f32 %v4051_v21, %v10805_v20  ;;  %v4067_v62 = vmul.f32 %v10805_v20, %v10805_v20  ;;  %v4043_v21 = vrot.slane %v4042_v44, 1 }
 0x743   :  { %v4053_v19 = vrot.slane %v4052_v8, 4  ;;  %v4074_v12 = vadd.f32 %v4073_v22, %v4067_v62  ;;  %v4044_v55 = vadd.f32 %v4043_v21, %v4042_v44 }
 0x745   :  { %v4054_v48 = vadd.f32 %v4053_v19, %v4052_v8  ;;  %v4075_v15 = vrot.slane %v4074_v12, 4  ;;  %v4045_v39 = vadd.f32 %v4044_v55, %v4009_v41  ;;  %v13280_v41 = vld [vmem:[#allocation5_spill] sm:$0xff] }
 0x747   :  { %v4055_v52 = vrot.slane %v4054_v48, 2  ;;  %v4076_v26 = vadd.f32 %v4075_v15, %v4074_v12 }
 0x749   :  { %v4056_v59 = vadd.f32 %v4055_v52, %v4054_v48  ;;  %v4077_v13 = vrot.slane %v4076_v26, 2  ;;  %v3792_v48 = vld [vmem:[%s13140_s2] sm:$0x1]  ;;  %s8558_s2 = smov 40  }
 0x74b   :  { %v4057_v63 = vrot.slane %v4056_v59, 1  ;;  %v4078_v25 = vadd.f32 %v4077_v13, %v4076_v26 }
 0x74d   :  { %v4058_v47 = vadd.f32 %v4057_v63, %v4056_v59  ;;  %v4079_v22 = vrot.slane %v4078_v25, 1 }
 0x74f   :  { %v4059_v8 = vadd.f32 %v4058_v47, %v4023_v50  ;;  %v4080_v62 = vadd.f32 %v4079_v22, %v4078_v25  ;;  %v13281_v47 = vld [vmem:[#allocation6_spill] sm:$0xff] }
 0x751   :  { %v4081_v35 = vadd.f32 %v4080_v62, %v4045_v39  ;;  %v4082_v38 = vmul.f32 0.001953125, %v4059_v8  ;;  %v13282_v39 = vld [vmem:[#allocation7_spill] sm:$0xff]  ;;  %v13283_v8 = vld [vmem:[#allocation8_spill] sm:$0xff] }
 0x753   :  { %v4083_v4 = vmul.f32 0.001953125, %v4081_v35  ;;  %v4084_v18 = vmul.f32 %v4082_v38, %v4082_v38 }
 0x755   :  { %v4085_v19 = vsub.f32 %v4083_v4, %v4084_v18 }
 0x757   :  { %v4086_v61 = vmax.f32 %v4085_v19, 0.0 }
 0x759   :  { %v4087_v12 = vadd.f32 1e-05, %v4086_v61 }
 0x75b   :  { %8543 = vrsqrt.f32 %v4087_v12  ;;  %vm4094_vm13 = vweird.f32 %v4087_v12 }
 0x761   :  { %v8544_v46 = vpop.eup %8543 }
 0x762   :  { %v4089_v44 = vmul.f32 %v8544_v46, %v4087_v12  ;;  %vm4095_vm12 = vweird.f32 %v8544_v46  ;;  %v13285_v12 = vld [vmem:[#allocation33_spill] sm:$0xff] }
 0x763   :  { %vm4096_vm14 = vmor %vm4094_vm13, %vm4095_vm12 }
 0x764   :  { %v4090_v37 = vmul.f32 %v8544_v46, %v4089_v44  ;;  %v13288_v44 = vld [vmem:[#allocation39_spill] sm:$0xff] }
 0x766   :  { %v4091_v40 = vmul.f32 0.5, %v4090_v37  ;;  %v13289_v37 = vld [vmem:[#allocation41_spill] sm:$0xff] }
 0x768   :  { %v4092_v28 = vsub.f32 1.5, %v4091_v40 }
 0x76a   :  { %v4093_v15 = vmul.f32 %v8544_v46, %v4092_v28 }
 0x76c   :  { %v4097_v32 = vsel %vm4096_vm14, %v8544_v46, %v4093_v15  ;;  %v13286_v46 = vld [vmem:[#allocation35_spill] sm:$0xff] }
 0x76d   :  { %v4098_v9 = vmul.f32 %v4097_v32, %v3792_v48 }
 0x76f   :  { %v4099_v21 = vmul.f32 %v4098_v9, %v4082_v38  ;;  %v10817_v52 = vperm.slane %v4098_v9, 0 }
 0x771   :  { %v4100_v26 = vsub.f32 %v3793_v57, %v4099_v21  ;;  %v4165_v14 = vmul.f32 %v10817_v52, %v10805_v20  ;;  %v4102_v36 = vmul.f32 %v10817_v52, %v10431_v2  ;;  %v4103_v55 = vmul.f32 %v10817_v52, %v13279_v56 }
 0x772   :  { %v4104_v63 = vmul.f32 %v10817_v52, %v10440_v34  ;;  %v4105_v25 = vmul.f32 %v10817_v52, %v10444_v24  ;;  %v4106_v20 = vmul.f32 %v10817_v52, %v10448_v30  ;;  %v4107_v50 = vmul.f32 %v10817_v52, %v13280_v41  ;;  %v13284_v34 = vld [vmem:[#allocation9_spill] sm:$0xff] }
 0x773   :  { %v10822_v0 = vperm.slane %v4100_v26, 0  ;;  %v4108_v22 = vmul.f32 %v10817_v52, %v13281_v47  ;;  %v10842_v2 = vmul.f32 %v10817_v52, %v13282_v39  ;;  %v10846_v62 = vmul.f32 %v10817_v52, %v13283_v8 }
 0x774   :  { %v10850_v24 = vmul.f32 %v10817_v52, %v13284_v34  ;;  %v4139_v30 = vmul.f32 %v10817_v52, %v10494_v5  ;;  %v4140_v35 = vmul.f32 %v10817_v52, %v10499_v33  ;;  %v4141_v38 = vmul.f32 %v10817_v52, %v10502_v27 }
 0x775   :  { %v4230_v59 = vadd.f32 %v10822_v0, %v4165_v14  ;;  %v4142_v4 = vmul.f32 %v10817_v52, %v10507_v16  ;;  %v4143_v18 = vmul.f32 %v10817_v52, %v10512_v1  ;;  %v4144_v19 = vmul.f32 %v10817_v52, %v10517_v51 }
 0x776   :  { %v4145_v61 = vmul.f32 %v10817_v52, %v10521_v29  ;;  %v4146_v5 = vmul.f32 %v10817_v52, %v10523_v58  ;;  %v4147_v33 = vmul.f32 %v10817_v52, %v10527_v49  ;;  %v4148_v27 = vmul.f32 %v10817_v52, %v10531_v31 }
 0x777   :  { %v4294_v13 = vmax.f32 %v4230_v59, 0.0  ;;  %v4149_v16 = vmul.f32 %v10817_v52, %v10535_v10  ;;  %v4150_v1 = vmul.f32 %v10817_v52, %v10539_v23  ;;  %v4151_v51 = vmul.f32 %v10817_v52, %v10541_v6 }
 0x778   :  { %v4152_v29 = vmul.f32 %v10817_v52, %v10545_v11  ;;  %v4153_v58 = vmul.f32 %v10817_v52, %v10549_v53  ;;  %v4154_v49 = vmul.f32 %v10817_v52, %v10553_v54  ;;  %v4155_v31 = vmul.f32 %v10817_v52, %v10557_v3 }
 0x779   :  { %4358 = vst.msk [vmem:[#allocation2 + $0x450] sm:$0xff] %vm84_vm0, %v4294_v13  ;;  %v4156_v10 = vmul.f32 %v10817_v52, %v10584_v17  ;;  %v4157_v23 = vmul.f32 %v10817_v52, %v13285_v12  ;;  %v4158_v6 = vmul.f32 %v10817_v52, %v13286_v46  ;;  %v4159_v11 = vmul.f32 %v10817_v52, %v13287_v45 }
 0x77a   :  { %v4160_v53 = vmul.f32 %v10817_v52, %v10662_v7  ;;  %v4161_v54 = vmul.f32 %v10817_v52, %v13288_v44  ;;  %v4162_v3 = vmul.f32 %v10817_v52, %v13289_v37  ;;  %v4163_v17 = vmul.f32 %v10817_v52, %v10766_v60  ;;  %v13295_v37 = vld [vmem:[#allocation20_spill] sm:$0xff] }
 0x77b   :  { %v4164_v40 = vmul.f32 %v10817_v52, %v10793_v43  ;;  %v4167_v28 = vadd.f32 %v10822_v0, %v4102_v36  ;;  %v4168_v48 = vadd.f32 %v10822_v0, %v4103_v55  ;;  %v4169_v15 = vadd.f32 %v10822_v0, %v4104_v63 }
 0x77c   :  { %v4170_v7 = vadd.f32 %v10822_v0, %v4105_v25  ;;  %v4171_v32 = vadd.f32 %v10822_v0, %v4106_v20  ;;  %v4172_v9 = vadd.f32 %v10822_v0, %v4107_v50  ;;  %v4173_v57 = vadd.f32 %v10822_v0, %v4108_v22 }
 0x77d   :  { %v10912_v21 = vadd.f32 %v10822_v0, %v4139_v30  ;;  %v10915_v60 = vadd.f32 %v10822_v0, %v4140_v35  ;;  %v10918_v43 = vadd.f32 %v10822_v0, %v4141_v38  ;;  %v10921_v26 = vadd.f32 %v10822_v0, %v4142_v4 }
 0x77e   :  { %v10924_v42 = vadd.f32 %v10822_v0, %v4143_v18  ;;  %v10927_v14 = vadd.f32 %v10822_v0, %v4144_v19  ;;  %v10930_v59 = vadd.f32 %v10822_v0, %v4145_v61  ;;  %v10933_v13 = vadd.f32 %v10822_v0, %v4146_v5 }
 0x77f   :  { %v10936_v36 = vadd.f32 %v10822_v0, %v4147_v33  ;;  %v10939_v56 = vadd.f32 %v10822_v0, %v4148_v27  ;;  %v10942_v55 = vadd.f32 %v10822_v0, %v4149_v16  ;;  %v10945_v63 = vadd.f32 %v10822_v0, %v4150_v1  ;;  %v13290_v16 = vld [vmem:[#allocation11_spill] sm:$0xff] }
 0x780   :  { %v10948_v25 = vadd.f32 %v10822_v0, %v4151_v51  ;;  %v10951_v20 = vadd.f32 %v10822_v0, %v4152_v29  ;;  %v10954_v41 = vadd.f32 %v10822_v0, %v4153_v58  ;;  %v10957_v50 = vadd.f32 %v10822_v0, %v4154_v49  ;;  %v13291_v58 = vld [vmem:[#allocation14_spill] sm:$0xff] }
 0x781   :  { %v10960_v47 = vadd.f32 %v10822_v0, %v4155_v31  ;;  %v10963_v22 = vadd.f32 %v10822_v0, %v4156_v10  ;;  %v10966_v39 = vadd.f32 %v10822_v0, %v4157_v23  ;;  %v10969_v8 = vadd.f32 %v10822_v0, %v4158_v6 }
 0x782   :  { %v10972_v34 = vadd.f32 %v10822_v0, %v4159_v11  ;;  %v10975_v30 = vadd.f32 %v10822_v0, %v4160_v53  ;;  %v10978_v35 = vadd.f32 %v10822_v0, %v4161_v54  ;;  %v10981_v38 = vadd.f32 %v10822_v0, %v4162_v3 }
 0x783   :  { %v10984_v4 = vadd.f32 %v10822_v0, %v4163_v17  ;;  %v10987_v18 = vadd.f32 %v10822_v0, %v4164_v40  ;;  %v4231_v19 = vmax.f32 %v4167_v28, 0.0  ;;  %v4174_v61 = vadd.f32 %v10822_v0, %v10842_v2  ;;  %v13292_v2 = vld [vmem:[#allocation16_spill] sm:$0xff]  ;;  %v13296_v28 = vld [vmem:[#allocation21_spill] sm:$0xff] }
 0x784   :  { %v4232_v5 = vmax.f32 %v4168_v48, 0.0  ;;  %v4233_v33 = vmax.f32 %v4169_v15, 0.0  ;;  %v4234_v27 = vmax.f32 %v4170_v7, 0.0  ;;  %v4112_v1 = vmul.f32 %v10817_v52, %v13290_v16 }
 0x785   :  { %v4175_v51 = vadd.f32 %v10822_v0, %v10846_v62  ;;  %v4235_v29 = vmax.f32 %v4171_v32, 0.0  ;;  %4295 = vst.msk [vmem:[#allocation2 + $0x28] sm:$0xff] %vm84_vm0, %v4231_v19  ;;  %v4113_v49 = vmul.f32 %v10817_v52, %v13291_v58  ;;  %v4176_v31 = vadd.f32 %v10822_v0, %v10850_v24  ;;  %v13293_v62 = vld [vmem:[#allocation18_spill] sm:$0xff]  ;;  %v13294_v24 = vld [vmem:[#allocation19_spill] sm:$0xff] }
 0x786   :  { %v4236_v10 = vmax.f32 %v4172_v9, 0.0  ;;  %4297 = vst.msk [vmem:[#allocation2 + $0x48] sm:$0xff] %vm84_vm0, %v4233_v33  ;;  %v4114_v12 = vmul.f32 %v10817_v52, %v13292_v2  ;;  %v4177_v23 = vadd.f32 %v10822_v0, %v4112_v1  ;;  %v4237_v46 = vmax.f32 %v4173_v57, 0.0  ;;  %v13297_v32 = vld [vmem:[#allocation22_spill] sm:$0xff]  ;;  %v13299_v1 = vld [vmem:[#allocation24_spill] sm:$0xff] }
 0x787   :  { %4296 = vst.msk [vmem:[#allocation2 + $0x30] sm:$0xff] %vm84_vm0, %v4232_v5  ;;  %v4115_v6 = vmul.f32 %v10817_v52, %v13293_v62  ;;  %v4178_v45 = vadd.f32 %v10822_v0, %v4113_v49  ;;  %v4238_v11 = vmax.f32 %v4174_v61, 0.0  ;;  %v4116_v53 = vmul.f32 %v10817_v52, %v13294_v24  ;;  %v13298_v61 = vld [vmem:[#allocation23_spill] sm:$0xff]  ;;  %v13300_v49 = vld [vmem:[#allocation25_spill] sm:$0xff] }
 0x788   :  { %4298 = vst.msk [vmem:[#allocation2 + $0x50] sm:$0xff] %vm84_vm0, %v4234_v27  ;;  %v4179_v44 = vadd.f32 %v10822_v0, %v4114_v12  ;;  %v4239_v54 = vmax.f32 %v4175_v51, 0.0  ;;  %v4117_v3 = vmul.f32 %v10817_v52, %v13295_v37  ;;  %v4240_v40 = vmax.f32 %v4176_v31, 0.0  ;;  %v13301_v12 = vld [vmem:[#allocation26_spill] sm:$0xff] }
 0x789   :  { %4299 = vst.msk [vmem:[#allocation2 + $0x68] sm:$0xff] %vm84_vm0, %v4235_v29  ;;  %v4180_v17 = vadd.f32 %v10822_v0, %v4115_v6  ;;  %v4118_v48 = vmul.f32 %v10817_v52, %v13296_v28  ;;  %v4181_v15 = vadd.f32 %v10822_v0, %v4116_v53  ;;  %v4241_v7 = vmax.f32 %v4177_v23, 0.0  ;;  %v13302_v6 = vld [vmem:[#allocation27_spill] sm:$0xff]  ;;  %v13303_v53 = vld [vmem:[#allocation28_spill] sm:$0xff] }
 0x78a   :  { %4300 = vst.msk [vmem:[#allocation2 + $0x70] sm:$0xff] %vm84_vm0, %v4236_v10  ;;  %v4119_v9 = vmul.f32 %v10817_v52, %v13297_v32  ;;  %v4182_v57 = vadd.f32 %v10822_v0, %v4117_v3  ;;  %v4242_v19 = vmax.f32 %v4178_v45, 0.0  ;;  %v4120_v5 = vmul.f32 %v10817_v52, %v13298_v61  ;;  %v13304_v3 = vld [vmem:[#allocation29_spill] sm:$0xff] }
 0x78b   :  { %4301 = vst.msk [vmem:[#allocation2 + $0x88] sm:$0xff] %vm84_vm0, %v4237_v46  ;;  %v4183_v33 = vadd.f32 %v10822_v0, %v4118_v48  ;;  %v4243_v27 = vmax.f32 %v4179_v44, 0.0  ;;  %v4121_v51 = vmul.f32 %v10817_v52, %v13299_v1  ;;  %v4244_v58 = vmax.f32 %v4180_v17, 0.0  ;;  %v13305_v48 = vld [vmem:[#allocation30_spill] sm:$0xff] }
 0x78c   :  { %4302 = vst.msk [vmem:[#allocation2 + $0x90] sm:$0xff] %vm84_vm0, %v4238_v11  ;;  %v4184_v29 = vadd.f32 %v10822_v0, %v4119_v9  ;;  %v4122_v31 = vmul.f32 %v10817_v52, %v13300_v49  ;;  %v4185_v10 = vadd.f32 %v10822_v0, %v4120_v5  ;;  %v4245_v2 = vmax.f32 %v4181_v15, 0.0  ;;  %v13306_v9 = vld [vmem:[#allocation31_spill] sm:$0xff]  ;;  %v13307_v5 = vld [vmem:[#allocation32_spill] sm:$0xff]  ;;  %v13308_v1 = vld [vmem:[#allocation34_spill] sm:$0xff] }
 0x78d   :  { %v4491_v16 = vld [vmem:[#allocation2 + $0x48] sm:$0xff]  ;;  %4303 = vst.msk [vmem:[#allocation2 + $0xa8] sm:$0xff] %vm84_vm0, %v4239_v54  ;;  %v4123_v23 = vmul.f32 %v10817_v52, %v13301_v12  ;;  %v4186_v46 = vadd.f32 %v10822_v0, %v4121_v51  ;;  %v4246_v62 = vmax.f32 %v4182_v57, 0.0  ;;  %v4124_v45 = vmul.f32 %v10817_v52, %v13302_v6  ;;  %v13309_v49 = vld [vmem:[#allocation36_spill] sm:$0xff]  ;;  %v13310_v12 = vld [vmem:[#allocation38_spill] sm:$0xff] }
 0x78e   :  { %4623 = vrot.lane.b32.xlu0 %v4491_v16, %s8551_s14  ;;  %4304 = vst.msk [vmem:[#allocation2 + $0xb0] sm:$0xff] %vm84_vm0, %v4240_v40  ;;  %v4187_v11 = vadd.f32 %v10822_v0, %v4122_v31  ;;  %v4247_v24 = vmax.f32 %v4183_v33, 0.0  ;;  %v4125_v44 = vmul.f32 %v10817_v52, %v13303_v53  ;;  %v4248_v37 = vmax.f32 %v4184_v29, 0.0  ;;  %v13311_v6 = vld [vmem:[#allocation40_spill] sm:$0xff]  ;;  %v13312_v53 = vld [vmem:[#allocation10_spill] sm:$0xff] }
 0x78f   :  { %4305 = vst.msk [vmem:[#allocation2 + $0xc8] sm:$0xff] %vm84_vm0, %v4241_v7  ;;  %v4188_v54 = vadd.f32 %v10822_v0, %v4123_v23  ;;  %v4126_v17 = vmul.f32 %v10817_v52, %v13304_v3  ;;  %v4189_v40 = vadd.f32 %v10822_v0, %v4124_v45  ;;  %v4249_v28 = vmax.f32 %v4185_v10, 0.0  ;;  %v13313_v3 = vld [vmem:[#allocation12_spill] sm:$0xff] }
 0x790   :  { %4306 = vst.msk [vmem:[#allocation2 + $0xd0] sm:$0xff] %vm84_vm0, %v4242_v19  ;;  %v4127_v15 = vmul.f32 %v10817_v52, %v13305_v48  ;;  %v4190_v7 = vadd.f32 %v10822_v0, %v4125_v44  ;;  %v4250_v32 = vmax.f32 %v4186_v46, 0.0  ;;  %v4128_v57 = vmul.f32 %v10817_v52, %v13306_v9  ;;  %v13314_v48 = vld [vmem:[#allocation13_spill] sm:$0xff]  ;;  %v13315_v9 = vld [vmem:[#allocation15_spill] sm:$0xff] }
 0x791   :  { %4307 = vst.msk [vmem:[#allocation2 + $0xe8] sm:$0xff] %vm84_vm0, %v4243_v27  ;;  %v4191_v19 = vadd.f32 %v10822_v0, %v4126_v17  ;;  %v4251_v61 = vmax.f32 %v4187_v11, 0.0  ;;  %v4129_v33 = vmul.f32 %v10817_v52, %v13307_v5  ;;  %v4252_v16 = vmax.f32 %v4188_v54, 0.0  ;;  %v13316_v5 = vld [vmem:[#allocation17_spill] sm:$0xff] }
 0x792   :  { %4308 = vst.msk [vmem:[#allocation2 + $0xf0] sm:$0xff] %vm84_vm0, %v4244_v58  ;;  %v4192_v27 = vadd.f32 %v10822_v0, %v4127_v15  ;;  %v4130_v51 = vmul.f32 %v10817_v52, %v13308_v1  ;;  %v4193_v29 = vadd.f32 %v10822_v0, %v4128_v57  ;;  %v4253_v58 = vmax.f32 %v4189_v40, 0.0 }
 0x793   :  { %4309 = vst.msk [vmem:[#allocation2 + $0x108] sm:$0xff] %vm84_vm0, %v4245_v2  ;;  %v4131_v31 = vmul.f32 %v10817_v52, %v13309_v49  ;;  %v4194_v10 = vadd.f32 %v10822_v0, %v4129_v33  ;;  %v4254_v2 = vmax.f32 %v4190_v7, 0.0  ;;  %v4132_v23 = vmul.f32 %v10817_v52, %v13310_v12  ;;  %v4494_v12 = vld [vmem:[#allocation2 + $0x70] sm:$0xff] }
 0x794   :  { %4310 = vst.msk [vmem:[#allocation2 + $0x110] sm:$0xff] %vm84_vm0, %v4246_v62  ;;  %v4195_v46 = vadd.f32 %v10822_v0, %v4130_v51  ;;  %v4255_v62 = vmax.f32 %v4191_v19, 0.0  ;;  %v4133_v45 = vmul.f32 %v10817_v52, %v13311_v6  ;;  %v4134_v44 = vmul.f32 %v10817_v52, %v13312_v53 }
 0x795   :  { %4311 = vst.msk [vmem:[#allocation2 + $0x128] sm:$0xff] %vm84_vm0, %v4247_v24  ;;  %v4196_v11 = vadd.f32 %v10822_v0, %v4131_v31  ;;  %v4256_v24 = vmax.f32 %v4192_v27, 0.0  ;;  %v4197_v54 = vadd.f32 %v10822_v0, %v4132_v23  ;;  %v4135_v17 = vmul.f32 %v10817_v52, %v13313_v3 }
 0x796   :  { %4312 = vst.msk [vmem:[#allocation2 + $0x130] sm:$0xff] %vm84_vm0, %v4248_v37  ;;  %v4257_v37 = vmax.f32 %v4193_v29, 0.0  ;;  %v4198_v40 = vadd.f32 %v10822_v0, %v4133_v45  ;;  %v4136_v15 = vmul.f32 %v10817_v52, %v13314_v48  ;;  %v4199_v7 = vadd.f32 %v10822_v0, %v4134_v44  ;;  %4629 = vrot.lane.b32.xlu0 %v4494_v12, %s8551_s14  ;;  %v4496_v44 = vld [vmem:[#allocation2 + $0x90] sm:$0xff]  ;;  %v4499_v3 = vld [vmem:[#allocation2 + $0xc8] sm:$0xff] }
 0x797   :  { %4313 = vst.msk [vmem:[#allocation2 + $0x148] sm:$0xff] %vm84_vm0, %v4249_v28  ;;  %v4258_v28 = vmax.f32 %v4194_v10, 0.0  ;;  %v4137_v57 = vmul.f32 %v10817_v52, %v13315_v9  ;;  %v4200_v19 = vadd.f32 %v10822_v0, %v4135_v17  ;;  %v4138_v33 = vmul.f32 %v10817_v52, %v13316_v5  ;;  %v4490_v52 = vld [vmem:[#allocation2 + $0x30] sm:$0xff]  ;;  %v4489_v10 = vld [vmem:[#allocation2 + $0x28] sm:$0xff] }
 0x798   :  { %4314 = vst.msk [vmem:[#allocation2 + $0x150] sm:$0xff] %vm84_vm0, %v4250_v32  ;;  %v4259_v32 = vmax.f32 %v4195_v46, 0.0  ;;  %v4201_v27 = vadd.f32 %v10822_v0, %v4136_v15  ;;  %v4262_v51 = vmax.f32 %v4198_v40, 0.0  ;;  %4621 = vrot.lane.b32.xlu2 %v4490_v52, %s8551_s14  ;;  %4619 = vrot.lane.b32.xlu1 %v4489_v10, %s8551_s14  ;;  %v4268_v23 = vmax.f32 %v10912_v21, 0.0  ;;  %v11188_v48 = vld [vmem:[#allocation2 + $0x47] sm:$0xff] }
 0x799   :  { %4315 = vst.msk [vmem:[#allocation2 + $0x168] sm:$0xff] %vm84_vm0, %v4251_v61  ;;  %v4260_v61 = vmax.f32 %v4196_v11, 0.0  ;;  %v4202_v1 = vadd.f32 %v10822_v0, %v4137_v57  ;;  %v4203_v29 = vadd.f32 %v10822_v0, %v4138_v33  ;;  %v4264_v49 = vmax.f32 %v4200_v19, 0.0  ;;  %v4493_v11 = vld [vmem:[#allocation2 + $0x68] sm:$0xff]  ;;  %v4502_v40 = vld [vmem:[#allocation2 + $0xf0] sm:$0xff] }
 0x79a   :  { %4316 = vst.msk [vmem:[#allocation2 + $0x170] sm:$0xff] %vm84_vm0, %v4252_v16  ;;  %v4261_v16 = vmax.f32 %v4197_v54, 0.0  ;;  %v4265_v31 = vmax.f32 %v4201_v27, 0.0  ;;  %v4269_v46 = vmax.f32 %v10915_v60, 0.0  ;;  %v4271_v6 = vmax.f32 %v10921_v26, 0.0  ;;  %v4492_v60 = vld [vmem:[#allocation2 + $0x50] sm:$0xff] }
 0x79b   :  { %4317 = vst.msk [vmem:[#allocation2 + $0x188] sm:$0xff] %vm84_vm0, %v4253_v58  ;;  %v4263_v58 = vmax.f32 %v4199_v7, 0.0  ;;  %v4267_v0 = vmax.f32 %v4203_v29, 0.0  ;;  %v4272_v45 = vmax.f32 %v10924_v42, 0.0  ;;  %v4273_v21 = vmax.f32 %v10927_v14, 0.0  ;;  %v11193_v15 = vld [vmem:[#allocation2 + $0xc7] sm:$0xff] }
 0x79c   :  { %4318 = vst.msk [vmem:[#allocation2 + $0x190] sm:$0xff] %vm84_vm0, %v4254_v2  ;;  %v4266_v2 = vmax.f32 %v4202_v1, 0.0  ;;  %v4275_v26 = vmax.f32 %v10933_v13, 0.0  ;;  %v4276_v42 = vmax.f32 %v10936_v36, 0.0  ;;  %v4277_v14 = vmax.f32 %v10939_v56, 0.0  ;;  %v4495_v56 = vld [vmem:[#allocation2 + $0x88] sm:$0xff] }
 0x79d   :  { %4319 = vst.msk [vmem:[#allocation2 + $0x1a8] sm:$0xff] %vm84_vm0, %v4255_v62  ;;  %v4270_v62 = vmax.f32 %v10918_v43, 0.0  ;;  %v4497_v43 = vld [vmem:[#allocation2 + $0xa8] sm:$0xff]  ;;  %v4279_v53 = vmax.f32 %v10945_v63, 0.0  ;;  %v4280_v13 = vmax.f32 %v10948_v25, 0.0  ;;  %v4281_v36 = vmax.f32 %v10951_v20, 0.0 }
 0x79e   :  { %4320 = vst.msk [vmem:[#allocation2 + $0x1b0] sm:$0xff] %vm84_vm0, %v4256_v24  ;;  %v4274_v24 = vmax.f32 %v10930_v59, 0.0  ;;  %4635 = vrot.lane.b32.xlu0 %v4497_v43, %s8551_s14  ;;  %v4278_v59 = vmax.f32 %v10942_v55, 0.0  ;;  %v4282_v54 = vmax.f32 %v10954_v41, 0.0  ;;  %v4500_v55 = vld [vmem:[#allocation2 + $0xd0] sm:$0xff]  ;;  %v4283_v63 = vmax.f32 %v10957_v50, 0.0 }
 0x79f   :  { %4321 = vst.msk [vmem:[#allocation2 + $0x1c8] sm:$0xff] %vm84_vm0, %v4257_v37  ;;  %v4284_v25 = vmax.f32 %v10960_v47, 0.0  ;;  %v4285_v20 = vmax.f32 %v10963_v22, 0.0  ;;  %v4286_v41 = vmax.f32 %v10966_v39, 0.0  ;;  %v4287_v37 = vmax.f32 %v10969_v8, 0.0  ;;  %v4498_v22 = vld [vmem:[#allocation2 + $0xb0] sm:$0xff] }
 0x7a0   :  { %4322 = vst.msk [vmem:[#allocation2 + $0x1d0] sm:$0xff] %vm84_vm0, %v4258_v28  ;;  %4627 = vrot.lane.b32.xlu2 %v4493_v11, %s8551_s14  ;;  %4625 = vrot.lane.b32.xlu1 %v4492_v60, %s8551_s14  ;;  %v4288_v50 = vmax.f32 %v10972_v34, 0.0  ;;  %v4289_v47 = vmax.f32 %v10975_v30, 0.0  ;;  %v4290_v17 = vmax.f32 %v10978_v35, 0.0  ;;  %v4503_v39 = vld [vmem:[#allocation2 + $0x108] sm:$0xff]  ;;  %v4291_v8 = vmax.f32 %v10981_v38, 0.0 }
 0x7a1   :  { %4323 = vst.msk [vmem:[#allocation2 + $0x1e8] sm:$0xff] %vm84_vm0, %v4259_v32  ;;  %v4292_v34 = vmax.f32 %v10984_v4, 0.0  ;;  %v4293_v30 = vmax.f32 %v10987_v18, 0.0  ;;  %v11176_v35 = vld [vmem:[#allocation2 + $0x2f] sm:$0xff]  ;;  %v11179_v38 = vld [vmem:[#allocation2 + $0x67] sm:$0xff] }
 0x7a2   :  { %4324 = vst.msk [vmem:[#allocation2 + $0x1f0] sm:$0xff] %vm84_vm0, %v4260_v61  ;;  %v4501_v4 = vld [vmem:[#allocation2 + $0xe8] sm:$0xff]  ;;  %v4506_v18 = vld [vmem:[#allocation2 + $0x130] sm:$0xff] }
 0x7a3   :  { %4325 = vst.msk [vmem:[#allocation2 + $0x208] sm:$0xff] %vm84_vm0, %v4261_v16  ;;  %v11182_v28 = vld [vmem:[#allocation2 + $0x8f] sm:$0xff]  ;;  %v11197_v7 = vld [vmem:[#allocation2 + $0x27] sm:$0xff] }
 0x7a4   :  { %4326 = vst.msk [vmem:[#allocation2 + $0x210] sm:$0xff] %vm84_vm0, %v4262_v51  ;;  %v11201_v32 = vld [vmem:[#allocation2 + $0x6f] sm:$0xff]  ;;  %v11213_v19 = vld [vmem:[#allocation2 + $0xa7] sm:$0xff] }
 0x7a5   :  { %4327 = vst.msk [vmem:[#allocation2 + $0x268] sm:$0xff] %vm84_vm0, %v4263_v58  ;;  %v11205_v9 = vld [vmem:[#allocation2 + $0xef] sm:$0xff]  ;;  %v11217_v33 = vld [vmem:[#allocation2 + $0x127] sm:$0xff] }
 0x7a6   :  { %4328 = vst.msk [vmem:[#allocation2 + $0x270] sm:$0xff] %vm84_vm0, %v4264_v49  ;;  %4641 = vrot.lane.b32.xlu0 %v4500_v55, %s8551_s14  ;;  %v11209_v57 = vld [vmem:[#allocation2 + $0x4f] sm:$0xff]  ;;  %v11223_v16 = vld [vmem:[#allocation2 + $0x87] sm:$0xff] }
 0x7a7   :  { %4329 = vst.msk [vmem:[#allocation2 + $0x288] sm:$0xff] %vm84_vm0, %v4265_v31  ;;  %v4505_v61 = vld [vmem:[#allocation2 + $0x128] sm:$0xff]  ;;  %v4504_v5 = vld [vmem:[#allocation2 + $0x110] sm:$0xff] }
 0x7a8   :  { %4330 = vst.msk [vmem:[#allocation2 + $0x290] sm:$0xff] %vm84_vm0, %v4266_v2  ;;  %4633 = vrot.lane.b32.xlu2 %v4496_v44, %s8551_s14  ;;  %4631 = vrot.lane.b32.xlu1 %v4495_v56, %s8551_s14  ;;  %v4509_v27 = vld [vmem:[#allocation2 + $0x168] sm:$0xff]  ;;  %v4508_v31 = vld [vmem:[#allocation2 + $0x150] sm:$0xff] }
 0x7a9   :  { %4331 = vst.msk [vmem:[#allocation2 + $0x2a8] sm:$0xff] %vm84_vm0, %v4267_v0  ;;  %v11228_v1 = vld [vmem:[#allocation2 + $0xcf] sm:$0xff]  ;;  %v11240_v58 = vld [vmem:[#allocation2 + $0x107] sm:$0xff]  ;;  %v4616_v0 = vpop.permute.xlu2 %4615 }
 0x7aa   :  { %4332 = vst.msk [vmem:[#allocation2 + $0x2b0] sm:$0xff] %vm84_vm0, %v4268_v23  ;;  %v11232_v51 = vld [vmem:[#allocation2 + $0x14f] sm:$0xff]  ;;  %v11244_v49 = vld [vmem:[#allocation2 + $0x187] sm:$0xff] }
 0x7ab   :  { %4333 = vst.msk [vmem:[#allocation2 + $0x2c8] sm:$0xff] %vm84_vm0, %v4269_v46  ;;  %v11236_v29 = vld [vmem:[#allocation2 + $0xaf] sm:$0xff]  ;;  %v4359_v2 = vld [vmem:[#allocation2 + $0x7] sm:$0xff] }
 0x7ac   :  { %4334 = vst.msk [vmem:[#allocation2 + $0x2d0] sm:$0xff] %vm84_vm0, %v4270_v62  ;;  %v4507_v52 = vld [vmem:[#allocation2 + $0x148] sm:$0xff]  ;;  %v4512_v10 = vld [vmem:[#allocation2 + $0x190] sm:$0xff] }
 0x7ad   :  { %4335 = vst.msk [vmem:[#allocation2 + $0x2e8] sm:$0xff] %vm84_vm0, %v4271_v6  ;;  %v11254_v12 = vld [vmem:[#allocation2 + $0xe7] sm:$0xff]  ;;  %v11258_v23 = vld [vmem:[#allocation2 + $0x12f] sm:$0xff] }
 0x7ae   :  { %4336 = vst.msk [vmem:[#allocation2 + $0x2f0] sm:$0xff] %vm84_vm0, %v4272_v45  ;;  %4647 = vrot.lane.b32.xlu0 %v4503_v39, %s8551_s14  ;;  %v11261_v46 = vld [vmem:[#allocation2 + $0x1af] sm:$0xff]  ;;  %v11269_v6 = vld [vmem:[#allocation2 + $0x167] sm:$0xff] }
 0x7af   :  { %4337 = vst.msk [vmem:[#allocation2 + $0x308] sm:$0xff] %vm84_vm0, %v4273_v21  ;;  %v11265_v62 = vld [vmem:[#allocation2 + $0x10f] sm:$0xff]  ;;  %v11273_v45 = vld [vmem:[#allocation2 + $0x1e7] sm:$0xff] }
 0x7b0   :  { %4338 = vst.msk [vmem:[#allocation2 + $0x310] sm:$0xff] %vm84_vm0, %v4274_v24  ;;  %4639 = vrot.lane.b32.xlu2 %v4499_v3, %s8551_s14  ;;  %4637 = vrot.lane.b32.xlu1 %v4498_v22, %s8551_s14  ;;  %v11277_v21 = vld [vmem:[#allocation2 + $0x147] sm:$0xff]  ;;  %v4510_v60 = vld [vmem:[#allocation2 + $0x170] sm:$0xff] }
 0x7b1   :  { %4339 = vst.msk [vmem:[#allocation2 + $0x328] sm:$0xff] %vm84_vm0, %v4275_v26  ;;  %v4511_v11 = vld [vmem:[#allocation2 + $0x188] sm:$0xff]  ;;  %v4514_v44 = vld [vmem:[#allocation2 + $0x1b0] sm:$0xff] }
 0x7b2   :  { %4340 = vst.msk [vmem:[#allocation2 + $0x330] sm:$0xff] %vm84_vm0, %v4276_v42  ;;  %v11281_v24 = vld [vmem:[#allocation2 + $0x18f] sm:$0xff]  ;;  %v11292_v42 = vld [vmem:[#allocation2 + $0x1c7] sm:$0xff] }
 0x7b3   :  { %4341 = vst.msk [vmem:[#allocation2 + $0x348] sm:$0xff] %vm84_vm0, %v4277_v14  ;;  %v4515_v43 = vld [vmem:[#allocation2 + $0x1c8] sm:$0xff]  ;;  %v4518_v55 = vld [vmem:[#allocation2 + $0x1f0] sm:$0xff] }
 0x7b4   :  { %4342 = vst.msk [vmem:[#allocation2 + $0x350] sm:$0xff] %vm84_vm0, %v4278_v59  ;;  %v11287_v26 = vld [vmem:[#allocation2 + $0x16f] sm:$0xff]  ;;  %v11296_v14 = vld [vmem:[#allocation2 + $0x287] sm:$0xff] }
 0x7b5   :  { %4343 = vst.msk [vmem:[#allocation2 + $0x368] sm:$0xff] %vm84_vm0, %v4279_v53  ;;  %v11300_v59 = vld [vmem:[#allocation2 + $0x1a7] sm:$0xff]  ;;  %v11304_v53 = vld [vmem:[#allocation2 + $0x1ef] sm:$0xff] }
 0x7b6   :  { %4344 = vst.msk [vmem:[#allocation2 + $0x370] sm:$0xff] %vm84_vm0, %v4280_v13  ;;  %4653 = vrot.lane.b32.xlu0 %v4506_v18, %s8551_s14  ;;  %v11308_v13 = vld [vmem:[#allocation2 + $0x2af] sm:$0xff]  ;;  %v11353_v39 = vld [vmem:[#allocation2 + $0x2a7] sm:$0xff] }
 0x7b7   :  { %4345 = vst.msk [vmem:[#allocation2 + $0x388] sm:$0xff] %vm84_vm0, %v4281_v36  ;;  %v11312_v36 = vld [vmem:[#allocation2 + $0x1cf] sm:$0xff] }
 0x7b8   :  { %4346 = vst.msk [vmem:[#allocation2 + $0x390] sm:$0xff] %vm84_vm0, %v4282_v54  ;;  %4645 = vrot.lane.b32.xlu2 %v4502_v40, %s8551_s14  ;;  %4643 = vrot.lane.b32.xlu1 %v4501_v4, %s8551_s14  ;;  %v4513_v56 = vld [vmem:[#allocation2 + $0x1a8] sm:$0xff]  ;;  %v4516_v3 = vld [vmem:[#allocation2 + $0x1d0] sm:$0xff] }
 0x7b9   :  { %4347 = vst.msk [vmem:[#allocation2 + $0x3a8] sm:$0xff] %vm84_vm0, %v4283_v63  ;;  %v11316_v54 = vld [vmem:[#allocation2 + $0x267] sm:$0xff]  ;;  %v11364_v40 = vld [vmem:[#allocation2 + $0x2cf] sm:$0xff] }
 0x7ba   :  { %4348 = vst.msk [vmem:[#allocation2 + $0x3b0] sm:$0xff] %vm84_vm0, %v4284_v25  ;;  %v11322_v63 = vld [vmem:[#allocation2 + $0x2e7] sm:$0xff]  ;;  %v11327_v25 = vld [vmem:[#allocation2 + $0x28f] sm:$0xff] }
 0x7bb   :  { %4349 = vst.msk [vmem:[#allocation2 + $0x3c8] sm:$0xff] %vm84_vm0, %v4285_v20  ;;  %v11331_v20 = vld [vmem:[#allocation2 + $0x30f] sm:$0xff]  ;;  %v11368_v4 = vld [vmem:[#allocation2 + $0x327] sm:$0xff] }
 0x7bc   :  { %4350 = vst.msk [vmem:[#allocation2 + $0x3d0] sm:$0xff] %vm84_vm0, %v4286_v41  ;;  %v11335_v41 = vld [vmem:[#allocation2 + $0x26f] sm:$0xff] }
 0x7bd   :  { %4351 = vst.msk [vmem:[#allocation2 + $0x3e8] sm:$0xff] %vm84_vm0, %v4287_v37  ;;  %v11339_v37 = vld [vmem:[#allocation2 + $0x2c7] sm:$0xff]  ;;  %v4520_v18 = vld [vmem:[#allocation2 + $0x250] sm:$0xff] }
 0x7be   :  { %4352 = vst.msk [vmem:[#allocation2 + $0x3f0] sm:$0xff] %vm84_vm0, %v4288_v50  ;;  %4659 = vrot.lane.b32.xlu0 %v4509_v27, %s8551_s14  ;;  %v11343_v50 = vld [vmem:[#allocation2 + $0x347] sm:$0xff] }
 0x7bf   :  { %4353 = vst.msk [vmem:[#allocation2 + $0x408] sm:$0xff] %vm84_vm0, %v4289_v47  ;;  %v4517_v47 = vld [vmem:[#allocation2 + $0x1e8] sm:$0xff] }
 0x7c0   :  { %4354 = vst.msk [vmem:[#allocation2 + $0x410] sm:$0xff] %vm84_vm0, %v4290_v17  ;;  %4651 = vrot.lane.b32.xlu2 %v4505_v61, %s8551_s14  ;;  %4649 = vrot.lane.b32.xlu1 %v4504_v5, %s8551_s14  ;;  %v4521_v22 = vld [vmem:[#allocation2 + $0x268] sm:$0xff] }
 0x7c1   :  { %4355 = vst.msk [vmem:[#allocation2 + $0x428] sm:$0xff] %vm84_vm0, %v4291_v8  ;;  %v4360_v17 = vld [vmem:[#allocation2 + $0xf] sm:$0xff]  ;;  %v4618_v8 = vpop.permute.xlu0 %4617  ;;  %v11372_v5 = vld [vmem:[#allocation2 + $0x3a7] sm:$0xff] }
 0x7c2   :  { %4356 = vst.msk [vmem:[#allocation2 + $0x430] sm:$0xff] %vm84_vm0, %v4292_v34  ;;  %v11357_v34 = vld [vmem:[#allocation2 + $0x2ef] sm:$0xff]  ;;  %v11376_v27 = vld [vmem:[#allocation2 + $0x307] sm:$0xff] }
 0x7c3   :  { %4357 = vst.msk [vmem:[#allocation2 + $0x448] sm:$0xff] %vm84_vm0, %v4293_v30  ;;  %v11360_v30 = vld [vmem:[#allocation2 + $0x36f] sm:$0xff] }
 0x7c4   :  { %4426 = vst.msk [vmem:[#allocation3 + $0x18] sm:$0xff] %vm84_vm0, %v11176_v35  ;;  %v4519_v61 = vld [vmem:[#allocation2 + $0x248] sm:$0xff] }
 0x7c5   :  { %4429 = vst.msk [vmem:[#allocation3 + $0x30] sm:$0xff] %vm84_vm0, %v11179_v38 }
 0x7c6   :  { %4432 = vst.msk [vmem:[#allocation3 + $0x48] sm:$0xff] %vm84_vm0, %v11182_v28  ;;  %4665 = vrot.lane.b32.xlu0 %v4512_v10, %s8551_s14  ;;  %v11386_v10 = vld [vmem:[#allocation2 + $0x3cf] sm:$0xff] }
 0x7c7   :  { %4427 = vst.msk [vmem:[#allocation3 + $0x20] sm:$0xff] %vm84_vm0, %v11188_v48 }
 0x7c8   :  { %4435 = vst.msk [vmem:[#allocation3 + $0x60] sm:$0xff] %vm84_vm0, %v11193_v15  ;;  %4657 = vrot.lane.b32.xlu2 %v4508_v31, %s8551_s14  ;;  %4655 = vrot.lane.b32.xlu1 %v4507_v52, %s8551_s14  ;;  %v11380_v31 = vld [vmem:[#allocation2 + $0x34f] sm:$0xff] }
 0x7c9   :  { %4425 = vst.msk [vmem:[#allocation3 + $0x10] sm:$0xff] %vm84_vm0, %v11197_v7  ;;  %v4524_v52 = vld [vmem:[#allocation2 + $0x290] sm:$0xff] }
 0x7ca   :  { %4430 = vst.msk [vmem:[#allocation3 + $0x38] sm:$0xff] %vm84_vm0, %v11201_v32 }
 0x7cb   :  { %4438 = vst.msk [vmem:[#allocation3 + $0x78] sm:$0xff] %vm84_vm0, %v11205_v9 }
 0x7cc   :  { %4428 = vst.msk [vmem:[#allocation3 + $0x28] sm:$0xff] %vm84_vm0, %v11209_v57 }
 0x7cd   :  { %4433 = vst.msk [vmem:[#allocation3 + $0x50] sm:$0xff] %vm84_vm0, %v11213_v19 }
 0x7ce   :  { %4441 = vst.msk [vmem:[#allocation3 + $0x90] sm:$0xff] %vm84_vm0, %v11217_v33  ;;  %4671 = vrot.lane.b32.xlu0 %v4515_v43, %s8551_s14  ;;  %v11407_v43 = vld [vmem:[#allocation2 + $0x3af] sm:$0xff] }
 0x7cf   :  { %4431 = vst.msk [vmem:[#allocation3 + $0x40] sm:$0xff] %vm84_vm0, %v11223_v16 }
 0x7d0   :  { %4436 = vst.msk [vmem:[#allocation3 + $0x68] sm:$0xff] %vm84_vm0, %v11228_v1  ;;  %4663 = vrot.lane.b32.xlu2 %v4511_v11, %s8551_s14  ;;  %4661 = vrot.lane.b32.xlu1 %v4510_v60, %s8551_s14  ;;  %v11399_v11 = vld [vmem:[#allocation2 + $0x407] sm:$0xff] }
 0x7d1   :  { %4444 = vst.msk [vmem:[#allocation3 + $0xa8] sm:$0xff] %vm84_vm0, %v11232_v51  ;;  %v11403_v60 = vld [vmem:[#allocation2 + $0x367] sm:$0xff] }
 0x7d2   :  { %4434 = vst.msk [vmem:[#allocation3 + $0x58] sm:$0xff] %vm84_vm0, %v11236_v29 }
 0x7d3   :  { %4439 = vst.msk [vmem:[#allocation3 + $0x80] sm:$0xff] %vm84_vm0, %v11240_v58 }
 0x7d4   :  { %4447 = vst.msk [vmem:[#allocation3 + $0xc0] sm:$0xff] %vm84_vm0, %v11244_v49 }
 0x7d5   :  { %4423 = vst.msk [vmem:[#allocation3] sm:$0xff] %vm84_vm0, %v4359_v2  ;;  %v11391_v2 = vld [vmem:[#allocation2 + $0x32f] sm:$0xff] }
 0x7d6   :  { %4808 = vst.msk [vmem:[#allocation3] sm:$0xff] %vm4807_vm15, %v4616_v0  ;;  %4677 = vrot.lane.b32.xlu0 %v4518_v55, %s8551_s14  ;;  %v11395_v0 = vld [vmem:[#allocation2 + $0x387] sm:$0xff]  ;;  %v4522_v55 = vld [vmem:[#allocation2 + $0x270] sm:$0xff] }
 0x7d7   :  { %4437 = vst.msk [vmem:[#allocation3 + $0x70] sm:$0xff] %vm84_vm0, %v11254_v12 }
 0x7d8   :  { %4442 = vst.msk [vmem:[#allocation3 + $0x98] sm:$0xff] %vm84_vm0, %v11258_v23  ;;  %4669 = vrot.lane.b32.xlu2 %v4514_v44, %s8551_s14  ;;  %4667 = vrot.lane.b32.xlu1 %v4513_v56, %s8551_s14  ;;  %v11411_v44 = vld [vmem:[#allocation2 + $0x42f] sm:$0xff] }
 0x7d9   :  { %4450 = vst.msk [vmem:[#allocation3 + $0xd8] sm:$0xff] %vm84_vm0, %v11261_v46  ;;  %v4523_v56 = vld [vmem:[#allocation2 + $0x288] sm:$0xff] }
 0x7da   :  { %4440 = vst.msk [vmem:[#allocation3 + $0x88] sm:$0xff] %vm84_vm0, %v11265_v62 }
 0x7db   :  { %4445 = vst.msk [vmem:[#allocation3 + $0xb0] sm:$0xff] %vm84_vm0, %v11269_v6 }
 0x7dc   :  { %4453 = vst.msk [vmem:[#allocation3 + $0xf0] sm:$0xff] %vm84_vm0, %v11273_v45 }
 0x7dd   :  { %4443 = vst.msk [vmem:[#allocation3 + $0xa0] sm:$0xff] %vm84_vm0, %v11277_v21 }
 0x7de   :  { %4448 = vst.msk [vmem:[#allocation3 + $0xc8] sm:$0xff] %vm84_vm0, %v11281_v24  ;;  %4683 = vrot.lane.b32.xlu0 %v4521_v22, %s8551_s14  ;;  %v11424_v22 = vld [vmem:[#allocation2 + $0x3e7] sm:$0xff] }
 0x7df   :  { %4446 = vst.msk [vmem:[#allocation3 + $0xb8] sm:$0xff] %vm84_vm0, %v11287_v26 }
 0x7e0   :  { %4451 = vst.msk [vmem:[#allocation3 + $0xe0] sm:$0xff] %vm84_vm0, %v11292_v42  ;;  %4675 = vrot.lane.b32.xlu2 %v4517_v47, %s8551_s14  ;;  %4673 = vrot.lane.b32.xlu1 %v4516_v3, %s8551_s14  ;;  %v11415_v47 = vld [vmem:[#allocation2 + $0x38f] sm:$0xff] }
 0x7e1   :  { %4459 = vst.msk [vmem:[#allocation3 + $0x120] sm:$0xff] %vm84_vm0, %v11296_v14  ;;  %v4527_v3 = vld [vmem:[#allocation2 + $0x2c8] sm:$0xff] }
 0x7e2   :  { %4449 = vst.msk [vmem:[#allocation3 + $0xd0] sm:$0xff] %vm84_vm0, %v11300_v59 }
 0x7e3   :  { %4454 = vst.msk [vmem:[#allocation3 + $0xf8] sm:$0xff] %vm84_vm0, %v11304_v53 }
 0x7e4   :  { %4462 = vst.msk [vmem:[#allocation3 + $0x138] sm:$0xff] %vm84_vm0, %v11308_v13 }
 0x7e5   :  { %4452 = vst.msk [vmem:[#allocation3 + $0xe8] sm:$0xff] %vm84_vm0, %v11312_v36 }
 0x7e6   :  { %4457 = vst.msk [vmem:[#allocation3 + $0x110] sm:$0xff] %vm84_vm0, %v11316_v54  ;;  %4689 = vrot.lane.b32.xlu0 %v4524_v52, %s8551_s14  ;;  %v11436_v52 = vld [vmem:[#allocation2 + $0x3ef] sm:$0xff] }
 0x7e7   :  { %4465 = vst.msk [vmem:[#allocation3 + $0x150] sm:$0xff] %vm84_vm0, %v11322_v63 }
 0x7e8   :  { %4460 = vst.msk [vmem:[#allocation3 + $0x128] sm:$0xff] %vm84_vm0, %v11327_v25  ;;  %4681 = vrot.lane.b32.xlu2 %v4520_v18, %s8551_s14  ;;  %4679 = vrot.lane.b32.xlu1 %v4519_v61, %s8551_s14  ;;  %v11433_v61 = vld [vmem:[#allocation2 + $0x40f] sm:$0xff] }
 0x7e9   :  { %4468 = vst.msk [vmem:[#allocation3 + $0x168] sm:$0xff] %vm84_vm0, %v11331_v20 }
 0x7ea   :  { %4458 = vst.msk [vmem:[#allocation3 + $0x118] sm:$0xff] %vm84_vm0, %v11335_v41 }
 0x7eb   :  { %4463 = vst.msk [vmem:[#allocation3 + $0x140] sm:$0xff] %vm84_vm0, %v11339_v37 }
 0x7ec   :  { %4471 = vst.msk [vmem:[#allocation3 + $0x180] sm:$0xff] %vm84_vm0, %v11343_v50 }
 0x7ed   :  { %4424 = vst.msk [vmem:[#allocation3 + $0x8] sm:$0xff] %vm84_vm0, %v4360_v17 }
 0x7ee   :  { %4809 = vst.msk [vmem:[#allocation3 + $0x8] sm:$0xff] %vm4807_vm15, %v4618_v8  ;;  %4695 = vrot.lane.b32.xlu0 %v4527_v3, %s8551_s14  ;;  %v11429_v8 = vld [vmem:[#allocation2 + $0x3c7] sm:$0xff] }
 0x7ef   :  { %4461 = vst.msk [vmem:[#allocation3 + $0x130] sm:$0xff] %vm84_vm0, %v11353_v39  ;;  %v4525_v3 = vld [vmem:[#allocation2 + $0x2a8] sm:$0xff] }
 0x7f0   :  { %4466 = vst.msk [vmem:[#allocation3 + $0x158] sm:$0xff] %vm84_vm0, %v11357_v34  ;;  %4687 = vrot.lane.b32.xlu2 %v4523_v56, %s8551_s14  ;;  %4685 = vrot.lane.b32.xlu1 %v4522_v55, %s8551_s14  ;;  %v11440_v56 = vld [vmem:[#allocation2 + $0x427] sm:$0xff]  ;;  %v4526_v55 = vld [vmem:[#allocation2 + $0x2b0] sm:$0xff] }
 0x7f1   :  { %4474 = vst.msk [vmem:[#allocation3 + $0x198] sm:$0xff] %vm84_vm0, %v11360_v30 }
 0x7f2   :  { %4464 = vst.msk [vmem:[#allocation3 + $0x148] sm:$0xff] %vm84_vm0, %v11364_v40  ;;  %v4622_v17 = vpop.permute.xlu2 %4621 }
 0x7f3   :  { %4469 = vst.msk [vmem:[#allocation3 + $0x170] sm:$0xff] %vm84_vm0, %v11368_v4 }
 0x7f4   :  { %4477 = vst.msk [vmem:[#allocation3 + $0x1b0] sm:$0xff] %vm84_vm0, %v11372_v5 }
 0x7f5   :  { %4467 = vst.msk [vmem:[#allocation3 + $0x160] sm:$0xff] %vm84_vm0, %v11376_v27 }
 0x7f6   :  { %4472 = vst.msk [vmem:[#allocation3 + $0x188] sm:$0xff] %vm84_vm0, %v11380_v31 }
 0x7f7   :  { %4480 = vst.msk [vmem:[#allocation3 + $0x1c8] sm:$0xff] %vm84_vm0, %v11386_v10 }
 0x7f8   :  { %13317 = vst [vmem:[#allocation4_spill] sm:$0xff] %v11399_v11  ;;  %4693 = vrot.lane.b32.xlu2 %v4526_v55, %s8551_s14  ;;  %4691 = vrot.lane.b32.xlu1 %v4525_v3, %s8551_s14  ;;  %v4533_v55 = vld [vmem:[#allocation2 + $0x328] sm:$0xff] }
 0x7f9   :  { %4470 = vst.msk [vmem:[#allocation3 + $0x178] sm:$0xff] %vm84_vm0, %v11391_v2 }
 0x7fa   :  { %4475 = vst.msk [vmem:[#allocation3 + $0x1a0] sm:$0xff] %vm84_vm0, %v11395_v0 }
 0x7fb   :  { %4483 = vst.msk [vmem:[#allocation3 + $0x1e0] sm:$0xff] %vm84_vm0, %v11399_v11  ;;  %v4528_v11 = vld [vmem:[#allocation2 + $0x2d0] sm:$0xff] }
 0x7fc   :  { %13318 = vst [vmem:[#allocation5_spill] sm:$0xff] %v11411_v44 }
 0x7fd   :  { %4473 = vst.msk [vmem:[#allocation3 + $0x190] sm:$0xff] %vm84_vm0, %v11403_v60 }
 0x7fe   :  { %4478 = vst.msk [vmem:[#allocation3 + $0x1b8] sm:$0xff] %vm84_vm0, %v11407_v43 }
 0x7ff   :  { %4486 = vst.msk [vmem:[#allocation3 + $0x1f8] sm:$0xff] %vm84_vm0, %v11411_v44  ;;  %v4529_v44 = vld [vmem:[#allocation2 + $0x2e8] sm:$0xff] }
 0x800   :  { %4476 = vst.msk [vmem:[#allocation3 + $0x1a8] sm:$0xff] %vm84_vm0, %v11415_v47  ;;  %v4624_v18 = vpop.permute.xlu0 %4623  ;;  %4699 = vrot.lane.b32.xlu2 %v4529_v44, %s8551_s14  ;;  %4697 = vrot.lane.b32.xlu1 %v4528_v11, %s8551_s14  ;;  %v4535_v44 = vld [vmem:[#allocation2 + $0x348] sm:$0xff] }
 0x801   :  { %4811 = vst.msk [vmem:[#allocation3 + $0x18] sm:$0xff] %vm4807_vm15, %v4622_v17  ;;  %v4530_v17 = vld [vmem:[#allocation2 + $0x2f0] sm:$0xff] }
 0x802   :  { %4481 = vst.msk [vmem:[#allocation3 + $0x1d0] sm:$0xff] %vm84_vm0, %v11424_v22  ;;  %4701 = vrot.lane.b32.xlu0 %v4530_v17, %s8551_s14  ;;  %v4531_v17 = vld [vmem:[#allocation2 + $0x308] sm:$0xff] }
 0x803   :  { %13319 = vst [vmem:[#allocation6_spill] sm:$0xff] %v11433_v61 }
 0x804   :  { %4812 = vst.msk [vmem:[#allocation3 + $0x20] sm:$0xff] %vm4807_vm15, %v4624_v18  ;;  %v4628_v18 = vpop.permute.xlu2 %4627 }
 0x805   :  { %13320 = vst [vmem:[#allocation7_spill] sm:$0xff] %v11436_v52 }
 0x806   :  { %4479 = vst.msk [vmem:[#allocation3 + $0x1c0] sm:$0xff] %vm84_vm0, %v11429_v8 }
 0x807   :  { %13321 = vst [vmem:[#allocation8_spill] sm:$0xff] %v11440_v56 }
 0x808   :  { %4484 = vst.msk [vmem:[#allocation3 + $0x1e8] sm:$0xff] %vm84_vm0, %v11433_v61  ;;  %4703 = vrot.lane.b32.xlu1 %v4531_v17, %s8551_s14  ;;  %v4630_v11 = vpop.permute.xlu0 %4629 }
 0x809   :  { %4482 = vst.msk [vmem:[#allocation3 + $0x1d8] sm:$0xff] %vm84_vm0, %v11436_v52  ;;  %v4532_v52 = vld [vmem:[#allocation2 + $0x310] sm:$0xff] }
 0x80a   :  { %4485 = vst.msk [vmem:[#allocation3 + $0x1f0] sm:$0xff] %vm84_vm0, %v11440_v56  ;;  %4707 = vrot.lane.b32.xlu0 %v4533_v55, %s8551_s14  ;;  %4705 = vrot.lane.b32.xlu2 %v4532_v52, %s8551_s14  ;;  %v4536_v56 = vld [vmem:[#allocation2 + $0x350] sm:$0xff]  ;;  %v4620_v61 = vpop.permute.xlu1 %4619  ;;  %v4539_v52 = vld [vmem:[#allocation2 + $0x388] sm:$0xff] }
 0x80b   :  { %4814 = vst.msk [vmem:[#allocation3 + $0x30] sm:$0xff] %vm4807_vm15, %v4628_v18  ;;  %v4534_v55 = vld [vmem:[#allocation2 + $0x330] sm:$0xff] }
 0x80c   :  { %v4634_v3 = vpop.permute.xlu2 %4633  ;;  %4810 = vst.msk [vmem:[#allocation3 + $0x10] sm:$0xff] %vm4807_vm15, %v4620_v61  ;;  %v4538_v61 = vld [vmem:[#allocation2 + $0x370] sm:$0xff] }
 0x80d   :  { %4817 = vst.msk [vmem:[#allocation3 + $0x48] sm:$0xff] %vm4807_vm15, %v4634_v3 }
 0x80e   :  { %4815 = vst.msk [vmem:[#allocation3 + $0x38] sm:$0xff] %vm4807_vm15, %v4630_v11  ;;  %v4542_v11 = vld [vmem:[#allocation2 + $0x3b0] sm:$0xff] }
 0x810   :  { %4709 = vrot.lane.b32.xlu1 %v4534_v55, %s8551_s14  ;;  %v4636_v17 = vpop.permute.xlu0 %4635 }
 0x811   :  { %4818 = vst.msk [vmem:[#allocation3 + $0x50] sm:$0xff] %vm4807_vm15, %v4636_v17  ;;  %v4545_v17 = vld [vmem:[#allocation2 + $0x3e8] sm:$0xff] }
 0x812   :  { %4713 = vrot.lane.b32.xlu0 %v4536_v56, %s8551_s14  ;;  %4711 = vrot.lane.b32.xlu2 %v4535_v44, %s8551_s14  ;;  %v4626_v56 = vpop.permute.xlu1 %4625 }
 0x813   :  { %4813 = vst.msk [vmem:[#allocation3 + $0x28] sm:$0xff] %vm4807_vm15, %v4626_v56  ;;  %v4540_v56 = vld [vmem:[#allocation2 + $0x390] sm:$0xff] }
 0x814   :  { %v4640_v18 = vpop.permute.xlu2 %4639 }
 0x815   :  { %4820 = vst.msk [vmem:[#allocation3 + $0x60] sm:$0xff] %vm4807_vm15, %v4640_v18  ;;  %v4537_v18 = vld [vmem:[#allocation2 + $0x368] sm:$0xff] }
 0x818   :  { %4715 = vrot.lane.b32.xlu1 %v4537_v18, %s8551_s14 }
 0x81a   :  { %4719 = vrot.lane.b32.xlu0 %v4539_v52, %s8551_s14  ;;  %4717 = vrot.lane.b32.xlu2 %v4538_v61, %s8551_s14  ;;  %v4632_v55 = vpop.permute.xlu1 %4631  ;;  %v4642_v52 = vpop.permute.xlu0 %4641  ;;  %v4392_v61 = vld [vmem:[#allocation2 + $0x24f] sm:$0xff] }
 0x81b   :  { %4816 = vst.msk [vmem:[#allocation3 + $0x40] sm:$0xff] %vm4807_vm15, %v4632_v55  ;;  %v4544_v55 = vld [vmem:[#allocation2 + $0x3d0] sm:$0xff] }
 0x81c   :  { %v4646_v3 = vpop.permute.xlu2 %4645  ;;  %4821 = vst.msk [vmem:[#allocation3 + $0x68] sm:$0xff] %vm4807_vm15, %v4642_v52  ;;  %v4543_v52 = vld [vmem:[#allocation2 + $0x3c8] sm:$0xff] }
 0x81d   :  { %4823 = vst.msk [vmem:[#allocation3 + $0x78] sm:$0xff] %vm4807_vm15, %v4646_v3  ;;  %v4541_v3 = vld [vmem:[#allocation2 + $0x3a8] sm:$0xff] }
 0x81e   :  { %4456 = vst.msk [vmem:[#allocation3 + $0x108] sm:$0xff] %vm84_vm0, %v4392_v61 }
 0x820   :  { %4721 = vrot.lane.b32.xlu1 %v4540_v56, %s8551_s14 }
 0x822   :  { %4725 = vrot.lane.b32.xlu0 %v4542_v11, %s8551_s14  ;;  %4723 = vrot.lane.b32.xlu2 %v4541_v3, %s8551_s14  ;;  %v4638_v11 = vpop.permute.xlu1 %4637  ;;  %v4548_v3 = vld [vmem:[#allocation2 + $0x410] sm:$0xff] }
 0x823   :  { %4819 = vst.msk [vmem:[#allocation3 + $0x58] sm:$0xff] %vm4807_vm15, %v4638_v11  ;;  %v4547_v11 = vld [vmem:[#allocation2 + $0x408] sm:$0xff] }
 0x824   :  { %v4652_v44 = vpop.permute.xlu2 %4651 }
 0x825   :  { %4826 = vst.msk [vmem:[#allocation3 + $0x90] sm:$0xff] %vm4807_vm15, %v4652_v44  ;;  %v4648_v44 = vpop.permute.xlu0 %4647 }
 0x826   :  { %4824 = vst.msk [vmem:[#allocation3 + $0x80] sm:$0xff] %vm4807_vm15, %v4648_v44  ;;  %v4546_v44 = vld [vmem:[#allocation2 + $0x3f0] sm:$0xff] }
 0x828   :  { %4727 = vrot.lane.b32.xlu1 %v4543_v52, %s8551_s14 }
 0x82a   :  { %4731 = vrot.lane.b32.xlu0 %v4545_v17, %s8551_s14  ;;  %4729 = vrot.lane.b32.xlu2 %v4544_v55, %s8551_s14  ;;  %v4644_v17 = vpop.permute.xlu1 %4643 }
 0x82b   :  { %4822 = vst.msk [vmem:[#allocation3 + $0x70] sm:$0xff] %vm4807_vm15, %v4644_v17  ;;  %v4549_v17 = vld [vmem:[#allocation2 + $0x428] sm:$0xff] }
 0x82c   :  { %v4658_v18 = vpop.permute.xlu2 %4657 }
 0x82d   :  { %4829 = vst.msk [vmem:[#allocation3 + $0xa8] sm:$0xff] %vm4807_vm15, %v4658_v18  ;;  %v4654_v61 = vpop.permute.xlu0 %4653  ;;  %v4872_v18 = vld [vmem:[#allocation2 + $0x9] sm:$0xff] }
 0x82e   :  { %4827 = vst.msk [vmem:[#allocation3 + $0x98] sm:$0xff] %vm4807_vm15, %v4654_v61  ;;  %v4875_v61 = vld [vmem:[#allocation2 + $0x31] sm:$0xff] }
 0x830   :  { %4733 = vrot.lane.b32.xlu1 %v4546_v44, %s8551_s14 }
 0x832   :  { %4737 = vrot.lane.b32.xlu0 %v4548_v3, %s8551_s14  ;;  %4735 = vrot.lane.b32.xlu2 %v4547_v11, %s8551_s14  ;;  %v4650_v52 = vpop.permute.xlu1 %4649 }
 0x833   :  { %4825 = vst.msk [vmem:[#allocation3 + $0x88] sm:$0xff] %vm4807_vm15, %v4650_v52  ;;  %v4873_v52 = vld [vmem:[#allocation2 + $0x11] sm:$0xff] }
 0x834   :  { %v4664_v56 = vpop.permute.xlu2 %4663 }
 0x835   :  { %4832 = vst.msk [vmem:[#allocation3 + $0xc0] sm:$0xff] %vm4807_vm15, %v4664_v56  ;;  %v4660_v3 = vpop.permute.xlu0 %4659  ;;  %v4550_v56 = vld [vmem:[#allocation2 + $0x430] sm:$0xff] }
 0x836   :  { %4830 = vst.msk [vmem:[#allocation3 + $0xb0] sm:$0xff] %vm4807_vm15, %v4660_v3  ;;  %v4874_v3 = vld [vmem:[#allocation2 + $0x29] sm:$0xff] }
 0x838   :  { %4739 = vrot.lane.b32.xlu1 %v4549_v17, %s8551_s14 }
 0x83a   :  { %5000 = vrot.lane.b32.xlu0 %v4872_v18, %s8553_s0  ;;  %4741 = vrot.lane.b32.xlu2 %v4550_v56, %s8551_s14  ;;  %v4656_v18 = vpop.permute.xlu1 %4655  ;;  %v4878_v56 = vld [vmem:[#allocation2 + $0x69] sm:$0xff]  ;;  %s8559_s14 = smov 48  }
 0x83b   :  { %4828 = vst.msk [vmem:[#allocation3 + $0xa0] sm:$0xff] %vm4807_vm15, %v4656_v18  ;;  %v4877_v18 = vld [vmem:[#allocation2 + $0x51] sm:$0xff] }
 0x83c   :  { %v4670_v55 = vpop.permute.xlu2 %4669 }
 0x83d   :  { %4835 = vst.msk [vmem:[#allocation3 + $0xd8] sm:$0xff] %vm4807_vm15, %v4670_v55  ;;  %v4666_v44 = vpop.permute.xlu0 %4665  ;;  %v4391_v55 = vld [vmem:[#allocation2 + $0x247] sm:$0xff] }
 0x83e   :  { %4833 = vst.msk [vmem:[#allocation3 + $0xc8] sm:$0xff] %vm4807_vm15, %v4666_v44  ;;  %v4876_v44 = vld [vmem:[#allocation2 + $0x49] sm:$0xff] }
 0x83f   :  { %4455 = vst.msk [vmem:[#allocation3 + $0x100] sm:$0xff] %vm84_vm0, %v4391_v55  ;;  %v4881_v55 = vld [vmem:[#allocation2 + $0x91] sm:$0xff]  ;;  %vm5192_vm0 = vcmask 195712  }
 0x840   :  { %5002 = vrot.lane.b32.xlu1 %v4873_v52, %s8553_s0 }
 0x842   :  { %5006 = vrot.lane.b32.xlu0 %v4875_v61, %s8553_s0  ;;  %5004 = vrot.lane.b32.xlu2 %v4874_v3, %s8553_s0  ;;  %v4662_v61 = vpop.permute.xlu1 %4661 }
 0x843   :  { %4831 = vst.msk [vmem:[#allocation3 + $0xb8] sm:$0xff] %vm4807_vm15, %v4662_v61  ;;  %v4879_v61 = vld [vmem:[#allocation2 + $0x71] sm:$0xff] }
 0x844   :  { %v4676_v11 = vpop.permute.xlu2 %4675 }
 0x845   :  { %4838 = vst.msk [vmem:[#allocation3 + $0xf0] sm:$0xff] %vm4807_vm15, %v4676_v11  ;;  %v4672_v11 = vpop.permute.xlu0 %4671 }
 0x846   :  { %4836 = vst.msk [vmem:[#allocation3 + $0xe0] sm:$0xff] %vm4807_vm15, %v4672_v11  ;;  %v4884_v11 = vld [vmem:[#allocation2 + $0xc9] sm:$0xff] }
 0x848   :  { %5008 = vrot.lane.b32.xlu1 %v4876_v44, %s8553_s0 }
 0x84a   :  { %5012 = vrot.lane.b32.xlu0 %v4878_v56, %s8553_s0  ;;  %5010 = vrot.lane.b32.xlu2 %v4877_v18, %s8553_s0  ;;  %v4668_v3 = vpop.permute.xlu1 %4667 }
 0x84b   :  { %4834 = vst.msk [vmem:[#allocation3 + $0xd0] sm:$0xff] %vm4807_vm15, %v4668_v3  ;;  %v4882_v3 = vld [vmem:[#allocation2 + $0xa9] sm:$0xff] }
 0x84c   :  { %v4682_v17 = vpop.permute.xlu2 %4681 }
 0x84d   :  { %4841 = vst.msk [vmem:[#allocation3 + $0x108] sm:$0xff] %vm4807_vm15, %v4682_v17  ;;  %v4678_v56 = vpop.permute.xlu0 %4677  ;;  %v4880_v17 = vld [vmem:[#allocation2 + $0x89] sm:$0xff] }
 0x84e   :  { %4839 = vst.msk [vmem:[#allocation3 + $0xf8] sm:$0xff] %vm4807_vm15, %v4678_v56  ;;  %v4887_v56 = vld [vmem:[#allocation2 + $0xf1] sm:$0xff] }
 0x850   :  { %5014 = vrot.lane.b32.xlu1 %v4879_v61, %s8553_s0 }
 0x852   :  { %5018 = vrot.lane.b32.xlu0 %v4881_v55, %s8553_s0  ;;  %5016 = vrot.lane.b32.xlu2 %v4880_v17, %s8553_s0  ;;  %v4674_v44 = vpop.permute.xlu1 %4673 }
 0x853   :  { %4837 = vst.msk [vmem:[#allocation3 + $0xe8] sm:$0xff] %vm4807_vm15, %v4674_v44  ;;  %v4885_v44 = vld [vmem:[#allocation2 + $0xd1] sm:$0xff] }
 0x854   :  { %v4688_v52 = vpop.permute.xlu2 %4687 }
 0x855   :  { %4844 = vst.msk [vmem:[#allocation3 + $0x120] sm:$0xff] %vm4807_vm15, %v4688_v52  ;;  %v4684_v55 = vpop.permute.xlu0 %4683  ;;  %v4883_v52 = vld [vmem:[#allocation2 + $0xb1] sm:$0xff] }
 0x856   :  { %4842 = vst.msk [vmem:[#allocation3 + $0x110] sm:$0xff] %vm4807_vm15, %v4684_v55  ;;  %v4890_v55 = vld [vmem:[#allocation2 + $0x129] sm:$0xff] }
 0x858   :  { %5020 = vrot.lane.b32.xlu1 %v4882_v3, %s8553_s0 }
 0x85a   :  { %5024 = vrot.lane.b32.xlu0 %v4884_v11, %s8553_s0  ;;  %5022 = vrot.lane.b32.xlu2 %v4883_v52, %s8553_s0  ;;  %v4680_v61 = vpop.permute.xlu1 %4679 }
 0x85b   :  { %4840 = vst.msk [vmem:[#allocation3 + $0x100] sm:$0xff] %vm4807_vm15, %v4680_v61  ;;  %v4888_v61 = vld [vmem:[#allocation2 + $0x109] sm:$0xff] }
 0x85c   :  { %v4694_v18 = vpop.permute.xlu2 %4693 }
 0x85d   :  { %4847 = vst.msk [vmem:[#allocation3 + $0x138] sm:$0xff] %vm4807_vm15, %v4694_v18  ;;  %v4690_v11 = vpop.permute.xlu0 %4689  ;;  %v4886_v18 = vld [vmem:[#allocation2 + $0xe9] sm:$0xff] }
 0x85e   :  { %4845 = vst.msk [vmem:[#allocation3 + $0x128] sm:$0xff] %vm4807_vm15, %v4690_v11  ;;  %v4893_v11 = vld [vmem:[#allocation2 + $0x151] sm:$0xff] }
 0x860   :  { %5026 = vrot.lane.b32.xlu1 %v4885_v44, %s8553_s0 }
 0x862   :  { %5030 = vrot.lane.b32.xlu0 %v4887_v56, %s8553_s0  ;;  %5028 = vrot.lane.b32.xlu2 %v4886_v18, %s8553_s0  ;;  %v4686_v3 = vpop.permute.xlu1 %4685 }
 0x863   :  { %4843 = vst.msk [vmem:[#allocation3 + $0x118] sm:$0xff] %vm4807_vm15, %v4686_v3  ;;  %v4891_v3 = vld [vmem:[#allocation2 + $0x131] sm:$0xff] }
 0x864   :  { %v4700_v17 = vpop.permute.xlu2 %4699 }
 0x865   :  { %4850 = vst.msk [vmem:[#allocation3 + $0x150] sm:$0xff] %vm4807_vm15, %v4700_v17  ;;  %v4696_v56 = vpop.permute.xlu0 %4695  ;;  %v4889_v17 = vld [vmem:[#allocation2 + $0x111] sm:$0xff] }
 0x866   :  { %4848 = vst.msk [vmem:[#allocation3 + $0x140] sm:$0xff] %vm4807_vm15, %v4696_v56  ;;  %v4896_v56 = vld [vmem:[#allocation2 + $0x189] sm:$0xff] }
 0x868   :  { %5032 = vrot.lane.b32.xlu1 %v4888_v61, %s8553_s0 }
 0x86a   :  { %5036 = vrot.lane.b32.xlu0 %v4890_v55, %s8553_s0  ;;  %5034 = vrot.lane.b32.xlu2 %v4889_v17, %s8553_s0  ;;  %v4692_v44 = vpop.permute.xlu1 %4691 }
 0x86b   :  { %4846 = vst.msk [vmem:[#allocation3 + $0x130] sm:$0xff] %vm4807_vm15, %v4692_v44  ;;  %v4894_v44 = vld [vmem:[#allocation2 + $0x169] sm:$0xff] }
 0x86c   :  { %v4706_v52 = vpop.permute.xlu2 %4705 }
 0x86d   :  { %4853 = vst.msk [vmem:[#allocation3 + $0x168] sm:$0xff] %vm4807_vm15, %v4706_v52  ;;  %v4892_v52 = vld [vmem:[#allocation2 + $0x149] sm:$0xff] }
 0x870   :  { %5038 = vrot.lane.b32.xlu1 %v4891_v3, %s8553_s0 }
 0x872   :  { %5042 = vrot.lane.b32.xlu0 %v4893_v11, %s8553_s0  ;;  %5040 = vrot.lane.b32.xlu2 %v4892_v52, %s8553_s0  ;;  %v4698_v61 = vpop.permute.xlu1 %4697 }
 0x873   :  { %4849 = vst.msk [vmem:[#allocation3 + $0x148] sm:$0xff] %vm4807_vm15, %v4698_v61  ;;  %v4897_v61 = vld [vmem:[#allocation2 + $0x191] sm:$0xff] }
 0x874   :  { %v4712_v18 = vpop.permute.xlu2 %4711  ;;  %v4702_v55 = vpop.permute.xlu0 %4701 }
 0x875   :  { %4856 = vst.msk [vmem:[#allocation3 + $0x180] sm:$0xff] %vm4807_vm15, %v4712_v18  ;;  %v4895_v18 = vld [vmem:[#allocation2 + $0x171] sm:$0xff] }
 0x876   :  { %4851 = vst.msk [vmem:[#allocation3 + $0x158] sm:$0xff] %vm4807_vm15, %v4702_v55  ;;  %v4899_v55 = vld [vmem:[#allocation2 + $0x1b1] sm:$0xff] }
 0x878   :  { %5044 = vrot.lane.b32.xlu1 %v4894_v44, %s8553_s0 }
 0x87a   :  { %5048 = vrot.lane.b32.xlu0 %v4896_v56, %s8553_s0  ;;  %5046 = vrot.lane.b32.xlu2 %v4895_v18, %s8553_s0  ;;  %v4704_v3 = vpop.permute.xlu1 %4703 }
 0x87b   :  { %4852 = vst.msk [vmem:[#allocation3 + $0x160] sm:$0xff] %vm4807_vm15, %v4704_v3  ;;  %v4901_v3 = vld [vmem:[#allocation2 + $0x1d1] sm:$0xff] }
 0x87c   :  { %v4718_v17 = vpop.permute.xlu2 %4717  ;;  %v4708_v11 = vpop.permute.xlu0 %4707 }
 0x87d   :  { %4859 = vst.msk [vmem:[#allocation3 + $0x198] sm:$0xff] %vm4807_vm15, %v4718_v17  ;;  %v4898_v17 = vld [vmem:[#allocation2 + $0x1a9] sm:$0xff] }
 0x87e   :  { %4854 = vst.msk [vmem:[#allocation3 + $0x170] sm:$0xff] %vm4807_vm15, %v4708_v11  ;;  %v4902_v11 = vld [vmem:[#allocation2 + $0x1e9] sm:$0xff] }
 0x880   :  { %5050 = vrot.lane.b32.xlu1 %v4897_v61, %s8553_s0 }
 0x882   :  { %5054 = vrot.lane.b32.xlu0 %v4899_v55, %s8553_s0  ;;  %5052 = vrot.lane.b32.xlu2 %v4898_v17, %s8553_s0  ;;  %v4710_v44 = vpop.permute.xlu1 %4709 }
 0x883   :  { %4855 = vst.msk [vmem:[#allocation3 + $0x178] sm:$0xff] %vm4807_vm15, %v4710_v44  ;;  %v4903_v44 = vld [vmem:[#allocation2 + $0x1f1] sm:$0xff] }
 0x884   :  { %v4724_v52 = vpop.permute.xlu2 %4723  ;;  %v4714_v56 = vpop.permute.xlu0 %4713 }
 0x885   :  { %4862 = vst.msk [vmem:[#allocation3 + $0x1b0] sm:$0xff] %vm4807_vm15, %v4724_v52  ;;  %v4905_v52 = vld [vmem:[#allocation2 + $0x251] sm:$0xff] }
 0x886   :  { %4857 = vst.msk [vmem:[#allocation3 + $0x188] sm:$0xff] %vm4807_vm15, %v4714_v56  ;;  %v4900_v56 = vld [vmem:[#allocation2 + $0x1c9] sm:$0xff] }
 0x888   :  { %5056 = vrot.lane.b32.xlu1 %v4900_v56, %s8553_s0 }
 0x88a   :  { %5060 = vrot.lane.b32.xlu0 %v4902_v11, %s8553_s0  ;;  %5058 = vrot.lane.b32.xlu2 %v4901_v3, %s8553_s0  ;;  %v4716_v61 = vpop.permute.xlu1 %4715 }
 0x88b   :  { %4858 = vst.msk [vmem:[#allocation3 + $0x190] sm:$0xff] %vm4807_vm15, %v4716_v61  ;;  %v4906_v61 = vld [vmem:[#allocation2 + $0x269] sm:$0xff] }
 0x88c   :  { %v4730_v18 = vpop.permute.xlu2 %4729  ;;  %v4720_v55 = vpop.permute.xlu0 %4719 }
 0x88d   :  { %4865 = vst.msk [vmem:[#allocation3 + $0x1c8] sm:$0xff] %vm4807_vm15, %v4730_v18  ;;  %v4904_v18 = vld [vmem:[#allocation2 + $0x249] sm:$0xff] }
 0x88e   :  { %4860 = vst.msk [vmem:[#allocation3 + $0x1a0] sm:$0xff] %vm4807_vm15, %v4720_v55  ;;  %v4908_v55 = vld [vmem:[#allocation2 + $0x289] sm:$0xff] }
 0x890   :  { %5062 = vrot.lane.b32.xlu1 %v4903_v44, %s8553_s0 }
 0x892   :  { %5066 = vrot.lane.b32.xlu0 %v4905_v52, %s8553_s0  ;;  %5064 = vrot.lane.b32.xlu2 %v4904_v18, %s8553_s0  ;;  %v4722_v52 = vpop.permute.xlu1 %4721 }
 0x893   :  { %4861 = vst.msk [vmem:[#allocation3 + $0x1a8] sm:$0xff] %vm4807_vm15, %v4722_v52  ;;  %v4909_v52 = vld [vmem:[#allocation2 + $0x291] sm:$0xff] }
 0x894   :  { %v4736_v17 = vpop.permute.xlu2 %4735  ;;  %v4726_v11 = vpop.permute.xlu0 %4725 }
 0x895   :  { %4868 = vst.msk [vmem:[#allocation3 + $0x1e0] sm:$0xff] %vm4807_vm15, %v4736_v17  ;;  %v4907_v17 = vld [vmem:[#allocation2 + $0x271] sm:$0xff] }
 0x896   :  { %4863 = vst.msk [vmem:[#allocation3 + $0x1b8] sm:$0xff] %vm4807_vm15, %v4726_v11  ;;  %v4911_v11 = vld [vmem:[#allocation2 + $0x2b1] sm:$0xff] }
 0x898   :  { %5068 = vrot.lane.b32.xlu1 %v4906_v61, %s8553_s0 }
 0x89a   :  { %5072 = vrot.lane.b32.xlu0 %v4908_v55, %s8553_s0  ;;  %5070 = vrot.lane.b32.xlu2 %v4907_v17, %s8553_s0  ;;  %v4728_v44 = vpop.permute.xlu1 %4727 }
 0x89b   :  { %4864 = vst.msk [vmem:[#allocation3 + $0x1c0] sm:$0xff] %vm4807_vm15, %v4728_v44  ;;  %v4912_v44 = vld [vmem:[#allocation2 + $0x2c9] sm:$0xff] }
 0x89c   :  { %v4742_v3 = vpop.permute.xlu2 %4741  ;;  %v4732_v56 = vpop.permute.xlu0 %4731 }
 0x89d   :  { %4871 = vst.msk [vmem:[#allocation3 + $0x1f8] sm:$0xff] %vm4807_vm15, %v4742_v3  ;;  %v4910_v3 = vld [vmem:[#allocation2 + $0x2a9] sm:$0xff] }
 0x89e   :  { %4866 = vst.msk [vmem:[#allocation3 + $0x1d0] sm:$0xff] %vm4807_vm15, %v4732_v56  ;;  %v4914_v56 = vld [vmem:[#allocation2 + $0x2e9] sm:$0xff] }
 0x8a0   :  { %5074 = vrot.lane.b32.xlu1 %v4909_v52, %s8553_s0 }
 0x8a2   :  { %5078 = vrot.lane.b32.xlu0 %v4911_v11, %s8553_s0  ;;  %5076 = vrot.lane.b32.xlu2 %v4910_v3, %s8553_s0  ;;  %v4734_v61 = vpop.permute.xlu1 %4733 }
 0x8a3   :  { %4867 = vst.msk [vmem:[#allocation3 + $0x1d8] sm:$0xff] %vm4807_vm15, %v4734_v61  ;;  %v4915_v61 = vld [vmem:[#allocation2 + $0x2f1] sm:$0xff] }
 0x8a4   :  { %v5005_v18 = vpop.permute.xlu2 %5004  ;;  %v4738_v55 = vpop.permute.xlu0 %4737 }
 0x8a5   :  { %5195 = vst.msk [vmem:[#allocation3 + $0x10] sm:$0xff] %vm5192_vm0, %v5005_v18  ;;  %v4913_v18 = vld [vmem:[#allocation2 + $0x2d1] sm:$0xff] }
 0x8a6   :  { %4869 = vst.msk [vmem:[#allocation3 + $0x1e8] sm:$0xff] %vm4807_vm15, %v4738_v55  ;;  %v4917_v55 = vld [vmem:[#allocation2 + $0x311] sm:$0xff] }
 0x8a8   :  { %5080 = vrot.lane.b32.xlu1 %v4912_v44, %s8553_s0 }
 0x8aa   :  { %5084 = vrot.lane.b32.xlu0 %v4914_v56, %s8553_s0  ;;  %5082 = vrot.lane.b32.xlu2 %v4913_v18, %s8553_s0  ;;  %v4740_v52 = vpop.permute.xlu1 %4739 }
 0x8ab   :  { %4870 = vst.msk [vmem:[#allocation3 + $0x1f0] sm:$0xff] %vm4807_vm15, %v4740_v52  ;;  %v4918_v52 = vld [vmem:[#allocation2 + $0x329] sm:$0xff] }
 0x8ac   :  { %v5011_v17 = vpop.permute.xlu2 %5010  ;;  %v5001_v11 = vpop.permute.xlu0 %5000 }
 0x8ad   :  { %5198 = vst.msk [vmem:[#allocation3 + $0x28] sm:$0xff] %vm5192_vm0, %v5011_v17  ;;  %v4916_v17 = vld [vmem:[#allocation2 + $0x309] sm:$0xff] }
 0x8ae   :  { %5193 = vst.msk [vmem:[#allocation3] sm:$0xff] %vm5192_vm0, %v5001_v11  ;;  %v4920_v11 = vld [vmem:[#allocation2 + $0x349] sm:$0xff] }
 0x8b0   :  { %5086 = vrot.lane.b32.xlu1 %v4915_v61, %s8553_s0 }
 0x8b2   :  { %5090 = vrot.lane.b32.xlu0 %v4917_v55, %s8553_s0  ;;  %5088 = vrot.lane.b32.xlu2 %v4916_v17, %s8553_s0  ;;  %v5003_v44 = vpop.permute.xlu1 %5002 }
 0x8b3   :  { %5194 = vst.msk [vmem:[#allocation3 + $0x8] sm:$0xff] %vm5192_vm0, %v5003_v44  ;;  %v4921_v44 = vld [vmem:[#allocation2 + $0x351] sm:$0xff] }
 0x8b4   :  { %v5017_v3 = vpop.permute.xlu2 %5016  ;;  %v5007_v56 = vpop.permute.xlu0 %5006 }
 0x8b5   :  { %5201 = vst.msk [vmem:[#allocation3 + $0x40] sm:$0xff] %vm5192_vm0, %v5017_v3  ;;  %v4919_v3 = vld [vmem:[#allocation2 + $0x331] sm:$0xff] }
 0x8b6   :  { %5196 = vst.msk [vmem:[#allocation3 + $0x18] sm:$0xff] %vm5192_vm0, %v5007_v56  ;;  %v4923_v56 = vld [vmem:[#allocation2 + $0x371] sm:$0xff] }
 0x8b8   :  { %5092 = vrot.lane.b32.xlu1 %v4918_v52, %s8553_s0 }
 0x8ba   :  { %5096 = vrot.lane.b32.xlu0 %v4920_v11, %s8553_s0  ;;  %5094 = vrot.lane.b32.xlu2 %v4919_v3, %s8553_s0  ;;  %v5009_v61 = vpop.permute.xlu1 %5008 }
 0x8bb   :  { %5197 = vst.msk [vmem:[#allocation3 + $0x20] sm:$0xff] %vm5192_vm0, %v5009_v61  ;;  %v4924_v61 = vld [vmem:[#allocation2 + $0x389] sm:$0xff] }
 0x8bc   :  { %v5023_v18 = vpop.permute.xlu2 %5022  ;;  %v5013_v55 = vpop.permute.xlu0 %5012 }
 0x8bd   :  { %5204 = vst.msk [vmem:[#allocation3 + $0x58] sm:$0xff] %vm5192_vm0, %v5023_v18  ;;  %v4922_v18 = vld [vmem:[#allocation2 + $0x369] sm:$0xff] }
 0x8be   :  { %5199 = vst.msk [vmem:[#allocation3 + $0x30] sm:$0xff] %vm5192_vm0, %v5013_v55  ;;  %v4926_v55 = vld [vmem:[#allocation2 + $0x3a9] sm:$0xff] }
 0x8c0   :  { %5098 = vrot.lane.b32.xlu1 %v4921_v44, %s8553_s0 }
 0x8c2   :  { %5102 = vrot.lane.b32.xlu0 %v4923_v56, %s8553_s0  ;;  %5100 = vrot.lane.b32.xlu2 %v4922_v18, %s8553_s0  ;;  %v5015_v52 = vpop.permute.xlu1 %5014 }
 0x8c3   :  { %5200 = vst.msk [vmem:[#allocation3 + $0x38] sm:$0xff] %vm5192_vm0, %v5015_v52  ;;  %v4927_v52 = vld [vmem:[#allocation2 + $0x3b1] sm:$0xff] }
 0x8c4   :  { %v5029_v17 = vpop.permute.xlu2 %5028  ;;  %v5019_v11 = vpop.permute.xlu0 %5018 }
 0x8c5   :  { %5207 = vst.msk [vmem:[#allocation3 + $0x70] sm:$0xff] %vm5192_vm0, %v5029_v17  ;;  %v4925_v17 = vld [vmem:[#allocation2 + $0x391] sm:$0xff] }
 0x8c6   :  { %5202 = vst.msk [vmem:[#allocation3 + $0x48] sm:$0xff] %vm5192_vm0, %v5019_v11  ;;  %v4929_v11 = vld [vmem:[#allocation2 + $0x3d1] sm:$0xff] }
 0x8c8   :  { %5104 = vrot.lane.b32.xlu1 %v4924_v61, %s8553_s0 }
 0x8ca   :  { %5108 = vrot.lane.b32.xlu0 %v4926_v55, %s8553_s0  ;;  %5106 = vrot.lane.b32.xlu2 %v4925_v17, %s8553_s0  ;;  %v5021_v44 = vpop.permute.xlu1 %5020 }
 0x8cb   :  { %5203 = vst.msk [vmem:[#allocation3 + $0x50] sm:$0xff] %vm5192_vm0, %v5021_v44  ;;  %v4930_v44 = vld [vmem:[#allocation2 + $0x3e9] sm:$0xff] }
 0x8cc   :  { %v5035_v3 = vpop.permute.xlu2 %5034  ;;  %v5025_v56 = vpop.permute.xlu0 %5024 }
 0x8cd   :  { %5210 = vst.msk [vmem:[#allocation3 + $0x88] sm:$0xff] %vm5192_vm0, %v5035_v3  ;;  %v4928_v3 = vld [vmem:[#allocation2 + $0x3c9] sm:$0xff] }
 0x8ce   :  { %5205 = vst.msk [vmem:[#allocation3 + $0x60] sm:$0xff] %vm5192_vm0, %v5025_v56  ;;  %v4932_v56 = vld [vmem:[#allocation2 + $0x409] sm:$0xff] }
 0x8d0   :  { %5110 = vrot.lane.b32.xlu1 %v4927_v52, %s8553_s0 }
 0x8d2   :  { %5114 = vrot.lane.b32.xlu0 %v4929_v11, %s8553_s0  ;;  %5112 = vrot.lane.b32.xlu2 %v4928_v3, %s8553_s0  ;;  %v5027_v61 = vpop.permute.xlu1 %5026 }
 0x8d3   :  { %5206 = vst.msk [vmem:[#allocation3 + $0x68] sm:$0xff] %vm5192_vm0, %v5027_v61  ;;  %v4933_v61 = vld [vmem:[#allocation2 + $0x411] sm:$0xff] }
 0x8d4   :  { %v5041_v18 = vpop.permute.xlu2 %5040  ;;  %v5031_v55 = vpop.permute.xlu0 %5030 }
 0x8d5   :  { %5213 = vst.msk [vmem:[#allocation3 + $0xa0] sm:$0xff] %vm5192_vm0, %v5041_v18  ;;  %v4931_v18 = vld [vmem:[#allocation2 + $0x3f1] sm:$0xff] }
 0x8d6   :  { %5208 = vst.msk [vmem:[#allocation3 + $0x78] sm:$0xff] %vm5192_vm0, %v5031_v55  ;;  %v4935_v55 = vld [vmem:[#allocation2 + $0x431] sm:$0xff] }
 0x8d8   :  { %5116 = vrot.lane.b32.xlu1 %v4930_v44, %s8553_s0 }
 0x8da   :  { %5120 = vrot.lane.b32.xlu0 %v4932_v56, %s8553_s0  ;;  %5118 = vrot.lane.b32.xlu2 %v4931_v18, %s8553_s0  ;;  %v5033_v52 = vpop.permute.xlu1 %5032 }
 0x8db   :  { %5209 = vst.msk [vmem:[#allocation3 + $0x80] sm:$0xff] %vm5192_vm0, %v5033_v52  ;;  %v5288_v52 = vld [vmem:[#allocation2 + $0x20f] sm:$0xff] }
 0x8dc   :  { %v5047_v17 = vpop.permute.xlu2 %5046  ;;  %v5037_v11 = vpop.permute.xlu0 %5036 }
 0x8dd   :  { %5216 = vst.msk [vmem:[#allocation3 + $0xb8] sm:$0xff] %vm5192_vm0, %v5047_v17  ;;  %v4934_v17 = vld [vmem:[#allocation2 + $0x429] sm:$0xff] }
 0x8de   :  { %5211 = vst.msk [vmem:[#allocation3 + $0x90] sm:$0xff] %vm5192_vm0, %v5037_v11 }
 0x8e0   :  { %5122 = vrot.lane.b32.xlu1 %v4933_v61, %s8553_s0 }
 0x8e2   :  { %5126 = vrot.lane.b32.xlu0 %v4935_v55, %s8553_s0  ;;  %5124 = vrot.lane.b32.xlu2 %v4934_v17, %s8553_s0  ;;  %v5039_v18 = vpop.permute.xlu1 %5038  ;;  %s8560_s0 = smov 56  }
 0x8e3   :  { %5212 = vst.msk [vmem:[#allocation3 + $0x98] sm:$0xff] %vm5192_vm0, %v5039_v18  ;;  %v13323_v18 = vld [vmem:[#allocation4_spill] sm:$0xff] }
 0x8e4   :  { %v5053_v3 = vpop.permute.xlu2 %5052  ;;  %v5043_v56 = vpop.permute.xlu0 %5042 }
 0x8e5   :  { %5219 = vst.msk [vmem:[#allocation3 + $0xd0] sm:$0xff] %vm5192_vm0, %v5053_v3 }
 0x8e6   :  { %5214 = vst.msk [vmem:[#allocation3 + $0xa8] sm:$0xff] %vm5192_vm0, %v5043_v56  ;;  %v5287_v56 = vld [vmem:[#allocation2 + $0x207] sm:$0xff] }
 0x8e8   :  { %5385 = vrot.lane.b32.xlu1 %v11197_v7, %s8555_s29 }
 0x8ea   :  { %5389 = vrot.lane.b32.xlu0 %v11188_v48, %s8555_s29  ;;  %5387 = vrot.lane.b32.xlu2 %v11176_v35, %s8555_s29  ;;  %v5045_v48 = vpop.permute.xlu1 %5044 }
 0x8eb   :  { %5215 = vst.msk [vmem:[#allocation3 + $0xb0] sm:$0xff] %vm5192_vm0, %v5045_v48 }
 0x8ec   :  { %v5059_v11 = vpop.permute.xlu2 %5058  ;;  %v5049_v44 = vpop.permute.xlu0 %5048 }
 0x8ed   :  { %5222 = vst.msk [vmem:[#allocation3 + $0xe8] sm:$0xff] %vm5192_vm0, %v5059_v11 }
 0x8ee   :  { %5217 = vst.msk [vmem:[#allocation3 + $0xc0] sm:$0xff] %vm5192_vm0, %v5049_v44  ;;  %v5319_v44 = vld [vmem:[#allocation2 + $0x447] sm:$0xff] }
 0x8f0   :  { %5391 = vrot.lane.b32.xlu1 %v11209_v57, %s8555_s29 }
 0x8f2   :  { %5395 = vrot.lane.b32.xlu0 %v11201_v32, %s8555_s29  ;;  %5393 = vrot.lane.b32.xlu2 %v11179_v38, %s8555_s29  ;;  %v5051_v7 = vpop.permute.xlu1 %5050 }
 0x8f3   :  { %5218 = vst.msk [vmem:[#allocation3 + $0xc8] sm:$0xff] %vm5192_vm0, %v5051_v7  ;;  %v5643_v7 = vld [vmem:[#allocation2 + $0x30] sm:$0xff] }
 0x8f4   :  { %v5065_v55 = vpop.permute.xlu2 %5064  ;;  %v5055_v3 = vpop.permute.xlu0 %5054 }
 0x8f5   :  { %5225 = vst.msk [vmem:[#allocation3 + $0x100] sm:$0xff] %vm5192_vm0, %v5065_v55 }
 0x8f6   :  { %5220 = vst.msk [vmem:[#allocation3 + $0xd8] sm:$0xff] %vm5192_vm0, %v5055_v3  ;;  %v13325_v3 = vld [vmem:[#allocation5_spill] sm:$0xff] }
 0x8f8   :  { %5397 = vrot.lane.b32.xlu1 %v11223_v16, %s8555_s29 }
 0x8fa   :  { %5401 = vrot.lane.b32.xlu0 %v11213_v19, %s8555_s29  ;;  %5399 = vrot.lane.b32.xlu2 %v11182_v28, %s8555_s29  ;;  %v5057_v57 = vpop.permute.xlu1 %5056 }
 0x8fb   :  { %5221 = vst.msk [vmem:[#allocation3 + $0xe0] sm:$0xff] %vm5192_vm0, %v5057_v57 }
 0x8fc   :  { %v5071_v35 = vpop.permute.xlu2 %5070  ;;  %v5061_v32 = vpop.permute.xlu0 %5060 }
 0x8fd   :  { %5228 = vst.msk [vmem:[#allocation3 + $0x118] sm:$0xff] %vm5192_vm0, %v5071_v35  ;;  %v13326_v35 = vld [vmem:[#allocation8_spill] sm:$0xff] }
 0x8fe   :  { %5223 = vst.msk [vmem:[#allocation3 + $0xf0] sm:$0xff] %vm5192_vm0, %v5061_v32 }
 0x900   :  { %5403 = vrot.lane.b32.xlu1 %v11236_v29, %s8555_s29 }
 0x902   :  { %5407 = vrot.lane.b32.xlu0 %v11228_v1, %s8555_s29  ;;  %5405 = vrot.lane.b32.xlu2 %v11193_v15, %s8555_s29  ;;  %v5063_v16 = vpop.permute.xlu1 %5062 }
 0x903   :  { %5224 = vst.msk [vmem:[#allocation3 + $0xf8] sm:$0xff] %vm5192_vm0, %v5063_v16  ;;  %v5646_v16 = vld [vmem:[#allocation2 + $0x68] sm:$0xff] }
 0x904   :  { %v5077_v38 = vpop.permute.xlu2 %5076  ;;  %v5067_v19 = vpop.permute.xlu0 %5066 }
 0x905   :  { %5231 = vst.msk [vmem:[#allocation3 + $0x130] sm:$0xff] %vm5192_vm0, %v5077_v38 }
 0x906   :  { %5226 = vst.msk [vmem:[#allocation3 + $0x108] sm:$0xff] %vm5192_vm0, %v5067_v19  ;;  %v5642_v19 = vld [vmem:[#allocation2 + $0x28] sm:$0xff] }
 0x908   :  { %5409 = vrot.lane.b32.xlu1 %v11254_v12, %s8555_s29 }
 0x90a   :  { %5413 = vrot.lane.b32.xlu0 %v11240_v58, %s8555_s29  ;;  %5411 = vrot.lane.b32.xlu2 %v11205_v9, %s8555_s29  ;;  %v5069_v29 = vpop.permute.xlu1 %5068 }
 0x90b   :  { %5227 = vst.msk [vmem:[#allocation3 + $0x110] sm:$0xff] %vm5192_vm0, %v5069_v29 }
 0x90c   :  { %v5083_v28 = vpop.permute.xlu2 %5082  ;;  %v5073_v1 = vpop.permute.xlu0 %5072 }
 0x90d   :  { %5234 = vst.msk [vmem:[#allocation3 + $0x148] sm:$0xff] %vm5192_vm0, %v5083_v28  ;;  %v5320_v28 = vld [vmem:[#allocation2 + $0x44f] sm:$0xff] }
 0x90e   :  { %5229 = vst.msk [vmem:[#allocation3 + $0x120] sm:$0xff] %vm5192_vm0, %v5073_v1 }
 0x910   :  { %5415 = vrot.lane.b32.xlu1 %v11265_v62, %s8555_s29 }
 0x912   :  { %5419 = vrot.lane.b32.xlu0 %v11258_v23, %s8555_s29  ;;  %5417 = vrot.lane.b32.xlu2 %v11217_v33, %s8555_s29  ;;  %v5075_v12 = vpop.permute.xlu1 %5074 }
 0x913   :  { %5230 = vst.msk [vmem:[#allocation3 + $0x128] sm:$0xff] %vm5192_vm0, %v5075_v12  ;;  %v5649_v12 = vld [vmem:[#allocation2 + $0x90] sm:$0xff] }
 0x914   :  { %v5089_v15 = vpop.permute.xlu2 %5088  ;;  %v5079_v58 = vpop.permute.xlu0 %5078 }
 0x915   :  { %5237 = vst.msk [vmem:[#allocation3 + $0x160] sm:$0xff] %vm5192_vm0, %v5089_v15 }
 0x916   :  { %5232 = vst.msk [vmem:[#allocation3 + $0x138] sm:$0xff] %vm5192_vm0, %v5079_v58  ;;  %v5645_v58 = vld [vmem:[#allocation2 + $0x50] sm:$0xff] }
 0x918   :  { %5421 = vrot.lane.b32.xlu1 %v11277_v21, %s8555_s29 }
 0x91a   :  { %5425 = vrot.lane.b32.xlu0 %v11269_v6, %s8555_s29  ;;  %5423 = vrot.lane.b32.xlu2 %v11232_v51, %s8555_s29  ;;  %v5081_v62 = vpop.permute.xlu1 %5080 }
 0x91b   :  { %5233 = vst.msk [vmem:[#allocation3 + $0x140] sm:$0xff] %vm5192_vm0, %v5081_v62 }
 0x91c   :  { %v5095_v9 = vpop.permute.xlu2 %5094  ;;  %v5085_v23 = vpop.permute.xlu0 %5084 }
 0x91d   :  { %5240 = vst.msk [vmem:[#allocation3 + $0x178] sm:$0xff] %vm5192_vm0, %v5095_v9  ;;  %v5644_v9 = vld [vmem:[#allocation2 + $0x48] sm:$0xff] }
 0x91e   :  { %5235 = vst.msk [vmem:[#allocation3 + $0x150] sm:$0xff] %vm5192_vm0, %v5085_v23 }
 0x920   :  { %5427 = vrot.lane.b32.xlu1 %v11287_v26, %s8555_s29 }
 0x922   :  { %5431 = vrot.lane.b32.xlu0 %v11281_v24, %s8555_s29  ;;  %5429 = vrot.lane.b32.xlu2 %v11244_v49, %s8555_s29  ;;  %v5087_v21 = vpop.permute.xlu1 %5086 }
 0x923   :  { %5236 = vst.msk [vmem:[#allocation3 + $0x158] sm:$0xff] %vm5192_vm0, %v5087_v21  ;;  %v5652_v21 = vld [vmem:[#allocation2 + $0xc8] sm:$0xff] }
 0x924   :  { %v5101_v33 = vpop.permute.xlu2 %5100  ;;  %v5091_v6 = vpop.permute.xlu0 %5090 }
 0x925   :  { %5243 = vst.msk [vmem:[#allocation3 + $0x190] sm:$0xff] %vm5192_vm0, %v5101_v33 }
 0x926   :  { %5238 = vst.msk [vmem:[#allocation3 + $0x168] sm:$0xff] %vm5192_vm0, %v5091_v6  ;;  %v5648_v6 = vld [vmem:[#allocation2 + $0x88] sm:$0xff] }
 0x928   :  { %5433 = vrot.lane.b32.xlu1 %v11300_v59, %s8555_s29 }
 0x92a   :  { %5437 = vrot.lane.b32.xlu0 %v11292_v42, %s8555_s29  ;;  %5435 = vrot.lane.b32.xlu2 %v11261_v46, %s8555_s29  ;;  %v5093_v26 = vpop.permute.xlu1 %5092 }
 0x92b   :  { %5239 = vst.msk [vmem:[#allocation3 + $0x170] sm:$0xff] %vm5192_vm0, %v5093_v26 }
 0x92c   :  { %v5107_v51 = vpop.permute.xlu2 %5106  ;;  %v5097_v24 = vpop.permute.xlu0 %5096 }
 0x92d   :  { %5246 = vst.msk [vmem:[#allocation3 + $0x1a8] sm:$0xff] %vm5192_vm0, %v5107_v51  ;;  %v5647_v51 = vld [vmem:[#allocation2 + $0x70] sm:$0xff] }
 0x92e   :  { %5241 = vst.msk [vmem:[#allocation3 + $0x180] sm:$0xff] %vm5192_vm0, %v5097_v24 }
 0x930   :  { %5439 = vrot.lane.b32.xlu1 %v11312_v36, %s8555_s29 }
 0x932   :  { %5443 = vrot.lane.b32.xlu0 %v11304_v53, %s8555_s29  ;;  %5441 = vrot.lane.b32.xlu2 %v11273_v45, %s8555_s29  ;;  %v5099_v59 = vpop.permute.xlu1 %5098 }
 0x933   :  { %5242 = vst.msk [vmem:[#allocation3 + $0x188] sm:$0xff] %vm5192_vm0, %v5099_v59  ;;  %v5655_v59 = vld [vmem:[#allocation2 + $0xf0] sm:$0xff] }
 0x934   :  { %v5113_v49 = vpop.permute.xlu2 %5112  ;;  %v5103_v42 = vpop.permute.xlu0 %5102 }
 0x935   :  { %5249 = vst.msk [vmem:[#allocation3 + $0x1c0] sm:$0xff] %vm5192_vm0, %v5113_v49 }
 0x936   :  { %5244 = vst.msk [vmem:[#allocation3 + $0x198] sm:$0xff] %vm5192_vm0, %v5103_v42  ;;  %v5651_v42 = vld [vmem:[#allocation2 + $0xb0] sm:$0xff] }
 0x938   :  { %5445 = vrot.lane.b32.xlu1 %v5287_v56, %s8555_s29 }
 0x93a   :  { %5449 = vrot.lane.b32.xlu0 %v11316_v54, %s8555_s29  ;;  %5447 = vrot.lane.b32.xlu2 %v5288_v52, %s8555_s29  ;;  %v5105_v36 = vpop.permute.xlu1 %5104 }
 0x93b   :  { %5245 = vst.msk [vmem:[#allocation3 + $0x1a0] sm:$0xff] %vm5192_vm0, %v5105_v36  ;;  %v5653_v36 = vld [vmem:[#allocation2 + $0xd0] sm:$0xff] }
 0x93c   :  { %v5119_v46 = vpop.permute.xlu2 %5118  ;;  %v5109_v53 = vpop.permute.xlu0 %5108 }
 0x93d   :  { %5252 = vst.msk [vmem:[#allocation3 + $0x1d8] sm:$0xff] %vm5192_vm0, %v5119_v46  ;;  %v5650_v46 = vld [vmem:[#allocation2 + $0xa8] sm:$0xff] }
 0x93e   :  { %5247 = vst.msk [vmem:[#allocation3 + $0x1b0] sm:$0xff] %vm5192_vm0, %v5109_v53 }
 0x940   :  { %5451 = vrot.lane.b32.xlu1 %v11335_v41, %s8555_s29 }
 0x942   :  { %5455 = vrot.lane.b32.xlu0 %v11327_v25, %s8555_s29  ;;  %5453 = vrot.lane.b32.xlu2 %v11296_v14, %s8555_s29  ;;  %v5111_v17 = vpop.permute.xlu1 %5110 }
 0x943   :  { %5248 = vst.msk [vmem:[#allocation3 + $0x1b8] sm:$0xff] %vm5192_vm0, %v5111_v17 }
 0x944   :  { %v5125_v45 = vpop.permute.xlu2 %5124  ;;  %v5115_v54 = vpop.permute.xlu0 %5114 }
 0x945   :  { %5255 = vst.msk [vmem:[#allocation3 + $0x1f0] sm:$0xff] %vm5192_vm0, %v5125_v45  ;;  %v5654_v45 = vld [vmem:[#allocation2 + $0xe8] sm:$0xff] }
 0x946   :  { %5250 = vst.msk [vmem:[#allocation3 + $0x1c8] sm:$0xff] %vm5192_vm0, %v5115_v54  ;;  %v5658_v54 = vld [vmem:[#allocation2 + $0x128] sm:$0xff] }
 0x948   :  { %5457 = vrot.lane.b32.xlu1 %v11353_v39, %s8555_s29 }
 0x94a   :  { %5461 = vrot.lane.b32.xlu0 %v11339_v37, %s8555_s29  ;;  %5459 = vrot.lane.b32.xlu2 %v11308_v13, %s8555_s29  ;;  %v5117_v41 = vpop.permute.xlu1 %5116 }
 0x94b   :  { %5251 = vst.msk [vmem:[#allocation3 + $0x1d0] sm:$0xff] %vm5192_vm0, %v5117_v41  ;;  %v5656_v41 = vld [vmem:[#allocation2 + $0x108] sm:$0xff] }
 0x94c   :  { %v5388_v25 = vpop.permute.xlu2 %5387  ;;  %v5121_v61 = vpop.permute.xlu0 %5120 }
 0x94d   :  { %5579 = vst.msk [vmem:[#allocation3 + $0x8] sm:$0xff] %vm5577_vm1, %v5388_v25 }
 0x94e   :  { %5253 = vst.msk [vmem:[#allocation3 + $0x1e0] sm:$0xff] %vm5192_vm0, %v5121_v61 }
 0x950   :  { %5463 = vrot.lane.b32.xlu1 %v11364_v40, %s8555_s29 }
 0x952   :  { %5467 = vrot.lane.b32.xlu0 %v11357_v34, %s8555_s29  ;;  %5465 = vrot.lane.b32.xlu2 %v11322_v63, %s8555_s29  ;;  %v5123_v39 = vpop.permute.xlu1 %5122 }
 0x953   :  { %5254 = vst.msk [vmem:[#allocation3 + $0x1e8] sm:$0xff] %vm5192_vm0, %v5123_v39 }
 0x954   :  { %v5394_v14 = vpop.permute.xlu2 %5393  ;;  %v5127_v37 = vpop.permute.xlu0 %5126 }
 0x955   :  { %5582 = vst.msk [vmem:[#allocation3 + $0x20] sm:$0xff] %vm5577_vm1, %v5394_v14  ;;  %v5657_v14 = vld [vmem:[#allocation2 + $0x110] sm:$0xff] }
 0x956   :  { %5256 = vst.msk [vmem:[#allocation3 + $0x1f8] sm:$0xff] %vm5192_vm0, %v5127_v37  ;;  %v5661_v37 = vld [vmem:[#allocation2 + $0x150] sm:$0xff] }
 0x958   :  { %5469 = vrot.lane.b32.xlu1 %v11376_v27, %s8555_s29 }
 0x95a   :  { %5473 = vrot.lane.b32.xlu0 %v11368_v4, %s8555_s29  ;;  %5471 = vrot.lane.b32.xlu2 %v11331_v20, %s8555_s29  ;;  %v5386_v40 = vpop.permute.xlu1 %5385 }
 0x95b   :  { %5578 = vst.msk [vmem:[#allocation3] sm:$0xff] %vm5577_vm1, %v5386_v40  ;;  %v5659_v40 = vld [vmem:[#allocation2 + $0x130] sm:$0xff] }
 0x95c   :  { %v5400_v13 = vpop.permute.xlu2 %5399  ;;  %v5390_v34 = vpop.permute.xlu0 %5389 }
 0x95d   :  { %5585 = vst.msk [vmem:[#allocation3 + $0x38] sm:$0xff] %vm5577_vm1, %v5400_v13 }
 0x95e   :  { %5580 = vst.msk [vmem:[#allocation3 + $0x10] sm:$0xff] %vm5577_vm1, %v5390_v34 }
 0x960   :  { %5475 = vrot.lane.b32.xlu1 %v11391_v2, %s8555_s29 }
 0x962   :  { %5479 = vrot.lane.b32.xlu0 %v11380_v31, %s8555_s29  ;;  %5477 = vrot.lane.b32.xlu2 %v11343_v50, %s8555_s29  ;;  %v5392_v27 = vpop.permute.xlu1 %5391 }
 0x963   :  { %5581 = vst.msk [vmem:[#allocation3 + $0x18] sm:$0xff] %vm5577_vm1, %v5392_v27 }
 0x964   :  { %v5406_v63 = vpop.permute.xlu2 %5405  ;;  %v5396_v4 = vpop.permute.xlu0 %5395 }
 0x965   :  { %5588 = vst.msk [vmem:[#allocation3 + $0x50] sm:$0xff] %vm5577_vm1, %v5406_v63  ;;  %v5660_v63 = vld [vmem:[#allocation2 + $0x148] sm:$0xff] }
 0x966   :  { %5583 = vst.msk [vmem:[#allocation3 + $0x28] sm:$0xff] %vm5577_vm1, %v5396_v4  ;;  %v5664_v4 = vld [vmem:[#allocation2 + $0x188] sm:$0xff] }
 0x968   :  { %5481 = vrot.lane.b32.xlu1 %v11403_v60, %s8555_s29 }
 0x96a   :  { %5485 = vrot.lane.b32.xlu0 %v11395_v0, %s8555_s29  ;;  %5483 = vrot.lane.b32.xlu2 %v11360_v30, %s8555_s29  ;;  %v5398_v2 = vpop.permute.xlu1 %5397 }
 0x96b   :  { %5584 = vst.msk [vmem:[#allocation3 + $0x30] sm:$0xff] %vm5577_vm1, %v5398_v2  ;;  %v5662_v2 = vld [vmem:[#allocation2 + $0x168] sm:$0xff] }
 0x96c   :  { %v5412_v20 = vpop.permute.xlu2 %5411  ;;  %v5402_v31 = vpop.permute.xlu0 %5401 }
 0x96d   :  { %5591 = vst.msk [vmem:[#allocation3 + $0x68] sm:$0xff] %vm5577_vm1, %v5412_v20 }
 0x96e   :  { %5586 = vst.msk [vmem:[#allocation3 + $0x40] sm:$0xff] %vm5577_vm1, %v5402_v31 }
 0x970   :  { %5487 = vrot.lane.b32.xlu1 %v11415_v47, %s8555_s29 }
 0x972   :  { %5491 = vrot.lane.b32.xlu0 %v11407_v43, %s8555_s29  ;;  %5489 = vrot.lane.b32.xlu2 %v11372_v5, %s8555_s29  ;;  %v5404_v60 = vpop.permute.xlu1 %5403  ;;  %v13322_v5 = vld [vmem:[#allocation6_spill] sm:$0xff] }
 0x973   :  { %5587 = vst.msk [vmem:[#allocation3 + $0x48] sm:$0xff] %vm5577_vm1, %v5404_v60 }
 0x974   :  { %v5418_v50 = vpop.permute.xlu2 %5417  ;;  %v5408_v0 = vpop.permute.xlu0 %5407 }
 0x975   :  { %5594 = vst.msk [vmem:[#allocation3 + $0x80] sm:$0xff] %vm5577_vm1, %v5418_v50  ;;  %v5663_v50 = vld [vmem:[#allocation2 + $0x170] sm:$0xff] }
 0x976   :  { %5589 = vst.msk [vmem:[#allocation3 + $0x58] sm:$0xff] %vm5577_vm1, %v5408_v0  ;;  %v5667_v0 = vld [vmem:[#allocation2 + $0x1b0] sm:$0xff] }
 0x978   :  { %5493 = vrot.lane.b32.xlu1 %v11429_v8, %s8555_s29 }
 0x97a   :  { %5497 = vrot.lane.b32.xlu0 %v11424_v22, %s8555_s29  ;;  %5495 = vrot.lane.b32.xlu2 %v11386_v10, %s8555_s29  ;;  %v5410_v22 = vpop.permute.xlu1 %5409  ;;  %v13324_v10 = vld [vmem:[#allocation7_spill] sm:$0xff] }
 0x97b   :  { %5590 = vst.msk [vmem:[#allocation3 + $0x60] sm:$0xff] %vm5577_vm1, %v5410_v22  ;;  %v5670_v22 = vld [vmem:[#allocation2 + $0x1e8] sm:$0xff] }
 0x97c   :  { %v5424_v30 = vpop.permute.xlu2 %5423  ;;  %v5414_v43 = vpop.permute.xlu0 %5413 }
 0x97d   :  { %5597 = vst.msk [vmem:[#allocation3 + $0x98] sm:$0xff] %vm5577_vm1, %v5424_v30 }
 0x97e   :  { %5592 = vst.msk [vmem:[#allocation3 + $0x70] sm:$0xff] %vm5577_vm1, %v5414_v43 }
 0x980   :  { %5499 = vrot.lane.b32.xlu1 %v13324_v10, %s8555_s29 }
 0x982   :  { %5503 = vrot.lane.b32.xlu0 %v13322_v5, %s8555_s29  ;;  %5501 = vrot.lane.b32.xlu2 %v13323_v18, %s8555_s29  ;;  %v5416_v55 = vpop.permute.xlu1 %5415  ;;  %v5666_v5 = vld [vmem:[#allocation2 + $0x1a8] sm:$0xff] }
 0x983   :  { %5593 = vst.msk [vmem:[#allocation3 + $0x78] sm:$0xff] %vm5577_vm1, %v5416_v55  ;;  %v5673_v55 = vld [vmem:[#allocation2 + $0x210] sm:$0xff] }
 0x984   :  { %v5430_v47 = vpop.permute.xlu2 %5429  ;;  %v5420_v11 = vpop.permute.xlu0 %5419 }
 0x985   :  { %5600 = vst.msk [vmem:[#allocation3 + $0xb0] sm:$0xff] %vm5577_vm1, %v5430_v47  ;;  %v5665_v47 = vld [vmem:[#allocation2 + $0x190] sm:$0xff] }
 0x986   :  { %5595 = vst.msk [vmem:[#allocation3 + $0x88] sm:$0xff] %vm5577_vm1, %v5420_v11 }
 0x988   :  { %5505 = vrot.lane.b32.xlu1 %v13326_v35, %s8555_s29 }
 0x98a   :  { %5509 = vrot.lane.b32.xlu0 %v5319_v44, %s8555_s29  ;;  %5507 = vrot.lane.b32.xlu2 %v13325_v3, %s8555_s29  ;;  %v5422_v38 = vpop.permute.xlu1 %5421  ;;  %v5669_v44 = vld [vmem:[#allocation2 + $0x1d0] sm:$0xff] }
 0x98b   :  { %5596 = vst.msk [vmem:[#allocation3 + $0x90] sm:$0xff] %vm5577_vm1, %v5422_v38  ;;  %v5676_v38 = vld [vmem:[#allocation2 + $0x288] sm:$0xff] }
 0x98c   :  { %v5436_v8 = vpop.permute.xlu2 %5435  ;;  %v5426_v48 = vpop.permute.xlu0 %5425 }
 0x98d   :  { %5603 = vst.msk [vmem:[#allocation3 + $0xc8] sm:$0xff] %vm5577_vm1, %v5436_v8  ;;  %v5668_v8 = vld [vmem:[#allocation2 + $0x1c8] sm:$0xff] }
 0x98e   :  { %5598 = vst.msk [vmem:[#allocation3 + $0xa0] sm:$0xff] %vm5577_vm1, %v5426_v48 }
 0x990   :  { %5511 = vrot.lane.b32.xlu1 %v5320_v28, %s8555_s29  ;;  %s8561_s29 = smov 64  }
 0x992   :  { %5772 = vrot.lane.b32.xlu0 %v5643_v7, %s8557_s6  ;;  %5770 = vrot.lane.b32.xlu2 %v5642_v19, %s8557_s6  ;;  %v5428_v15 = vpop.permute.xlu1 %5427  ;;  %v5672_v7 = vld [vmem:[#allocation2 + $0x208] sm:$0xff] }
 0x993   :  { %5599 = vst.msk [vmem:[#allocation3 + $0xa8] sm:$0xff] %vm5577_vm1, %v5428_v15  ;;  %v5679_v15 = vld [vmem:[#allocation2 + $0x2b0] sm:$0xff] }
 0x994   :  { %v5442_v32 = vpop.permute.xlu2 %5441  ;;  %v5432_v57 = vpop.permute.xlu0 %5431 }
 0x995   :  { %5606 = vst.msk [vmem:[#allocation3 + $0xe0] sm:$0xff] %vm5577_vm1, %v5442_v32  ;;  %v5671_v32 = vld [vmem:[#allocation2 + $0x1f0] sm:$0xff] }
 0x996   :  { %5601 = vst.msk [vmem:[#allocation3 + $0xb8] sm:$0xff] %vm5577_vm1, %v5432_v57 }
 0x998   :  { %5774 = vrot.lane.b32.xlu1 %v5644_v9, %s8557_s6 }
 0x99a   :  { %5778 = vrot.lane.b32.xlu0 %v5646_v16, %s8557_s6  ;;  %5776 = vrot.lane.b32.xlu2 %v5645_v58, %s8557_s6  ;;  %v5434_v33 = vpop.permute.xlu1 %5433  ;;  %v5675_v16 = vld [vmem:[#allocation2 + $0x270] sm:$0xff] }
 0x99b   :  { %5602 = vst.msk [vmem:[#allocation3 + $0xc0] sm:$0xff] %vm5577_vm1, %v5434_v33  ;;  %v5682_v33 = vld [vmem:[#allocation2 + $0x2e8] sm:$0xff] }
 0x99c   :  { %v5448_v1 = vpop.permute.xlu2 %5447  ;;  %v5438_v29 = vpop.permute.xlu0 %5437 }
 0x99d   :  { %5609 = vst.msk [vmem:[#allocation3 + $0xf8] sm:$0xff] %vm5577_vm1, %v5448_v1  ;;  %v5674_v1 = vld [vmem:[#allocation2 + $0x268] sm:$0xff] }
 0x99e   :  { %5604 = vst.msk [vmem:[#allocation3 + $0xd0] sm:$0xff] %vm5577_vm1, %v5438_v29 }
 0x9a0   :  { %5780 = vrot.lane.b32.xlu1 %v5647_v51, %s8557_s6 }
 0x9a2   :  { %5784 = vrot.lane.b32.xlu0 %v5649_v12, %s8557_s6  ;;  %5782 = vrot.lane.b32.xlu2 %v5648_v6, %s8557_s6  ;;  %v5440_v49 = vpop.permute.xlu1 %5439  ;;  %v5678_v12 = vld [vmem:[#allocation2 + $0x2a8] sm:$0xff] }
 0x9a3   :  { %5605 = vst.msk [vmem:[#allocation3 + $0xd8] sm:$0xff] %vm5577_vm1, %v5440_v49  ;;  %v5685_v49 = vld [vmem:[#allocation2 + $0x310] sm:$0xff] }
 0x9a4   :  { %v5454_v23 = vpop.permute.xlu2 %5453  ;;  %v5444_v62 = vpop.permute.xlu0 %5443 }
 0x9a5   :  { %5612 = vst.msk [vmem:[#allocation3 + $0x110] sm:$0xff] %vm5577_vm1, %v5454_v23  ;;  %v5677_v23 = vld [vmem:[#allocation2 + $0x290] sm:$0xff] }
 0x9a6   :  { %5607 = vst.msk [vmem:[#allocation3 + $0xe8] sm:$0xff] %vm5577_vm1, %v5444_v62 }
 0x9a8   :  { %5786 = vrot.lane.b32.xlu1 %v5650_v46, %s8557_s6 }
 0x9aa   :  { %5790 = vrot.lane.b32.xlu0 %v5652_v21, %s8557_s6  ;;  %5788 = vrot.lane.b32.xlu2 %v5651_v42, %s8557_s6  ;;  %v5446_v52 = vpop.permute.xlu1 %5445  ;;  %v5681_v21 = vld [vmem:[#allocation2 + $0x2d0] sm:$0xff] }
 0x9ab   :  { %5608 = vst.msk [vmem:[#allocation3 + $0xf0] sm:$0xff] %vm5577_vm1, %v5446_v52  ;;  %v5688_v52 = vld [vmem:[#allocation2 + $0x348] sm:$0xff] }
 0x9ac   :  { %v5460_v24 = vpop.permute.xlu2 %5459  ;;  %v5450_v26 = vpop.permute.xlu0 %5449 }
 0x9ad   :  { %5615 = vst.msk [vmem:[#allocation3 + $0x128] sm:$0xff] %vm5577_vm1, %v5460_v24  ;;  %v5680_v24 = vld [vmem:[#allocation2 + $0x2c8] sm:$0xff] }
 0x9ae   :  { %5610 = vst.msk [vmem:[#allocation3 + $0x100] sm:$0xff] %vm5577_vm1, %v5450_v26 }
 0x9b0   :  { %5792 = vrot.lane.b32.xlu1 %v5653_v36, %s8557_s6 }
 0x9b2   :  { %5796 = vrot.lane.b32.xlu0 %v5655_v59, %s8557_s6  ;;  %5794 = vrot.lane.b32.xlu2 %v5654_v45, %s8557_s6  ;;  %v5452_v17 = vpop.permute.xlu1 %5451  ;;  %v5684_v59 = vld [vmem:[#allocation2 + $0x308] sm:$0xff] }
 0x9b3   :  { %5611 = vst.msk [vmem:[#allocation3 + $0x108] sm:$0xff] %vm5577_vm1, %v5452_v17  ;;  %v5691_v17 = vld [vmem:[#allocation2 + $0x370] sm:$0xff] }
 0x9b4   :  { %v5466_v53 = vpop.permute.xlu2 %5465  ;;  %v5456_v56 = vpop.permute.xlu0 %5455 }
 0x9b5   :  { %5618 = vst.msk [vmem:[#allocation3 + $0x140] sm:$0xff] %vm5577_vm1, %v5466_v53  ;;  %v5683_v53 = vld [vmem:[#allocation2 + $0x2f0] sm:$0xff] }
 0x9b6   :  { %5613 = vst.msk [vmem:[#allocation3 + $0x118] sm:$0xff] %vm5577_vm1, %v5456_v56 }
 0x9b8   :  { %5798 = vrot.lane.b32.xlu1 %v5656_v41, %s8557_s6 }
 0x9ba   :  { %5802 = vrot.lane.b32.xlu0 %v5658_v54, %s8557_s6  ;;  %5800 = vrot.lane.b32.xlu2 %v5657_v14, %s8557_s6  ;;  %v5458_v39 = vpop.permute.xlu1 %5457  ;;  %v5687_v54 = vld [vmem:[#allocation2 + $0x330] sm:$0xff] }
 0x9bb   :  { %5614 = vst.msk [vmem:[#allocation3 + $0x120] sm:$0xff] %vm5577_vm1, %v5458_v39  ;;  %v5694_v39 = vld [vmem:[#allocation2 + $0x3a8] sm:$0xff] }
 0x9bc   :  { %v5472_v25 = vpop.permute.xlu2 %5471  ;;  %v5462_v61 = vpop.permute.xlu0 %5461 }
 0x9bd   :  { %5621 = vst.msk [vmem:[#allocation3 + $0x158] sm:$0xff] %vm5577_vm1, %v5472_v25  ;;  %v5686_v25 = vld [vmem:[#allocation2 + $0x328] sm:$0xff] }
 0x9be   :  { %5616 = vst.msk [vmem:[#allocation3 + $0x130] sm:$0xff] %vm5577_vm1, %v5462_v61 }
 0x9c0   :  { %5804 = vrot.lane.b32.xlu1 %v5659_v40, %s8557_s6 }
 0x9c2   :  { %5808 = vrot.lane.b32.xlu0 %v5661_v37, %s8557_s6  ;;  %5806 = vrot.lane.b32.xlu2 %v5660_v63, %s8557_s6  ;;  %v5464_v27 = vpop.permute.xlu1 %5463  ;;  %v5690_v37 = vld [vmem:[#allocation2 + $0x368] sm:$0xff] }
 0x9c3   :  { %5617 = vst.msk [vmem:[#allocation3 + $0x138] sm:$0xff] %vm5577_vm1, %v5464_v27  ;;  %v5697_v27 = vld [vmem:[#allocation2 + $0x3d0] sm:$0xff] }
 0x9c4   :  { %v5478_v13 = vpop.permute.xlu2 %5477  ;;  %v5468_v34 = vpop.permute.xlu0 %5467 }
 0x9c5   :  { %5624 = vst.msk [vmem:[#allocation3 + $0x170] sm:$0xff] %vm5577_vm1, %v5478_v13  ;;  %v5689_v13 = vld [vmem:[#allocation2 + $0x350] sm:$0xff] }
 0x9c6   :  { %5619 = vst.msk [vmem:[#allocation3 + $0x148] sm:$0xff] %vm5577_vm1, %v5468_v34 }
 0x9c8   :  { %5810 = vrot.lane.b32.xlu1 %v5662_v2, %s8557_s6 }
 0x9ca   :  { %5814 = vrot.lane.b32.xlu0 %v5664_v4, %s8557_s6  ;;  %5812 = vrot.lane.b32.xlu2 %v5663_v50, %s8557_s6  ;;  %v5470_v60 = vpop.permute.xlu1 %5469  ;;  %v5693_v4 = vld [vmem:[#allocation2 + $0x390] sm:$0xff] }
 0x9cb   :  { %5620 = vst.msk [vmem:[#allocation3 + $0x150] sm:$0xff] %vm5577_vm1, %v5470_v60  ;;  %v5700_v60 = vld [vmem:[#allocation2 + $0x408] sm:$0xff] }
 0x9cc   :  { %v5484_v20 = vpop.permute.xlu2 %5483  ;;  %v5474_v31 = vpop.permute.xlu0 %5473 }
 0x9cd   :  { %5627 = vst.msk [vmem:[#allocation3 + $0x188] sm:$0xff] %vm5577_vm1, %v5484_v20  ;;  %v5692_v20 = vld [vmem:[#allocation2 + $0x388] sm:$0xff] }
 0x9ce   :  { %5622 = vst.msk [vmem:[#allocation3 + $0x160] sm:$0xff] %vm5577_vm1, %v5474_v31 }
 0x9d0   :  { %5816 = vrot.lane.b32.xlu1 %v5665_v47, %s8557_s6 }
 0x9d2   :  { %5820 = vrot.lane.b32.xlu0 %v5667_v0, %s8557_s6  ;;  %5818 = vrot.lane.b32.xlu2 %v5666_v5, %s8557_s6  ;;  %v5476_v18 = vpop.permute.xlu1 %5475  ;;  %v5696_v0 = vld [vmem:[#allocation2 + $0x3c8] sm:$0xff] }
 0x9d3   :  { %5623 = vst.msk [vmem:[#allocation3 + $0x168] sm:$0xff] %vm5577_vm1, %v5476_v18  ;;  %v5703_v18 = vld [vmem:[#allocation2 + $0x430] sm:$0xff] }
 0x9d4   :  { %v5490_v30 = vpop.permute.xlu2 %5489  ;;  %v5480_v43 = vpop.permute.xlu0 %5479 }
 0x9d5   :  { %5630 = vst.msk [vmem:[#allocation3 + $0x1a0] sm:$0xff] %vm5577_vm1, %v5490_v30  ;;  %v5695_v30 = vld [vmem:[#allocation2 + $0x3b0] sm:$0xff] }
 0x9d6   :  { %5625 = vst.msk [vmem:[#allocation3 + $0x178] sm:$0xff] %vm5577_vm1, %v5480_v43 }
 0x9d8   :  { %5822 = vrot.lane.b32.xlu1 %v5668_v8, %s8557_s6 }
 0x9da   :  { %5826 = vrot.lane.b32.xlu0 %v5670_v22, %s8557_s6  ;;  %5824 = vrot.lane.b32.xlu2 %v5669_v44, %s8557_s6  ;;  %v5482_v3 = vpop.permute.xlu1 %5481  ;;  %v5699_v22 = vld [vmem:[#allocation2 + $0x3f0] sm:$0xff] }
 0x9db   :  { %5626 = vst.msk [vmem:[#allocation3 + $0x180] sm:$0xff] %vm5577_vm1, %v5482_v3  ;;  %v6027_v3 = vld [vmem:[#allocation2 + $0x29] sm:$0xff] }
 0x9dc   :  { %v5496_v11 = vpop.permute.xlu2 %5495  ;;  %v5486_v10 = vpop.permute.xlu0 %5485 }
 0x9dd   :  { %5633 = vst.msk [vmem:[#allocation3 + $0x1b8] sm:$0xff] %vm5577_vm1, %v5496_v11  ;;  %v5698_v11 = vld [vmem:[#allocation2 + $0x3e8] sm:$0xff] }
 0x9de   :  { %5628 = vst.msk [vmem:[#allocation3 + $0x190] sm:$0xff] %vm5577_vm1, %v5486_v10 }
 0x9e0   :  { %5828 = vrot.lane.b32.xlu1 %v5671_v32, %s8557_s6 }
 0x9e2   :  { %5832 = vrot.lane.b32.xlu0 %v5673_v55, %s8557_s6  ;;  %5830 = vrot.lane.b32.xlu2 %v5672_v7, %s8557_s6  ;;  %v5488_v19 = vpop.permute.xlu1 %5487  ;;  %v5702_v55 = vld [vmem:[#allocation2 + $0x428] sm:$0xff] }
 0x9e3   :  { %5629 = vst.msk [vmem:[#allocation3 + $0x198] sm:$0xff] %vm5577_vm1, %v5488_v19  ;;  %v6030_v19 = vld [vmem:[#allocation2 + $0x51] sm:$0xff] }
 0x9e4   :  { %v5502_v48 = vpop.permute.xlu2 %5501  ;;  %v5492_v35 = vpop.permute.xlu0 %5491 }
 0x9e5   :  { %5636 = vst.msk [vmem:[#allocation3 + $0x1d0] sm:$0xff] %vm5577_vm1, %v5502_v48  ;;  %v5701_v48 = vld [vmem:[#allocation2 + $0x410] sm:$0xff] }
 0x9e6   :  { %5631 = vst.msk [vmem:[#allocation3 + $0x1a8] sm:$0xff] %vm5577_vm1, %v5492_v35 }
 0x9e8   :  { %5834 = vrot.lane.b32.xlu1 %v5674_v1, %s8557_s6 }
 0x9ea   :  { %5838 = vrot.lane.b32.xlu0 %v5676_v38, %s8557_s6  ;;  %5836 = vrot.lane.b32.xlu2 %v5675_v16, %s8557_s6  ;;  %v5494_v58 = vpop.permute.xlu1 %5493  ;;  %v5705_v38 = vld [vmem:[#allocation2 + $0x450] sm:$0xff] }
 0x9eb   :  { %5632 = vst.msk [vmem:[#allocation3 + $0x1b0] sm:$0xff] %vm5577_vm1, %v5494_v58  ;;  %v6033_v58 = vld [vmem:[#allocation2 + $0x89] sm:$0xff] }
 0x9ec   :  { %v5508_v57 = vpop.permute.xlu2 %5507  ;;  %v5498_v28 = vpop.permute.xlu0 %5497 }
 0x9ed   :  { %5639 = vst.msk [vmem:[#allocation3 + $0x1e8] sm:$0xff] %vm5577_vm1, %v5508_v57  ;;  %v5704_v57 = vld [vmem:[#allocation2 + $0x448] sm:$0xff] }
 0x9ee   :  { %5634 = vst.msk [vmem:[#allocation3 + $0x1c0] sm:$0xff] %vm5577_vm1, %v5498_v28 }
 0x9f0   :  { %5840 = vrot.lane.b32.xlu1 %v5677_v23, %s8557_s6 }
 0x9f2   :  { %5844 = vrot.lane.b32.xlu0 %v5679_v15, %s8557_s6  ;;  %5842 = vrot.lane.b32.xlu2 %v5678_v12, %s8557_s6  ;;  %v5500_v6 = vpop.permute.xlu1 %5499  ;;  %v6029_v15 = vld [vmem:[#allocation2 + $0x49] sm:$0xff] }
 0x9f3   :  { %5635 = vst.msk [vmem:[#allocation3 + $0x1c8] sm:$0xff] %vm5577_vm1, %v5500_v6  ;;  %v6036_v6 = vld [vmem:[#allocation2 + $0xb1] sm:$0xff] }
 0x9f4   :  { %v5771_v29 = vpop.permute.xlu2 %5770  ;;  %v5504_v9 = vpop.permute.xlu0 %5503 }
 0x9f5   :  { %5963 = vst.msk [vmem:[#allocation3] sm:$0xff] %vm5962_vm2, %v5771_v29  ;;  %v6028_v29 = vld [vmem:[#allocation2 + $0x31] sm:$0xff] }
 0x9f6   :  { %5637 = vst.msk [vmem:[#allocation3 + $0x1d8] sm:$0xff] %vm5577_vm1, %v5504_v9 }
 0x9f8   :  { %5846 = vrot.lane.b32.xlu1 %v5680_v24, %s8557_s6 }
 0x9fa   :  { %5850 = vrot.lane.b32.xlu0 %v5682_v33, %s8557_s6  ;;  %5848 = vrot.lane.b32.xlu2 %v5681_v21, %s8557_s6  ;;  %v5506_v42 = vpop.permute.xlu1 %5505  ;;  %v6032_v33 = vld [vmem:[#allocation2 + $0x71] sm:$0xff] }
 0x9fb   :  { %5638 = vst.msk [vmem:[#allocation3 + $0x1e0] sm:$0xff] %vm5577_vm1, %v5506_v42  ;;  %v6039_v42 = vld [vmem:[#allocation2 + $0xe9] sm:$0xff] }
 0x9fc   :  { %v5777_v62 = vpop.permute.xlu2 %5776  ;;  %v5510_v51 = vpop.permute.xlu0 %5509 }
 0x9fd   :  { %5966 = vst.msk [vmem:[#allocation3 + $0x18] sm:$0xff] %vm5962_vm2, %v5777_v62  ;;  %v6031_v62 = vld [vmem:[#allocation2 + $0x69] sm:$0xff] }
 0x9fe   :  { %5640 = vst.msk [vmem:[#allocation3 + $0x1f0] sm:$0xff] %vm5577_vm1, %v5510_v51 }
 0xa00   :  { %5852 = vrot.lane.b32.xlu1 %v5683_v53, %s8557_s6 }
 0xa02   :  { %5856 = vrot.lane.b32.xlu0 %v5685_v49, %s8557_s6  ;;  %5854 = vrot.lane.b32.xlu2 %v5684_v59, %s8557_s6  ;;  %v5512_v45 = vpop.permute.xlu1 %5511  ;;  %v6035_v49 = vld [vmem:[#allocation2 + $0xa9] sm:$0xff] }
 0xa03   :  { %5641 = vst.msk [vmem:[#allocation3 + $0x1f8] sm:$0xff] %vm5577_vm1, %v5512_v45  ;;  %v6042_v45 = vld [vmem:[#allocation2 + $0x111] sm:$0xff] }
 0xa04   :  { %v5783_v26 = vpop.permute.xlu2 %5782  ;;  %v5773_v46 = vpop.permute.xlu0 %5772 }
 0xa05   :  { %5969 = vst.msk [vmem:[#allocation3 + $0x30] sm:$0xff] %vm5962_vm2, %v5783_v26  ;;  %v6034_v26 = vld [vmem:[#allocation2 + $0x91] sm:$0xff] }
 0xa06   :  { %5964 = vst.msk [vmem:[#allocation3 + $0x8] sm:$0xff] %vm5962_vm2, %v5773_v46 }
 0xa08   :  { %5858 = vrot.lane.b32.xlu1 %v5686_v25, %s8557_s6 }
 0xa0a   :  { %5862 = vrot.lane.b32.xlu0 %v5688_v52, %s8557_s6  ;;  %5860 = vrot.lane.b32.xlu2 %v5687_v54, %s8557_s6  ;;  %v5775_v14 = vpop.permute.xlu1 %5774  ;;  %v6038_v52 = vld [vmem:[#allocation2 + $0xd1] sm:$0xff] }
 0xa0b   :  { %5965 = vst.msk [vmem:[#allocation3 + $0x10] sm:$0xff] %vm5962_vm2, %v5775_v14  ;;  %v6045_v14 = vld [vmem:[#allocation2 + $0x149] sm:$0xff] }
 0xa0c   :  { %v5789_v56 = vpop.permute.xlu2 %5788  ;;  %v5779_v36 = vpop.permute.xlu0 %5778 }
 0xa0d   :  { %5972 = vst.msk [vmem:[#allocation3 + $0x48] sm:$0xff] %vm5962_vm2, %v5789_v56  ;;  %v6037_v56 = vld [vmem:[#allocation2 + $0xc9] sm:$0xff] }
 0xa0e   :  { %5967 = vst.msk [vmem:[#allocation3 + $0x20] sm:$0xff] %vm5962_vm2, %v5779_v36 }
 0xa10   :  { %5864 = vrot.lane.b32.xlu1 %v5689_v13, %s8557_s6 }
 0xa12   :  { %5868 = vrot.lane.b32.xlu0 %v5691_v17, %s8557_s6  ;;  %5866 = vrot.lane.b32.xlu2 %v5690_v37, %s8557_s6  ;;  %v5781_v63 = vpop.permute.xlu1 %5780  ;;  %v6041_v17 = vld [vmem:[#allocation2 + $0x109] sm:$0xff] }
 0xa13   :  { %5968 = vst.msk [vmem:[#allocation3 + $0x28] sm:$0xff] %vm5962_vm2, %v5781_v63  ;;  %v6048_v63 = vld [vmem:[#allocation2 + $0x171] sm:$0xff] }
 0xa14   :  { %v5795_v61 = vpop.permute.xlu2 %5794  ;;  %v5785_v41 = vpop.permute.xlu0 %5784 }
 0xa15   :  { %5975 = vst.msk [vmem:[#allocation3 + $0x60] sm:$0xff] %vm5962_vm2, %v5795_v61  ;;  %v6040_v61 = vld [vmem:[#allocation2 + $0xf1] sm:$0xff] }
 0xa16   :  { %5970 = vst.msk [vmem:[#allocation3 + $0x38] sm:$0xff] %vm5962_vm2, %v5785_v41 }
 0xa18   :  { %5870 = vrot.lane.b32.xlu1 %v5692_v20, %s8557_s6 }
 0xa1a   :  { %5874 = vrot.lane.b32.xlu0 %v5694_v39, %s8557_s6  ;;  %5872 = vrot.lane.b32.xlu2 %v5693_v4, %s8557_s6  ;;  %v5787_v50 = vpop.permute.xlu1 %5786  ;;  %v6044_v39 = vld [vmem:[#allocation2 + $0x131] sm:$0xff] }
 0xa1b   :  { %5971 = vst.msk [vmem:[#allocation3 + $0x40] sm:$0xff] %vm5962_vm2, %v5787_v50  ;;  %v6051_v50 = vld [vmem:[#allocation2 + $0x1a9] sm:$0xff] }
 0xa1c   :  { %v5801_v34 = vpop.permute.xlu2 %5800  ;;  %v5791_v40 = vpop.permute.xlu0 %5790 }
 0xa1d   :  { %5978 = vst.msk [vmem:[#allocation3 + $0x78] sm:$0xff] %vm5962_vm2, %v5801_v34  ;;  %v6043_v34 = vld [vmem:[#allocation2 + $0x129] sm:$0xff] }
 0xa1e   :  { %5973 = vst.msk [vmem:[#allocation3 + $0x50] sm:$0xff] %vm5962_vm2, %v5791_v40 }
 0xa20   :  { %5876 = vrot.lane.b32.xlu1 %v5695_v30, %s8557_s6 }
 0xa22   :  { %5880 = vrot.lane.b32.xlu0 %v5697_v27, %s8557_s6  ;;  %5878 = vrot.lane.b32.xlu2 %v5696_v0, %s8557_s6  ;;  %v5793_v5 = vpop.permute.xlu1 %5792  ;;  %v6047_v27 = vld [vmem:[#allocation2 + $0x169] sm:$0xff] }
 0xa23   :  { %5974 = vst.msk [vmem:[#allocation3 + $0x58] sm:$0xff] %vm5962_vm2, %v5793_v5  ;;  %v6054_v5 = vld [vmem:[#allocation2 + $0x1d1] sm:$0xff] }
 0xa24   :  { %v5807_v31 = vpop.permute.xlu2 %5806  ;;  %v5797_v2 = vpop.permute.xlu0 %5796 }
 0xa25   :  { %5981 = vst.msk [vmem:[#allocation3 + $0x90] sm:$0xff] %vm5962_vm2, %v5807_v31  ;;  %v6046_v31 = vld [vmem:[#allocation2 + $0x151] sm:$0xff] }
 0xa26   :  { %5976 = vst.msk [vmem:[#allocation3 + $0x68] sm:$0xff] %vm5962_vm2, %v5797_v2 }
 0xa28   :  { %5882 = vrot.lane.b32.xlu1 %v5698_v11, %s8557_s6 }
 0xa2a   :  { %5886 = vrot.lane.b32.xlu0 %v5700_v60, %s8557_s6  ;;  %5884 = vrot.lane.b32.xlu2 %v5699_v22, %s8557_s6  ;;  %v5799_v44 = vpop.permute.xlu1 %5798  ;;  %v6050_v60 = vld [vmem:[#allocation2 + $0x191] sm:$0xff] }
 0xa2b   :  { %5977 = vst.msk [vmem:[#allocation3 + $0x70] sm:$0xff] %vm5962_vm2, %v5799_v44  ;;  %v6057_v44 = vld [vmem:[#allocation2 + $0x209] sm:$0xff] }
 0xa2c   :  { %v5813_v43 = vpop.permute.xlu2 %5812  ;;  %v5803_v47 = vpop.permute.xlu0 %5802 }
 0xa2d   :  { %5984 = vst.msk [vmem:[#allocation3 + $0xa8] sm:$0xff] %vm5962_vm2, %v5813_v43  ;;  %v6049_v43 = vld [vmem:[#allocation2 + $0x189] sm:$0xff] }
 0xa2e   :  { %5979 = vst.msk [vmem:[#allocation3 + $0x80] sm:$0xff] %vm5962_vm2, %v5803_v47 }
 0xa30   :  { %5888 = vrot.lane.b32.xlu1 %v5701_v48, %s8557_s6 }
 0xa32   :  { %5892 = vrot.lane.b32.xlu0 %v5703_v18, %s8557_s6  ;;  %5890 = vrot.lane.b32.xlu2 %v5702_v55, %s8557_s6  ;;  %v5805_v7 = vpop.permute.xlu1 %5804  ;;  %v6053_v18 = vld [vmem:[#allocation2 + $0x1c9] sm:$0xff] }
 0xa33   :  { %5980 = vst.msk [vmem:[#allocation3 + $0x88] sm:$0xff] %vm5962_vm2, %v5805_v7  ;;  %v6060_v7 = vld [vmem:[#allocation2 + $0x271] sm:$0xff] }
 0xa34   :  { %v5819_v10 = vpop.permute.xlu2 %5818  ;;  %v5809_v8 = vpop.permute.xlu0 %5808 }
 0xa35   :  { %5987 = vst.msk [vmem:[#allocation3 + $0xc0] sm:$0xff] %vm5962_vm2, %v5819_v10  ;;  %v6052_v10 = vld [vmem:[#allocation2 + $0x1b1] sm:$0xff] }
 0xa36   :  { %5982 = vst.msk [vmem:[#allocation3 + $0x98] sm:$0xff] %vm5962_vm2, %v5809_v8 }
 0xa38   :  { %5894 = vrot.lane.b32.xlu1 %v5704_v57, %s8557_s6 }
 0xa3a   :  { %6155 = vrot.lane.b32.xlu0 %v6027_v3, %s8558_s2  ;;  %5896 = vrot.lane.b32.xlu2 %v5705_v38, %s8557_s6  ;;  %v5811_v16 = vpop.permute.xlu1 %5810  ;;  %v6056_v3 = vld [vmem:[#allocation2 + $0x1f1] sm:$0xff] }
 0xa3b   :  { %5983 = vst.msk [vmem:[#allocation3 + $0xa0] sm:$0xff] %vm5962_vm2, %v5811_v16  ;;  %v12006_v16 = vld [vmem:[#allocation2 + $0x2a9] sm:$0xff] }
 0xa3c   :  { %v5825_v35 = vpop.permute.xlu2 %5824  ;;  %v5815_v32 = vpop.permute.xlu0 %5814 }
 0xa3d   :  { %5990 = vst.msk [vmem:[#allocation3 + $0xd8] sm:$0xff] %vm5962_vm2, %v5825_v35  ;;  %v6055_v35 = vld [vmem:[#allocation2 + $0x1e9] sm:$0xff] }
 0xa3e   :  { %5985 = vst.msk [vmem:[#allocation3 + $0xb0] sm:$0xff] %vm5962_vm2, %v5815_v32 }
 0xa40   :  { %6157 = vrot.lane.b32.xlu1 %v6028_v29, %s8558_s2 }
 0xa42   :  { %6161 = vrot.lane.b32.xlu0 %v6030_v19, %s8558_s2  ;;  %6159 = vrot.lane.b32.xlu2 %v6029_v15, %s8558_s2  ;;  %v5817_v12 = vpop.permute.xlu1 %5816  ;;  %v6059_v19 = vld [vmem:[#allocation2 + $0x269] sm:$0xff] }
 0xa43   :  { %5986 = vst.msk [vmem:[#allocation3 + $0xb8] sm:$0xff] %vm5962_vm2, %v5817_v12  ;;  %v12021_v12 = vld [vmem:[#allocation2 + $0x2d1] sm:$0xff] }
 0xa44   :  { %v5831_v28 = vpop.permute.xlu2 %5830  ;;  %v5821_v1 = vpop.permute.xlu0 %5820 }
 0xa45   :  { %5993 = vst.msk [vmem:[#allocation3 + $0xf0] sm:$0xff] %vm5962_vm2, %v5831_v28  ;;  %v6058_v28 = vld [vmem:[#allocation2 + $0x211] sm:$0xff] }
 0xa46   :  { %5988 = vst.msk [vmem:[#allocation3 + $0xc8] sm:$0xff] %vm5962_vm2, %v5821_v1 }
 0xa48   :  { %6163 = vrot.lane.b32.xlu1 %v6031_v62, %s8558_s2 }
 0xa4a   :  { %6167 = vrot.lane.b32.xlu0 %v6033_v58, %s8558_s2  ;;  %6165 = vrot.lane.b32.xlu2 %v6032_v33, %s8558_s2  ;;  %v5823_v21 = vpop.permute.xlu1 %5822  ;;  %v12013_v58 = vld [vmem:[#allocation2 + $0x291] sm:$0xff] }
 0xa4b   :  { %5989 = vst.msk [vmem:[#allocation3 + $0xd0] sm:$0xff] %vm5962_vm2, %v5823_v21  ;;  %v6069_v21 = vld [vmem:[#allocation2 + $0x309] sm:$0xff] }
 0xa4c   :  { %v5837_v9 = vpop.permute.xlu2 %5836  ;;  %v5827_v23 = vpop.permute.xlu0 %5826 }
 0xa4d   :  { %5996 = vst.msk [vmem:[#allocation3 + $0x108] sm:$0xff] %vm5962_vm2, %v5837_v9  ;;  %v12015_v9 = vld [vmem:[#allocation2 + $0x289] sm:$0xff] }
 0xa4e   :  { %5991 = vst.msk [vmem:[#allocation3 + $0xe0] sm:$0xff] %vm5962_vm2, %v5827_v23 }
 0xa50   :  { %6169 = vrot.lane.b32.xlu1 %v6034_v26, %s8558_s2 }
 0xa52   :  { %6173 = vrot.lane.b32.xlu0 %v6036_v6, %s8558_s2  ;;  %6171 = vrot.lane.b32.xlu2 %v6035_v49, %s8558_s2  ;;  %v5829_v59 = vpop.permute.xlu1 %5828  ;;  %v12028_v6 = vld [vmem:[#allocation2 + $0x2c9] sm:$0xff] }
 0xa53   :  { %5992 = vst.msk [vmem:[#allocation3 + $0xe8] sm:$0xff] %vm5962_vm2, %v5829_v59  ;;  %v6072_v59 = vld [vmem:[#allocation2 + $0x331] sm:$0xff] }
 0xa54   :  { %v5843_v51 = vpop.permute.xlu2 %5842  ;;  %v5833_v24 = vpop.permute.xlu0 %5832 }
 0xa55   :  { %5999 = vst.msk [vmem:[#allocation3 + $0x120] sm:$0xff] %vm5962_vm2, %v5843_v51  ;;  %v12030_v51 = vld [vmem:[#allocation2 + $0x2b1] sm:$0xff] }
 0xa56   :  { %5994 = vst.msk [vmem:[#allocation3 + $0xf8] sm:$0xff] %vm5962_vm2, %v5833_v24 }
 0xa58   :  { %6175 = vrot.lane.b32.xlu1 %v6037_v56, %s8558_s2 }
 0xa5a   :  { %6179 = vrot.lane.b32.xlu0 %v6039_v42, %s8558_s2  ;;  %6177 = vrot.lane.b32.xlu2 %v6038_v52, %s8558_s2  ;;  %v5835_v54 = vpop.permute.xlu1 %5834  ;;  %v12040_v42 = vld [vmem:[#allocation2 + $0x2f1] sm:$0xff] }
 0xa5b   :  { %5995 = vst.msk [vmem:[#allocation3 + $0x100] sm:$0xff] %vm5962_vm2, %v5835_v54  ;;  %v6075_v54 = vld [vmem:[#allocation2 + $0x369] sm:$0xff] }
 0xa5c   :  { %v5849_v46 = vpop.permute.xlu2 %5848  ;;  %v5839_v53 = vpop.permute.xlu0 %5838 }
 0xa5d   :  { %6002 = vst.msk [vmem:[#allocation3 + $0x138] sm:$0xff] %vm5962_vm2, %v5849_v46  ;;  %v12042_v46 = vld [vmem:[#allocation2 + $0x2e9] sm:$0xff] }
 0xa5e   :  { %5997 = vst.msk [vmem:[#allocation3 + $0x110] sm:$0xff] %vm5962_vm2, %v5839_v53 }
 0xa60   :  { %6181 = vrot.lane.b32.xlu1 %v6040_v61, %s8558_s2 }
 0xa62   :  { %6185 = vrot.lane.b32.xlu0 %v6042_v45, %s8558_s2  ;;  %6183 = vrot.lane.b32.xlu2 %v6041_v17, %s8558_s2  ;;  %v5841_v37 = vpop.permute.xlu1 %5840  ;;  %v6071_v45 = vld [vmem:[#allocation2 + $0x329] sm:$0xff] }
 0xa63   :  { %5998 = vst.msk [vmem:[#allocation3 + $0x118] sm:$0xff] %vm5962_vm2, %v5841_v37  ;;  %v6078_v37 = vld [vmem:[#allocation2 + $0x391] sm:$0xff] }
 0xa64   :  { %v5855_v36 = vpop.permute.xlu2 %5854  ;;  %v5845_v25 = vpop.permute.xlu0 %5844 }
 0xa65   :  { %6005 = vst.msk [vmem:[#allocation3 + $0x150] sm:$0xff] %vm5962_vm2, %v5855_v36  ;;  %v6070_v36 = vld [vmem:[#allocation2 + $0x311] sm:$0xff] }
 0xa66   :  { %6000 = vst.msk [vmem:[#allocation3 + $0x128] sm:$0xff] %vm5962_vm2, %v5845_v25 }
 0xa68   :  { %6187 = vrot.lane.b32.xlu1 %v6043_v34, %s8558_s2 }
 0xa6a   :  { %6191 = vrot.lane.b32.xlu0 %v6045_v14, %s8558_s2  ;;  %6189 = vrot.lane.b32.xlu2 %v6044_v39, %s8558_s2  ;;  %v5847_v4 = vpop.permute.xlu1 %5846  ;;  %v6074_v14 = vld [vmem:[#allocation2 + $0x351] sm:$0xff] }
 0xa6b   :  { %6001 = vst.msk [vmem:[#allocation3 + $0x130] sm:$0xff] %vm5962_vm2, %v5847_v4  ;;  %v6081_v4 = vld [vmem:[#allocation2 + $0x3c9] sm:$0xff] }
 0xa6c   :  { %v5861_v41 = vpop.permute.xlu2 %5860  ;;  %v5851_v13 = vpop.permute.xlu0 %5850 }
 0xa6d   :  { %6008 = vst.msk [vmem:[#allocation3 + $0x168] sm:$0xff] %vm5962_vm2, %v5861_v41  ;;  %v6073_v41 = vld [vmem:[#allocation2 + $0x349] sm:$0xff] }
 0xa6e   :  { %6003 = vst.msk [vmem:[#allocation3 + $0x140] sm:$0xff] %vm5962_vm2, %v5851_v13 }
 0xa70   :  { %6193 = vrot.lane.b32.xlu1 %v6046_v31, %s8558_s2 }
 0xa72   :  { %6197 = vrot.lane.b32.xlu0 %v6048_v63, %s8558_s2  ;;  %6195 = vrot.lane.b32.xlu2 %v6047_v27, %s8558_s2  ;;  %v5853_v0 = vpop.permute.xlu1 %5852  ;;  %v6077_v63 = vld [vmem:[#allocation2 + $0x389] sm:$0xff] }
 0xa73   :  { %6004 = vst.msk [vmem:[#allocation3 + $0x148] sm:$0xff] %vm5962_vm2, %v5853_v0  ;;  %v6084_v0 = vld [vmem:[#allocation2 + $0x3f1] sm:$0xff] }
 0xa74   :  { %v5867_v40 = vpop.permute.xlu2 %5866  ;;  %v5857_v20 = vpop.permute.xlu0 %5856 }
 0xa75   :  { %6011 = vst.msk [vmem:[#allocation3 + $0x180] sm:$0xff] %vm5962_vm2, %v5867_v40  ;;  %v6076_v40 = vld [vmem:[#allocation2 + $0x371] sm:$0xff] }
 0xa76   :  { %6006 = vst.msk [vmem:[#allocation3 + $0x158] sm:$0xff] %vm5962_vm2, %v5857_v20 }
 0xa78   :  { %6199 = vrot.lane.b32.xlu1 %v6049_v43, %s8558_s2 }
 0xa7a   :  { %6203 = vrot.lane.b32.xlu0 %v6051_v50, %s8558_s2  ;;  %6201 = vrot.lane.b32.xlu2 %v6050_v60, %s8558_s2  ;;  %v5859_v22 = vpop.permute.xlu1 %5858  ;;  %v6080_v50 = vld [vmem:[#allocation2 + $0x3b1] sm:$0xff] }
 0xa7b   :  { %6007 = vst.msk [vmem:[#allocation3 + $0x160] sm:$0xff] %vm5962_vm2, %v5859_v22  ;;  %v6087_v22 = vld [vmem:[#allocation2 + $0x429] sm:$0xff] }
 0xa7c   :  { %v5873_v2 = vpop.permute.xlu2 %5872  ;;  %v5863_v30 = vpop.permute.xlu0 %5862 }
 0xa7d   :  { %6014 = vst.msk [vmem:[#allocation3 + $0x198] sm:$0xff] %vm5962_vm2, %v5873_v2  ;;  %v6079_v2 = vld [vmem:[#allocation2 + $0x3a9] sm:$0xff] }
 0xa7e   :  { %6009 = vst.msk [vmem:[#allocation3 + $0x170] sm:$0xff] %vm5962_vm2, %v5863_v30 }
 0xa80   :  { %6205 = vrot.lane.b32.xlu1 %v6052_v10, %s8558_s2 }
 0xa82   :  { %6209 = vrot.lane.b32.xlu0 %v6054_v5, %s8558_s2  ;;  %6207 = vrot.lane.b32.xlu2 %v6053_v18, %s8558_s2  ;;  %v5865_v55 = vpop.permute.xlu1 %5864  ;;  %v6083_v5 = vld [vmem:[#allocation2 + $0x3e9] sm:$0xff] }
 0xa83   :  { %6010 = vst.msk [vmem:[#allocation3 + $0x178] sm:$0xff] %vm5962_vm2, %v5865_v55  ;;  %v6090_v55 = vld [vmem:[#allocation2 + $0x451] sm:$0xff] }
 0xa84   :  { %v5879_v47 = vpop.permute.xlu2 %5878  ;;  %v5869_v11 = vpop.permute.xlu0 %5868 }
 0xa85   :  { %6017 = vst.msk [vmem:[#allocation3 + $0x1b0] sm:$0xff] %vm5962_vm2, %v5879_v47  ;;  %v6082_v47 = vld [vmem:[#allocation2 + $0x3d1] sm:$0xff] }
 0xa86   :  { %6012 = vst.msk [vmem:[#allocation3 + $0x188] sm:$0xff] %vm5962_vm2, %v5869_v11 }
 0xa88   :  { %6211 = vrot.lane.b32.xlu1 %v6055_v35, %s8558_s2 }
 0xa8a   :  { %6215 = vrot.lane.b32.xlu0 %v6057_v44, %s8558_s2  ;;  %6213 = vrot.lane.b32.xlu2 %v6056_v3, %s8558_s2  ;;  %v5871_v38 = vpop.permute.xlu1 %5870  ;;  %v6086_v44 = vld [vmem:[#allocation2 + $0x411] sm:$0xff] }
 0xa8b   :  { %6013 = vst.msk [vmem:[#allocation3 + $0x190] sm:$0xff] %vm5962_vm2, %v5871_v38  ;;  %v6414_v38 = vld [vmem:[#allocation2 + $0x67] sm:$0xff] }
 0xa8c   :  { %v5885_v8 = vpop.permute.xlu2 %5884  ;;  %v5875_v48 = vpop.permute.xlu0 %5874 }
 0xa8d   :  { %6020 = vst.msk [vmem:[#allocation3 + $0x1c8] sm:$0xff] %vm5962_vm2, %v5885_v8  ;;  %v6085_v8 = vld [vmem:[#allocation2 + $0x409] sm:$0xff] }
 0xa8e   :  { %6015 = vst.msk [vmem:[#allocation3 + $0x1a0] sm:$0xff] %vm5962_vm2, %v5875_v48 }
 0xa90   :  { %6217 = vrot.lane.b32.xlu1 %v6058_v28, %s8558_s2 }
 0xa92   :  { %6221 = vrot.lane.b32.xlu0 %v6060_v7, %s8558_s2  ;;  %6219 = vrot.lane.b32.xlu2 %v6059_v19, %s8558_s2  ;;  %v5877_v15 = vpop.permute.xlu1 %5876  ;;  %v6089_v7 = vld [vmem:[#allocation2 + $0x449] sm:$0xff] }
 0xa93   :  { %6016 = vst.msk [vmem:[#allocation3 + $0x1a8] sm:$0xff] %vm5962_vm2, %v5877_v15  ;;  %v6412_v15 = vld [vmem:[#allocation2 + $0x47] sm:$0xff] }
 0xa94   :  { %v5891_v32 = vpop.permute.xlu2 %5890  ;;  %v5881_v57 = vpop.permute.xlu0 %5880 }
 0xa95   :  { %6023 = vst.msk [vmem:[#allocation3 + $0x1e0] sm:$0xff] %vm5962_vm2, %v5891_v32  ;;  %v6088_v32 = vld [vmem:[#allocation2 + $0x431] sm:$0xff] }
 0xa96   :  { %6018 = vst.msk [vmem:[#allocation3 + $0x1b8] sm:$0xff] %vm5962_vm2, %v5881_v57 }
 0xa98   :  { %6223 = vrot.lane.b32.xlu1 %v12015_v9, %s8558_s2 }
 0xa9a   :  { %6227 = vrot.lane.b32.xlu0 %v12006_v16, %s8558_s2  ;;  %6225 = vrot.lane.b32.xlu2 %v12013_v58, %s8558_s2  ;;  %v5883_v33 = vpop.permute.xlu1 %5882 }
 0xa9b   :  { %6019 = vst.msk [vmem:[#allocation3 + $0x1c0] sm:$0xff] %vm5962_vm2, %v5883_v33 }
 0xa9c   :  { %v5897_v1 = vpop.permute.xlu2 %5896  ;;  %v5887_v29 = vpop.permute.xlu0 %5886 }
 0xa9d   :  { %6026 = vst.msk [vmem:[#allocation3 + $0x1f8] sm:$0xff] %vm5962_vm2, %v5897_v1  ;;  %v6413_v1 = vld [vmem:[#allocation2 + $0x4f] sm:$0xff] }
 0xa9e   :  { %6021 = vst.msk [vmem:[#allocation3 + $0x1d0] sm:$0xff] %vm5962_vm2, %v5887_v29  ;;  %v6417_v29 = vld [vmem:[#allocation2 + $0x8f] sm:$0xff] }
 0xaa0   :  { %6229 = vrot.lane.b32.xlu1 %v12030_v51, %s8558_s2 }
 0xaa2   :  { %6233 = vrot.lane.b32.xlu0 %v12021_v12, %s8558_s2  ;;  %6231 = vrot.lane.b32.xlu2 %v12028_v6, %s8558_s2  ;;  %v5889_v49 = vpop.permute.xlu1 %5888 }
 0xaa3   :  { %6022 = vst.msk [vmem:[#allocation3 + $0x1d8] sm:$0xff] %vm5962_vm2, %v5889_v49  ;;  %v6420_v49 = vld [vmem:[#allocation2 + $0xc7] sm:$0xff] }
 0xaa4   :  { %v6160_v23 = vpop.permute.xlu2 %6159  ;;  %v5893_v62 = vpop.permute.xlu0 %5892 }
 0xaa5   :  { %6350 = vst.msk [vmem:[#allocation3 + $0x10] sm:$0xff] %vm6347_vm3, %v6160_v23 }
 0xaa6   :  { %6024 = vst.msk [vmem:[#allocation3 + $0x1e8] sm:$0xff] %vm5962_vm2, %v5893_v62 }
 0xaa8   :  { %6235 = vrot.lane.b32.xlu1 %v12042_v46, %s8558_s2 }
 0xaaa   :  { %6239 = vrot.lane.b32.xlu0 %v6069_v21, %s8558_s2  ;;  %6237 = vrot.lane.b32.xlu2 %v12040_v42, %s8558_s2  ;;  %v5895_v52 = vpop.permute.xlu1 %5894  ;;  %v6416_v21 = vld [vmem:[#allocation2 + $0x87] sm:$0xff] }
 0xaab   :  { %6025 = vst.msk [vmem:[#allocation3 + $0x1f0] sm:$0xff] %vm5962_vm2, %v5895_v52  ;;  %v6419_v52 = vld [vmem:[#allocation2 + $0xaf] sm:$0xff] }
 0xaac   :  { %v6166_v24 = vpop.permute.xlu2 %6165  ;;  %v6156_v26 = vpop.permute.xlu0 %6155 }
 0xaad   :  { %6353 = vst.msk [vmem:[#allocation3 + $0x28] sm:$0xff] %vm6347_vm3, %v6166_v24  ;;  %v6415_v24 = vld [vmem:[#allocation2 + $0x6f] sm:$0xff] }
 0xaae   :  { %6348 = vst.msk [vmem:[#allocation3] sm:$0xff] %vm6347_vm3, %v6156_v26 }
 0xab0   :  { %6241 = vrot.lane.b32.xlu1 %v6070_v36, %s8558_s2 }
 0xab2   :  { %6245 = vrot.lane.b32.xlu0 %v6072_v59, %s8558_s2  ;;  %6243 = vrot.lane.b32.xlu2 %v6071_v45, %s8558_s2  ;;  %v6158_v17 = vpop.permute.xlu1 %6157  ;;  %v6423_v45 = vld [vmem:[#allocation2 + $0xef] sm:$0xff] }
 0xab3   :  { %6349 = vst.msk [vmem:[#allocation3 + $0x8] sm:$0xff] %vm6347_vm3, %v6158_v17  ;;  %v6422_v17 = vld [vmem:[#allocation2 + $0xe7] sm:$0xff] }
 0xab4   :  { %v6172_v53 = vpop.permute.xlu2 %6171  ;;  %v6162_v56 = vpop.permute.xlu0 %6161 }
 0xab5   :  { %6356 = vst.msk [vmem:[#allocation3 + $0x40] sm:$0xff] %vm6347_vm3, %v6172_v53 }
 0xab6   :  { %6351 = vst.msk [vmem:[#allocation3 + $0x18] sm:$0xff] %vm6347_vm3, %v6162_v56  ;;  %v6418_v56 = vld [vmem:[#allocation2 + $0xa7] sm:$0xff] }
 0xab8   :  { %6247 = vrot.lane.b32.xlu1 %v6073_v41, %s8558_s2 }
 0xaba   :  { %6251 = vrot.lane.b32.xlu0 %v6075_v54, %s8558_s2  ;;  %6249 = vrot.lane.b32.xlu2 %v6074_v14, %s8558_s2  ;;  %v6164_v39 = vpop.permute.xlu1 %6163  ;;  %v6426_v14 = vld [vmem:[#allocation2 + $0x127] sm:$0xff] }
 0xabb   :  { %6352 = vst.msk [vmem:[#allocation3 + $0x20] sm:$0xff] %vm6347_vm3, %v6164_v39  ;;  %v6425_v39 = vld [vmem:[#allocation2 + $0x10f] sm:$0xff] }
 0xabc   :  { %v6178_v25 = vpop.permute.xlu2 %6177  ;;  %v6168_v61 = vpop.permute.xlu0 %6167 }
 0xabd   :  { %6359 = vst.msk [vmem:[#allocation3 + $0x58] sm:$0xff] %vm6347_vm3, %v6178_v25 }
 0xabe   :  { %6354 = vst.msk [vmem:[#allocation3 + $0x30] sm:$0xff] %vm6347_vm3, %v6168_v61  ;;  %v6421_v61 = vld [vmem:[#allocation2 + $0xcf] sm:$0xff] }
 0xac0   :  { %6253 = vrot.lane.b32.xlu1 %v6076_v40, %s8558_s2 }
 0xac2   :  { %6257 = vrot.lane.b32.xlu0 %v6078_v37, %s8558_s2  ;;  %6255 = vrot.lane.b32.xlu2 %v6077_v63, %s8558_s2  ;;  %v6170_v27 = vpop.permute.xlu1 %6169  ;;  %v6429_v63 = vld [vmem:[#allocation2 + $0x14f] sm:$0xff] }
 0xac3   :  { %6355 = vst.msk [vmem:[#allocation3 + $0x38] sm:$0xff] %vm6347_vm3, %v6170_v27  ;;  %v6428_v27 = vld [vmem:[#allocation2 + $0x147] sm:$0xff] }
 0xac4   :  { %v6184_v13 = vpop.permute.xlu2 %6183  ;;  %v6174_v34 = vpop.permute.xlu0 %6173 }
 0xac5   :  { %6362 = vst.msk [vmem:[#allocation3 + $0x70] sm:$0xff] %vm6347_vm3, %v6184_v13 }
 0xac6   :  { %6357 = vst.msk [vmem:[#allocation3 + $0x48] sm:$0xff] %vm6347_vm3, %v6174_v34  ;;  %v6424_v34 = vld [vmem:[#allocation2 + $0x107] sm:$0xff] }
 0xac8   :  { %6259 = vrot.lane.b32.xlu1 %v6079_v2, %s8558_s2 }
 0xaca   :  { %6263 = vrot.lane.b32.xlu0 %v6081_v4, %s8558_s2  ;;  %6261 = vrot.lane.b32.xlu2 %v6080_v50, %s8558_s2  ;;  %v6176_v60 = vpop.permute.xlu1 %6175  ;;  %v6432_v50 = vld [vmem:[#allocation2 + $0x187] sm:$0xff] }
 0xacb   :  { %6358 = vst.msk [vmem:[#allocation3 + $0x50] sm:$0xff] %vm6347_vm3, %v6176_v60  ;;  %v6431_v60 = vld [vmem:[#allocation2 + $0x16f] sm:$0xff] }
 0xacc   :  { %v6190_v20 = vpop.permute.xlu2 %6189  ;;  %v6180_v31 = vpop.permute.xlu0 %6179 }
 0xacd   :  { %6365 = vst.msk [vmem:[#allocation3 + $0x88] sm:$0xff] %vm6347_vm3, %v6190_v20 }
 0xace   :  { %6360 = vst.msk [vmem:[#allocation3 + $0x60] sm:$0xff] %vm6347_vm3, %v6180_v31  ;;  %v6427_v31 = vld [vmem:[#allocation2 + $0x12f] sm:$0xff] }
 0xad0   :  { %6265 = vrot.lane.b32.xlu1 %v6082_v47, %s8558_s2 }
 0xad2   :  { %6269 = vrot.lane.b32.xlu0 %v6084_v0, %s8558_s2  ;;  %6267 = vrot.lane.b32.xlu2 %v6083_v5, %s8558_s2  ;;  %v6182_v18 = vpop.permute.xlu1 %6181  ;;  %v6435_v5 = vld [vmem:[#allocation2 + $0x1af] sm:$0xff] }
 0xad3   :  { %6361 = vst.msk [vmem:[#allocation3 + $0x68] sm:$0xff] %vm6347_vm3, %v6182_v18  ;;  %v6434_v18 = vld [vmem:[#allocation2 + $0x1a7] sm:$0xff] }
 0xad4   :  { %v6196_v30 = vpop.permute.xlu2 %6195  ;;  %v6186_v43 = vpop.permute.xlu0 %6185 }
 0xad5   :  { %6368 = vst.msk [vmem:[#allocation3 + $0xa0] sm:$0xff] %vm6347_vm3, %v6196_v30 }
 0xad6   :  { %6363 = vst.msk [vmem:[#allocation3 + $0x78] sm:$0xff] %vm6347_vm3, %v6186_v43  ;;  %v6430_v43 = vld [vmem:[#allocation2 + $0x167] sm:$0xff] }
 0xad8   :  { %6271 = vrot.lane.b32.xlu1 %v6085_v8, %s8558_s2 }
 0xada   :  { %6275 = vrot.lane.b32.xlu0 %v6087_v22, %s8558_s2  ;;  %6273 = vrot.lane.b32.xlu2 %v6086_v44, %s8558_s2  ;;  %v6188_v3 = vpop.permute.xlu1 %6187  ;;  %v6438_v44 = vld [vmem:[#allocation2 + $0x1e7] sm:$0xff] }
 0xadb   :  { %6364 = vst.msk [vmem:[#allocation3 + $0x80] sm:$0xff] %vm6347_vm3, %v6188_v3  ;;  %v6437_v3 = vld [vmem:[#allocation2 + $0x1cf] sm:$0xff] }
 0xadc   :  { %v6202_v11 = vpop.permute.xlu2 %6201  ;;  %v6192_v10 = vpop.permute.xlu0 %6191 }
 0xadd   :  { %6371 = vst.msk [vmem:[#allocation3 + $0xb8] sm:$0xff] %vm6347_vm3, %v6202_v11 }
 0xade   :  { %6366 = vst.msk [vmem:[#allocation3 + $0x90] sm:$0xff] %vm6347_vm3, %v6192_v10  ;;  %v6433_v10 = vld [vmem:[#allocation2 + $0x18f] sm:$0xff] }
 0xae0   :  { %6277 = vrot.lane.b32.xlu1 %v6088_v32, %s8558_s2 }
 0xae2   :  { %6281 = vrot.lane.b32.xlu0 %v6090_v55, %s8558_s2  ;;  %6279 = vrot.lane.b32.xlu2 %v6089_v7, %s8558_s2  ;;  %v6194_v19 = vpop.permute.xlu1 %6193  ;;  %v6441_v7 = vld [vmem:[#allocation2 + $0x20f] sm:$0xff] }
 0xae3   :  { %6367 = vst.msk [vmem:[#allocation3 + $0x98] sm:$0xff] %vm6347_vm3, %v6194_v19  ;;  %v6440_v19 = vld [vmem:[#allocation2 + $0x207] sm:$0xff] }
 0xae4   :  { %v6208_v48 = vpop.permute.xlu2 %6207  ;;  %v6198_v35 = vpop.permute.xlu0 %6197 }
 0xae5   :  { %6374 = vst.msk [vmem:[#allocation3 + $0xd0] sm:$0xff] %vm6347_vm3, %v6208_v48 }
 0xae6   :  { %6369 = vst.msk [vmem:[#allocation3 + $0xa8] sm:$0xff] %vm6347_vm3, %v6198_v35  ;;  %v6436_v35 = vld [vmem:[#allocation2 + $0x1c7] sm:$0xff] }
 0xae8   :  { %6540 = vrot.lane.b32.xlu1 %v6412_v15, %s8559_s14 }
 0xaea   :  { %6544 = vrot.lane.b32.xlu0 %v6414_v38, %s8559_s14  ;;  %6542 = vrot.lane.b32.xlu2 %v6413_v1, %s8559_s14  ;;  %v6200_v33 = vpop.permute.xlu1 %6199  ;;  %v6444_v1 = vld [vmem:[#allocation2 + $0x287] sm:$0xff] }
 0xaeb   :  { %6370 = vst.msk [vmem:[#allocation3 + $0xb0] sm:$0xff] %vm6347_vm3, %v6200_v33  ;;  %v6443_v33 = vld [vmem:[#allocation2 + $0x22f] sm:$0xff] }
 0xaec   :  { %v6214_v57 = vpop.permute.xlu2 %6213  ;;  %v6204_v28 = vpop.permute.xlu0 %6203 }
 0xaed   :  { %6377 = vst.msk [vmem:[#allocation3 + $0xe8] sm:$0xff] %vm6347_vm3, %v6214_v57 }
 0xaee   :  { %6372 = vst.msk [vmem:[#allocation3 + $0xc0] sm:$0xff] %vm6347_vm3, %v6204_v28  ;;  %v6439_v28 = vld [vmem:[#allocation2 + $0x1ef] sm:$0xff] }
 0xaf0   :  { %6546 = vrot.lane.b32.xlu1 %v6415_v24, %s8559_s14 }
 0xaf2   :  { %6550 = vrot.lane.b32.xlu0 %v6417_v29, %s8559_s14  ;;  %6548 = vrot.lane.b32.xlu2 %v6416_v21, %s8559_s14  ;;  %v6206_v59 = vpop.permute.xlu1 %6205  ;;  %v6447_v21 = vld [vmem:[#allocation2 + $0x2af] sm:$0xff] }
 0xaf3   :  { %6373 = vst.msk [vmem:[#allocation3 + $0xc8] sm:$0xff] %vm6347_vm3, %v6206_v59  ;;  %v6446_v59 = vld [vmem:[#allocation2 + $0x2a7] sm:$0xff] }
 0xaf4   :  { %v6220_v23 = vpop.permute.xlu2 %6219  ;;  %v6210_v62 = vpop.permute.xlu0 %6209 }
 0xaf5   :  { %6380 = vst.msk [vmem:[#allocation3 + $0x100] sm:$0xff] %vm6347_vm3, %v6220_v23 }
 0xaf6   :  { %6375 = vst.msk [vmem:[#allocation3 + $0xd8] sm:$0xff] %vm6347_vm3, %v6210_v62  ;;  %v6442_v62 = vld [vmem:[#allocation2 + $0x227] sm:$0xff] }
 0xaf8   :  { %6552 = vrot.lane.b32.xlu1 %v6418_v56, %s8559_s14 }
 0xafa   :  { %6556 = vrot.lane.b32.xlu0 %v6420_v49, %s8559_s14  ;;  %6554 = vrot.lane.b32.xlu2 %v6419_v52, %s8559_s14  ;;  %v6212_v54 = vpop.permute.xlu1 %6211  ;;  %v6450_v52 = vld [vmem:[#allocation2 + $0x2e7] sm:$0xff] }
 0xafb   :  { %6376 = vst.msk [vmem:[#allocation3 + $0xe0] sm:$0xff] %vm6347_vm3, %v6212_v54  ;;  %v6449_v54 = vld [vmem:[#allocation2 + $0x2cf] sm:$0xff] }
 0xafc   :  { %v6226_v26 = vpop.permute.xlu2 %6225  ;;  %v6216_v53 = vpop.permute.xlu0 %6215 }
 0xafd   :  { %6383 = vst.msk [vmem:[#allocation3 + $0x118] sm:$0xff] %vm6347_vm3, %v6226_v26 }
 0xafe   :  { %6378 = vst.msk [vmem:[#allocation3 + $0xf0] sm:$0xff] %vm6347_vm3, %v6216_v53  ;;  %v6445_v53 = vld [vmem:[#allocation2 + $0x28f] sm:$0xff] }
 0xb00   :  { %6558 = vrot.lane.b32.xlu1 %v6421_v61, %s8559_s14 }
 0xb02   :  { %6562 = vrot.lane.b32.xlu0 %v6423_v45, %s8559_s14  ;;  %6560 = vrot.lane.b32.xlu2 %v6422_v17, %s8559_s14  ;;  %v6218_v37 = vpop.permute.xlu1 %6217  ;;  %v6453_v17 = vld [vmem:[#allocation2 + $0x30f] sm:$0xff] }
 0xb03   :  { %6379 = vst.msk [vmem:[#allocation3 + $0xf8] sm:$0xff] %vm6347_vm3, %v6218_v37  ;;  %v6452_v37 = vld [vmem:[#allocation2 + $0x307] sm:$0xff] }
 0xb04   :  { %v6232_v36 = vpop.permute.xlu2 %6231  ;;  %v6222_v25 = vpop.permute.xlu0 %6221 }
 0xb05   :  { %6386 = vst.msk [vmem:[#allocation3 + $0x130] sm:$0xff] %vm6347_vm3, %v6232_v36 }
 0xb06   :  { %6381 = vst.msk [vmem:[#allocation3 + $0x108] sm:$0xff] %vm6347_vm3, %v6222_v25  ;;  %v6448_v25 = vld [vmem:[#allocation2 + $0x2c7] sm:$0xff] }
 0xb08   :  { %6564 = vrot.lane.b32.xlu1 %v6424_v34, %s8559_s14 }
 0xb0a   :  { %6568 = vrot.lane.b32.xlu0 %v6426_v14, %s8559_s14  ;;  %6566 = vrot.lane.b32.xlu2 %v6425_v39, %s8559_s14  ;;  %v6224_v4 = vpop.permute.xlu1 %6223  ;;  %v6456_v39 = vld [vmem:[#allocation2 + $0x347] sm:$0xff] }
 0xb0b   :  { %6382 = vst.msk [vmem:[#allocation3 + $0x110] sm:$0xff] %vm6347_vm3, %v6224_v4  ;;  %v6455_v4 = vld [vmem:[#allocation2 + $0x32f] sm:$0xff] }
 0xb0c   :  { %v6238_v41 = vpop.permute.xlu2 %6237  ;;  %v6228_v13 = vpop.permute.xlu0 %6227 }
 0xb0d   :  { %6389 = vst.msk [vmem:[#allocation3 + $0x148] sm:$0xff] %vm6347_vm3, %v6238_v41 }
 0xb0e   :  { %6384 = vst.msk [vmem:[#allocation3 + $0x120] sm:$0xff] %vm6347_vm3, %v6228_v13  ;;  %v6451_v13 = vld [vmem:[#allocation2 + $0x2ef] sm:$0xff] }
 0xb10   :  { %6570 = vrot.lane.b32.xlu1 %v6427_v31, %s8559_s14 }
 0xb12   :  { %6574 = vrot.lane.b32.xlu0 %v6429_v63, %s8559_s14  ;;  %6572 = vrot.lane.b32.xlu2 %v6428_v27, %s8559_s14  ;;  %v6230_v0 = vpop.permute.xlu1 %6229  ;;  %v6459_v27 = vld [vmem:[#allocation2 + $0x36f] sm:$0xff] }
 0xb13   :  { %6385 = vst.msk [vmem:[#allocation3 + $0x128] sm:$0xff] %vm6347_vm3, %v6230_v0  ;;  %v6458_v0 = vld [vmem:[#allocation2 + $0x367] sm:$0xff] }
 0xb14   :  { %v6244_v40 = vpop.permute.xlu2 %6243  ;;  %v6234_v20 = vpop.permute.xlu0 %6233 }
 0xb15   :  { %6392 = vst.msk [vmem:[#allocation3 + $0x160] sm:$0xff] %vm6347_vm3, %v6244_v40 }
 0xb16   :  { %6387 = vst.msk [vmem:[#allocation3 + $0x138] sm:$0xff] %vm6347_vm3, %v6234_v20  ;;  %v6454_v20 = vld [vmem:[#allocation2 + $0x327] sm:$0xff] }
 0xb18   :  { %6576 = vrot.lane.b32.xlu1 %v6430_v43, %s8559_s14 }
 0xb1a   :  { %6580 = vrot.lane.b32.xlu0 %v6432_v50, %s8559_s14  ;;  %6578 = vrot.lane.b32.xlu2 %v6431_v60, %s8559_s14  ;;  %v6236_v22 = vpop.permute.xlu1 %6235  ;;  %v6462_v60 = vld [vmem:[#allocation2 + $0x3a7] sm:$0xff] }
 0xb1b   :  { %6388 = vst.msk [vmem:[#allocation3 + $0x140] sm:$0xff] %vm6347_vm3, %v6236_v22  ;;  %v6461_v22 = vld [vmem:[#allocation2 + $0x38f] sm:$0xff] }
 0xb1c   :  { %v6250_v2 = vpop.permute.xlu2 %6249  ;;  %v6240_v30 = vpop.permute.xlu0 %6239 }
 0xb1d   :  { %6395 = vst.msk [vmem:[#allocation3 + $0x178] sm:$0xff] %vm6347_vm3, %v6250_v2 }
 0xb1e   :  { %6390 = vst.msk [vmem:[#allocation3 + $0x150] sm:$0xff] %vm6347_vm3, %v6240_v30  ;;  %v6457_v30 = vld [vmem:[#allocation2 + $0x34f] sm:$0xff] }
 0xb20   :  { %6582 = vrot.lane.b32.xlu1 %v6433_v10, %s8559_s14 }
 0xb22   :  { %6586 = vrot.lane.b32.xlu0 %v6435_v5, %s8559_s14  ;;  %6584 = vrot.lane.b32.xlu2 %v6434_v18, %s8559_s14  ;;  %v6242_v55 = vpop.permute.xlu1 %6241  ;;  %v6465_v18 = vld [vmem:[#allocation2 + $0x3cf] sm:$0xff] }
 0xb23   :  { %6391 = vst.msk [vmem:[#allocation3 + $0x158] sm:$0xff] %vm6347_vm3, %v6242_v55  ;;  %v6464_v55 = vld [vmem:[#allocation2 + $0x3c7] sm:$0xff] }
 0xb24   :  { %v6256_v47 = vpop.permute.xlu2 %6255  ;;  %v6246_v11 = vpop.permute.xlu0 %6245 }
 0xb25   :  { %6398 = vst.msk [vmem:[#allocation3 + $0x190] sm:$0xff] %vm6347_vm3, %v6256_v47 }
 0xb26   :  { %6393 = vst.msk [vmem:[#allocation3 + $0x168] sm:$0xff] %vm6347_vm3, %v6246_v11  ;;  %v6460_v11 = vld [vmem:[#allocation2 + $0x387] sm:$0xff] }
 0xb28   :  { %6588 = vrot.lane.b32.xlu1 %v6436_v35, %s8559_s14 }
 0xb2a   :  { %6592 = vrot.lane.b32.xlu0 %v6438_v44, %s8559_s14  ;;  %6590 = vrot.lane.b32.xlu2 %v6437_v3, %s8559_s14  ;;  %v6248_v38 = vpop.permute.xlu1 %6247  ;;  %v6468_v3 = vld [vmem:[#allocation2 + $0x407] sm:$0xff] }
 0xb2b   :  { %6394 = vst.msk [vmem:[#allocation3 + $0x170] sm:$0xff] %vm6347_vm3, %v6248_v38  ;;  %v6467_v38 = vld [vmem:[#allocation2 + $0x3ef] sm:$0xff] }
 0xb2c   :  { %v6262_v8 = vpop.permute.xlu2 %6261  ;;  %v6252_v48 = vpop.permute.xlu0 %6251 }
 0xb2d   :  { %6401 = vst.msk [vmem:[#allocation3 + $0x1a8] sm:$0xff] %vm6347_vm3, %v6262_v8 }
 0xb2e   :  { %6396 = vst.msk [vmem:[#allocation3 + $0x180] sm:$0xff] %vm6347_vm3, %v6252_v48  ;;  %v6463_v48 = vld [vmem:[#allocation2 + $0x3af] sm:$0xff] }
 0xb30   :  { %6594 = vrot.lane.b32.xlu1 %v6439_v28, %s8559_s14 }
 0xb32   :  { %6598 = vrot.lane.b32.xlu0 %v6441_v7, %s8559_s14  ;;  %6596 = vrot.lane.b32.xlu2 %v6440_v19, %s8559_s14  ;;  %v6254_v29 = vpop.permute.xlu1 %6253  ;;  %v6471_v19 = vld [vmem:[#allocation2 + $0x42f] sm:$0xff] }
 0xb33   :  { %6397 = vst.msk [vmem:[#allocation3 + $0x188] sm:$0xff] %vm6347_vm3, %v6254_v29  ;;  %v6474_v29 = vld [vmem:[#allocation2 + $0x467] sm:$0xff] }
 0xb34   :  { %v6268_v32 = vpop.permute.xlu2 %6267  ;;  %v6258_v57 = vpop.permute.xlu0 %6257 }
 0xb35   :  { %6404 = vst.msk [vmem:[#allocation3 + $0x1c0] sm:$0xff] %vm6347_vm3, %v6268_v32 }
 0xb36   :  { %6399 = vst.msk [vmem:[#allocation3 + $0x198] sm:$0xff] %vm6347_vm3, %v6258_v57  ;;  %v6466_v57 = vld [vmem:[#allocation2 + $0x3e7] sm:$0xff] }
 0xb38   :  { %6600 = vrot.lane.b32.xlu1 %v6442_v62, %s8559_s14 }
 0xb3a   :  { %6604 = vrot.lane.b32.xlu0 %v6444_v1, %s8559_s14  ;;  %6602 = vrot.lane.b32.xlu2 %v6443_v33, %s8559_s14  ;;  %v6260_v49 = vpop.permute.xlu1 %6259  ;;  %v6469_v33 = vld [vmem:[#allocation2 + $0x40f] sm:$0xff] }
 0xb3b   :  { %6400 = vst.msk [vmem:[#allocation3 + $0x1a0] sm:$0xff] %vm6347_vm3, %v6260_v49  ;;  %v6473_v49 = vld [vmem:[#allocation2 + $0x44f] sm:$0xff] }
 0xb3c   :  { %v6274_v15 = vpop.permute.xlu2 %6273  ;;  %v6264_v23 = vpop.permute.xlu0 %6263 }
 0xb3d   :  { %6407 = vst.msk [vmem:[#allocation3 + $0x1d8] sm:$0xff] %vm6347_vm3, %v6274_v15 }
 0xb3e   :  { %6402 = vst.msk [vmem:[#allocation3 + $0x1b0] sm:$0xff] %vm6347_vm3, %v6264_v23  ;;  %v6470_v23 = vld [vmem:[#allocation2 + $0x427] sm:$0xff] }
 0xb40   :  { %6606 = vrot.lane.b32.xlu1 %v6445_v53, %s8559_s14 }
 0xb42   :  { %6610 = vrot.lane.b32.xlu0 %v6447_v21, %s8559_s14  ;;  %6608 = vrot.lane.b32.xlu2 %v6446_v59, %s8559_s14  ;;  %v6266_v45 = vpop.permute.xlu1 %6265  ;;  %v6798_v59 = vld [vmem:[#allocation2 + $0x50] sm:$0xff] }
 0xb43   :  { %6403 = vst.msk [vmem:[#allocation3 + $0x1b8] sm:$0xff] %vm6347_vm3, %v6266_v45  ;;  %v6475_v45 = vld [vmem:[#allocation2 + $0x46f] sm:$0xff] }
 0xb44   :  { %v6280_v24 = vpop.permute.xlu2 %6279  ;;  %v6270_v26 = vpop.permute.xlu0 %6269 }
 0xb45   :  { %6410 = vst.msk [vmem:[#allocation3 + $0x1f0] sm:$0xff] %vm6347_vm3, %v6280_v24 }
 0xb46   :  { %6405 = vst.msk [vmem:[#allocation3 + $0x1c8] sm:$0xff] %vm6347_vm3, %v6270_v26  ;;  %v6472_v26 = vld [vmem:[#allocation2 + $0x447] sm:$0xff] }
 0xb48   :  { %6612 = vrot.lane.b32.xlu1 %v6448_v25, %s8559_s14 }
 0xb4a   :  { %6616 = vrot.lane.b32.xlu0 %v6450_v52, %s8559_s14  ;;  %6614 = vrot.lane.b32.xlu2 %v6449_v54, %s8559_s14  ;;  %v6272_v14 = vpop.permute.xlu1 %6271  ;;  %v6801_v54 = vld [vmem:[#allocation2 + $0x88] sm:$0xff] }
 0xb4b   :  { %6406 = vst.msk [vmem:[#allocation3 + $0x1d0] sm:$0xff] %vm6347_vm3, %v6272_v14  ;;  %v6800_v14 = vld [vmem:[#allocation2 + $0x70] sm:$0xff] }
 0xb4c   :  { %v6543_v56 = vpop.permute.xlu2 %6542  ;;  %v6276_v36 = vpop.permute.xlu0 %6275 }
 0xb4d   :  { %6734 = vst.msk [vmem:[#allocation3 + $0x8] sm:$0xff] %vm6732_vm4, %v6543_v56 }
 0xb4e   :  { %6408 = vst.msk [vmem:[#allocation3 + $0x1e0] sm:$0xff] %vm6347_vm3, %v6276_v36  ;;  %v6797_v36 = vld [vmem:[#allocation2 + $0x48] sm:$0xff] }
 0xb50   :  { %6618 = vrot.lane.b32.xlu1 %v6451_v13, %s8559_s14 }
 0xb52   :  { %6622 = vrot.lane.b32.xlu0 %v6453_v17, %s8559_s14  ;;  %6620 = vrot.lane.b32.xlu2 %v6452_v37, %s8559_s14  ;;  %v6278_v63 = vpop.permute.xlu1 %6277  ;;  %v6804_v37 = vld [vmem:[#allocation2 + $0xb0] sm:$0xff] }
 0xb53   :  { %6409 = vst.msk [vmem:[#allocation3 + $0x1e8] sm:$0xff] %vm6347_vm3, %v6278_v63  ;;  %v6803_v63 = vld [vmem:[#allocation2 + $0xa8] sm:$0xff] }
 0xb54   :  { %v6549_v61 = vpop.permute.xlu2 %6548  ;;  %v6282_v41 = vpop.permute.xlu0 %6281 }
 0xb55   :  { %6737 = vst.msk [vmem:[#allocation3 + $0x20] sm:$0xff] %vm6732_vm4, %v6549_v61 }
 0xb56   :  { %6411 = vst.msk [vmem:[#allocation3 + $0x1f8] sm:$0xff] %vm6347_vm3, %v6282_v41  ;;  %v6799_v41 = vld [vmem:[#allocation2 + $0x68] sm:$0xff] }
 0xb58   :  { %6624 = vrot.lane.b32.xlu1 %v6454_v20, %s8559_s14 }
 0xb5a   :  { %6628 = vrot.lane.b32.xlu0 %v6456_v39, %s8559_s14  ;;  %6626 = vrot.lane.b32.xlu2 %v6455_v4, %s8559_s14  ;;  %v6541_v50 = vpop.permute.xlu1 %6540  ;;  %v6807_v4 = vld [vmem:[#allocation2 + $0xe8] sm:$0xff] }
 0xb5b   :  { %6733 = vst.msk [vmem:[#allocation3] sm:$0xff] %vm6732_vm4, %v6541_v50  ;;  %v6806_v50 = vld [vmem:[#allocation2 + $0xd0] sm:$0xff] }
 0xb5c   :  { %v6555_v34 = vpop.permute.xlu2 %6554  ;;  %v6545_v40 = vpop.permute.xlu0 %6544 }
 0xb5d   :  { %6740 = vst.msk [vmem:[#allocation3 + $0x38] sm:$0xff] %vm6732_vm4, %v6555_v34 }
 0xb5e   :  { %6735 = vst.msk [vmem:[#allocation3 + $0x10] sm:$0xff] %vm6732_vm4, %v6545_v40  ;;  %v6802_v40 = vld [vmem:[#allocation2 + $0x90] sm:$0xff] }
 0xb60   :  { %6630 = vrot.lane.b32.xlu1 %v6457_v30, %s8559_s14 }
 0xb62   :  { %6634 = vrot.lane.b32.xlu0 %v6459_v27, %s8559_s14  ;;  %6632 = vrot.lane.b32.xlu2 %v6458_v0, %s8559_s14  ;;  %v6547_v5 = vpop.permute.xlu1 %6546  ;;  %v7182_v0 = vld [vmem:[#allocation2 + $0x49] sm:$0xff] }
 0xb63   :  { %6736 = vst.msk [vmem:[#allocation3 + $0x18] sm:$0xff] %vm6732_vm4, %v6547_v5  ;;  %v6809_v5 = vld [vmem:[#allocation2 + $0x108] sm:$0xff] }
 0xb64   :  { %v6561_v31 = vpop.permute.xlu2 %6560  ;;  %v6551_v2 = vpop.permute.xlu0 %6550 }
 0xb65   :  { %6743 = vst.msk [vmem:[#allocation3 + $0x50] sm:$0xff] %vm6732_vm4, %v6561_v31 }
 0xb66   :  { %6738 = vst.msk [vmem:[#allocation3 + $0x28] sm:$0xff] %vm6732_vm4, %v6551_v2  ;;  %v6805_v2 = vld [vmem:[#allocation2 + $0xc8] sm:$0xff] }
 0xb68   :  { %6636 = vrot.lane.b32.xlu1 %v6460_v11, %s8559_s14 }
 0xb6a   :  { %6640 = vrot.lane.b32.xlu0 %v6462_v60, %s8559_s14  ;;  %6638 = vrot.lane.b32.xlu2 %v6461_v22, %s8559_s14  ;;  %v6553_v44 = vpop.permute.xlu1 %6552  ;;  %v7183_v22 = vld [vmem:[#allocation2 + $0x51] sm:$0xff] }
 0xb6b   :  { %6739 = vst.msk [vmem:[#allocation3 + $0x30] sm:$0xff] %vm6732_vm4, %v6553_v44  ;;  %v6829_v44 = vld [vmem:[#allocation2 + $0x288] sm:$0xff] }
 0xb6c   :  { %v6567_v43 = vpop.permute.xlu2 %6566  ;;  %v6557_v47 = vpop.permute.xlu0 %6556 }
 0xb6d   :  { %6746 = vst.msk [vmem:[#allocation3 + $0x68] sm:$0xff] %vm6732_vm4, %v6567_v43 }
 0xb6e   :  { %6741 = vst.msk [vmem:[#allocation3 + $0x40] sm:$0xff] %vm6732_vm4, %v6557_v47  ;;  %v6808_v47 = vld [vmem:[#allocation2 + $0xf0] sm:$0xff] }
 0xb70   :  { %6642 = vrot.lane.b32.xlu1 %v6463_v48, %s8559_s14 }
 0xb72   :  { %6646 = vrot.lane.b32.xlu0 %v6465_v18, %s8559_s14  ;;  %6644 = vrot.lane.b32.xlu2 %v6464_v55, %s8559_s14  ;;  %v6559_v7 = vpop.permute.xlu1 %6558 }
 0xb73   :  { %6742 = vst.msk [vmem:[#allocation3 + $0x48] sm:$0xff] %vm6732_vm4, %v6559_v7 }
 0xb74   :  { %v6573_v10 = vpop.permute.xlu2 %6572  ;;  %v6563_v8 = vpop.permute.xlu0 %6562 }
 0xb75   :  { %6749 = vst.msk [vmem:[#allocation3 + $0x80] sm:$0xff] %vm6732_vm4, %v6573_v10 }
 0xb76   :  { %6744 = vst.msk [vmem:[#allocation3 + $0x58] sm:$0xff] %vm6732_vm4, %v6563_v8  ;;  %v7184_v8 = vld [vmem:[#allocation2 + $0x69] sm:$0xff] }
 0xb78   :  { %6648 = vrot.lane.b32.xlu1 %v6466_v57, %s8559_s14  ;;  %v6831_v57 = vld [vmem:[#allocation2 + $0x2a8] sm:$0xff] }
 0xb7a   :  { %6652 = vrot.lane.b32.xlu0 %v6468_v3, %s8559_s14  ;;  %6650 = vrot.lane.b32.xlu2 %v6467_v38, %s8559_s14  ;;  %v6565_v1 = vpop.permute.xlu1 %6564 }
 0xb7b   :  { %6745 = vst.msk [vmem:[#allocation3 + $0x60] sm:$0xff] %vm6732_vm4, %v6565_v1 }
 0xb7c   :  { %v6579_v35 = vpop.permute.xlu2 %6578  ;;  %v6569_v32 = vpop.permute.xlu0 %6568 }
 0xb7d   :  { %6752 = vst.msk [vmem:[#allocation3 + $0x98] sm:$0xff] %vm6732_vm4, %v6579_v35  ;;  %v6830_v35 = vld [vmem:[#allocation2 + $0x290] sm:$0xff] }
 0xb7e   :  { %6747 = vst.msk [vmem:[#allocation3 + $0x70] sm:$0xff] %vm6732_vm4, %v6569_v32 }
 0xb80   :  { %6654 = vrot.lane.b32.xlu1 %v6469_v33, %s8559_s14 }
 0xb82   :  { %6658 = vrot.lane.b32.xlu0 %v6471_v19, %s8559_s14  ;;  %6656 = vrot.lane.b32.xlu2 %v6470_v23, %s8559_s14  ;;  %v6571_v21 = vpop.permute.xlu1 %6570 }
 0xb83   :  { %6748 = vst.msk [vmem:[#allocation3 + $0x78] sm:$0xff] %vm6732_vm4, %v6571_v21 }
 0xb84   :  { %v6585_v28 = vpop.permute.xlu2 %6584  ;;  %v6575_v15 = vpop.permute.xlu0 %6574 }
 0xb85   :  { %6755 = vst.msk [vmem:[#allocation3 + $0xb0] sm:$0xff] %vm6732_vm4, %v6585_v28 }
 0xb86   :  { %6750 = vst.msk [vmem:[#allocation3 + $0x88] sm:$0xff] %vm6732_vm4, %v6575_v15  ;;  %v6832_v15 = vld [vmem:[#allocation2 + $0x2b0] sm:$0xff] }
 0xb88   :  { %6660 = vrot.lane.b32.xlu1 %v6472_v26, %s8559_s14  ;;  %v6834_v26 = vld [vmem:[#allocation2 + $0x2d0] sm:$0xff] }
 0xb8a   :  { %6664 = vrot.lane.b32.xlu0 %v6474_v29, %s8559_s14  ;;  %6662 = vrot.lane.b32.xlu2 %v6473_v49, %s8559_s14  ;;  %v6577_v52 = vpop.permute.xlu1 %6576 }
 0xb8b   :  { %6751 = vst.msk [vmem:[#allocation3 + $0x90] sm:$0xff] %vm6732_vm4, %v6577_v52 }
 0xb8c   :  { %v6591_v62 = vpop.permute.xlu2 %6590  ;;  %v6581_v24 = vpop.permute.xlu0 %6580 }
 0xb8d   :  { %6758 = vst.msk [vmem:[#allocation3 + $0xc8] sm:$0xff] %vm6732_vm4, %v6591_v62  ;;  %v6833_v62 = vld [vmem:[#allocation2 + $0x2c8] sm:$0xff] }
 0xb8e   :  { %6753 = vst.msk [vmem:[#allocation3 + $0xa0] sm:$0xff] %vm6732_vm4, %v6581_v24 }
 0xb90   :  { %6666 = vrot.lane.b32.xlu1 %v6475_v45, %s8559_s14 }
 0xb92   :  { %6927 = vrot.lane.b32.xlu0 %v6798_v59, %s8560_s0  ;;  %6925 = vrot.lane.b32.xlu2 %v6797_v36, %s8560_s0  ;;  %v6583_v17 = vpop.permute.xlu1 %6582 }
 0xb93   :  { %6754 = vst.msk [vmem:[#allocation3 + $0xa8] sm:$0xff] %vm6732_vm4, %v6583_v17  ;;  %v7644_v17 = vld [vmem:[%s13141_s3 + $0x68] sm:$0xff] }
 0xb94   :  { %v6597_v53 = vpop.permute.xlu2 %6596  ;;  %v6587_v56 = vpop.permute.xlu0 %6586 }
 0xb95   :  { %6761 = vst.msk [vmem:[#allocation3 + $0xe0] sm:$0xff] %vm6732_vm4, %v6597_v53 }
 0xb96   :  { %6756 = vst.msk [vmem:[#allocation3 + $0xb8] sm:$0xff] %vm6732_vm4, %v6587_v56  ;;  %v6835_v56 = vld [vmem:[#allocation2 + $0x2e8] sm:$0xff] }
 0xb98   :  { %6929 = vrot.lane.b32.xlu1 %v6799_v41, %s8560_s0  ;;  %v7643_v41 = vld [vmem:[%s13141_s3 + $0x60] sm:$0xff] }
 0xb9a   :  { %6933 = vrot.lane.b32.xlu0 %v6801_v54, %s8560_s0  ;;  %6931 = vrot.lane.b32.xlu2 %v6800_v14, %s8560_s0  ;;  %v6589_v39 = vpop.permute.xlu1 %6588  ;;  %v7191_v14 = vld [vmem:[#allocation2 + $0xd1] sm:$0xff] }
 0xb9b   :  { %6757 = vst.msk [vmem:[#allocation3 + $0xc0] sm:$0xff] %vm6732_vm4, %v6589_v39 }
 0xb9c   :  { %v6603_v25 = vpop.permute.xlu2 %6602  ;;  %v6593_v61 = vpop.permute.xlu0 %6592 }
 0xb9d   :  { %6764 = vst.msk [vmem:[#allocation3 + $0xf8] sm:$0xff] %vm6732_vm4, %v6603_v25  ;;  %v7646_v25 = vld [vmem:[%s13141_s3 + $0x78] sm:$0xff] }
 0xb9e   :  { %6759 = vst.msk [vmem:[#allocation3 + $0xd0] sm:$0xff] %vm6732_vm4, %v6593_v61  ;;  %7647 = vmatpush.msra.mxu1 %v7646_v25  ;;  %8514 = vmatpush.msra.mxu3 %v7646_v25  ;;  %v6836_v61 = vld [vmem:[#allocation2 + $0x2f0] sm:$0xff] }
 0xba0   :  { %6935 = vrot.lane.b32.xlu1 %v6802_v40, %s8560_s0  ;;  %v6837_v40 = vld [vmem:[#allocation2 + $0x308] sm:$0xff] }
 0xba2   :  { %6939 = vrot.lane.b32.xlu0 %v6804_v37, %s8560_s0  ;;  %6937 = vrot.lane.b32.xlu2 %v6803_v63, %s8560_s0  ;;  %v6595_v27 = vpop.permute.xlu1 %6594  ;;  %v7640_v63 = vld [vmem:[%s13141_s3 + $0x48] sm:$0xff] }
 0xba3   :  { %6760 = vst.msk [vmem:[#allocation3 + $0xd8] sm:$0xff] %vm6732_vm4, %v6595_v27  ;;  %v7639_v27 = vld [vmem:[%s13141_s3 + $0x40] sm:$0xff] }
 0xba4   :  { %v6609_v13 = vpop.permute.xlu2 %6608  ;;  %v6599_v34 = vpop.permute.xlu0 %6598 }
 0xba5   :  { %6767 = vst.msk [vmem:[#allocation3 + $0x110] sm:$0xff] %vm6732_vm4, %v6609_v13 }
 0xba6   :  { %6762 = vst.msk [vmem:[#allocation3 + $0xe8] sm:$0xff] %vm6732_vm4, %v6599_v34  ;;  %v7641_v34 = vld [vmem:[%s13141_s3 + $0x50] sm:$0xff] }
 0xba8   :  { %6941 = vrot.lane.b32.xlu1 %v6805_v2, %s8560_s0 }
 0xbaa   :  { %6945 = vrot.lane.b32.xlu0 %v6807_v4, %s8560_s0  ;;  %6943 = vrot.lane.b32.xlu2 %v6806_v50, %s8560_s0  ;;  %v6601_v60 = vpop.permute.xlu1 %6600  ;;  %v8547_v4 = vld [vmem:[#allocation2 + $0x309] sm:$0xff] }
 0xbab   :  { %6763 = vst.msk [vmem:[#allocation3 + $0xf0] sm:$0xff] %vm6732_vm4, %v6601_v60  ;;  %v7636_v60 = vld [vmem:[%s13141_s3 + $0x28] sm:$0xff] }
 0xbac   :  { %v6615_v20 = vpop.permute.xlu2 %6614  ;;  %v6605_v31 = vpop.permute.xlu0 %6604 }
 0xbad   :  { %6770 = vst.msk [vmem:[#allocation3 + $0x128] sm:$0xff] %vm6732_vm4, %v6615_v20  ;;  %v7192_v20 = vld [vmem:[#allocation2 + $0xe9] sm:$0xff] }
 0xbae   :  { %6765 = vst.msk [vmem:[#allocation3 + $0x100] sm:$0xff] %vm6732_vm4, %v6605_v31 }
 0xbb0   :  { %6947 = vrot.lane.b32.xlu1 %v6808_v47, %s8560_s0  ;;  %v7193_v47 = vld [vmem:[#allocation2 + $0xf1] sm:$0xff] }
 0xbb2   :  { %7310 = vrot.lane.b32.xlu0 %v7182_v0, %s8561_s29  ;;  %6949 = vrot.lane.b32.xlu2 %v6809_v5, %s8560_s0  ;;  %v6607_v18 = vpop.permute.xlu1 %6606  ;;  %v7638_v0 = vld [vmem:[%s13141_s3 + $0x38] sm:$0xff] }
 0xbb3   :  { %6766 = vst.msk [vmem:[#allocation3 + $0x108] sm:$0xff] %vm6732_vm4, %v6607_v18  ;;  %v8548_v5 = vld [vmem:[#allocation2 + $0x311] sm:$0xff] }
 0xbb4   :  { %v6621_v30 = vpop.permute.xlu2 %6620  ;;  %v6611_v43 = vpop.permute.xlu0 %6610 }
 0xbb5   :  { %6773 = vst.msk [vmem:[#allocation3 + $0x140] sm:$0xff] %vm6732_vm4, %v6621_v30  ;;  %v7637_v30 = vld [vmem:[%s13141_s3 + $0x30] sm:$0xff] }
 0xbb6   :  { %6768 = vst.msk [vmem:[#allocation3 + $0x118] sm:$0xff] %vm6732_vm4, %v6611_v43  ;;  %v6838_v43 = vld [vmem:[#allocation2 + $0x310] sm:$0xff] }
 0xbb8   :  { %6989 = vrot.lane.b32.xlu1 %v6829_v44, %s8560_s0  ;;  %v7634_v44 = vld [vmem:[%s13141_s3 + $0x18] sm:$0xff] }
 0xbba   :  { %7312 = vrot.lane.b32.xlu0 %v7183_v22, %s8561_s29  ;;  %7374 = vrot.lane.b32.xlu2 %v12015_v9, %s8561_s29  ;;  %v6613_v48 = vpop.permute.xlu1 %6612  ;;  %v7185_v9 = vld [vmem:[#allocation2 + $0x71] sm:$0xff]  ;;  %v7635_v22 = vld [vmem:[%s13141_s3 + $0x20] sm:$0xff] }
 0xbbb   :  { %6769 = vst.msk [vmem:[#allocation3 + $0x120] sm:$0xff] %vm6732_vm4, %v6613_v48  ;;  %v7224_v48 = vld [vmem:[#allocation2 + $0x329] sm:$0xff] }
 0xbbc   :  { %v6627_v11 = vpop.permute.xlu2 %6626  ;;  %v6617_v10 = vpop.permute.xlu0 %6616 }
 0xbbd   :  { %6776 = vst.msk [vmem:[#allocation3 + $0x158] sm:$0xff] %vm6732_vm4, %v6627_v11 }
 0xbbe   :  { %6771 = vst.msk [vmem:[#allocation3 + $0x130] sm:$0xff] %vm6732_vm4, %v6617_v10 }
 0xbc0   :  { %6991 = vrot.lane.b32.xlu1 %v6830_v35, %s8560_s0  ;;  %v7194_v35 = vld [vmem:[#allocation2 + $0x109] sm:$0xff] }
 0xbc2   :  { %7314 = vrot.lane.b32.xlu0 %v7184_v8, %s8561_s29  ;;  %7376 = vrot.lane.b32.xlu2 %v12013_v58, %s8561_s29  ;;  %v6619_v32 = vpop.permute.xlu1 %6618  ;;  %v7186_v58 = vld [vmem:[#allocation2 + $0x89] sm:$0xff] }
 0xbc3   :  { %6772 = vst.msk [vmem:[#allocation3 + $0x138] sm:$0xff] %vm6732_vm4, %v6619_v32  ;;  %v7633_v8 = vld [vmem:[%s13141_s3 + $0x10] sm:$0xff] }
 0xbc4   :  { %v6633_v55 = vpop.permute.xlu2 %6632  ;;  %v6623_v3 = vpop.permute.xlu0 %6622 }
 0xbc5   :  { %6779 = vst.msk [vmem:[#allocation3 + $0x170] sm:$0xff] %vm6732_vm4, %v6633_v55  ;;  %v7632_v55 = vld [vmem:[%s13141_s3 + $0x8] sm:$0xff] }
 0xbc6   :  { %6774 = vst.msk [vmem:[#allocation3 + $0x148] sm:$0xff] %vm6732_vm4, %v6623_v3  ;;  %v6839_v3 = vld [vmem:[#allocation2 + $0x328] sm:$0xff] }
 0xbc8   :  { %6993 = vrot.lane.b32.xlu1 %v6831_v57, %s8560_s0  ;;  %v7225_v57 = vld [vmem:[#allocation2 + $0x331] sm:$0xff] }
 0xbca   :  { %7316 = vrot.lane.b32.xlu0 %v7185_v9, %s8561_s29  ;;  %7378 = vrot.lane.b32.xlu2 %v12006_v16, %s8561_s29  ;;  %v6625_v28 = vpop.permute.xlu1 %6624  ;;  %v7187_v16 = vld [vmem:[#allocation2 + $0x91] sm:$0xff]  ;;  %v7631_v9 = vld [vmem:[%s13141_s3] sm:$0xff] }
 0xbcb   :  { %6775 = vst.msk [vmem:[#allocation3 + $0x150] sm:$0xff] %vm6732_vm4, %v6625_v28 }
 0xbcc   :  { %v6639_v7 = vpop.permute.xlu2 %6638  ;;  %v6629_v38 = vpop.permute.xlu0 %6628 }
 0xbcd   :  { %6782 = vst.msk [vmem:[#allocation3 + $0x188] sm:$0xff] %vm6732_vm4, %v6639_v7 }
 0xbce   :  { %6777 = vst.msk [vmem:[#allocation3 + $0x160] sm:$0xff] %vm6732_vm4, %v6629_v38 }
 0xbd0   :  { %6995 = vrot.lane.b32.xlu1 %v6832_v15, %s8560_s0 }
 0xbd2   :  { %7318 = vrot.lane.b32.xlu0 %v7186_v58, %s8561_s29  ;;  %7380 = vrot.lane.b32.xlu2 %v12030_v51, %s8561_s29  ;;  %v6631_v23 = vpop.permute.xlu1 %6630  ;;  %v7188_v51 = vld [vmem:[#allocation2 + $0xa9] sm:$0xff] }
 0xbd3   :  { %6778 = vst.msk [vmem:[#allocation3 + $0x168] sm:$0xff] %vm6732_vm4, %v6631_v23  ;;  %v6840_v58 = vld [vmem:[#allocation2 + $0x330] sm:$0xff] }
 0xbd4   :  { %v6645_v19 = vpop.permute.xlu2 %6644  ;;  %v6635_v1 = vpop.permute.xlu0 %6634  ;;  %v7227_v23 = vld [vmem:[#allocation2 + $0x351] sm:$0xff] }
 0xbd5   :  { %6785 = vst.msk [vmem:[#allocation3 + $0x1a0] sm:$0xff] %vm6732_vm4, %v6645_v19  ;;  %v6810_v19 = vld [vmem:[#allocation2 + $0x110] sm:$0xff] }
 0xbd6   :  { %6780 = vst.msk [vmem:[#allocation3 + $0x178] sm:$0xff] %vm6732_vm4, %v6635_v1 }
 0xbd8   :  { %6997 = vrot.lane.b32.xlu1 %v6833_v62, %s8560_s0 }
 0xbda   :  { %7320 = vrot.lane.b32.xlu0 %v7187_v16, %s8561_s29  ;;  %7382 = vrot.lane.b32.xlu2 %v12028_v6, %s8561_s29  ;;  %v6637_v24 = vpop.permute.xlu1 %6636  ;;  %v7189_v6 = vld [vmem:[#allocation2 + $0xb1] sm:$0xff]  ;;  %v7226_v16 = vld [vmem:[#allocation2 + $0x349] sm:$0xff] }
 0xbdb   :  { %6781 = vst.msk [vmem:[#allocation3 + $0x180] sm:$0xff] %vm6732_vm4, %v6637_v24  ;;  %v7195_v24 = vld [vmem:[#allocation2 + $0x111] sm:$0xff] }
 0xbdc   :  { %v6651_v29 = vpop.permute.xlu2 %6650  ;;  %v6641_v33 = vpop.permute.xlu0 %6640 }
 0xbdd   :  { %6788 = vst.msk [vmem:[#allocation3 + $0x1b8] sm:$0xff] %vm6732_vm4, %v6651_v29  ;;  %v6841_v29 = vld [vmem:[#allocation2 + $0x348] sm:$0xff] }
 0xbde   :  { %6783 = vst.msk [vmem:[#allocation3 + $0x190] sm:$0xff] %vm6732_vm4, %v6641_v33 }
 0xbe0   :  { %6999 = vrot.lane.b32.xlu1 %v6834_v26, %s8560_s0 }
 0xbe2   :  { %7322 = vrot.lane.b32.xlu0 %v7188_v51, %s8561_s29  ;;  %7384 = vrot.lane.b32.xlu2 %v12021_v12, %s8561_s29  ;;  %v6643_v53 = vpop.permute.xlu1 %6642  ;;  %v7190_v12 = vld [vmem:[#allocation2 + $0xc9] sm:$0xff] }
 0xbe3   :  { %6784 = vst.msk [vmem:[#allocation3 + $0x198] sm:$0xff] %vm6732_vm4, %v6643_v53 }
 0xbe4   :  { %v6657_v21 = vpop.permute.xlu2 %6656  ;;  %v6647_v49 = vpop.permute.xlu0 %6646 }
 0xbe5   :  { %6791 = vst.msk [vmem:[#allocation3 + $0x1d0] sm:$0xff] %vm6732_vm4, %v6657_v21  ;;  %v6842_v21 = vld [vmem:[#allocation2 + $0x350] sm:$0xff] }
 0xbe6   :  { %6786 = vst.msk [vmem:[#allocation3 + $0x1a8] sm:$0xff] %vm6732_vm4, %v6647_v49  ;;  %v6843_v49 = vld [vmem:[#allocation2 + $0x368] sm:$0xff] }
 0xbe8   :  { %7001 = vrot.lane.b32.xlu1 %v6835_v56, %s8560_s0  ;;  %v6811_v56 = vld [vmem:[#allocation2 + $0x128] sm:$0xff] }
 0xbea   :  { %7324 = vrot.lane.b32.xlu0 %v7189_v6, %s8561_s29  ;;  %7386 = vrot.lane.b32.xlu2 %v12042_v46, %s8561_s29  ;;  %v6649_v36 = vpop.permute.xlu1 %6648  ;;  %v7645_v46 = vld [vmem:[%s13141_s3 + $0x70] sm:$0xff] }
 0xbeb   :  { %6787 = vst.msk [vmem:[#allocation3 + $0x1b0] sm:$0xff] %vm6732_vm4, %v6649_v36  ;;  %7648 = vmatpush.msra.mxu1 %v7645_v46  ;;  %8515 = vmatpush.msra.mxu3 %v7645_v46  ;;  %v6812_v46 = vld [vmem:[#allocation2 + $0x130] sm:$0xff] }
 0xbec   :  { %v6663_v59 = vpop.permute.xlu2 %6662  ;;  %v6653_v52 = vpop.permute.xlu0 %6652 }
 0xbed   :  { %6794 = vst.msk [vmem:[#allocation3 + $0x1e8] sm:$0xff] %vm6732_vm4, %v6663_v59  ;;  %7649 = vmatpush.msra.mxu1 %v7644_v17  ;;  %8516 = vmatpush.msra.mxu3 %v7644_v17  ;;  %v7228_v17 = vld [vmem:[#allocation2 + $0x369] sm:$0xff] }
 0xbee   :  { %6789 = vst.msk [vmem:[#allocation3 + $0x1c0] sm:$0xff] %vm6732_vm4, %v6653_v52  ;;  %v7196_v52 = vld [vmem:[#allocation2 + $0x129] sm:$0xff] }
 0xbef   :  { %7650 = vmatpush.msra.mxu1 %v7643_v41  ;;  %8517 = vmatpush.msra.mxu3 %v7643_v41 }
 0xbf0   :  { %7003 = vrot.lane.b32.xlu1 %v6836_v61, %s8560_s0  ;;  %v6813_v61 = vld [vmem:[#allocation2 + $0x148] sm:$0xff] }
 0xbf2   :  { %7326 = vrot.lane.b32.xlu0 %v7190_v12, %s8561_s29  ;;  %7388 = vrot.lane.b32.xlu2 %v12040_v42, %s8561_s29  ;;  %v6655_v13 = vpop.permute.xlu1 %6654  ;;  %v7642_v42 = vld [vmem:[%s13141_s3 + $0x58] sm:$0xff] }
 0xbf3   :  { %6790 = vst.msk [vmem:[#allocation3 + $0x1c8] sm:$0xff] %vm6732_vm4, %v6655_v13  ;;  %7651 = vmatpush.msra.mxu1 %v7642_v42  ;;  %8518 = vmatpush.msra.mxu3 %v7642_v42  ;;  %v7197_v12 = vld [vmem:[#allocation2 + $0x131] sm:$0xff] }
 0xbf4   :  { %v6926_v45 = vpop.permute.xlu2 %6925  ;;  %v6659_v54 = vpop.permute.xlu0 %6658  ;;  %v7229_v42 = vld [vmem:[#allocation2 + $0x371] sm:$0xff] }
 0xbf5   :  { %7118 = vst.msk [vmem:[#allocation3] sm:$0xff] %vm7117_vm5, %v6926_v45  ;;  %7652 = vmatpush.msra.mxu1 %v7641_v34  ;;  %8519 = vmatpush.msra.mxu3 %v7641_v34  ;;  %v6844_v34 = vld [vmem:[#allocation2 + $0x370] sm:$0xff] }
 0xbf6   :  { %6792 = vst.msk [vmem:[#allocation3 + $0x1d8] sm:$0xff] %vm6732_vm4, %v6659_v54 }
 0xbf7   :  { %7653 = vmatpush.msra.mxu1 %v7640_v63  ;;  %8520 = vmatpush.msra.mxu3 %v7640_v63  ;;  %v7230_v63 = vld [vmem:[#allocation2 + $0x389] sm:$0xff] }
 0xbf8   :  { %7005 = vrot.lane.b32.xlu1 %v6837_v40, %s8560_s0 }
 0xbf9   :  { %7654 = vmatpush.msra.mxu1 %v7639_v27  ;;  %8521 = vmatpush.msra.mxu3 %v7639_v27 }
 0xbfa   :  { %7328 = vrot.lane.b32.xlu0 %v7191_v14, %s8561_s29  ;;  %7390 = vrot.lane.b32.xlu2 %v8547_v4, %s8561_s29  ;;  %v6661_v50 = vpop.permute.xlu1 %6660 }
 0xbfb   :  { %6793 = vst.msk [vmem:[#allocation3 + $0x1e0] sm:$0xff] %vm6732_vm4, %v6661_v50  ;;  %7655 = vmatpush.msra.mxu1 %v7638_v0  ;;  %8522 = vmatpush.msra.mxu3 %v7638_v0  ;;  %v6845_v50 = vld [vmem:[#allocation2 + $0x388] sm:$0xff]  ;;  %v6846_v0 = vld [vmem:[#allocation2 + $0x390] sm:$0xff] }
 0xbfc   :  { %v6932_v37 = vpop.permute.xlu2 %6931  ;;  %v6665_v39 = vpop.permute.xlu0 %6664 }
 0xbfd   :  { %7121 = vst.msk [vmem:[#allocation3 + $0x18] sm:$0xff] %vm7117_vm5, %v6932_v37  ;;  %7656 = vmatpush.msra.mxu1 %v7637_v30  ;;  %8523 = vmatpush.msra.mxu3 %v7637_v30 }
 0xbfe   :  { %6795 = vst.msk [vmem:[#allocation3 + $0x1f0] sm:$0xff] %vm6732_vm4, %v6665_v39 }
 0xbff   :  { %7657 = vmatpush.msra.mxu1 %v7636_v60  ;;  %8524 = vmatpush.msra.mxu3 %v7636_v60 }
 0xc00   :  { %7007 = vrot.lane.b32.xlu1 %v6838_v43, %s8560_s0 }
 0xc01   :  { %7658 = vmatpush.msra.mxu1 %v7635_v22  ;;  %8525 = vmatpush.msra.mxu3 %v7635_v22  ;;  %v7199_v22 = vld [vmem:[#allocation2 + $0x151] sm:$0xff] }
 0xc02   :  { %7330 = vrot.lane.b32.xlu0 %v7192_v20, %s8561_s29  ;;  %7392 = vrot.lane.b32.xlu2 %v8548_v5, %s8561_s29  ;;  %v6667_v18 = vpop.permute.xlu1 %6666 }
 0xc03   :  { %6796 = vst.msk [vmem:[#allocation3 + $0x1f8] sm:$0xff] %vm6732_vm4, %v6667_v18  ;;  %7659 = vmatpush.msra.mxu1 %v7634_v44  ;;  %8526 = vmatpush.msra.mxu3 %v7634_v44  ;;  %v7200_v18 = vld [vmem:[#allocation2 + $0x169] sm:$0xff] }
 0xc04   :  { %v6938_v31 = vpop.permute.xlu2 %6937  ;;  %v6928_v2 = vpop.permute.xlu0 %6927 }
 0xc05   :  { %7124 = vst.msk [vmem:[#allocation3 + $0x30] sm:$0xff] %vm7117_vm5, %v6938_v31  ;;  %7660 = vmatpush.msra.mxu1 %v7633_v8  ;;  %8527 = vmatpush.msra.mxu3 %v7633_v8 }
 0xc06   :  { %7119 = vst.msk [vmem:[#allocation3 + $0x8] sm:$0xff] %vm7117_vm5, %v6928_v2  ;;  %v7198_v2 = vld [vmem:[#allocation2 + $0x149] sm:$0xff] }
 0xc07   :  { %7661 = vmatpush.msra.mxu1 %v7632_v55  ;;  %8528 = vmatpush.msra.mxu3 %v7632_v55 }
 0xc08   :  { %7009 = vrot.lane.b32.xlu1 %v6839_v3, %s8560_s0  ;;  %v6815_v3 = vld [vmem:[#allocation2 + $0x168] sm:$0xff] }
 0xc09   :  { %7662 = vmatpush.msra.mxu1 %v7631_v9  ;;  %8529 = vmatpush.msra.mxu3 %v7631_v9  ;;  %v6816_v9 = vld [vmem:[#allocation2 + $0x170] sm:$0xff] }
 0xc0a   :  { %7332 = vrot.lane.b32.xlu0 %v7193_v47, %s8561_s29  ;;  %7394 = vrot.lane.b32.xlu2 %v7224_v48, %s8561_s29  ;;  %v6930_v32 = vpop.permute.xlu1 %6929 }
 0xc0b   :  { %7120 = vst.msk [vmem:[#allocation3 + $0x10] sm:$0xff] %vm7117_vm5, %v6930_v32 }
 0xc0c   :  { %v6944_v11 = vpop.permute.xlu2 %6943  ;;  %v6934_v10 = vpop.permute.xlu0 %6933 }
 0xc0d   :  { %7127 = vst.msk [vmem:[#allocation3 + $0x48] sm:$0xff] %vm7117_vm5, %v6944_v11  ;;  %v6814_v11 = vld [vmem:[#allocation2 + $0x150] sm:$0xff] }
 0xc0e   :  { %7122 = vst.msk [vmem:[#allocation3 + $0x20] sm:$0xff] %vm7117_vm5, %v6934_v10 }
 0xc10   :  { %7011 = vrot.lane.b32.xlu1 %v6840_v58, %s8560_s0 }
 0xc12   :  { %7334 = vrot.lane.b32.xlu0 %v7194_v35, %s8561_s29  ;;  %7396 = vrot.lane.b32.xlu2 %v7225_v57, %s8561_s29  ;;  %v6936_v1 = vpop.permute.xlu1 %6935  ;;  %v7231_v35 = vld [vmem:[#allocation2 + $0x391] sm:$0xff] }
 0xc13   :  { %7123 = vst.msk [vmem:[#allocation3 + $0x28] sm:$0xff] %vm7117_vm5, %v6936_v1  ;;  %v7233_v1 = vld [vmem:[#allocation2 + $0x3b1] sm:$0xff] }
 0xc14   :  { %v6950_v7 = vpop.permute.xlu2 %6949  ;;  %v6940_v38 = vpop.permute.xlu0 %6939 }
 0xc15   :  { %7130 = vst.msk [vmem:[#allocation3 + $0x60] sm:$0xff] %vm7117_vm5, %v6950_v7 }
 0xc16   :  { %7125 = vst.msk [vmem:[#allocation3 + $0x38] sm:$0xff] %vm7117_vm5, %v6940_v38 }
 0xc18   :  { %7013 = vrot.lane.b32.xlu1 %v6841_v29, %s8560_s0 }
 0xc1a   :  { %6951 = vrot.lane.b32.xlu0 %v6810_v19, %s8560_s0  ;;  %7398 = vrot.lane.b32.xlu2 %v7226_v16, %s8561_s29  ;;  %v6942_v62 = vpop.permute.xlu1 %6941  ;;  %v7232_v19 = vld [vmem:[#allocation2 + $0x3a9] sm:$0xff] }
 0xc1b   :  { %7126 = vst.msk [vmem:[#allocation3 + $0x40] sm:$0xff] %vm7117_vm5, %v6942_v62  ;;  %v6848_v62 = vld [vmem:[#allocation2 + $0x3b0] sm:$0xff] }
 0xc1c   :  { %v7375_v28 = vpop.permute.xlu2 %7374  ;;  %v6946_v15 = vpop.permute.xlu0 %6945 }
 0xc1d   :  { %7128 = vst.msk [vmem:[#allocation3 + $0x50] sm:$0xff] %vm7117_vm5, %v6946_v15 }
 0xc20   :  { %7336 = vrot.lane.b32.xlu1 %v7195_v24, %s8561_s29 }
 0xc22   :  { %7400 = vrot.lane.b32.xlu0 %v7227_v23, %s8561_s29  ;;  %7015 = vrot.lane.b32.xlu2 %v6842_v21, %s8560_s0  ;;  %v6948_v6 = vpop.permute.xlu1 %6947  ;;  %v6849_v21 = vld [vmem:[#allocation2 + $0x3c8] sm:$0xff] }
 0xc23   :  { %7129 = vst.msk [vmem:[#allocation3 + $0x58] sm:$0xff] %vm7117_vm5, %v6948_v6 }
 0xc24   :  { %v7377_v33 = vpop.permute.xlu2 %7376  ;;  %v7311_v51 = vpop.permute.xlu0 %7310 }
 0xc25   :  { %7503 = vst.msk [vmem:[#allocation3] sm:$0xff] %vm7502_vm6, %v7311_v51  ;;  %v7201_v51 = vld [vmem:[#allocation2 + $0x171] sm:$0xff] }
 0xc28   :  { %6953 = vrot.lane.b32.xlu1 %v6811_v56, %s8560_s0  ;;  %v7203_v56 = vld [vmem:[#allocation2 + $0x191] sm:$0xff] }
 0xc2a   :  { %7017 = vrot.lane.b32.xlu0 %v6843_v49, %s8560_s0  ;;  %7338 = vrot.lane.b32.xlu2 %v7196_v52, %s8561_s29  ;;  %v6990_v36 = vpop.permute.xlu1 %6989  ;;  %v6817_v52 = vld [vmem:[#allocation2 + $0x188] sm:$0xff] }
 0xc2b   :  { %7150 = vst.msk [vmem:[#allocation3 + $0x100] sm:$0xff] %vm7117_vm5, %v6990_v36 }
 0xc2c   :  { %v7379_v26 = vpop.permute.xlu2 %7378  ;;  %v7313_v59 = vpop.permute.xlu0 %7312  ;;  %v7567_v53 = vld [vmem:[#allocation3] sm:$0xff]  ;;  %7535 = vst.msk [vmem:[#allocation3 + $0x100] sm:$0xff] %vm7502_vm6, %v7375_v28  ;;  %v6847_v28 = vld [vmem:[#allocation2 + $0x3a8] sm:$0xff] }
 0xc2d   :  { %7504 = vst.msk [vmem:[#allocation3 + $0x8] sm:$0xff] %vm7502_vm6, %v7313_v59  ;;  %7663 = vmatmul.f32.vlgmr.msra.gmra.mxu1 %v7567_v53  ;;  %v7202_v53 = vld [vmem:[#allocation2 + $0x189] sm:$0xff] }
 0xc30   :  { %7402 = vrot.lane.b32.xlu1 %v7228_v17, %s8561_s29  ;;  %v7234_v17 = vld [vmem:[#allocation2 + $0x3c9] sm:$0xff] }
 0xc32   :  { %7340 = vrot.lane.b32.xlu0 %v7197_v12, %s8561_s29  ;;  %6955 = vrot.lane.b32.xlu2 %v6812_v46, %s8560_s0  ;;  %v6992_v41 = vpop.permute.xlu1 %6991  ;;  %v6818_v46 = vld [vmem:[#allocation2 + $0x190] sm:$0xff] }
 0xc33   :  { %7151 = vst.msk [vmem:[#allocation3 + $0x108] sm:$0xff] %vm7117_vm5, %v6992_v41  ;;  %v7599_v37 = vld [vmem:[#allocation3 + $0x100] sm:$0xff] }
 0xc34   :  { %v7381_v45 = vpop.permute.xlu2 %7380  ;;  %v7315_v54 = vpop.permute.xlu0 %7314  ;;  %v7568_v25 = vld [vmem:[#allocation3 + $0x8] sm:$0xff]  ;;  %7536 = vst.msk [vmem:[#allocation3 + $0x108] sm:$0xff] %vm7502_vm6, %v7377_v33  ;;  %7759 = vmatmul.f32.vlgmr.msra.gmra.mxu3 %v7599_v37 }
 0xc35   :  { %7666 = vmatmul.f32.gmra.mxu1 %v7568_v25  ;;  %7505 = vst.msk [vmem:[#allocation3 + $0x10] sm:$0xff] %vm7502_vm6, %v7315_v54 }
 0xc38   :  { %7019 = vrot.lane.b32.xlu1 %v6844_v34, %s8560_s0  ;;  %v6850_v34 = vld [vmem:[#allocation2 + $0x3d0] sm:$0xff] }
 0xc3a   :  { %6957 = vrot.lane.b32.xlu0 %v6813_v61, %s8560_s0  ;;  %7404 = vrot.lane.b32.xlu2 %v7229_v42, %s8561_s29  ;;  %v6994_v4 = vpop.permute.xlu1 %6993  ;;  %v6819_v61 = vld [vmem:[#allocation2 + $0x1a8] sm:$0xff]  ;;  %v7235_v42 = vld [vmem:[#allocation2 + $0x3d1] sm:$0xff] }
 0xc3b   :  { %7152 = vst.msk [vmem:[#allocation3 + $0x110] sm:$0xff] %vm7117_vm5, %v6994_v4  ;;  %v7600_v20 = vld [vmem:[#allocation3 + $0x108] sm:$0xff] }
 0xc3c   :  { %v7383_v14 = vpop.permute.xlu2 %7382  ;;  %v7317_v13 = vpop.permute.xlu0 %7316  ;;  %v7569_v39 = vld [vmem:[#allocation3 + $0x10] sm:$0xff]  ;;  %7537 = vst.msk [vmem:[#allocation3 + $0x110] sm:$0xff] %vm7502_vm6, %v7379_v26  ;;  %7762 = vmatmul.f32.gmra.mxu3 %v7600_v20 }
 0xc3d   :  { %7506 = vst.msk [vmem:[#allocation3 + $0x18] sm:$0xff] %vm7502_vm6, %v7317_v13  ;;  %7669 = vmatmul.f32.gmra.mxu1 %v7569_v39 }
 0xc40   :  { %7342 = vrot.lane.b32.xlu1 %v7198_v2, %s8561_s29  ;;  %v7204_v2 = vld [vmem:[#allocation2 + $0x1a9] sm:$0xff] }
 0xc42   :  { %7406 = vrot.lane.b32.xlu0 %v7230_v63, %s8561_s29  ;;  %7021 = vrot.lane.b32.xlu2 %v6845_v50, %s8560_s0  ;;  %v6996_v60 = vpop.permute.xlu1 %6995  ;;  %v7236_v63 = vld [vmem:[#allocation2 + $0x3e9] sm:$0xff] }
 0xc43   :  { %7153 = vst.msk [vmem:[#allocation3 + $0x118] sm:$0xff] %vm7117_vm5, %v6996_v60  ;;  %v7601_v43 = vld [vmem:[#allocation3 + $0x110] sm:$0xff]  ;;  %v6851_v50 = vld [vmem:[#allocation2 + $0x3e8] sm:$0xff] }
 0xc44   :  { %v7385_v40 = vpop.permute.xlu2 %7384  ;;  %v7319_v27 = vpop.permute.xlu0 %7318  ;;  %v7570_v31 = vld [vmem:[#allocation3 + $0x18] sm:$0xff]  ;;  %7538 = vst.msk [vmem:[#allocation3 + $0x118] sm:$0xff] %vm7502_vm6, %v7381_v45  ;;  %7765 = vmatmul.f32.gmra.mxu3 %v7601_v43 }
 0xc45   :  { %7507 = vst.msk [vmem:[#allocation3 + $0x20] sm:$0xff] %vm7502_vm6, %v7319_v27  ;;  %7672 = vmatmul.f32.gmra.mxu1 %v7570_v31 }
 0xc48   :  { %6959 = vrot.lane.b32.xlu1 %v6814_v11, %s8560_s0  ;;  %v6820_v11 = vld [vmem:[#allocation2 + $0x1b0] sm:$0xff] }
 0xc4a   :  { %7023 = vrot.lane.b32.xlu0 %v6846_v0, %s8560_s0  ;;  %7344 = vrot.lane.b32.xlu2 %v7199_v22, %s8561_s29  ;;  %v6998_v44 = vpop.permute.xlu1 %6997  ;;  %v6852_v0 = vld [vmem:[#allocation2 + $0x3f0] sm:$0xff] }
 0xc4b   :  { %7154 = vst.msk [vmem:[#allocation3 + $0x120] sm:$0xff] %vm7117_vm5, %v6998_v44  ;;  %v7602_v8 = vld [vmem:[#allocation3 + $0x118] sm:$0xff] }
 0xc4c   :  { %v7387_v30 = vpop.permute.xlu2 %7386  ;;  %v7321_v5 = vpop.permute.xlu0 %7320  ;;  %v7571_v47 = vld [vmem:[#allocation3 + $0x20] sm:$0xff]  ;;  %7539 = vst.msk [vmem:[#allocation3 + $0x120] sm:$0xff] %vm7502_vm6, %v7383_v14  ;;  %7768 = vmatmul.f32.gmra.mxu3 %v7602_v8  ;;  %v7205_v22 = vld [vmem:[#allocation2 + $0x1b1] sm:$0xff] }
 0xc4d   :  { %7508 = vst.msk [vmem:[#allocation3 + $0x28] sm:$0xff] %vm7502_vm6, %v7321_v5  ;;  %7675 = vmatmul.f32.gmra.mxu1 %v7571_v47 }
 0xc50   :  { %7408 = vrot.lane.b32.xlu1 %v7231_v35, %s8561_s29  ;;  %v6822_v35 = vld [vmem:[#allocation2 + $0x1d0] sm:$0xff] }
 0xc52   :  { %7346 = vrot.lane.b32.xlu0 %v7200_v18, %s8561_s29  ;;  %6961 = vrot.lane.b32.xlu2 %v6815_v3, %s8560_s0  ;;  %v7000_v32 = vpop.permute.xlu1 %6999  ;;  %v7206_v18 = vld [vmem:[#allocation2 + $0x1c9] sm:$0xff]  ;;  %v7237_v3 = vld [vmem:[#allocation2 + $0x3f1] sm:$0xff] }
 0xc53   :  { %7155 = vst.msk [vmem:[#allocation3 + $0x128] sm:$0xff] %vm7117_vm5, %v7000_v32  ;;  %v7603_v38 = vld [vmem:[#allocation3 + $0x120] sm:$0xff] }
 0xc54   :  { %v7389_v10 = vpop.permute.xlu2 %7388  ;;  %v7323_v55 = vpop.permute.xlu0 %7322  ;;  %v7572_v48 = vld [vmem:[#allocation3 + $0x28] sm:$0xff]  ;;  %7540 = vst.msk [vmem:[#allocation3 + $0x128] sm:$0xff] %vm7502_vm6, %v7385_v40  ;;  %7771 = vmatmul.f32.gmra.mxu3 %v7603_v38 }
 0xc55   :  { %7509 = vst.msk [vmem:[#allocation3 + $0x30] sm:$0xff] %vm7502_vm6, %v7323_v55  ;;  %7678 = vmatmul.f32.gmra.mxu1 %v7572_v48  ;;  %v6821_v48 = vld [vmem:[#allocation2 + $0x1c8] sm:$0xff] }
 0xc58   :  { %7025 = vrot.lane.b32.xlu1 %v6847_v28, %s8560_s0 }
 0xc5a   :  { %6963 = vrot.lane.b32.xlu0 %v6816_v9, %s8560_s0  ;;  %7410 = vrot.lane.b32.xlu2 %v7232_v19, %s8561_s29  ;;  %v7002_v16 = vpop.permute.xlu1 %7001  ;;  %v7239_v19 = vld [vmem:[#allocation2 + $0x411] sm:$0xff] }
 0xc5b   :  { %7156 = vst.msk [vmem:[#allocation3 + $0x130] sm:$0xff] %vm7117_vm5, %v7002_v16  ;;  %v7604_v29 = vld [vmem:[#allocation3 + $0x128] sm:$0xff] }
 0xc5c   :  { %v7391_v7 = vpop.permute.xlu2 %7390  ;;  %v7325_v57 = vpop.permute.xlu0 %7324  ;;  %v7573_v58 = vld [vmem:[#allocation3 + $0x30] sm:$0xff]  ;;  %7541 = vst.msk [vmem:[#allocation3 + $0x130] sm:$0xff] %vm7502_vm6, %v7387_v30  ;;  %7774 = vmatmul.f32.gmra.mxu3 %v7604_v29 }
 0xc5d   :  { %7510 = vst.msk [vmem:[#allocation3 + $0x38] sm:$0xff] %vm7502_vm6, %v7325_v57  ;;  %7681 = vmatmul.f32.gmra.mxu1 %v7573_v58  ;;  %v7238_v57 = vld [vmem:[#allocation2 + $0x409] sm:$0xff] }
 0xc5e   :  { %v6853_v58 = vld [vmem:[#allocation2 + $0x408] sm:$0xff] }
 0xc60   :  { %7348 = vrot.lane.b32.xlu1 %v7201_v51, %s8561_s29 }
 0xc62   :  { %7412 = vrot.lane.b32.xlu0 %v7233_v1, %s8561_s29  ;;  %7027 = vrot.lane.b32.xlu2 %v6848_v62, %s8560_s0  ;;  %v7004_v49 = vpop.permute.xlu1 %7003  ;;  %v6855_v62 = vld [vmem:[#allocation2 + $0x428] sm:$0xff] }
 0xc63   :  { %7157 = vst.msk [vmem:[#allocation3 + $0x138] sm:$0xff] %vm7117_vm5, %v7004_v49  ;;  %v7605_v26 = vld [vmem:[#allocation3 + $0x130] sm:$0xff] }
 0xc64   :  { %v7393_v15 = vpop.permute.xlu2 %7392  ;;  %v7327_v23 = vpop.permute.xlu0 %7326  ;;  %v7574_v33 = vld [vmem:[#allocation3 + $0x38] sm:$0xff]  ;;  %7542 = vst.msk [vmem:[#allocation3 + $0x138] sm:$0xff] %vm7502_vm6, %v7389_v10  ;;  %7777 = vmatmul.f32.gmra.mxu3 %v7605_v26  ;;  %v7208_v26 = vld [vmem:[#allocation2 + $0x1e9] sm:$0xff] }
 0xc65   :  { %7511 = vst.msk [vmem:[#allocation3 + $0x40] sm:$0xff] %vm7502_vm6, %v7327_v23  ;;  %7684 = vmatmul.f32.gmra.mxu1 %v7574_v33  ;;  %v6854_v23 = vld [vmem:[#allocation2 + $0x410] sm:$0xff] }
 0xc66   :  { %v7207_v33 = vld [vmem:[#allocation2 + $0x1d1] sm:$0xff] }
 0xc68   :  { %6965 = vrot.lane.b32.xlu1 %v6817_v52, %s8560_s0 }
 0xc6a   :  { %7029 = vrot.lane.b32.xlu0 %v6849_v21, %s8560_s0  ;;  %7350 = vrot.lane.b32.xlu2 %v7202_v53, %s8561_s29  ;;  %v7006_v45 = vpop.permute.xlu1 %7005 }
 0xc6b   :  { %7158 = vst.msk [vmem:[#allocation3 + $0x140] sm:$0xff] %vm7117_vm5, %v7006_v45  ;;  %v7606_v36 = vld [vmem:[#allocation3 + $0x138] sm:$0xff] }
 0xc6c   :  { %v7395_v24 = vpop.permute.xlu2 %7394  ;;  %v7329_v6 = vpop.permute.xlu0 %7328  ;;  %v7575_v59 = vld [vmem:[#allocation3 + $0x40] sm:$0xff]  ;;  %7543 = vst.msk [vmem:[#allocation3 + $0x140] sm:$0xff] %vm7502_vm6, %v7391_v7  ;;  %7780 = vmatmul.f32.gmra.mxu3 %v7606_v36 }
 0xc6d   :  { %7512 = vst.msk [vmem:[#allocation3 + $0x48] sm:$0xff] %vm7502_vm6, %v7329_v6  ;;  %7687 = vmatmul.f32.gmra.mxu1 %v7575_v59  ;;  %v6823_v6 = vld [vmem:[#allocation2 + $0x1e8] sm:$0xff]  ;;  %v7209_v59 = vld [vmem:[#allocation2 + $0x1f1] sm:$0xff] }
 0xc70   :  { %7414 = vrot.lane.b32.xlu1 %v7234_v17, %s8561_s29 }
 0xc72   :  { %7352 = vrot.lane.b32.xlu0 %v7203_v56, %s8561_s29  ;;  %6967 = vrot.lane.b32.xlu2 %v6818_v46, %s8560_s0  ;;  %v7008_v41 = vpop.permute.xlu1 %7007  ;;  %v6825_v46 = vld [vmem:[#allocation2 + $0x208] sm:$0xff] }
 0xc73   :  { %7159 = vst.msk [vmem:[#allocation3 + $0x148] sm:$0xff] %vm7117_vm5, %v7008_v41  ;;  %v7607_v37 = vld [vmem:[#allocation3 + $0x140] sm:$0xff] }
 0xc74   :  { %v7397_v12 = vpop.permute.xlu2 %7396  ;;  %v7331_v54 = vpop.permute.xlu0 %7330  ;;  %v7576_v25 = vld [vmem:[#allocation3 + $0x48] sm:$0xff]  ;;  %7544 = vst.msk [vmem:[#allocation3 + $0x148] sm:$0xff] %vm7502_vm6, %v7393_v15  ;;  %7783 = vmatmul.f32.gmra.mxu3 %v7607_v37 }
 0xc75   :  { %7513 = vst.msk [vmem:[#allocation3 + $0x50] sm:$0xff] %vm7502_vm6, %v7331_v54  ;;  %7690 = vmatmul.f32.gmra.mxu1 %v7576_v25  ;;  %v6824_v54 = vld [vmem:[#allocation2 + $0x1f0] sm:$0xff] }
 0xc76   :  { %v7240_v25 = vld [vmem:[#allocation2 + $0x429] sm:$0xff] }
 0xc78   :  { %7031 = vrot.lane.b32.xlu1 %v6850_v34, %s8560_s0 }
 0xc7a   :  { %6969 = vrot.lane.b32.xlu0 %v6819_v61, %s8560_s0  ;;  %7416 = vrot.lane.b32.xlu2 %v7235_v42, %s8561_s29  ;;  %v7010_v4 = vpop.permute.xlu1 %7009  ;;  %v7242_v42 = vld [vmem:[#allocation2 + $0x449] sm:$0xff] }
 0xc7b   :  { %v7608_v20 = vld [vmem:[#allocation3 + $0x148] sm:$0xff]  ;;  %7160 = vst.msk [vmem:[#allocation3 + $0x150] sm:$0xff] %vm7117_vm5, %v7010_v4 }
 0xc7c   :  { %v7399_v14 = vpop.permute.xlu2 %7398  ;;  %v7333_v13 = vpop.permute.xlu0 %7332  ;;  %v7577_v39 = vld [vmem:[#allocation3 + $0x50] sm:$0xff]  ;;  %7786 = vmatmul.f32.gmra.mxu3 %v7608_v20  ;;  %7545 = vst.msk [vmem:[#allocation3 + $0x150] sm:$0xff] %vm7502_vm6, %v7395_v24 }
 0xc7d   :  { %7514 = vst.msk [vmem:[#allocation3 + $0x58] sm:$0xff] %vm7502_vm6, %v7333_v13  ;;  %7693 = vmatmul.f32.gmra.mxu1 %v7577_v39  ;;  %v7241_v13 = vld [vmem:[#allocation2 + $0x431] sm:$0xff] }
 0xc7e   :  { %v6856_v39 = vld [vmem:[#allocation2 + $0x430] sm:$0xff] }
 0xc80   :  { %7354 = vrot.lane.b32.xlu1 %v7204_v2, %s8561_s29  ;;  %v6858_v2 = vld [vmem:[#allocation2 + $0x450] sm:$0xff] }
 0xc82   :  { %7418 = vrot.lane.b32.xlu0 %v7236_v63, %s8561_s29  ;;  %7033 = vrot.lane.b32.xlu2 %v6851_v50, %s8560_s0  ;;  %v7012_v60 = vpop.permute.xlu1 %7011  ;;  %v7210_v50 = vld [vmem:[#allocation2 + $0x209] sm:$0xff] }
 0xc83   :  { %7161 = vst.msk [vmem:[#allocation3 + $0x158] sm:$0xff] %vm7117_vm5, %v7012_v60  ;;  %v7609_v5 = vld [vmem:[#allocation3 + $0x150] sm:$0xff] }
 0xc84   :  { %v7016_v40 = vpop.permute.xlu2 %7015  ;;  %v7335_v27 = vpop.permute.xlu0 %7334  ;;  %v7578_v31 = vld [vmem:[#allocation3 + $0x58] sm:$0xff]  ;;  %7546 = vst.msk [vmem:[#allocation3 + $0x158] sm:$0xff] %vm7502_vm6, %v7397_v12  ;;  %7789 = vmatmul.f32.gmra.mxu3 %v7609_v5 }
 0xc85   :  { %7163 = vst.msk [vmem:[#allocation3 + $0x168] sm:$0xff] %vm7117_vm5, %v7016_v40  ;;  %7696 = vmatmul.f32.gmra.mxu1 %v7578_v31  ;;  %v6857_v31 = vld [vmem:[#allocation2 + $0x448] sm:$0xff] }
 0xc86   :  { %7515 = vst.msk [vmem:[#allocation3 + $0x60] sm:$0xff] %vm7502_vm6, %v7335_v27 }
 0xc88   :  { %6971 = vrot.lane.b32.xlu1 %v6820_v11, %s8560_s0  ;;  %v7211_v11 = vld [vmem:[#allocation2 + $0x211] sm:$0xff] }
 0xc8a   :  { %7035 = vrot.lane.b32.xlu0 %v6852_v0, %s8560_s0  ;;  %7356 = vrot.lane.b32.xlu2 %v7205_v22, %s8561_s29  ;;  %v7014_v44 = vpop.permute.xlu1 %7013  ;;  %v7212_v22 = vld [vmem:[#allocation2 + $0x229] sm:$0xff] }
 0xc8b   :  { %v7610_v8 = vld [vmem:[#allocation3 + $0x158] sm:$0xff]  ;;  %7162 = vst.msk [vmem:[#allocation3 + $0x160] sm:$0xff] %vm7117_vm5, %v7014_v44 }
 0xc8c   :  { %v7339_v30 = vpop.permute.xlu2 %7338  ;;  %v6952_v43 = vpop.permute.xlu0 %6951  ;;  %7547 = vst.msk [vmem:[#allocation3 + $0x160] sm:$0xff] %vm7502_vm6, %v7399_v14  ;;  %7792 = vmatmul.f32.gmra.mxu3 %v7610_v8 }
 0xc8d   :  { %7131 = vst.msk [vmem:[#allocation3 + $0x68] sm:$0xff] %vm7117_vm5, %v6952_v43  ;;  %v7579_v47 = vld [vmem:[#allocation3 + $0x60] sm:$0xff] }
 0xc8e   :  { %7699 = vmatmul.f32.gmra.mxu1 %v7579_v47 }
 0xc90   :  { %7420 = vrot.lane.b32.xlu1 %v7237_v3, %s8561_s29 }
 0xc92   :  { %7358 = vrot.lane.b32.xlu0 %v7206_v18, %s8561_s29  ;;  %6973 = vrot.lane.b32.xlu2 %v6821_v48, %s8560_s0  ;;  %v7337_v7 = vpop.permute.xlu1 %7336  ;;  %v6826_v18 = vld [vmem:[#allocation2 + $0x210] sm:$0xff] }
 0xc93   :  { %7516 = vst.msk [vmem:[#allocation3 + $0x68] sm:$0xff] %vm7502_vm6, %v7337_v7  ;;  %v7611_v38 = vld [vmem:[#allocation3 + $0x160] sm:$0xff]  ;;  %v6828_v7 = vld [vmem:[#allocation2 + $0x230] sm:$0xff] }
 0xc94   :  { %v6956_v10 = vpop.permute.xlu2 %6955  ;;  %v7401_v55 = vpop.permute.xlu0 %7400  ;;  %7795 = vmatmul.f32.gmra.mxu3 %v7611_v38 }
 0xc95   :  { %7133 = vst.msk [vmem:[#allocation3 + $0x78] sm:$0xff] %vm7117_vm5, %v6956_v10 }
 0xc96   :  { %7548 = vst.msk [vmem:[#allocation3 + $0x168] sm:$0xff] %vm7502_vm6, %v7401_v55 }
 0xc98   :  { %7037 = vrot.lane.b32.xlu1 %v6853_v58, %s8560_s0 }
 0xc9a   :  { %6975 = vrot.lane.b32.xlu0 %v6822_v35, %s8560_s0  ;;  %7422 = vrot.lane.b32.xlu2 %v7238_v57, %s8561_s29  ;;  %v6954_v1 = vpop.permute.xlu1 %6953  ;;  %v7580_v15 = vld [vmem:[#allocation3 + $0x68] sm:$0xff] }
 0xc9b   :  { %7702 = vmatmul.f32.gmra.mxu1 %v7580_v15  ;;  %7132 = vst.msk [vmem:[#allocation3 + $0x70] sm:$0xff] %vm7117_vm5, %v6954_v1  ;;  %v6859_v1 = vld [vmem:[#allocation2 + $0x468] sm:$0xff]  ;;  %v7245_v15 = vld [vmem:[#allocation2 + $0x471] sm:$0xff] }
 0xc9c   :  { %v7405_v9 = vpop.permute.xlu2 %7404  ;;  %v7018_v32 = vpop.permute.xlu0 %7017  ;;  %7517 = vst.msk [vmem:[#allocation3 + $0x70] sm:$0xff] %vm7502_vm6, %v7339_v30 }
 0xc9d   :  { %7164 = vst.msk [vmem:[#allocation3 + $0x170] sm:$0xff] %vm7117_vm5, %v7018_v32  ;;  %v7612_v16 = vld [vmem:[#allocation3 + $0x168] sm:$0xff]  ;;  %v7243_v32 = vld [vmem:[#allocation2 + $0x451] sm:$0xff] }
 0xc9e   :  { %7798 = vmatmul.f32.gmra.mxu3 %v7612_v16 }
 0xca0   :  { %7360 = vrot.lane.b32.xlu1 %v7207_v33, %s8561_s29 }
 0xca2   :  { %7424 = vrot.lane.b32.xlu0 %v7239_v19, %s8561_s29  ;;  %7039 = vrot.lane.b32.xlu2 %v6854_v23, %s8560_s0  ;;  %v7403_v21 = vpop.permute.xlu1 %7402 }
 0xca3   :  { %7549 = vst.msk [vmem:[#allocation3 + $0x170] sm:$0xff] %vm7502_vm6, %v7403_v21  ;;  %v7581_v49 = vld [vmem:[#allocation3 + $0x70] sm:$0xff] }
 0xca4   :  { %v7022_v28 = vpop.permute.xlu2 %7021  ;;  %v7341_v29 = vpop.permute.xlu0 %7340  ;;  %7705 = vmatmul.f32.gmra.mxu1 %v7581_v49  ;;  %v7213_v21 = vld [vmem:[#allocation2 + $0x231] sm:$0xff] }
 0xca5   :  { %7166 = vst.msk [vmem:[#allocation3 + $0x180] sm:$0xff] %vm7117_vm5, %v7022_v28 }
 0xca6   :  { %7518 = vst.msk [vmem:[#allocation3 + $0x78] sm:$0xff] %vm7502_vm6, %v7341_v29 }
 0xca8   :  { %6977 = vrot.lane.b32.xlu1 %v6823_v6, %s8560_s0 }
 0xcaa   :  { %7041 = vrot.lane.b32.xlu0 %v6855_v62, %s8560_s0  ;;  %7362 = vrot.lane.b32.xlu2 %v7208_v26, %s8561_s29  ;;  %v7020_v52 = vpop.permute.xlu1 %7019  ;;  %v7613_v56 = vld [vmem:[#allocation3 + $0x170] sm:$0xff]  ;;  %v12491_v36 = vpop.f32.mrf.mxu1 }
 0xcab   :  { %7801 = vmatmul.f32.gmra.mxu3 %v7613_v56  ;;  %7165 = vst.msk [vmem:[#allocation3 + $0x178] sm:$0xff] %vm7117_vm5, %v7020_v52  ;;  %v6860_v56 = vld [vmem:[#allocation2 + $0x470] sm:$0xff] }
 0xcac   :  { %v7345_v51 = vpop.permute.xlu2 %7344  ;;  %v6958_v24 = vpop.permute.xlu0 %6957  ;;  %7550 = vst.msk [vmem:[#allocation3 + $0x178] sm:$0xff] %vm7502_vm6, %v7405_v9  ;;  %v6827_v9 = vld [vmem:[#allocation2 + $0x228] sm:$0xff] }
 0xcad   :  { %7134 = vst.msk [vmem:[#allocation3 + $0x80] sm:$0xff] %vm7117_vm5, %v6958_v24  ;;  %v7582_v12 = vld [vmem:[#allocation3 + $0x78] sm:$0xff]  ;;  %v7244_v24 = vld [vmem:[#allocation2 + $0x469] sm:$0xff] }
 0xcae   :  { %7708 = vmatmul.f32.gmra.mxu1 %v7582_v12 }
 0xcb0   :  { %7426 = vrot.lane.b32.xlu1 %v7240_v25, %s8561_s29 }
 0xcb2   :  { %7364 = vrot.lane.b32.xlu0 %v7209_v59, %s8561_s29  ;;  %6979 = vrot.lane.b32.xlu2 %v6824_v54, %s8560_s0  ;;  %v7343_v61 = vpop.permute.xlu1 %7342  ;;  %v12502_v34 = vpop.f32.mrf.mxu1 }
 0xcb3   :  { %7519 = vst.msk [vmem:[#allocation3 + $0x80] sm:$0xff] %vm7502_vm6, %v7343_v61  ;;  %v7614_v41 = vld [vmem:[#allocation3 + $0x178] sm:$0xff] }
 0xcb4   :  { %v6962_v53 = vpop.permute.xlu2 %6961  ;;  %v7407_v45 = vpop.permute.xlu0 %7406  ;;  %7804 = vmatmul.f32.gmra.mxu3 %v7614_v41  ;;  %13327 = vst [vmem:[#allocation9_spill] sm:$0xff] %v12502_v34 }
 0xcb5   :  { %7136 = vst.msk [vmem:[#allocation3 + $0x90] sm:$0xff] %vm7117_vm5, %v6962_v53 }
 0xcb6   :  { %7551 = vst.msk [vmem:[#allocation3 + $0x180] sm:$0xff] %vm7502_vm6, %v7407_v45 }
 0xcb7   :  { %v12498_v37 = vpop.f32.mrf.mxu3 }
 0xcb8   :  { %7043 = vrot.lane.b32.xlu1 %v6856_v39, %s8560_s0 }
 0xcba   :  { %6981 = vrot.lane.b32.xlu0 %v6825_v46, %s8560_s0  ;;  %7428 = vrot.lane.b32.xlu2 %v7241_v13, %s8561_s29  ;;  %v6960_v40 = vpop.permute.xlu1 %6959  ;;  %v7583_v4 = vld [vmem:[#allocation3 + $0x80] sm:$0xff]  ;;  %v12514_v43 = vpop.f32.mrf.mxu1 }
 0xcbb   :  { %7711 = vmatmul.f32.gmra.mxu1 %v7583_v4  ;;  %7135 = vst.msk [vmem:[#allocation3 + $0x88] sm:$0xff] %vm7117_vm5, %v6960_v40 }
 0xcbc   :  { %v7411_v17 = vpop.permute.xlu2 %7410  ;;  %v7024_v14 = vpop.permute.xlu0 %7023  ;;  %7520 = vst.msk [vmem:[#allocation3 + $0x88] sm:$0xff] %vm7502_vm6, %v7345_v51 }
 0xcbd   :  { %7167 = vst.msk [vmem:[#allocation3 + $0x188] sm:$0xff] %vm7117_vm5, %v7024_v14  ;;  %v7615_v20 = vld [vmem:[#allocation3 + $0x180] sm:$0xff] }
 0xcbe   :  { %7807 = vmatmul.f32.gmra.mxu3 %v7615_v20  ;;  %13328 = vst [vmem:[#allocation33_spill] sm:$0xff] %v12514_v43 }
 0xcbf   :  { %v12511_v0 = vpop.f32.mrf.mxu3 }
 0xcc0   :  { %7366 = vrot.lane.b32.xlu1 %v7210_v50, %s8561_s29 }
 0xcc2   :  { %7430 = vrot.lane.b32.xlu0 %v7242_v42, %s8561_s29  ;;  %7045 = vrot.lane.b32.xlu2 %v6857_v31, %s8560_s0  ;;  %v7409_v60 = vpop.permute.xlu1 %7408  ;;  %v12525_v35 = vpop.f32.mrf.mxu1 }
 0xcc3   :  { %7552 = vst.msk [vmem:[#allocation3 + $0x188] sm:$0xff] %vm7502_vm6, %v7409_v60  ;;  %v7584_v47 = vld [vmem:[#allocation3 + $0x88] sm:$0xff] }
 0xcc4   :  { %v7028_v63 = vpop.permute.xlu2 %7027  ;;  %v7347_v27 = vpop.permute.xlu0 %7346  ;;  %7714 = vmatmul.f32.gmra.mxu1 %v7584_v47  ;;  %13330 = vst [vmem:[#allocation37_spill] sm:$0xff] %v12525_v35 }
 0xcc5   :  { %7169 = vst.msk [vmem:[#allocation3 + $0x198] sm:$0xff] %vm7117_vm5, %v7028_v63 }
 0xcc6   :  { %7521 = vst.msk [vmem:[#allocation3 + $0x90] sm:$0xff] %vm7502_vm6, %v7347_v27 }
 0xcc7   :  { %v12521_v48 = vpop.f32.mrf.mxu3 }
 0xcc8   :  { %6983 = vrot.lane.b32.xlu1 %v6826_v18, %s8560_s0  ;;  %13329 = vst [vmem:[#allocation35_spill] sm:$0xff] %v12521_v48 }
 0xcca   :  { %7047 = vrot.lane.b32.xlu0 %v6858_v2, %s8560_s0  ;;  %7368 = vrot.lane.b32.xlu2 %v7211_v11, %s8561_s29  ;;  %v7026_v44 = vpop.permute.xlu1 %7025  ;;  %v7616_v8 = vld [vmem:[#allocation3 + $0x188] sm:$0xff]  ;;  %v12536_v16 = vpop.f32.mrf.mxu1 }
 0xccb   :  { %7810 = vmatmul.f32.gmra.mxu3 %v7616_v8  ;;  %7168 = vst.msk [vmem:[#allocation3 + $0x190] sm:$0xff] %vm7117_vm5, %v7026_v44 }
 0xccc   :  { %v7351_v30 = vpop.permute.xlu2 %7350  ;;  %v6964_v5 = vpop.permute.xlu0 %6963  ;;  %7553 = vst.msk [vmem:[#allocation3 + $0x190] sm:$0xff] %vm7502_vm6, %v7411_v17 }
 0xccd   :  { %7137 = vst.msk [vmem:[#allocation3 + $0x98] sm:$0xff] %vm7117_vm5, %v6964_v5  ;;  %v7585_v55 = vld [vmem:[#allocation3 + $0x90] sm:$0xff] }
 0xcce   :  { %7717 = vmatmul.f32.gmra.mxu1 %v7585_v55  ;;  %13332 = vst [vmem:[#allocation41_spill] sm:$0xff] %v12536_v16 }
 0xccf   :  { %v12534_v28 = vpop.f32.mrf.mxu3 }
 0xcd0   :  { %7432 = vrot.lane.b32.xlu1 %v7243_v32, %s8561_s29  ;;  %13331 = vst [vmem:[#allocation39_spill] sm:$0xff] %v12534_v28 }
 0xcd2   :  { %7370 = vrot.lane.b32.xlu0 %v7212_v22, %s8561_s29  ;;  %6985 = vrot.lane.b32.xlu2 %v6827_v9, %s8560_s0  ;;  %v7349_v57 = vpop.permute.xlu1 %7348  ;;  %v12548_v26 = vpop.f32.mrf.mxu1 }
 0xcd3   :  { %7522 = vst.msk [vmem:[#allocation3 + $0x98] sm:$0xff] %vm7502_vm6, %v7349_v57  ;;  %v7617_v19 = vld [vmem:[#allocation3 + $0x190] sm:$0xff] }
 0xcd4   :  { %v6968_v10 = vpop.permute.xlu2 %6967  ;;  %v7413_v3 = vpop.permute.xlu0 %7412  ;;  %7813 = vmatmul.f32.gmra.mxu3 %v7617_v19  ;;  %13334 = vst [vmem:[#allocation14_spill] sm:$0xff] %v12548_v26 }
 0xcd5   :  { %7139 = vst.msk [vmem:[#allocation3 + $0xa8] sm:$0xff] %vm7117_vm5, %v6968_v10 }
 0xcd6   :  { %7554 = vst.msk [vmem:[#allocation3 + $0x198] sm:$0xff] %vm7502_vm6, %v7413_v3 }
 0xcd7   :  { %v12544_v49 = vpop.f32.mrf.mxu3 }
 0xcd8   :  { %7049 = vrot.lane.b32.xlu1 %v6859_v1, %s8560_s0  ;;  %13333 = vst [vmem:[#allocation11_spill] sm:$0xff] %v12544_v49 }
 0xcda   :  { %6987 = vrot.lane.b32.xlu0 %v6828_v7, %s8560_s0  ;;  %v6966_v23 = vpop.permute.xlu1 %6965  ;;  %v7586_v33 = vld [vmem:[#allocation3 + $0x98] sm:$0xff]  ;;  %7434 = vrot.lane.b32.xlu2 %v7244_v24, %s8561_s29  ;;  %v12555_v17 = vpop.f32.mrf.mxu1 }
 0xcdb   :  { %7720 = vmatmul.f32.gmra.mxu1 %v7586_v33  ;;  %7138 = vst.msk [vmem:[#allocation3 + $0xa0] sm:$0xff] %vm7117_vm5, %v6966_v23 }
 0xcdc   :  { %v7417_v38 = vpop.permute.xlu2 %7416  ;;  %v7030_v58 = vpop.permute.xlu0 %7029  ;;  %7523 = vst.msk [vmem:[#allocation3 + $0xa0] sm:$0xff] %vm7502_vm6, %v7351_v30 }
 0xcdd   :  { %7170 = vst.msk [vmem:[#allocation3 + $0x1a0] sm:$0xff] %vm7117_vm5, %v7030_v58  ;;  %v7618_v62 = vld [vmem:[#allocation3 + $0x198] sm:$0xff] }
 0xcde   :  { %7816 = vmatmul.f32.gmra.mxu3 %v7618_v62  ;;  %13336 = vst [vmem:[#allocation18_spill] sm:$0xff] %v12555_v17 }
 0xcdf   :  { %v12553_v12 = vpop.f32.mrf.mxu3 }
 0xce0   :  { %7372 = vrot.lane.b32.xlu1 %v7213_v21, %s8561_s29  ;;  %13335 = vst [vmem:[#allocation16_spill] sm:$0xff] %v12553_v12 }
 0xce2   :  { %7436 = vrot.lane.b32.xlu0 %v7245_v15, %s8561_s29  ;;  %v7415_v59 = vpop.permute.xlu1 %7414  ;;  %7051 = vrot.lane.b32.xlu2 %v6860_v56, %s8560_s0  ;;  %v12565_v63 = vpop.f32.mrf.mxu1 }
 0xce3   :  { %7555 = vst.msk [vmem:[#allocation3 + $0x1a0] sm:$0xff] %vm7502_vm6, %v7415_v59  ;;  %v7587_v52 = vld [vmem:[#allocation3 + $0xa0] sm:$0xff] }
 0xce4   :  { %v7034_v29 = vpop.permute.xlu2 %7033  ;;  %v7353_v51 = vpop.permute.xlu0 %7352  ;;  %7723 = vmatmul.f32.gmra.mxu1 %v7587_v52  ;;  %13337 = vst [vmem:[#allocation19_spill] sm:$0xff] %v12565_v63 }
 0xce5   :  { %7172 = vst.msk [vmem:[#allocation3 + $0x1b0] sm:$0xff] %vm7117_vm5, %v7034_v29 }
 0xce6   :  { %7524 = vst.msk [vmem:[#allocation3 + $0xa8] sm:$0xff] %vm7502_vm6, %v7353_v51 }
 0xce7   :  { %v12561_v13 = vpop.f32.mrf.mxu3 }
 0xcea   :  { %v7032_v54 = vpop.permute.xlu1 %7031  ;;  %v7619_v25 = vld [vmem:[#allocation3 + $0x1a0] sm:$0xff]  ;;  %v12573_v2 = vpop.f32.mrf.mxu1 }
 0xceb   :  { %7819 = vmatmul.f32.gmra.mxu3 %v7619_v25  ;;  %7171 = vst.msk [vmem:[#allocation3 + $0x1a8] sm:$0xff] %vm7117_vm5, %v7032_v54 }
 0xcec   :  { %v7357_v6 = vpop.permute.xlu2 %7356  ;;  %v6970_v53 = vpop.permute.xlu0 %6969  ;;  %7556 = vst.msk [vmem:[#allocation3 + $0x1a8] sm:$0xff] %vm7502_vm6, %v7417_v38 }
 0xced   :  { %7140 = vst.msk [vmem:[#allocation3 + $0xb0] sm:$0xff] %vm7117_vm5, %v6970_v53  ;;  %v7588_v46 = vld [vmem:[#allocation3 + $0xa8] sm:$0xff] }
 0xcee   :  { %7726 = vmatmul.f32.gmra.mxu1 %v7588_v46  ;;  %13338 = vst [vmem:[#allocation20_spill] sm:$0xff] %v12573_v2 }
 0xcef   :  { %v12569_v50 = vpop.f32.mrf.mxu3 }
 0xcf2   :  { %v7355_v41 = vpop.permute.xlu1 %7354  ;;  %v12579_v11 = vpop.f32.mrf.mxu1 }
 0xcf3   :  { %7525 = vst.msk [vmem:[#allocation3 + $0xb0] sm:$0xff] %vm7502_vm6, %v7355_v41  ;;  %v7620_v42 = vld [vmem:[#allocation3 + $0x1a8] sm:$0xff] }
 0xcf4   :  { %v6974_v45 = vpop.permute.xlu2 %6973  ;;  %v7419_v61 = vpop.permute.xlu0 %7418  ;;  %7822 = vmatmul.f32.gmra.mxu3 %v7620_v42  ;;  %13340 = vst [vmem:[#allocation22_spill] sm:$0xff] %v12579_v11 }
 0xcf5   :  { %7142 = vst.msk [vmem:[#allocation3 + $0xc0] sm:$0xff] %vm7117_vm5, %v6974_v45 }
 0xcf6   :  { %7557 = vst.msk [vmem:[#allocation3 + $0x1b0] sm:$0xff] %vm7502_vm6, %v7419_v61 }
 0xcf7   :  { %v12577_v22 = vpop.f32.mrf.mxu3 }
 0xcf8   :  { %13339 = vst [vmem:[#allocation21_spill] sm:$0xff] %v12577_v22 }
 0xcfa   :  { %v6972_v4 = vpop.permute.xlu1 %6971  ;;  %v7589_v20 = vld [vmem:[#allocation3 + $0xb0] sm:$0xff]  ;;  %v12588_v38 = vpop.f32.mrf.mxu1 }
 0xcfb   :  { %7729 = vmatmul.f32.gmra.mxu1 %v7589_v20  ;;  %7141 = vst.msk [vmem:[#allocation3 + $0xb8] sm:$0xff] %vm7117_vm5, %v6972_v4 }
 0xcfc   :  { %v7423_v14 = vpop.permute.xlu2 %7422  ;;  %v7036_v39 = vpop.permute.xlu0 %7035  ;;  %7526 = vst.msk [vmem:[#allocation3 + $0xb8] sm:$0xff] %vm7502_vm6, %v7357_v6 }
 0xcfd   :  { %7173 = vst.msk [vmem:[#allocation3 + $0x1b8] sm:$0xff] %vm7117_vm5, %v7036_v39  ;;  %v7621_v27 = vld [vmem:[#allocation3 + $0x1b0] sm:$0xff] }
 0xcfe   :  { %7825 = vmatmul.f32.gmra.mxu3 %v7621_v27  ;;  %13342 = vst [vmem:[#allocation24_spill] sm:$0xff] %v12588_v38 }
 0xcff   :  { %v12585_v3 = vpop.f32.mrf.mxu3 }
 0xd00   :  { %13341 = vst [vmem:[#allocation23_spill] sm:$0xff] %v12585_v3 }
 0xd02   :  { %v7421_v60 = vpop.permute.xlu1 %7420  ;;  %v12596_v33 = vpop.f32.mrf.mxu1 }
 0xd03   :  { %7558 = vst.msk [vmem:[#allocation3 + $0x1b8] sm:$0xff] %vm7502_vm6, %v7421_v60  ;;  %v7590_v47 = vld [vmem:[#allocation3 + $0xb8] sm:$0xff] }
 0xd04   :  { %v7040_v40 = vpop.permute.xlu2 %7039  ;;  %v7359_v31 = vpop.permute.xlu0 %7358  ;;  %7732 = vmatmul.f32.gmra.mxu1 %v7590_v47  ;;  %13344 = vst [vmem:[#allocation26_spill] sm:$0xff] %v12596_v33 }
 0xd05   :  { %7175 = vst.msk [vmem:[#allocation3 + $0x1c8] sm:$0xff] %vm7117_vm5, %v7040_v40 }
 0xd06   :  { %7527 = vst.msk [vmem:[#allocation3 + $0xc0] sm:$0xff] %vm7502_vm6, %v7359_v31 }
 0xd07   :  { %v12592_v23 = vpop.f32.mrf.mxu3 }
 0xd08   :  { %13343 = vst [vmem:[#allocation25_spill] sm:$0xff] %v12592_v23 }
 0xd0a   :  { %v7038_v10 = vpop.permute.xlu1 %7037  ;;  %v7622_v44 = vld [vmem:[#allocation3 + $0x1b8] sm:$0xff] }
 0xd0b   :  { %7828 = vmatmul.f32.gmra.mxu3 %v7622_v44  ;;  %7174 = vst.msk [vmem:[#allocation3 + $0x1c0] sm:$0xff] %vm7117_vm5, %v7038_v10  ;;  %v12603_v59 = vpop.f32.mrf.mxu1 }
 0xd0c   :  { %v7363_v30 = vpop.permute.xlu2 %7362  ;;  %v6976_v5 = vpop.permute.xlu0 %6975  ;;  %7559 = vst.msk [vmem:[#allocation3 + $0x1c0] sm:$0xff] %vm7502_vm6, %v7423_v14 }
 0xd0d   :  { %7143 = vst.msk [vmem:[#allocation3 + $0xc8] sm:$0xff] %vm7117_vm5, %v6976_v5  ;;  %v7591_v8 = vld [vmem:[#allocation3 + $0xc0] sm:$0xff] }
 0xd0e   :  { %7735 = vmatmul.f32.gmra.mxu1 %v7591_v8  ;;  %13345 = vst [vmem:[#allocation27_spill] sm:$0xff] %v12603_v59 }
 0xd0f   :  { %v12601_v6 = vpop.f32.mrf.mxu3 }
 0xd12   :  { %v7361_v7 = vpop.permute.xlu1 %7360 }
 0xd13   :  { %7528 = vst.msk [vmem:[#allocation3 + $0xc8] sm:$0xff] %vm7502_vm6, %v7361_v7  ;;  %v7623_v57 = vld [vmem:[#allocation3 + $0x1c0] sm:$0xff] }
 0xd14   :  { %v6980_v18 = vpop.permute.xlu2 %6979  ;;  %v7425_v55 = vpop.permute.xlu0 %7424  ;;  %7831 = vmatmul.f32.gmra.mxu3 %v7623_v57 }
 0xd15   :  { %7145 = vst.msk [vmem:[#allocation3 + $0xd8] sm:$0xff] %vm7117_vm5, %v6980_v18 }
 0xd16   :  { %7560 = vst.msk [vmem:[#allocation3 + $0x1c8] sm:$0xff] %vm7502_vm6, %v7425_v55 }
 0xd17   :  { %v12609_v25 = vpop.f32.mrf.mxu3 }
 0xd18   :  { %13346 = vst [vmem:[#allocation28_spill] sm:$0xff] %v12609_v25  ;;  %v12611_v46 = vpop.f32.mrf.mxu1 }
 0xd19   :  { %13347 = vst [vmem:[#allocation29_spill] sm:$0xff] %v12611_v46 }
 0xd1a   :  { %v6978_v19 = vpop.permute.xlu1 %6977  ;;  %v7592_v1 = vld [vmem:[#allocation3 + $0xc8] sm:$0xff] }
 0xd1b   :  { %7738 = vmatmul.f32.gmra.mxu1 %v7592_v1  ;;  %7144 = vst.msk [vmem:[#allocation3 + $0xd0] sm:$0xff] %vm7117_vm5, %v6978_v19 }
 0xd1c   :  { %v7429_v9 = vpop.permute.xlu2 %7428  ;;  %v7042_v32 = vpop.permute.xlu0 %7041  ;;  %7529 = vst.msk [vmem:[#allocation3 + $0xd0] sm:$0xff] %vm7502_vm6, %v7363_v30 }
 0xd1d   :  { %7176 = vst.msk [vmem:[#allocation3 + $0x1d0] sm:$0xff] %vm7117_vm5, %v7042_v32  ;;  %v7624_v15 = vld [vmem:[#allocation3 + $0x1c8] sm:$0xff] }
 0xd1e   :  { %7834 = vmatmul.f32.gmra.mxu3 %v7624_v15 }
 0xd21   :  { %v12615_v42 = vpop.f32.mrf.mxu3  ;;  %v12617_v40 = vpop.f32.mrf.mxu1 }
 0xd22   :  { %v7427_v51 = vpop.permute.xlu1 %7426  ;;  %13348 = vst [vmem:[#allocation30_spill] sm:$0xff] %v12615_v42 }
 0xd23   :  { %7561 = vst.msk [vmem:[#allocation3 + $0x1d0] sm:$0xff] %vm7502_vm6, %v7427_v51  ;;  %v7593_v24 = vld [vmem:[#allocation3 + $0xd0] sm:$0xff] }
 0xd24   :  { %v7046_v58 = vpop.permute.xlu2 %7045  ;;  %v7365_v29 = vpop.permute.xlu0 %7364  ;;  %7741 = vmatmul.f32.gmra.mxu1 %v7593_v24  ;;  %13349 = vst [vmem:[#allocation31_spill] sm:$0xff] %v12617_v40 }
 0xd25   :  { %7178 = vst.msk [vmem:[#allocation3 + $0x1e0] sm:$0xff] %vm7117_vm5, %v7046_v58 }
 0xd26   :  { %7530 = vst.msk [vmem:[#allocation3 + $0xd8] sm:$0xff] %vm7502_vm6, %v7365_v29 }
 0xd2a   :  { %v7044_v56 = vpop.permute.xlu1 %7043  ;;  %v7625_v45 = vld [vmem:[#allocation3 + $0x1d0] sm:$0xff] }
 0xd2b   :  { %7177 = vst.msk [vmem:[#allocation3 + $0x1d8] sm:$0xff] %vm7117_vm5, %v7044_v56  ;;  %7837 = vmatmul.f32.gmra.mxu3 %v7625_v45  ;;  %v12626_v10 = vpop.f32.mrf.mxu1 }
 0xd2c   :  { %v7369_v62 = vpop.permute.xlu2 %7368  ;;  %v6982_v21 = vpop.permute.xlu0 %6981  ;;  %7562 = vst.msk [vmem:[#allocation3 + $0x1d8] sm:$0xff] %vm7502_vm6, %v7429_v9 }
 0xd2d   :  { %7146 = vst.msk [vmem:[#allocation3 + $0xe0] sm:$0xff] %vm7117_vm5, %v6982_v21  ;;  %v7594_v53 = vld [vmem:[#allocation3 + $0xd8] sm:$0xff] }
 0xd2e   :  { %7744 = vmatmul.f32.gmra.mxu1 %v7594_v53  ;;  %v12622_v60 = vpop.f32.mrf.mxu3  ;;  %13350 = vst [vmem:[#allocation32_spill] sm:$0xff] %v12626_v10 }
 0xd32   :  { %v7367_v61 = vpop.permute.xlu1 %7366 }
 0xd33   :  { %7531 = vst.msk [vmem:[#allocation3 + $0xe0] sm:$0xff] %vm7502_vm6, %v7367_v61  ;;  %v7626_v41 = vld [vmem:[#allocation3 + $0x1d8] sm:$0xff] }
 0xd34   :  { %v6986_v52 = vpop.permute.xlu2 %6985  ;;  %v7431_v54 = vpop.permute.xlu0 %7430  ;;  %7840 = vmatmul.f32.gmra.mxu3 %v7626_v41 }
 0xd35   :  { %7148 = vst.msk [vmem:[#allocation3 + $0xf0] sm:$0xff] %vm7117_vm5, %v6986_v52 }
 0xd36   :  { %7563 = vst.msk [vmem:[#allocation3 + $0x1e0] sm:$0xff] %vm7502_vm6, %v7431_v54 }
 0xd37   :  { %v12630_v7 = vpop.f32.mrf.mxu3 }
 0xd38   :  { %v12632_v32 = vpop.f32.mrf.mxu1 }
 0xd3a   :  { %v6984_v20 = vpop.permute.xlu1 %6983  ;;  %v7595_v27 = vld [vmem:[#allocation3 + $0xe0] sm:$0xff] }
 0xd3b   :  { %7147 = vst.msk [vmem:[#allocation3 + $0xe8] sm:$0xff] %vm7117_vm5, %v6984_v20  ;;  %7747 = vmatmul.f32.gmra.mxu1 %v7595_v27  ;;  %v7874_v20 = vmul.f32 %v12514_v43, %v12514_v43  ;;  %v7858_v27 = vadd.f32 %v12502_v34, %v12491_v36 }
 0xd3c   :  { %v7048_v14 = vpop.permute.xlu0 %7047  ;;  %v7435_v39 = vpop.permute.xlu2 %7434  ;;  %7532 = vst.msk [vmem:[#allocation3 + $0xe8] sm:$0xff] %vm7502_vm6, %v7369_v62 }
 0xd3d   :  { %7179 = vst.msk [vmem:[#allocation3 + $0x1e8] sm:$0xff] %vm7117_vm5, %v7048_v14  ;;  %v7627_v4 = vld [vmem:[#allocation3 + $0x1e0] sm:$0xff] }
 0xd3e   :  { %7843 = vmatmul.f32.gmra.mxu3 %v7627_v4  ;;  %v7872_v4 = vmul.f32 %v12491_v36, %v12491_v36 }
 0xd41   :  { %v12637_v19 = vpop.f32.mrf.mxu3  ;;  %v12639_v1 = vpop.f32.mrf.mxu1 }
 0xd42   :  { %v7433_v5 = vpop.permute.xlu1 %7432  ;;  %13351 = vst [vmem:[#allocation34_spill] sm:$0xff] %v12637_v19 }
 0xd43   :  { %7564 = vst.msk [vmem:[#allocation3 + $0x1e8] sm:$0xff] %vm7502_vm6, %v7433_v5  ;;  %v7596_v18 = vld [vmem:[#allocation3 + $0xe8] sm:$0xff] }
 0xd44   :  { %v7371_v31 = vpop.permute.xlu0 %7370  ;;  %v7052_v30 = vpop.permute.xlu2 %7051  ;;  %7750 = vmatmul.f32.gmra.mxu1 %v7596_v18 }
 0xd45   :  { %7533 = vst.msk [vmem:[#allocation3 + $0xf0] sm:$0xff] %vm7502_vm6, %v7371_v31 }
 0xd46   :  { %7181 = vst.msk [vmem:[#allocation3 + $0x1f8] sm:$0xff] %vm7117_vm5, %v7052_v30  ;;  %v7875_v30 = vmul.f32 %v12525_v35, %v12525_v35 }
 0xd4a   :  { %v7050_v8 = vpop.permute.xlu1 %7049  ;;  %v7628_v55 = vld [vmem:[#allocation3 + $0x1e8] sm:$0xff] }
 0xd4b   :  { %7180 = vst.msk [vmem:[#allocation3 + $0x1f0] sm:$0xff] %vm7117_vm5, %v7050_v8  ;;  %7846 = vmatmul.f32.gmra.mxu3 %v7628_v55  ;;  %v12643_v51 = vpop.f32.mrf.mxu1 }
 0xd4c   :  { %v6988_v47 = vpop.permute.xlu0 %6987  ;;  %v7597_v44 = vld [vmem:[#allocation3 + $0xf0] sm:$0xff]  ;;  %7565 = vst.msk [vmem:[#allocation3 + $0x1f0] sm:$0xff] %vm7502_vm6, %v7435_v39  ;;  %v7873_v39 = vmul.f32 %v12502_v34, %v12502_v34 }
 0xd4d   :  { %7149 = vst.msk [vmem:[#allocation3 + $0xf8] sm:$0xff] %vm7117_vm5, %v6988_v47  ;;  %7753 = vmatmul.f32.gmra.mxu1 %v7597_v44  ;;  %v7859_v47 = vadd.f32 %v7858_v27, %v12514_v43  ;;  %v7876_v44 = vmul.f32 %v12536_v16, %v12536_v16  ;;  %v8017_v27 = vmul.f32 %v12511_v0, %v12511_v0 }
 0xd4e   :  { %v12641_v62 = vpop.f32.mrf.mxu3  ;;  %v7880_v31 = vadd.f32 %v7873_v39, %v7872_v4 }
 0xd4f   :  { %13352 = vst [vmem:[#allocation36_spill] sm:$0xff] %v12641_v62  ;;  %v7860_v55 = vadd.f32 %v7859_v47, %v12525_v35  ;;  %v7894_v35 = vadd.f32 %v12579_v11, %v12573_v2 }
 0xd50   :  { %v7881_v18 = vadd.f32 %v7880_v31, %v7874_v20  ;;  %v7879_v20 = vmul.f32 %v12565_v63, %v12565_v63 }
 0xd52   :  { %v7373_v57 = vpop.permute.xlu1 %7372 }
 0xd53   :  { %7534 = vst.msk [vmem:[#allocation3 + $0xf8] sm:$0xff] %vm7502_vm6, %v7373_v57  ;;  %v7629_v58 = vld [vmem:[#allocation3 + $0x1f0] sm:$0xff]  ;;  %v7877_v57 = vmul.f32 %v12548_v26, %v12548_v26 }
 0xd54   :  { %v7437_v9 = vpop.permute.xlu0 %7436  ;;  %7849 = vmatmul.f32.gmra.mxu3 %v7629_v58  ;;  %v7861_v58 = vadd.f32 %v7860_v55, %v12536_v16  ;;  %v8018_v55 = vmul.f32 %v12521_v48, %v12521_v48 }
 0xd55   :  { %7566 = vst.msk [vmem:[#allocation3 + $0x1f8] sm:$0xff] %vm7502_vm6, %v7437_v9  ;;  %v7882_v9 = vadd.f32 %v7881_v18, %v7875_v30 }
 0xd56   :  { %v7862_v39 = vadd.f32 %v7861_v58, %v12548_v26  ;;  %v8002_v58 = vadd.f32 %v12511_v0, %v12498_v37 }
 0xd57   :  { %v12645_v21 = vpop.f32.mrf.mxu3 }
 0xd58   :  { %13353 = vst [vmem:[#allocation38_spill] sm:$0xff] %v12645_v21  ;;  %v12647_v24 = vpop.f32.mrf.mxu1  ;;  %v7863_v31 = vadd.f32 %v7862_v39, %v12555_v17  ;;  %v8003_v39 = vadd.f32 %v8002_v58, %v12521_v48  ;;  %v8022_v48 = vmul.f32 %v12561_v13, %v12561_v13 }
 0xd5a   :  { %v7598_v29 = vld [vmem:[#allocation3 + $0xf8] sm:$0xff] }
 0xd5b   :  { %7756 = vmatmul.f32.gmra.mxu1 %v7598_v29  ;;  %v7878_v29 = vmul.f32 %v12555_v17, %v12555_v17  ;;  %v8020_v17 = vmul.f32 %v12544_v49, %v12544_v49 }
 0xd5c   :  { %v7630_v15 = vld [vmem:[#allocation3 + $0x1f8] sm:$0xff] }
 0xd5d   :  { %7852 = vmatmul.f32.gmra.mxu3 %v7630_v15  ;;  %v7883_v15 = vadd.f32 %v7882_v9, %v7876_v44  ;;  %v8016_v44 = vmul.f32 %v12498_v37, %v12498_v37  ;;  %v7864_v9 = vadd.f32 %v7863_v31, %v12565_v63 }
 0xd5f   :  { %v7884_v4 = vadd.f32 %v7883_v15, %v7877_v57  ;;  %v8024_v15 = vadd.f32 %v8017_v27, %v8016_v44  ;;  %v7865_v26 = vrot.slane %v7864_v9, 4  ;;  %v8021_v27 = vmul.f32 %v12553_v12, %v12553_v12 }
 0xd61   :  { %v12649_v53 = vpop.f32.mrf.mxu3  ;;  %v12651_v52 = vpop.f32.mrf.mxu1  ;;  %v7885_v30 = vadd.f32 %v7884_v4, %v7878_v29  ;;  %v8019_v29 = vmul.f32 %v12534_v28, %v12534_v28  ;;  %v8025_v4 = vadd.f32 %v8024_v15, %v8018_v55  ;;  %v7866_v55 = vadd.f32 %v7865_v26, %v7864_v9 }
 0xd62   :  { %13354 = vst [vmem:[#allocation40_spill] sm:$0xff] %v12649_v53  ;;  %v7910_v26 = vmul.f32 %v12588_v38, %v12588_v38 }
 0xd63   :  { %v7886_v57 = vadd.f32 %v7885_v30, %v7879_v20  ;;  %v8004_v20 = vadd.f32 %v8003_v39, %v12534_v28  ;;  %v8026_v31 = vadd.f32 %v8025_v4, %v8019_v29  ;;  %v7895_v30 = vadd.f32 %v7894_v35, %v12588_v38 }
 0xd64   :  { %v7909_v29 = vmul.f32 %v12579_v11, %v12579_v11  ;;  %v7912_v38 = vmul.f32 %v12603_v59, %v12603_v59 }
 0xd65   :  { %v7887_v16 = vrot.slane %v7886_v57, 4  ;;  %v8005_v44 = vadd.f32 %v8004_v20, %v12544_v49  ;;  %v8027_v58 = vadd.f32 %v8026_v31, %v8020_v17  ;;  %v7896_v39 = vadd.f32 %v7895_v30, %v12596_v33 }
 0xd66   :  { %v7908_v17 = vmul.f32 %v12573_v2, %v12573_v2 }
 0xd67   :  { %v7888_v15 = vadd.f32 %v7887_v16, %v7886_v57  ;;  %v8006_v4 = vadd.f32 %v8005_v44, %v12553_v12  ;;  %v8028_v35 = vadd.f32 %v8027_v58, %v8021_v27  ;;  %v8023_v16 = vmul.f32 %v12569_v50, %v12569_v50 }
 0xd68   :  { %v7897_v9 = vadd.f32 %v7896_v39, %v12603_v59  ;;  %v7867_v57 = vrot.slane %v7866_v55, 2  ;;  %v7916_v30 = vadd.f32 %v7909_v29, %v7908_v17  ;;  %v7911_v27 = vmul.f32 %v12596_v33, %v12596_v33 }
 0xd69   :  { %v7889_v20 = vrot.slane %v7888_v15, 2  ;;  %v8007_v31 = vadd.f32 %v8006_v4, %v12561_v13  ;;  %v8029_v11 = vadd.f32 %v8028_v35, %v8022_v48  ;;  %v7913_v29 = vmul.f32 %v12611_v46, %v12611_v46 }
 0xd6a   :  { %v7898_v44 = vadd.f32 %v7897_v9, %v12611_v46  ;;  %v7917_v12 = vadd.f32 %v7916_v30, %v7910_v26  ;;  %v7868_v49 = vadd.f32 %v7867_v57, %v7866_v55  ;;  %v7914_v26 = vmul.f32 %v12617_v40, %v12617_v40 }
 0xd6b   :  { %v12655_v45 = vpop.f32.mrf.mxu1  ;;  %v8008_v58 = vadd.f32 %v8007_v31, %v12569_v50  ;;  %v8030_v2 = vadd.f32 %v8029_v11, %v8023_v16  ;;  %v7890_v28 = vadd.f32 %v7889_v20, %v7888_v15  ;;  %v8053_v30 = vmul.f32 %v12585_v3, %v12585_v3 }
 0xd6c   :  { %v7899_v39 = vadd.f32 %v7898_v44, %v12617_v40  ;;  %v7918_v48 = vadd.f32 %v7917_v12, %v7911_v27  ;;  %v7869_v9 = vrot.slane %v7868_v49, 1  ;;  %v7915_v12 = vmul.f32 %v12626_v10, %v12626_v10 }
 0xd6d   :  { %v8009_v17 = vrot.slane %v8008_v58, 4  ;;  %v8031_v11 = vrot.slane %v8030_v2, 4  ;;  %v7891_v31 = vrot.slane %v7890_v28, 1  ;;  %v8056_v46 = vmul.f32 %v12609_v25, %v12609_v25 }
 0xd6e   :  { %v12653_v56 = vpop.f32.mrf.mxu3  ;;  %v7900_v4 = vadd.f32 %v7899_v39, %v12626_v10  ;;  %v7919_v16 = vadd.f32 %v7918_v48, %v7912_v38  ;;  %v12755_v44 = vadd.f32 %v7869_v9, %v7868_v49  ;;  %v7945_v38 = vmul.f32 %v12639_v1, %v12639_v1 }
 0xd6f   :  { %13355 = vst [vmem:[#allocation10_spill] sm:$0xff] %v12653_v56  ;;  %v8010_v57 = vadd.f32 %v8009_v17, %v8008_v58  ;;  %v8032_v20 = vadd.f32 %v8031_v11, %v8030_v2  ;;  %v12757_v39 = vadd.f32 %v7891_v31, %v7890_v28  ;;  %v8052_v48 = vmul.f32 %v12577_v22, %v12577_v22 }
 0xd70   :  { %v7920_v55 = vadd.f32 %v7919_v16, %v7913_v29  ;;  %v7901_v15 = vrot.slane %v7900_v4, 4  ;;  %v8054_v29 = vmul.f32 %v12592_v23, %v12592_v23  ;;  %v8038_v2 = vadd.f32 %v12585_v3, %v12577_v22 }
 0xd71   :  { %v7944_v49 = vmul.f32 %v12632_v32, %v12632_v32  ;;  %v7930_v28 = vadd.f32 %v12639_v1, %v12632_v32  ;;  %v7946_v17 = vmul.f32 %v12643_v51, %v12643_v51  ;;  %v8011_v9 = vrot.slane %v8010_v57, 2 }
 0xd72   :  { %v7921_v27 = vadd.f32 %v7920_v55, %v7914_v26  ;;  %v7902_v16 = vadd.f32 %v7901_v15, %v7900_v4  ;;  %v8033_v31 = vrot.slane %v8032_v20, 2  ;;  %v8060_v4 = vadd.f32 %v8053_v30, %v8052_v48 }
 0xd73   :  { %v8055_v55 = vmul.f32 %v12601_v6, %v12601_v6  ;;  %v8039_v15 = vadd.f32 %v8038_v2, %v12592_v23  ;;  %v7947_v10 = vmul.f32 %v12647_v24, %v12647_v24  ;;  %v7948_v2 = vmul.f32 %v12651_v52, %v12651_v52 }
 0xd74   :  { %v7922_v58 = vadd.f32 %v7921_v27, %v7915_v12  ;;  %v7952_v12 = vadd.f32 %v7945_v38, %v7944_v49  ;;  %v7931_v27 = vadd.f32 %v7930_v28, %v12643_v51  ;;  %v8061_v40 = vadd.f32 %v8060_v4, %v8054_v29 }
 0xd75   :  { %v7903_v59 = vrot.slane %v7902_v16, 2  ;;  %v8040_v3 = vadd.f32 %v8039_v15, %v12601_v6  ;;  %v12789_v38 = vadd.f32 %v8011_v9, %v8010_v57  ;;  %v12791_v49 = vadd.f32 %v8033_v31, %v8032_v20 }
 0xd76   :  { %v7923_v33 = vrot.slane %v7922_v58, 4  ;;  %v7953_v30 = vadd.f32 %v7952_v12, %v7946_v17  ;;  %v7932_v48 = vadd.f32 %v7931_v27, %v12647_v24  ;;  %v8062_v28 = vadd.f32 %v8061_v40, %v8055_v55 }
 0xd77   :  { %v12657_v54 = vpop.f32.mrf.mxu3  ;;  %v8057_v29 = vmul.f32 %v12615_v42, %v12615_v42  ;;  %v8041_v4 = vadd.f32 %v8040_v3, %v12609_v25  ;;  %v7949_v17 = vmul.f32 %v12655_v45, %v12655_v45  ;;  %v7904_v12 = vadd.f32 %v7903_v59, %v7902_v16 }
 0xd78   :  { %13356 = vst [vmem:[#allocation12_spill] sm:$0xff] %v12657_v54  ;;  %v12659_v61 = vpop.f32.mrf.mxu1  ;;  %v7954_v23 = vadd.f32 %v7953_v30, %v7947_v10  ;;  %v7933_v22 = vadd.f32 %v7932_v48, %v12651_v52  ;;  %v8063_v15 = vadd.f32 %v8062_v28, %v8056_v46  ;;  %v7924_v27 = vadd.f32 %v7923_v33, %v7922_v58 }
 0xd79   :  { %v8089_v57 = vmul.f32 %v12641_v62, %v12641_v62  ;;  %v8042_v20 = vadd.f32 %v8041_v4, %v12615_v42  ;;  %v7950_v3 = vmul.f32 %v12659_v61, %v12659_v61  ;;  %v8058_v31 = vmul.f32 %v12622_v60, %v12622_v60 }
 0xd7a   :  { %v7955_v40 = vadd.f32 %v7954_v23, %v7948_v2  ;;  %v7934_v9 = vadd.f32 %v7933_v22, %v12655_v45  ;;  %v8064_v10 = vadd.f32 %v8063_v15, %v8057_v29  ;;  %v8088_v46 = vmul.f32 %v12637_v19, %v12637_v19 }
 0xd7b   :  { %v8074_v33 = vadd.f32 %v12641_v62, %v12637_v19  ;;  %v8090_v59 = vmul.f32 %v12645_v21, %v12645_v21  ;;  %v7905_v30 = vrot.slane %v7904_v12, 1  ;;  %v7925_v48 = vrot.slane %v7924_v27, 2 }
 0xd7c   :  { %v7956_v16 = vadd.f32 %v7955_v40, %v7949_v17  ;;  %v7935_v23 = vadd.f32 %v7934_v9, %v12659_v61  ;;  %v8043_v2 = vadd.f32 %v8042_v20, %v12622_v60  ;;  %v8096_v28 = vadd.f32 %v8089_v57, %v8088_v46 }
 0xd7d   :  { %v8075_v29 = vadd.f32 %v8074_v33, %v12645_v21  ;;  %v8091_v4 = vmul.f32 %v12649_v53, %v12649_v53  ;;  %v8065_v62 = vadd.f32 %v8064_v10, %v8058_v31  ;;  %v8092_v57 = vmul.f32 %v12653_v56, %v12653_v56 }
 0xd7e   :  { %v7957_v17 = vadd.f32 %v7956_v16, %v7950_v3  ;;  %v8044_v19 = vadd.f32 %v8043_v2, %v12630_v7  ;;  %v8097_v42 = vadd.f32 %v8096_v28, %v8090_v59  ;;  %v12831_v46 = vadd.f32 %v7905_v30, %v7904_v12 }
 0xd7f   :  { %v8076_v25 = vadd.f32 %v8075_v29, %v12649_v53  ;;  %v12833_v33 = vadd.f32 %v7925_v48, %v7924_v27  ;;  %v8059_v3 = vmul.f32 %v12630_v7, %v12630_v7  ;;  %v8093_v59 = vmul.f32 %v12657_v54, %v12657_v54 }
 0xd80   :  { %v8098_v10 = vadd.f32 %v8097_v42, %v8091_v4  ;;  %v8045_v2 = vrot.slane %v8044_v19, 4 }
 0xd81   :  { %v12661_v14 = vpop.f32.mrf.mxu3  ;;  %v12663_v41 = vpop.f32.mrf.mxu1  ;;  %v8077_v31 = vadd.f32 %v8076_v25, %v12653_v56  ;;  %v8066_v40 = vadd.f32 %v8065_v62, %v8059_v3 }
 0xd82   :  { %13357 = vst [vmem:[#allocation13_spill] sm:$0xff] %v12661_v14  ;;  %v7951_v22 = vmul.f32 %v12663_v41, %v12663_v41  ;;  %v7936_v15 = vadd.f32 %v7935_v23, %v12663_v41  ;;  %v8099_v30 = vadd.f32 %v8098_v10, %v8092_v57  ;;  %v8094_v25 = vmul.f32 %v12661_v14, %v12661_v14 }
 0xd83   :  { %v8078_v48 = vadd.f32 %v8077_v31, %v12657_v54 }
 0xd84   :  { %v7958_v20 = vadd.f32 %v7957_v17, %v7951_v22  ;;  %v7937_v23 = vrot.slane %v7936_v15, 4  ;;  %v8100_v56 = vadd.f32 %v8099_v30, %v8093_v59 }
 0xd85   :  { %v8079_v57 = vadd.f32 %v8078_v48, %v12661_v14 }
 0xd86   :  { %v7959_v42 = vrot.slane %v7958_v20, 4  ;;  %v7938_v10 = vadd.f32 %v7937_v23, %v7936_v15 }
 0xd88   :  { %v7960_v29 = vadd.f32 %v7959_v42, %v7958_v20 }
 0xd8b   :  { %v12680_v8 = vpop.f32.mrf.mxu1 }
 0xd8c   :  { %v7980_v12 = vmul.f32 %v12680_v8, %v12680_v8 }
 0xd8e   :  { %v12675_v5 = vpop.f32.mrf.mxu3 }
 0xd8f   :  { %13358 = vst [vmem:[#allocation15_spill] sm:$0xff] %v12675_v5  ;;  %v8095_v54 = vmul.f32 %v12675_v5, %v12675_v5  ;;  %v8080_v3 = vadd.f32 %v8079_v57, %v12675_v5 }
 0xd97   :  { %v12694_v47 = vpop.f32.mrf.mxu3 }
 0xd98   :  { %13359 = vst [vmem:[#allocation17_spill] sm:$0xff] %v12694_v47  ;;  %v12696_v18 = vpop.f32.mrf.mxu1  ;;  %v8124_v30 = vmul.f32 %v12694_v47, %v12694_v47 }
 0xd99   :  { %v7981_v16 = vmul.f32 %v12696_v18, %v12696_v18  ;;  %v7966_v27 = vadd.f32 %v12696_v18, %v12680_v8 }
 0xd9b   :  { %v7988_v4 = vadd.f32 %v7981_v16, %v7980_v12  ;;  %v8046_v12 = vadd.f32 %v8045_v2, %v8044_v19 }
 0xda1   :  { %v12717_v63 = vpop.f32.mrf.mxu3  ;;  %v12719_v43 = vpop.f32.mrf.mxu1 }
 0xda2   :  { %13360 = vst [vmem:[#allocation6_spill] sm:$0xff] %v12717_v63  ;;  %v7982_v22 = vmul.f32 %v12719_v43, %v12719_v43  ;;  %v7967_v17 = vadd.f32 %v7966_v27, %v12719_v43  ;;  %v8101_v27 = vadd.f32 %v8100_v56, %v8094_v25  ;;  %v8125_v62 = vmul.f32 %v12717_v63, %v12717_v63 }
 0xda3   :  { %v8110_v19 = vadd.f32 %v12717_v63, %v12694_v47 }
 0xda4   :  { %v7989_v53 = vadd.f32 %v7988_v4, %v7982_v22  ;;  %v7939_v22 = vrot.slane %v7938_v10, 2  ;;  %v8102_v20 = vadd.f32 %v8101_v27, %v8095_v54  ;;  %v7961_v4 = vrot.slane %v7960_v29, 2 }
 0xda6   :  { %v7940_v54 = vadd.f32 %v7939_v22, %v7938_v10  ;;  %v7962_v22 = vadd.f32 %v7961_v4, %v7960_v29 }
 0xda8   :  { %v7963_v4 = vrot.slane %v7962_v22, 1 }
 0xdab   :  { %v12747_v35 = vpop.f32.mrf.mxu1 }
 0xdac   :  { %v7983_v9 = vmul.f32 %v12747_v35, %v12747_v35  ;;  %v7968_v21 = vadd.f32 %v7967_v17, %v12747_v35  ;;  %v8081_v17 = vrot.slane %v8080_v3, 4 }
 0xdae   :  { %v12742_v34 = vpop.f32.mrf.mxu3  ;;  %v7990_v15 = vadd.f32 %v7989_v53, %v7983_v9  ;;  %v8067_v53 = vrot.slane %v8066_v40, 4  ;;  %v8132_v9 = vadd.f32 %v8125_v62, %v8124_v30 }
 0xdaf   :  { %13361 = vst [vmem:[#allocation4_spill] sm:$0xff] %v12742_v34  ;;  %v8126_v56 = vmul.f32 %v12742_v34, %v12742_v34  ;;  %v8111_v25 = vadd.f32 %v8110_v19, %v12742_v34 }
 0xdb7   :  { %v12773_v11 = vpop.f32.mrf.mxu3 }
 0xdb8   :  { %13362 = vst [vmem:[#allocation7_spill] sm:$0xff] %v12773_v11  ;;  %v12775_v26 = vpop.f32.mrf.mxu1  ;;  %v8127_v42 = vmul.f32 %v12773_v11, %v12773_v11  ;;  %v8112_v27 = vadd.f32 %v8111_v25, %v12773_v11  ;;  %v8047_v11 = vrot.slane %v8046_v12, 2 }
 0xdb9   :  { %v7984_v16 = vmul.f32 %v12775_v26, %v12775_v26  ;;  %v7969_v59 = vadd.f32 %v7968_v21, %v12775_v26 }
 0xdbb   :  { %v7991_v2 = vadd.f32 %v7990_v15, %v7984_v16  ;;  %v8133_v16 = vadd.f32 %v8132_v9, %v8126_v56  ;;  %v8082_v56 = vadd.f32 %v8081_v17, %v8080_v3 }
 0xdbd   :  { %v8083_v17 = vrot.slane %v8082_v56, 2 }
 0xdc1   :  { %v12816_v58 = vpop.f32.mrf.mxu3  ;;  %v12818_v55 = vpop.f32.mrf.mxu1 }
 0xdc2   :  { %13363 = vst [vmem:[#allocation5_spill] sm:$0xff] %v12816_v58  ;;  %v7985_v23 = vmul.f32 %v12818_v55, %v12818_v55  ;;  %v7970_v48 = vadd.f32 %v7969_v59, %v12818_v55  ;;  %v8128_v15 = vmul.f32 %v12816_v58, %v12816_v58  ;;  %v8103_v59 = vrot.slane %v8102_v20, 4 }
 0xdc3   :  { %v8113_v34 = vadd.f32 %v8112_v27, %v12816_v58 }
 0xdc4   :  { %v7992_v57 = vadd.f32 %v7991_v2, %v7985_v23  ;;  %v8068_v2 = vadd.f32 %v8067_v53, %v8066_v40  ;;  %v8104_v14 = vadd.f32 %v8103_v59, %v8102_v20 }
 0xdc6   :  { %v8069_v27 = vrot.slane %v8068_v2, 2 }
 0xdca   :  { %v12858_v31 = vpop.f32.mrf.mxu1 }
 0xdcb   :  { %v7986_v21 = vmul.f32 %v12858_v31, %v12858_v31  ;;  %v7971_v63 = vadd.f32 %v7970_v48, %v12858_v31  ;;  %v8134_v48 = vadd.f32 %v8133_v16, %v8127_v42  ;;  %v13366_v42 = vrot.slane %v12833_v33, 1 }
 0xdcd   :  { %v7993_v30 = vadd.f32 %v7992_v57, %v7986_v21  ;;  %v8135_v5 = vadd.f32 %v8134_v48, %v8128_v15  ;;  %v7941_v57 = vrot.slane %v7940_v54, 1  ;;  %v7928_v16 = vadd.f32 %v13366_v42, %v12833_v33 }
 0xdce   :  { %v12851_v28 = vpop.f32.mrf.mxu3 }
 0xdcf   :  { %13364 = vst [vmem:[#allocation8_spill] sm:$0xff] %v12851_v28  ;;  %v8129_v10 = vmul.f32 %v12851_v28, %v12851_v28  ;;  %v8114_v21 = vadd.f32 %v8113_v34, %v12851_v28 }
 0xdd1   :  { %v8136_v29 = vadd.f32 %v8135_v5, %v8129_v10  ;;  %v7907_v5 = vadd.f32 %v12831_v46, %v12755_v44  ;;  %v8070_v10 = vadd.f32 %v8069_v27, %v8068_v2 }
 0xdd3   :  { %v8071_v46 = vrot.slane %v8070_v10, 1 }
 0xdd7   :  { %v12884_v47 = vpop.f32.mrf.mxu3 }
 0xdd8   :  { %13365 = vst [vmem:[#allocation42_spill] sm:$0xff] %v12884_v47  ;;  %v12889_v62 = vpop.f32.mrf.mxu1  ;;  %v8115_v3 = vadd.f32 %v8114_v21, %v12884_v47 }
 0xdd9   :  { %v7972_v19 = vadd.f32 %v7971_v63, %v12889_v62  ;;  %v7987_v23 = vmul.f32 %v12889_v62, %v12889_v62  ;;  %v8130_v63 = vmul.f32 %v12884_v47, %v12884_v47 }
 0xddb   :  { %v7973_v9 = vrot.slane %v7972_v19, 4  ;;  %v7994_v25 = vadd.f32 %v7993_v30, %v7987_v23  ;;  %v8048_v23 = vadd.f32 %v8047_v11, %v8046_v12  ;;  %v8137_v48 = vadd.f32 %v8136_v29, %v8130_v63 }
 0xddc   :  { %v7929_v12 = vadd.f32 %v7928_v16, %v12757_v39  ;;  %v13368_v39 = vrot.slane %v12791_v49, 1 }
 0xddd   :  { %v7974_v40 = vadd.f32 %v7973_v9, %v7972_v19  ;;  %v7995_v53 = vrot.slane %v7994_v25, 4  ;;  %v7942_v19 = vadd.f32 %v7941_v57, %v7940_v54  ;;  %v8105_v9 = vrot.slane %v8104_v14, 2 }
 0xdde   :  { %v8049_v63 = vrot.slane %v8048_v23, 1  ;;  %v8036_v16 = vadd.f32 %v13368_v39, %v12791_v49 }
 0xddf   :  { %v7975_v15 = vrot.slane %v7974_v40, 2  ;;  %v7996_v30 = vadd.f32 %v7995_v53, %v7994_v25  ;;  %v7964_v25 = vadd.f32 %v7963_v4, %v7962_v22  ;;  %v8084_v53 = vadd.f32 %v8083_v17, %v8082_v56 }
 0xde0   :  { %v12904_v34 = vpop.f32.mrf.mxu3  ;;  %v7943_v58 = vadd.f32 %v7942_v19, %v7907_v5  ;;  %v8106_v54 = vadd.f32 %v8105_v9, %v8104_v14  ;;  %v8050_v14 = vadd.f32 %v8049_v63, %v8048_v23 }
 0xde1   :  { %v8116_v20 = vadd.f32 %v8115_v3, %v12904_v34  ;;  %v8131_v59 = vmul.f32 %v12904_v34, %v12904_v34  ;;  %v7976_v33 = vadd.f32 %v7975_v15, %v7974_v40  ;;  %v7997_v42 = vrot.slane %v7996_v30, 2 }
 0xde2   :  { %v13367_v15 = vrot.slane %v12789_v38, 1  ;;  %v7965_v22 = vadd.f32 %v7964_v25, %v7929_v12  ;;  %v8085_v56 = vrot.slane %v8084_v53, 1 }
 0xde3   :  { %v8117_v21 = vrot.slane %v8116_v20, 4  ;;  %v8138_v47 = vadd.f32 %v8137_v48, %v8131_v59  ;;  %v7977_v28 = vrot.slane %v7976_v33, 1  ;;  %v7998_v11 = vadd.f32 %v7997_v42, %v7996_v30 }
 0xde4   :  { %v8014_v44 = vadd.f32 %v13367_v15, %v12789_v38  ;;  %v8072_v38 = vadd.f32 %v8071_v46, %v8070_v10 }
 0xde5   :  { %v8118_v29 = vadd.f32 %v8117_v21, %v8116_v20  ;;  %v8139_v3 = vrot.slane %v8138_v47, 4  ;;  %v7978_v57 = vadd.f32 %v7977_v28, %v7976_v33  ;;  %v7999_v40 = vrot.slane %v7998_v11, 1 }
 0xde6   :  { %v8107_v28 = vrot.slane %v8106_v54, 1  ;;  %v8086_v33 = vadd.f32 %v8085_v56, %v8084_v53 }
 0xde7   :  { %v8119_v2 = vrot.slane %v8118_v29, 2  ;;  %v8140_v27 = vadd.f32 %v8139_v3, %v8138_v47  ;;  %v7979_v4 = vadd.f32 %v7978_v57, %v7943_v58  ;;  %v8000_v17 = vadd.f32 %v7999_v40, %v7998_v11 }
 0xde8   :  { %v8108_v58 = vadd.f32 %v8107_v28, %v8106_v54  ;;  %v7856_v54 = vld [vmem:[%s13142_s4] sm:$0x1] }
 0xde9   :  { %v8120_v30 = vadd.f32 %v8119_v2, %v8118_v29  ;;  %v8141_v48 = vrot.slane %v8140_v27, 2  ;;  %v8001_v20 = vadd.f32 %v8000_v17, %v7965_v22  ;;  %v8015_v59 = vadd.f32 %v8014_v44, %v7979_v4 }
 0xdeb   :  { %v8121_v19 = vrot.slane %v8120_v30, 1  ;;  %v8142_v9 = vadd.f32 %v8141_v48, %v8140_v27  ;;  %v8037_v42 = vadd.f32 %v8036_v16, %v8001_v20  ;;  %v8051_v47 = vadd.f32 %v8050_v14, %v8015_v59 }
 0xded   :  { %v8122_v5 = vadd.f32 %v8121_v19, %v8120_v30  ;;  %v8143_v21 = vrot.slane %v8142_v9, 1  ;;  %v8073_v25 = vadd.f32 %v8072_v38, %v8037_v42  ;;  %v8087_v11 = vadd.f32 %v8086_v33, %v8051_v47  ;;  %v7857_v30 = vld [vmem:[%s13142_s4 + $0x1] sm:$0x1] }
 0xdef   :  { %v8144_v12 = vadd.f32 %v8143_v21, %v8142_v9  ;;  %v8109_v3 = vadd.f32 %v8108_v58, %v8073_v25  ;;  %v8123_v49 = vadd.f32 %v8122_v5, %v8087_v11 }
 0xdf1   :  { %v8145_v29 = vadd.f32 %v8144_v12, %v8109_v3  ;;  %v8146_v57 = vmul.f32 0.001953125, %v8123_v49  ;;  %v13370_v3 = vld [vmem:[#allocation35_spill] sm:$0xff]  ;;  %v13371_v49 = vld [vmem:[#allocation33_spill] sm:$0xff] }
 0xdf3   :  { %v8147_v23 = vmul.f32 0.001953125, %v8145_v29  ;;  %v8148_v63 = vmul.f32 %v8146_v57, %v8146_v57 }
 0xdf5   :  { %v8149_v40 = vsub.f32 %v8147_v23, %v8148_v63 }
 0xdf7   :  { %v8150_v15 = vmax.f32 %v8149_v40, 0.0 }
 0xdf9   :  { %v8151_v44 = vadd.f32 1e-05, %v8150_v15 }
 0xdfb   :  { %8545 = vrsqrt.f32 %v8151_v44  ;;  %vm8158_vm8 = vweird.f32 %v8151_v44 }
 0xe01   :  { %v8546_v10 = vpop.eup %8545 }
 0xe02   :  { %v8153_v53 = vmul.f32 %v8546_v10, %v8151_v44  ;;  %vm8159_vm7 = vweird.f32 %v8546_v10 }
 0xe03   :  { %vm8160_vm9 = vmor %vm8158_vm8, %vm8159_vm7 }
 0xe04   :  { %v8154_v46 = vmul.f32 %v8546_v10, %v8153_v53 }
 0xe06   :  { %v8155_v2 = vmul.f32 0.5, %v8154_v46  ;;  %v13373_v46 = vld [vmem:[#allocation37_spill] sm:$0xff] }
 0xe08   :  { %v8156_v27 = vsub.f32 1.5, %v8155_v2 }
 0xe0a   :  { %v8157_v22 = vmul.f32 %v8546_v10, %v8156_v27 }
 0xe0c   :  { %v8161_v56 = vsel %vm8160_vm9, %v8546_v10, %v8157_v22  ;;  %v13372_v10 = vld [vmem:[#allocation39_spill] sm:$0xff] }
 0xe0d   :  { %v8162_v4 = vmul.f32 %v8161_v56, %v7856_v54 }
 0xe0f   :  { %v12921_v17 = vperm.slane %v8162_v4, 0  ;;  %v8163_v16 = vmul.f32 %v8162_v4, %v8146_v57 }
 0xe11   :  { %v12925_v39 = vmul.f32 %v12921_v17, %v12904_v34  ;;  %v8164_v48 = vsub.f32 %v7857_v30, %v8163_v16  ;;  %v12932_v14 = vmul.f32 %v12921_v17, %v12889_v62  ;;  %v8198_v20 = vmul.f32 %v12921_v17, %v12498_v37  ;;  %v13369_v37 = vld [vmem:[#allocation9_spill] sm:$0xff]  ;;  %v13374_v30 = vld [vmem:[#allocation11_spill] sm:$0xff] }
 0xe12   :  { %v8166_v59 = vmul.f32 %v12921_v17, %v12491_v36  ;;  %v8182_v34 = vmul.f32 %v12921_v17, %v12632_v32  ;;  %v8199_v47 = vmul.f32 %v12921_v17, %v12511_v0  ;;  %v8167_v5 = vmul.f32 %v12921_v17, %v13369_v37  ;;  %v13377_v37 = vld [vmem:[#allocation14_spill] sm:$0xff] }
 0xe13   :  { %v12934_v28 = vperm.slane %v8164_v48, 0  ;;  %v8183_v36 = vmul.f32 %v12921_v17, %v12639_v1  ;;  %v8200_v0 = vmul.f32 %v12921_v17, %v13370_v3  ;;  %v8168_v29 = vmul.f32 %v12921_v17, %v13371_v49  ;;  %v13378_v3 = vld [vmem:[#allocation18_spill] sm:$0xff] }
 0xe14   :  { %v8184_v1 = vmul.f32 %v12921_v17, %v12643_v51  ;;  %v8201_v53 = vmul.f32 %v12921_v17, %v13372_v10  ;;  %v8169_v2 = vmul.f32 %v12921_v17, %v13373_v46  ;;  %v8185_v51 = vmul.f32 %v12921_v17, %v12647_v24 }
 0xe15   :  { %v8263_v19 = vadd.f32 %v12934_v28, %v8198_v20  ;;  %v8247_v9 = vadd.f32 %v12934_v28, %v8182_v34  ;;  %v8231_v38 = vadd.f32 %v12934_v28, %v8166_v59  ;;  %v8264_v32 = vadd.f32 %v12934_v28, %v8199_v47  ;;  %v13375_v20 = vld [vmem:[#allocation41_spill] sm:$0xff] }
 0xe16   :  { %v8248_v21 = vadd.f32 %v12934_v28, %v8183_v36  ;;  %v8232_v58 = vadd.f32 %v12934_v28, %v8167_v5  ;;  %v8265_v57 = vadd.f32 %v12934_v28, %v8200_v0  ;;  %v8249_v23 = vadd.f32 %v12934_v28, %v8184_v1 }
 0xe17   :  { %v8327_v33 = vmax.f32 %v8263_v19, 0.0  ;;  %v8311_v62 = vmax.f32 %v8247_v9, 0.0  ;;  %v8295_v42 = vmax.f32 %v8231_v38, 0.0  ;;  %v8328_v25 = vmax.f32 %v8264_v32, 0.0 }
 0xe18   :  { %v8312_v11 = vmax.f32 %v8248_v21, 0.0  ;;  %v8296_v12 = vmax.f32 %v8232_v58, 0.0  ;;  %v8233_v63 = vadd.f32 %v12934_v28, %v8168_v29  ;;  %v8329_v40 = vmax.f32 %v8265_v57, 0.0 }
 0xe19   :  { %8425 = vxpose.xlu0.b32.start [1/16] (narrow) %v8327_v33, 8  ;;  %8391 = vxpose.xlu2.b32.start [1/16] (narrow) %v8311_v62, 8  ;;  %v8313_v15 = vmax.f32 %v8249_v23, 0.0  ;;  %v8266_v27 = vadd.f32 %v12934_v28, %v8201_v53  ;;  %v8250_v54 = vadd.f32 %v12934_v28, %v8185_v51  ;;  %v8234_v22 = vadd.f32 %v12934_v28, %v8169_v2 }
 0xe1a   :  { %8359 = vxpose.xlu1.b32.start [1/16] (narrow) %v8295_v42, 8  ;;  %v8297_v44 = vmax.f32 %v8233_v63, 0.0  ;;  %v8202_v48 = vmul.f32 %v12921_v17, %v13374_v30  ;;  %v8170_v59 = vmul.f32 %v12921_v17, %v13375_v20  ;;  %v8186_v24 = vmul.f32 %v12921_v17, %v12651_v52  ;;  %v13376_v42 = vld [vmem:[#allocation16_spill] sm:$0xff] }
 0xe1b   :  { %v8330_v56 = vmax.f32 %v8266_v27, 0.0  ;;  %v8314_v4 = vmax.f32 %v8250_v54, 0.0  ;;  %v8298_v16 = vmax.f32 %v8234_v22, 0.0  ;;  %v8203_v47 = vmul.f32 %v12921_v17, %v13376_v42  ;;  %v13380_v27 = vld [vmem:[#allocation21_spill] sm:$0xff]  ;;  %v13381_v54 = vld [vmem:[#allocation20_spill] sm:$0xff] }
 0xe1c   :  { %v8267_v34 = vadd.f32 %v12934_v28, %v8202_v48  ;;  %v8251_v19 = vadd.f32 %v12934_v28, %v8186_v24  ;;  %v8235_v9 = vadd.f32 %v12934_v28, %v8170_v59  ;;  %v8171_v5 = vmul.f32 %v12921_v17, %v13377_v37  ;;  %v13382_v59 = vld [vmem:[#allocation23_spill] sm:$0xff]  ;;  %v13384_v37 = vld [vmem:[#allocation25_spill] sm:$0xff] }
 0xe1d   :  { %v8187_v52 = vmul.f32 %v12921_v17, %v12655_v45  ;;  %v8268_v36 = vadd.f32 %v12934_v28, %v8203_v47  ;;  %v8172_v0 = vmul.f32 %v12921_v17, %v13378_v3  ;;  %v8188_v45 = vmul.f32 %v12921_v17, %v12659_v61 }
 0xe1e   :  { %v8331_v38 = vmax.f32 %v8267_v34, 0.0  ;;  %v8315_v33 = vmax.f32 %v8251_v19, 0.0  ;;  %v8299_v62 = vmax.f32 %v8235_v9, 0.0  ;;  %v8236_v21 = vadd.f32 %v12934_v28, %v8171_v5  ;;  %v13383_v34 = vld [vmem:[#allocation22_spill] sm:$0xff] }
 0xe1f   :  { %v8252_v32 = vadd.f32 %v12934_v28, %v8187_v52  ;;  %v8332_v58 = vmax.f32 %v8268_v36, 0.0  ;;  %v8253_v29 = vadd.f32 %v12934_v28, %v8188_v45  ;;  %v8237_v1 = vadd.f32 %v12934_v28, %v8172_v0  ;;  %v13385_v52 = vld [vmem:[#allocation24_spill] sm:$0xff]  ;;  %v13386_v0 = vld [vmem:[#allocation26_spill] sm:$0xff] }
 0xe20   :  { %v8189_v61 = vmul.f32 %v12921_v17, %v12663_v41  ;;  %v8174_v22 = vmul.f32 %v12921_v17, %v13381_v54  ;;  %v8190_v41 = vmul.f32 %v12921_v17, %v12680_v8  ;;  %v8207_v24 = vmul.f32 %v12921_v17, %v13382_v59 }
 0xe21   :  { %8426 = vxpose.xlu0.b32.cont [2/16] (narrow) %v8328_v25, 8  ;;  %8392 = vxpose.xlu2.b32.cont [2/16] (narrow) %v8312_v11, 8  ;;  %v8316_v25 = vmax.f32 %v8252_v32, 0.0  ;;  %v8300_v11 = vmax.f32 %v8236_v21, 0.0  ;;  %v8317_v23 = vmax.f32 %v8253_v29, 0.0  ;;  %v8301_v63 = vmax.f32 %v8237_v1, 0.0 }
 0xe22   :  { %8360 = vxpose.xlu1.b32.cont [2/16] (narrow) %v8296_v12, 8  ;;  %v8204_v12 = vmul.f32 %v12921_v17, %v12561_v13  ;;  %v8205_v13 = vmul.f32 %v12921_v17, %v12569_v50  ;;  %v8254_v10 = vadd.f32 %v12934_v28, %v8189_v61  ;;  %v8206_v50 = vmul.f32 %v12921_v17, %v13380_v27 }
 0xe23   :  { %v8175_v19 = vmul.f32 %v12921_v17, %v13383_v34  ;;  %v8191_v8 = vmul.f32 %v12921_v17, %v12696_v18  ;;  %v8272_v9 = vadd.f32 %v12934_v28, %v8207_v24  ;;  %v8208_v5 = vmul.f32 %v12921_v17, %v13384_v37 }
 0xe24   :  { %v8269_v49 = vadd.f32 %v12934_v28, %v8204_v12  ;;  %v8318_v2 = vmax.f32 %v8254_v10, 0.0  ;;  %v8176_v36 = vmul.f32 %v12921_v17, %v13385_v52  ;;  %v8192_v18 = vmul.f32 %v12921_v17, %v12719_v43 }
 0xe25   :  { %v8273_v32 = vadd.f32 %v12934_v28, %v8208_v5  ;;  %v8209_v3 = vmul.f32 %v12921_v17, %v12601_v6  ;;  %v8177_v45 = vmul.f32 %v12921_v17, %v13386_v0  ;;  %v8193_v43 = vmul.f32 %v12921_v17, %v12747_v35 }
 0xe26   :  { %v8333_v57 = vmax.f32 %v8269_v49, 0.0  ;;  %v8257_v21 = vadd.f32 %v12934_v28, %v8192_v18  ;;  %v8194_v35 = vmul.f32 %v12921_v17, %v12775_v26  ;;  %v8195_v26 = vmul.f32 %v12921_v17, %v12818_v55 }
 0xe27   :  { %v8274_v49 = vadd.f32 %v12934_v28, %v8209_v3  ;;  %v8258_v29 = vadd.f32 %v12934_v28, %v8193_v43  ;;  %v8242_v1 = vadd.f32 %v12934_v28, %v8177_v45  ;;  %v8196_v55 = vmul.f32 %v12921_v17, %v12858_v31  ;;  %v13396_v45 = vld [vmem:[#allocation40_spill] sm:$0xff] }
 0xe28   :  { %v8217_v43 = vmul.f32 %v12921_v17, %v13396_v45 }
 0xe29   :  { %8427 = vxpose.xlu0.b32.cont [3/16] (narrow) %v8329_v40, 8  ;;  %8393 = vxpose.xlu2.b32.cont [3/16] (narrow) %v8313_v15, 8  ;;  %v13379_v40 = vld [vmem:[#allocation19_spill] sm:$0xff]  ;;  %v8261_v34 = vadd.f32 %v12934_v28, %v8196_v55 }
 0xe2a   :  { %8361 = vxpose.xlu1.b32.cont [3/16] (narrow) %v8297_v44, 8  ;;  %v8173_v15 = vmul.f32 %v12921_v17, %v13379_v40  ;;  %v8270_v44 = vadd.f32 %v12934_v28, %v8205_v13  ;;  %v13387_v13 = vld [vmem:[#allocation28_spill] sm:$0xff]  ;;  %v13388_v40 = vld [vmem:[#allocation27_spill] sm:$0xff] }
 0xe2b   :  { %v8210_v6 = vmul.f32 %v12921_v17, %v13387_v13  ;;  %v13398_v13 = vld [vmem:[#allocation12_spill] sm:$0xff] }
 0xe2c   :  { %v8238_v53 = vadd.f32 %v12934_v28, %v8173_v15  ;;  %v8334_v46 = vmax.f32 %v8270_v44, 0.0  ;;  %v8178_v15 = vmul.f32 %v12921_v17, %v13388_v40  ;;  %v8259_v44 = vadd.f32 %v12934_v28, %v8194_v35  ;;  %v13399_v35 = vld [vmem:[#allocation13_spill] sm:$0xff] }
 0xe2d   :  { %v8275_v61 = vadd.f32 %v12934_v28, %v8210_v6  ;;  %v8219_v6 = vmul.f32 %v12921_v17, %v13398_v13 }
 0xe2e   :  { %v8302_v51 = vmax.f32 %v8238_v53, 0.0  ;;  %v8243_v10 = vadd.f32 %v12934_v28, %v8178_v15 }
 0xe2f   :  { %v8339_v53 = vmax.f32 %v8275_v61, 0.0  ;;  %v8284_v40 = vadd.f32 %v12934_v28, %v8219_v6  ;;  %v8220_v61 = vmul.f32 %v12921_v17, %v13399_v35 }
 0xe31   :  { %8428 = vxpose.xlu0.b32.cont [4/16] (narrow) %v8330_v56, 8  ;;  %8394 = vxpose.xlu2.b32.cont [4/16] (narrow) %v8314_v4, 8  ;;  %v8271_v56 = vadd.f32 %v12934_v28, %v8206_v50  ;;  %v8255_v4 = vadd.f32 %v12934_v28, %v8190_v41  ;;  %v13390_v50 = vld [vmem:[#allocation29_spill] sm:$0xff]  ;;  %v8260_v41 = vadd.f32 %v12934_v28, %v8195_v26  ;;  %v8348_v15 = vmax.f32 %v8284_v40, 0.0 }
 0xe32   :  { %8362 = vxpose.xlu1.b32.cont [4/16] (narrow) %v8298_v16, 8  ;;  %v8239_v16 = vadd.f32 %v12934_v28, %v8174_v22  ;;  %v8179_v54 = vmul.f32 %v12921_v17, %v13390_v50 }
 0xe33   :  { %v8335_v30 = vmax.f32 %v8271_v56, 0.0  ;;  %v8319_v48 = vmax.f32 %v8255_v4, 0.0 }
 0xe34   :  { %v8303_v20 = vmax.f32 %v8239_v16, 0.0  ;;  %v8244_v56 = vadd.f32 %v12934_v28, %v8179_v54  ;;  %v8324_v16 = vmax.f32 %v8260_v41, 0.0 }
 0xe39   :  { %8429 = vxpose.xlu0.b32.cont [5/16] (narrow) %v8331_v38, 8  ;;  %8395 = vxpose.xlu2.b32.cont [5/16] (narrow) %v8315_v33, 8  ;;  %v8256_v38 = vadd.f32 %v12934_v28, %v8191_v8  ;;  %v8240_v33 = vadd.f32 %v12934_v28, %v8175_v19 }
 0xe3a   :  { %8363 = vxpose.xlu1.b32.cont [5/16] (narrow) %v8299_v62, 8  ;;  %v8336_v62 = vmax.f32 %v8272_v9, 0.0  ;;  %v8325_v9 = vmax.f32 %v8261_v34, 0.0 }
 0xe3b   :  { %v8320_v42 = vmax.f32 %v8256_v38, 0.0  ;;  %v8304_v47 = vmax.f32 %v8240_v33, 0.0  ;;  %v13392_v33 = vld [vmem:[#allocation32_spill] sm:$0xff] }
 0xe41   :  { %8430 = vxpose.xlu0.b32.cont [6/16] (narrow) %v8332_v58, 8  ;;  %8396 = vxpose.xlu2.b32.cont [6/16] (narrow) %v8316_v25, 8  ;;  %v8241_v58 = vadd.f32 %v12934_v28, %v8176_v36  ;;  %v8337_v25 = vmax.f32 %v8273_v32, 0.0  ;;  %v13393_v36 = vld [vmem:[#allocation34_spill] sm:$0xff] }
 0xe42   :  { %8364 = vxpose.xlu1.b32.cont [6/16] (narrow) %v8300_v11, 8  ;;  %v8321_v11 = vmax.f32 %v8257_v21, 0.0  ;;  %v13394_v21 = vld [vmem:[#allocation36_spill] sm:$0xff] }
 0xe43   :  { %v8305_v12 = vmax.f32 %v8241_v58, 0.0  ;;  %v8215_v58 = vmul.f32 %v12921_v17, %v13394_v21 }
 0xe49   :  { %8431 = vxpose.xlu0.b32.cont [7/16] (narrow) %v8333_v57, 8  ;;  %8397 = vxpose.xlu2.b32.cont [7/16] (narrow) %v8317_v23, 8  ;;  %v8338_v57 = vmax.f32 %v8274_v49, 0.0  ;;  %v8322_v23 = vmax.f32 %v8258_v29, 0.0  ;;  %v8282_v49 = vadd.f32 %v12934_v28, %v8217_v43 }
 0xe4a   :  { %8365 = vxpose.xlu1.b32.cont [7/16] (narrow) %v8301_v63, 8  ;;  %v8306_v63 = vmax.f32 %v8242_v1, 0.0  ;;  %v13397_v1 = vld [vmem:[#allocation10_spill] sm:$0xff] }
 0xe4b   :  { %v8346_v29 = vmax.f32 %v8282_v49, 0.0 }
 0xe51   :  { %8432 = vxpose.xlu0.b32.cont [8/16] (narrow) %v8334_v46, 8  ;;  %8398 = vxpose.xlu2.b32.cont [8/16] (narrow) %v8318_v2, 8  ;;  %v8323_v46 = vmax.f32 %v8259_v44, 0.0  ;;  %v8307_v2 = vmax.f32 %v8243_v10, 0.0  ;;  %v8285_v44 = vadd.f32 %v12934_v28, %v8220_v61 }
 0xe52   :  { %8366 = vxpose.xlu1.b32.cont [8/16] (narrow) %v8302_v51, 8  ;;  %v13389_v51 = vld [vmem:[#allocation30_spill] sm:$0xff] }
 0xe53   :  { %v8211_v27 = vmul.f32 %v12921_v17, %v13389_v51  ;;  %v8349_v10 = vmax.f32 %v8285_v44, 0.0 }
 0xe55   :  { %v8276_v22 = vadd.f32 %v12934_v28, %v8211_v27  ;;  %v13401_v27 = vld [vmem:[#allocation17_spill] sm:$0xff] }
 0xe56   :  { %v8222_v50 = vmul.f32 %v12921_v17, %v13401_v27 }
 0xe57   :  { %v8340_v4 = vmax.f32 %v8276_v22, 0.0  ;;  %v13402_v22 = vld [vmem:[#allocation6_spill] sm:$0xff] }
 0xe58   :  { %v8287_v54 = vadd.f32 %v12934_v28, %v8222_v50  ;;  %v8223_v41 = vmul.f32 %v12921_v17, %v13402_v22 }
 0xe59   :  { %8433 = vxpose.xlu0.b32.cont [9/16] (narrow) %v8335_v30, 8  ;;  %8399 = vxpose.xlu2.b32.cont [9/16] (narrow) %v8319_v48, 8  ;;  %v8308_v30 = vmax.f32 %v8244_v56, 0.0  ;;  %v8212_v48 = vmul.f32 %v12921_v17, %v12622_v60  ;;  %v8213_v60 = vmul.f32 %v12921_v17, %v12630_v7  ;;  %v8214_v7 = vmul.f32 %v12921_v17, %v13393_v36 }
 0xe5a   :  { %8367 = vxpose.xlu1.b32.cont [9/16] (narrow) %v8303_v20, 8  ;;  %v13391_v20 = vld [vmem:[#allocation31_spill] sm:$0xff]  ;;  %v8351_v26 = vmax.f32 %v8287_v54, 0.0  ;;  %v8288_v56 = vadd.f32 %v12934_v28, %v8223_v41 }
 0xe5b   :  { %v8180_v59 = vmul.f32 %v12921_v17, %v13391_v20  ;;  %v8277_v24 = vadd.f32 %v12934_v28, %v8212_v48  ;;  %v8278_v31 = vadd.f32 %v12934_v28, %v8213_v60  ;;  %v8279_v18 = vadd.f32 %v12934_v28, %v8214_v7 }
 0xe5c   :  { %v8294_v7 = vadd.f32 %v12934_v28, %v12925_v39 }
 0xe5d   :  { %v8245_v19 = vadd.f32 %v12934_v28, %v8180_v59  ;;  %v8341_v8 = vmax.f32 %v8277_v24, 0.0  ;;  %v8342_v37 = vmax.f32 %v8278_v31, 0.0  ;;  %v8343_v32 = vmax.f32 %v8279_v18, 0.0  ;;  %v13404_v59 = vld [vmem:[#allocation7_spill] sm:$0xff] }
 0xe5e   :  { %v8225_v55 = vmul.f32 %v12921_v17, %v13404_v59  ;;  %v8358_v18 = vmax.f32 %v8294_v7, 0.0 }
 0xe5f   :  { %v8309_v38 = vmax.f32 %v8245_v19, 0.0  ;;  %v13405_v19 = vld [vmem:[#allocation5_spill] sm:$0xff] }
 0xe60   :  { %v8290_v24 = vadd.f32 %v12934_v28, %v8225_v55 }
 0xe61   :  { %8434 = vxpose.xlu0.b32.cont [10/16] (narrow) %v8336_v62, 8  ;;  %8400 = vxpose.xlu2.b32.cont [10/16] (narrow) %v8320_v42, 8  ;;  %v8181_v62 = vmul.f32 %v12921_v17, %v13392_v33  ;;  %v8262_v42 = vadd.f32 %v12934_v28, %v12932_v14  ;;  %v8280_v14 = vadd.f32 %v12934_v28, %v8215_v58 }
 0xe62   :  { %8368 = vxpose.xlu1.b32.cont [10/16] (narrow) %v8304_v47, 8  ;;  %v8354_v34 = vmax.f32 %v8290_v24, 0.0 }
 0xe63   :  { %v8246_v47 = vadd.f32 %v12934_v28, %v8181_v62  ;;  %v8326_v5 = vmax.f32 %v8262_v42, 0.0  ;;  %v13406_v62 = vld [vmem:[#allocation8_spill] sm:$0xff] }
 0xe64   :  { %v8227_v31 = vmul.f32 %v12921_v17, %v13406_v62 }
 0xe65   :  { %v8310_v52 = vmax.f32 %v8246_v47, 0.0 }
 0xe66   :  { %v8292_v42 = vadd.f32 %v12934_v28, %v8227_v31 }
 0xe68   :  { %v8356_v47 = vmax.f32 %v8292_v42, 0.0 }
 0xe69   :  { %8435 = vxpose.xlu0.b32.cont [11/16] (narrow) %v8337_v25, 8  ;;  %8401 = vxpose.xlu2.b32.cont [11/16] (narrow) %v8321_v11, 8  ;;  %v8344_v25 = vmax.f32 %v8280_v14, 0.0  ;;  %v13395_v11 = vld [vmem:[#allocation38_spill] sm:$0xff] }
 0xe6a   :  { %8369 = vxpose.xlu1.b32.cont [11/16] (narrow) %v8305_v12, 8  ;;  %v8216_v12 = vmul.f32 %v12921_v17, %v13395_v11 }
 0xe6c   :  { %v8281_v3 = vadd.f32 %v12934_v28, %v8216_v12 }
 0xe6e   :  { %v8345_v0 = vmax.f32 %v8281_v3, 0.0 }
 0xe71   :  { %8436 = vxpose.xlu0.b32.cont [12/16] (narrow) %v8338_v57, 8  ;;  %8402 = vxpose.xlu2.b32.cont [12/16] (narrow) %v8322_v23, 8  ;;  %v8218_v57 = vmul.f32 %v12921_v17, %v13397_v1 }
 0xe72   :  { %8370 = vxpose.xlu1.b32.cont [12/16] (narrow) %v8306_v63, 8 }
 0xe73   :  { %v8283_v23 = vadd.f32 %v12934_v28, %v8218_v57 }
 0xe75   :  { %v8347_v63 = vmax.f32 %v8283_v23, 0.0 }
 0xe79   :  { %8437 = vxpose.xlu0.b32.cont [13/16] (narrow) %v8339_v53, 8  ;;  %8403 = vxpose.xlu2.b32.cont [13/16] (narrow) %v8323_v46, 8  ;;  %v13400_v53 = vld [vmem:[#allocation15_spill] sm:$0xff] }
 0xe7a   :  { %8371 = vxpose.xlu1.b32.cont [13/16] (narrow) %v8307_v2, 8  ;;  %v8221_v46 = vmul.f32 %v12921_v17, %v13400_v53 }
 0xe7c   :  { %v8286_v2 = vadd.f32 %v12934_v28, %v8221_v46 }
 0xe7e   :  { %v8350_v51 = vmax.f32 %v8286_v2, 0.0 }
 0xe81   :  { %8438 = vxpose.xlu0.b32.cont [14/16] (narrow) %v8340_v4, 8  ;;  %8404 = vxpose.xlu2.b32.cont [14/16] (narrow) %v8324_v16, 8  ;;  %v8352_v4 = vmax.f32 %v8288_v56, 0.0  ;;  %v13403_v16 = vld [vmem:[#allocation4_spill] sm:$0xff] }
 0xe82   :  { %8372 = vxpose.xlu1.b32.cont [14/16] (narrow) %v8308_v30, 8  ;;  %v8224_v30 = vmul.f32 %v12921_v17, %v13403_v16 }
 0xe84   :  { %v8289_v48 = vadd.f32 %v12934_v28, %v8224_v30 }
 0xe86   :  { %v8353_v20 = vmax.f32 %v8289_v48, 0.0 }
 0xe89   :  { %8439 = vxpose.xlu0.b32.cont [15/16] (narrow) %v8341_v8, 8  ;;  %8405 = vxpose.xlu2.b32.cont [15/16] (narrow) %v8325_v9, 8  ;;  %v8226_v8 = vmul.f32 %v12921_v17, %v13405_v19 }
 0xe8a   :  { %8373 = vxpose.xlu1.b32.cont [15/16] (narrow) %v8309_v38, 8 }
 0xe8b   :  { %v8291_v60 = vadd.f32 %v12934_v28, %v8226_v8 }
 0xe8d   :  { %v8355_v33 = vmax.f32 %v8291_v60, 0.0 }
 0xe91   :  { %8440 = vxpose.xlu0.b32.end [16/16] (narrow) %v8342_v37, 8  ;;  %8406 = vxpose.xlu2.b32.end [16/16] (narrow) %v8326_v5, 8  ;;  %v13407_v37 = vld [vmem:[#allocation42_spill] sm:$0xff] }
 0xe92   :  { %8374 = vxpose.xlu1.b32.end [16/16] (narrow) %v8310_v52, 8  ;;  %v8228_v5 = vmul.f32 %v12921_v17, %v13407_v37 }
 0xe94   :  { %v8293_v52 = vadd.f32 %v12934_v28, %v8228_v5 }
 0xe96   :  { %v8357_v36 = vmax.f32 %v8293_v52, 0.0 }
 0xe99   :  { %8457 = vxpose.xlu2.b32.start [1/16] (narrow) %v8343_v32, 8 }
 0xea1   :  { %8458 = vxpose.xlu2.b32.cont [2/16] (narrow) %v8344_v25, 8 }
 0xea9   :  { %8459 = vxpose.xlu2.b32.cont [3/16] (narrow) %v8345_v0, 8 }
 0xeb1   :  { %8460 = vxpose.xlu2.b32.cont [4/16] (narrow) %v8346_v29, 8 }
 0xeb2   :  { %v8407_v9 = vpop.trf.xlu2 }
 0xeb3   :  { %8424 = vst [vmem:[%s13143_s5 + $0x8] sm:$0xff] %v8407_v9 }
 0xeb9   :  { %8461 = vxpose.xlu2.b32.cont [5/16] (narrow) %v8347_v63, 8 }
 0xebd   :  { %v8441_v38 = vpop.trf.xlu0 }
 0xebe   :  { %8496 = vst [vmem:[%s13143_s5 + $0x10] sm:$0xff] %v8441_v38  ;;  %v8375_v32 = vpop.trf.xlu1 }
 0xebf   :  { %8423 = vst [vmem:[%s13143_s5] sm:$0xff] %v8375_v32 }
 0xec1   :  { %8462 = vxpose.xlu2.b32.cont [6/16] (narrow) %v8348_v15, 8 }
 0xec9   :  { %8463 = vxpose.xlu2.b32.cont [7/16] (narrow) %v8349_v10, 8 }
 0xed1   :  { %8464 = vxpose.xlu2.b32.cont [8/16] (narrow) %v8350_v51, 8 }
 0xed9   :  { %8465 = vxpose.xlu2.b32.cont [9/16] (narrow) %v8351_v26, 8 }
 0xee1   :  { %8466 = vxpose.xlu2.b32.cont [10/16] (narrow) %v8352_v4, 8 }
 0xee9   :  { %8467 = vxpose.xlu2.b32.cont [11/16] (narrow) %v8353_v20, 8 }
 0xef1   :  { %8468 = vxpose.xlu2.b32.cont [12/16] (narrow) %v8354_v34, 8 }
 0xef9   :  { %8469 = vxpose.xlu2.b32.cont [13/16] (narrow) %v8355_v33, 8 }
 0xf01   :  { %8470 = vxpose.xlu2.b32.cont [14/16] (narrow) %v8356_v47, 8 }
 0xf09   :  { %8471 = vxpose.xlu2.b32.cont [15/16] (narrow) %v8357_v36, 8 }
 0xf11   :  { %8472 = vxpose.xlu2.b32.end [16/16] (narrow) %v8358_v18, 8 }
 0xf32   :  { %v8473_v21 = vpop.trf.xlu2 }
 0xf33   :  { %8497 = vst [vmem:[%s13143_s5 + $0x18] sm:$0xff] %v8473_v21 }

</bundles_post_ra>
